<compile_context>
chip_gen: v7x
topology: tpu7x:2x2x1
jax: 0.10.0
libtpu: 0.0.40
codegen_flags: <defaults>
</compile_context>

<pallas_src>
import math

import jax
import jax.numpy as jnp
from jax.experimental import pallas as pl
from jax.experimental.pallas import tpu as pltpu

# ----------------------------- model dimensions ------------------------------
B, S, C = 2, 8, 4          # batch, seq_len, n_channels
D, H = 32, 4               # d_model, n_heads (constructor args, chosen small)
HD = D // H                # head_dim
FF = 2048                  # nn.TransformerEncoderLayer default dim_feedforward
NLAYERS = 4                # nn.TransformerEncoder(num_layers=4)
EPS = 1e-5                 # LayerNorm eps (PyTorch default)


# --------------------------------- kernel ------------------------------------
def fused_forward_kernel(x_ref, posb_ref, w_in_ref,
                         wqkv_ref, bqkv_ref, wo_ref, small_ref,
                         w1_ref, b1_ref, w2_ref,
                         wc_ref, bc_ref, o_ref):
    """Full forward for one batch element (grid over B)."""

    def layer_norm(z, g, beta):
        mu = jnp.mean(z, axis=-1, keepdims=True)
        c = z - mu
        var = jnp.mean(c * c, axis=-1, keepdims=True)
        return c * jax.lax.rsqrt(var + EPS) * g + beta

    # input projection + (pos + b_in) : (S, C) @ (C, D) + (S, D)
    xb = x_ref[0]                                                  # (S, C)
    h = jnp.dot(xb, w_in_ref[...],
                preferred_element_type=jnp.float32) + posb_ref[...]  # (S, D)

    for li in range(NLAYERS):                                      # static unroll
        wqkv = wqkv_ref[li]                                        # (D, 3D), Q pre-scaled
        bqkv = bqkv_ref[li]                                        # (1, 3D), Q pre-scaled
        wo = wo_ref[li]                                            # (D, D)
        small = small_ref[li]                                      # (6, D)
        bo = small[0:1, :]
        ln1w = small[1:2, :]
        ln1b = small[2:3, :]
        b2 = small[3:4, :]
        ln2w = small[4:5, :]
        ln2b = small[5:6, :]
        w1 = w1_ref[li].astype(jnp.float32)                        # (D, FF)
        b1 = b1_ref[li]                                            # (1, FF)
        w2 = w2_ref[li].astype(jnp.float32)                        # (FF, D)

        # ---- multi-head self attention (per-head, concat folded into Wo) ----
        qkv = jnp.dot(h, wqkv, preferred_element_type=jnp.float32) + bqkv  # (S, 3D)
        attn = jnp.zeros((S, D), jnp.float32)
        for hh in range(H):
            qh = qkv[:, hh * HD:(hh + 1) * HD]                     # (S, HD), scaled
            kh = qkv[:, D + hh * HD:D + (hh + 1) * HD]
            vh = qkv[:, 2 * D + hh * HD:2 * D + (hh + 1) * HD]
            s = jnp.dot(qh, kh.T, preferred_element_type=jnp.float32)   # (S, S)
            s = s - jnp.max(s, axis=-1, keepdims=True)
            p = jnp.exp(s)
            p = p * pl.reciprocal(jnp.sum(p, axis=-1, keepdims=True), approx=True)
            ctx = jnp.dot(p, vh, preferred_element_type=jnp.float32)    # (S, HD)
            attn = attn + jnp.dot(ctx, wo[hh * HD:(hh + 1) * HD, :],
                                  preferred_element_type=jnp.float32)
        # residual + LayerNorm 1 (post-norm)
        x1 = layer_norm(h + attn + bo, ln1w, ln1b)

        # ---- feed forward (ReLU) ----
        hmid = jnp.maximum(
            jnp.dot(x1, w1, preferred_element_type=jnp.float32) + b1, 0.0)
        ffn = jnp.dot(hmid, w2, preferred_element_type=jnp.float32) + b2

        # residual + LayerNorm 2
        h = layer_norm(x1 + ffn, ln2w, ln2b)

    # ---- mean over sequence + classifier (1/S folded into wc at pack time) ----
    pooled = jnp.sum(h, axis=0, keepdims=True)                     # (1, D)
    o_ref[0] = jnp.dot(pooled, wc_ref[...],
                       preferred_element_type=jnp.float32) + bc_ref[...]


# ------------------------------ pallas wrapper --------------------------------
def _full_spec(a):
    """Whole-array VMEM block with a constant index map (resident across grid)."""
    n = a.ndim
    return pl.BlockSpec(a.shape, lambda b, n=n: (0,) * n)


def forward(x, packed):
    (posb, w_in, wqkv_all, bqkv_all, wo_all, small_all,
     w1_all, b1_all, w2_all, wc, bc) = packed

    out = pl.pallas_call(
        fused_forward_kernel,
        out_shape=jax.ShapeDtypeStruct((B, 1, 2), jnp.float32),
        grid=(B,),
        in_specs=[
            pl.BlockSpec((1, S, C), lambda b: (b, 0, 0)),   # x: one batch element / step
            _full_spec(posb), _full_spec(w_in),
            _full_spec(wqkv_all), _full_spec(bqkv_all), _full_spec(wo_all),
            _full_spec(small_all),
            _full_spec(w1_all), _full_spec(b1_all), _full_spec(w2_all),
            _full_spec(wc), _full_spec(bc),
        ],
        out_specs=pl.BlockSpec((1, 1, 2), lambda b: (b, 0, 0)),
        compiler_params=pltpu.CompilerParams(
            dimension_semantics=("parallel",)),
    )(x, posb, w_in, wqkv_all, bqkv_all, wo_all, small_all,
      w1_all, b1_all, w2_all, wc, bc)
    return out.reshape(B, 2)


# ----------------------------- parameter handling ------------------------------
def init_params(key):
    """PyTorch-equivalent parameters (FFN weights stored in bf16 for inference)."""
    def dense(k, shape, scale=0.05):
        return (scale * jax.random.normal(k, shape)).astype(jnp.float32)

    k = jax.random.split(key, 5)
    pos = dense(k[0], (S, D), 0.02)        # learnable positional encoding
    w_in = dense(k[1], (C, D))
    b_in = dense(k[2], (1, D), 0.02)
    wc = dense(k[3], (D, 2))
    bc = dense(k[4], (1, 2), 0.02)

    layers = []
    for li in range(NLAYERS):
        lk = jax.random.split(jax.random.fold_in(key, 100 + li), 8)
        layers.append(dict(
            wqkv=dense(lk[0], (D, 3 * D)),
            bqkv=dense(lk[1], (1, 3 * D), 0.02),
            wo=dense(lk[2], (D, D)),
            bo=dense(lk[3], (1, D), 0.02),
            ln1w=jnp.ones((1, D), jnp.float32),
            ln1b=jnp.zeros((1, D), jnp.float32),
            w1=dense(lk[4], (D, FF)).astype(jnp.bfloat16),
            b1=dense(lk[5], (1, FF), 0.02),
            w2=dense(lk[6], (FF, D), 0.02).astype(jnp.bfloat16),
            b2=dense(lk[7], (1, D), 0.02),
            ln2w=jnp.ones((1, D), jnp.float32),
            ln2b=jnp.zeros((1, D), jnp.float32),
        ))
    return dict(pos=pos, w_in=w_in, b_in=b_in, layers=layers, wc=wc, bc=bc)


def pack_params(params):
    """Stack per-layer weights, fold biases/scales, pack tiny vectors."""
    scale = 1.0 / math.sqrt(HD)
    qscale = jnp.concatenate(
        [jnp.full((1, D), scale, jnp.float32), jnp.ones((1, 2 * D), jnp.float32)],
        axis=1)                                                        # (1, 3D)

    posb = params["pos"] + params["b_in"]                              # (S, D)
    ls = params["layers"]
    wqkv_all = jnp.stack([l["wqkv"] * qscale for l in ls])             # (NL, D, 3D)
    bqkv_all = jnp.stack([l["bqkv"] * qscale for l in ls])             # (NL, 1, 3D)
    wo_all = jnp.stack([l["wo"] for l in ls])                          # (NL, D, D)
    small_all = jnp.stack([jnp.concatenate(
        [l["bo"], l["ln1w"], l["ln1b"], l["b2"], l["ln2w"], l["ln2b"]], axis=0)
        for l in ls])                                                  # (NL, 6, D)
    w1_all = jnp.stack([l["w1"] for l in ls])                          # (NL, D, FF) bf16
    b1_all = jnp.stack([l["b1"] for l in ls])                          # (NL, 1, FF)
    w2_all = jnp.stack([l["w2"] for l in ls])                          # (NL, FF, D) bf16
    wc_scaled = params["wc"] * (1.0 / S)                               # fold mean-pool
    return (posb, params["w_in"], wqkv_all, bqkv_all, wo_all, small_all,
            w1_all, b1_all, w2_all, wc_scaled, params["bc"])


# ------------------------------ pure-JAX reference -----------------------------
def reference_forward(x, params):
    def layer_norm(z, g, beta):
        mu = jnp.mean(z, axis=-1, keepdims=True)
        var = jnp.mean((z - mu) ** 2, axis=-1, keepdims=True)
        return (z - mu) * jax.lax.rsqrt(var + EPS) * g + beta

    scale = 1.0 / math.sqrt(HD)
    h = x @ params["w_in"] + params["b_in"] + params["pos"]            # (B, S, D)
    for l in params["layers"]:
        qkv = h @ l["wqkv"] + l["bqkv"]
        q = qkv[..., :D].reshape(B, S, H, HD) * scale
        k = qkv[..., D:2 * D].reshape(B, S, H, HD)
        v = qkv[..., 2 * D:].reshape(B, S, H, HD)
        s = jnp.einsum("bqhd,bkhd->bhqk", q, k)
        p = jax.nn.softmax(s, axis=-1)
        ctx = jnp.einsum("bhqk,bkhd->bqhd", p, v).reshape(B, S, D)
        attn = ctx @ l["wo"] + l["bo"]
        h1 = layer_norm(h + attn, l["ln1w"], l["ln1b"])
        w1 = l["w1"].astype(jnp.float32)
        w2 = l["w2"].astype(jnp.float32)
        ffn = jnp.maximum(h1 @ w1 + l["b1"], 0.0) @ w2 + l["b2"]
        h = layer_norm(h1 + ffn, l["ln2w"], l["ln2b"])
    pooled = jnp.mean(h, axis=1)
    return pooled @ params["wc"] + params["bc"]


# ----------------------------------- main ---------------------------------------
if __name__ == "__main__":
    key = jax.random.PRNGKey(0)
    kx, kp = jax.random.split(key)
    x = jax.random.normal(kx, (B, S, C), dtype=jnp.float32)
    params = init_params(kp)
    packed = pack_params(params)

    out = jax.jit(forward)(x, packed)
    out = jax.block_until_ready(out)
    assert out.shape == (B, 2) and out.dtype == jnp.float32

    ref = jax.block_until_ready(jax.jit(reference_forward)(x, params))
    if not jnp.allclose(out, ref, atol=1e-2, rtol=1e-2):
        raise AssertionError(f"kernel/reference mismatch:\n{out}\n{ref}")

    print("KERNEL_OK")
</pallas_src>

<mosaic_0001>
module attributes {stable_mosaic.version = 11 : i64} {
  func.func @fused_forward_kernel(%arg0: i32, %arg1: memref<1x8x4xf32, #tpu.memory_space<vmem>>, %arg2: memref<8x32xf32, #tpu.memory_space<vmem>>, %arg3: memref<4x32xf32, #tpu.memory_space<vmem>>, %arg4: memref<4x32x96xf32, #tpu.memory_space<vmem>>, %arg5: memref<4x1x96xf32, #tpu.memory_space<vmem>>, %arg6: memref<4x32x32xf32, #tpu.memory_space<vmem>>, %arg7: memref<4x6x32xf32, #tpu.memory_space<vmem>>, %arg8: memref<4x32x2048xbf16, #tpu.memory_space<vmem>>, %arg9: memref<4x1x2048xf32, #tpu.memory_space<vmem>>, %arg10: memref<4x2048x32xbf16, #tpu.memory_space<vmem>>, %arg11: memref<32x2xf32, #tpu.memory_space<vmem>>, %arg12: memref<1x2xf32, #tpu.memory_space<vmem>>, %arg13: memref<1x1x2xf32, #tpu.memory_space<vmem>>) attributes {dimension_semantics = [#tpu.dimension_semantics<parallel>], iteration_bounds = array<i64: 2>, scalar_prefetch = 0 : i64, scratch_operands = 0 : i64, tpu.core_type = #tpu.core_type<tc>, window_params = [{transform_indices = @transform_0, window_bounds = array<i64: 1, 8, 4>}, {pipeline_mode = #tpu.pipeline_mode<synchronous>, transform_indices = @transform_1, window_bounds = array<i64: 8, 32>}, {pipeline_mode = #tpu.pipeline_mode<synchronous>, transform_indices = @transform_2, window_bounds = array<i64: 4, 32>}, {pipeline_mode = #tpu.pipeline_mode<synchronous>, transform_indices = @transform_3, window_bounds = array<i64: 4, 32, 96>}, {pipeline_mode = #tpu.pipeline_mode<synchronous>, transform_indices = @transform_4, window_bounds = array<i64: 4, 1, 96>}, {pipeline_mode = #tpu.pipeline_mode<synchronous>, transform_indices = @transform_5, window_bounds = array<i64: 4, 32, 32>}, {pipeline_mode = #tpu.pipeline_mode<synchronous>, transform_indices = @transform_6, window_bounds = array<i64: 4, 6, 32>}, {pipeline_mode = #tpu.pipeline_mode<synchronous>, transform_indices = @transform_7, window_bounds = array<i64: 4, 32, 2048>}, {pipeline_mode = #tpu.pipeline_mode<synchronous>, transform_indices = @transform_8, window_bounds = array<i64: 4, 1, 2048>}, {pipeline_mode = #tpu.pipeline_mode<synchronous>, transform_indices = @transform_9, window_bounds = array<i64: 4, 2048, 32>}, {pipeline_mode = #tpu.pipeline_mode<synchronous>, transform_indices = @transform_10, window_bounds = array<i64: 32, 2>}, {pipeline_mode = #tpu.pipeline_mode<synchronous>, transform_indices = @transform_11, window_bounds = array<i64: 1, 2>}, {transform_indices = @transform_12, window_bounds = array<i64: 1, 1, 2>}]} {
    %c0 = arith.constant 0 : index
    %c0_0 = arith.constant 0 : index
    %c0_1 = arith.constant 0 : index
    %0 = vector.load %arg1[%c0, %c0_0, %c0_1] : memref<1x8x4xf32, #tpu.memory_space<vmem>>, vector<1x8x4xf32>
    %1 = vector.shape_cast %0 : vector<1x8x4xf32> to vector<8x4xf32>
    %c0_2 = arith.constant 0 : index
    %c0_3 = arith.constant 0 : index
    %2 = vector.load %arg3[%c0_2, %c0_3] : memref<4x32xf32, #tpu.memory_space<vmem>>, vector<4x32xf32>
    %cst = arith.constant dense<0.000000e+00> : vector<8x32xf32>
    %3 = tpu.matmul %1, %2, %cst {dimension_numbers = #tpu.dot_dimension_numbers<[1], [0], [0], [1], [0, 0, 1, 1], [], []>} : vector<8x4xf32>, vector<4x32xf32>, vector<8x32xf32> -> vector<8x32xf32>
    %c0_4 = arith.constant 0 : index
    %c0_5 = arith.constant 0 : index
    %4 = vector.load %arg2[%c0_4, %c0_5] : memref<8x32xf32, #tpu.memory_space<vmem>>, vector<8x32xf32>
    %5 = arith.addf %3, %4 : vector<8x32xf32>
    %c0_6 = arith.constant 0 : index
    %c0_7 = arith.constant 0 : index
    %c0_8 = arith.constant 0 : index
    %6 = vector.load %arg4[%c0_6, %c0_7, %c0_8] : memref<4x32x96xf32, #tpu.memory_space<vmem>>, vector<1x32x96xf32>
    %7 = vector.shape_cast %6 : vector<1x32x96xf32> to vector<32x96xf32>
    %c0_9 = arith.constant 0 : index
    %c0_10 = arith.constant 0 : index
    %c0_11 = arith.constant 0 : index
    %8 = vector.load %arg5[%c0_9, %c0_10, %c0_11] : memref<4x1x96xf32, #tpu.memory_space<vmem>>, vector<1x1x96xf32>
    %9 = vector.shape_cast %8 : vector<1x1x96xf32> to vector<1x96xf32>
    %c0_12 = arith.constant 0 : index
    %c0_13 = arith.constant 0 : index
    %c0_14 = arith.constant 0 : index
    %10 = vector.load %arg6[%c0_12, %c0_13, %c0_14] : memref<4x32x32xf32, #tpu.memory_space<vmem>>, vector<1x32x32xf32>
    %11 = vector.shape_cast %10 : vector<1x32x32xf32> to vector<32x32xf32>
    %c0_15 = arith.constant 0 : index
    %c0_16 = arith.constant 0 : index
    %c0_17 = arith.constant 0 : index
    %12 = vector.load %arg7[%c0_15, %c0_16, %c0_17] : memref<4x6x32xf32, #tpu.memory_space<vmem>>, vector<1x6x32xf32>
    %13 = vector.shape_cast %12 : vector<1x6x32xf32> to vector<6x32xf32>
    %14 = vector.extract_strided_slice %13 {offsets = [0, 0], sizes = [1, 32], strides = [1, 1]} : vector<6x32xf32> to vector<1x32xf32>
    %15 = vector.extract_strided_slice %13 {offsets = [1, 0], sizes = [1, 32], strides = [1, 1]} : vector<6x32xf32> to vector<1x32xf32>
    %16 = vector.extract_strided_slice %13 {offsets = [2, 0], sizes = [1, 32], strides = [1, 1]} : vector<6x32xf32> to vector<1x32xf32>
    %17 = vector.extract_strided_slice %13 {offsets = [3, 0], sizes = [1, 32], strides = [1, 1]} : vector<6x32xf32> to vector<1x32xf32>
    %18 = vector.extract_strided_slice %13 {offsets = [4, 0], sizes = [1, 32], strides = [1, 1]} : vector<6x32xf32> to vector<1x32xf32>
    %19 = vector.extract_strided_slice %13 {offsets = [5, 0], sizes = [1, 32], strides = [1, 1]} : vector<6x32xf32> to vector<1x32xf32>
    %c0_18 = arith.constant 0 : index
    %c0_19 = arith.constant 0 : index
    %c0_20 = arith.constant 0 : index
    %20 = vector.load %arg8[%c0_18, %c0_19, %c0_20] : memref<4x32x2048xbf16, #tpu.memory_space<vmem>>, vector<1x32x2048xbf16>
    %21 = vector.shape_cast %20 : vector<1x32x2048xbf16> to vector<32x2048xbf16>
    %22 = arith.extf %21 : vector<32x2048xbf16> to vector<32x2048xf32>
    %c0_21 = arith.constant 0 : index
    %c0_22 = arith.constant 0 : index
    %c0_23 = arith.constant 0 : index
    %23 = vector.load %arg9[%c0_21, %c0_22, %c0_23] : memref<4x1x2048xf32, #tpu.memory_space<vmem>>, vector<1x1x2048xf32>
    %24 = vector.shape_cast %23 : vector<1x1x2048xf32> to vector<1x2048xf32>
    %c0_24 = arith.constant 0 : index
    %c0_25 = arith.constant 0 : index
    %c0_26 = arith.constant 0 : index
    %25 = vector.load %arg10[%c0_24, %c0_25, %c0_26] : memref<4x2048x32xbf16, #tpu.memory_space<vmem>>, vector<1x2048x32xbf16>
    %26 = vector.shape_cast %25 : vector<1x2048x32xbf16> to vector<2048x32xbf16>
    %27 = arith.extf %26 : vector<2048x32xbf16> to vector<2048x32xf32>
    %cst_27 = arith.constant dense<0.000000e+00> : vector<8x96xf32>
    %28 = tpu.matmul %5, %7, %cst_27 {dimension_numbers = #tpu.dot_dimension_numbers<[1], [0], [0], [1], [0, 0, 1, 1], [], []>} : vector<8x32xf32>, vector<32x96xf32>, vector<8x96xf32> -> vector<8x96xf32>
    %29 = vector.broadcast %9 : vector<1x96xf32> to vector<8x96xf32>
    %30 = arith.addf %28, %29 : vector<8x96xf32>
    %cst_28 = arith.constant 0.000000e+00 : f32
    %31 = vector.broadcast %cst_28 : f32 to vector<8x32xf32>
    %32 = vector.extract_strided_slice %30 {offsets = [0, 0], sizes = [8, 8], strides = [1, 1]} : vector<8x96xf32> to vector<8x8xf32>
    %33 = vector.extract_strided_slice %30 {offsets = [0, 32], sizes = [8, 8], strides = [1, 1]} : vector<8x96xf32> to vector<8x8xf32>
    %34 = vector.extract_strided_slice %30 {offsets = [0, 64], sizes = [8, 8], strides = [1, 1]} : vector<8x96xf32> to vector<8x8xf32>
    %35 = tpu.transpose %33, [1, 0] : vector<8x8xf32> -> vector<8x8xf32>
    %cst_29 = arith.constant dense<0.000000e+00> : vector<8x8xf32>
    %36 = tpu.matmul %32, %35, %cst_29 {dimension_numbers = #tpu.dot_dimension_numbers<[1], [0], [0], [1], [0, 0, 1, 1], [], []>} : vector<8x8xf32>, vector<8x8xf32>, vector<8x8xf32> -> vector<8x8xf32>
    %cst_30 = arith.constant dense<0xFF800000> : vector<8xf32>
    %37 = vector.multi_reduction <maximumf>, %36, %cst_30 [1] : vector<8x8xf32> to vector<8xf32>
    %38 = vector.shape_cast %37 : vector<8xf32> to vector<8x1xf32>
    %39 = vector.broadcast %38 : vector<8x1xf32> to vector<8x8xf32>
    %40 = arith.subf %36, %39 : vector<8x8xf32>
    %41 = math.exp %40 : vector<8x8xf32>
    %cst_31 = arith.constant dense<0.000000e+00> : vector<8xf32>
    %42 = vector.multi_reduction <add>, %41, %cst_31 [1] : vector<8x8xf32> to vector<8xf32>
    %43 = vector.shape_cast %42 : vector<8xf32> to vector<8x1xf32>
    %44 = tpu.reciprocal %43 {approx = true} : vector<8x1xf32> -> vector<8x1xf32>
    %45 = vector.broadcast %44 : vector<8x1xf32> to vector<8x8xf32>
    %46 = arith.mulf %41, %45 : vector<8x8xf32>
    %cst_32 = arith.constant dense<0.000000e+00> : vector<8x8xf32>
    %47 = tpu.matmul %46, %34, %cst_32 {dimension_numbers = #tpu.dot_dimension_numbers<[1], [0], [0], [1], [0, 0, 1, 1], [], []>} : vector<8x8xf32>, vector<8x8xf32>, vector<8x8xf32> -> vector<8x8xf32>
    %48 = vector.extract_strided_slice %11 {offsets = [0, 0], sizes = [8, 32], strides = [1, 1]} : vector<32x32xf32> to vector<8x32xf32>
    %cst_33 = arith.constant dense<0.000000e+00> : vector<8x32xf32>
    %49 = tpu.matmul %47, %48, %cst_33 {dimension_numbers = #tpu.dot_dimension_numbers<[1], [0], [0], [1], [0, 0, 1, 1], [], []>} : vector<8x8xf32>, vector<8x32xf32>, vector<8x32xf32> -> vector<8x32xf32>
    %50 = arith.addf %31, %49 : vector<8x32xf32>
    %51 = vector.extract_strided_slice %30 {offsets = [0, 8], sizes = [8, 8], strides = [1, 1]} : vector<8x96xf32> to vector<8x8xf32>
    %52 = vector.extract_strided_slice %30 {offsets = [0, 40], sizes = [8, 8], strides = [1, 1]} : vector<8x96xf32> to vector<8x8xf32>
    %53 = vector.extract_strided_slice %30 {offsets = [0, 72], sizes = [8, 8], strides = [1, 1]} : vector<8x96xf32> to vector<8x8xf32>
    %54 = tpu.transpose %52, [1, 0] : vector<8x8xf32> -> vector<8x8xf32>
    %cst_34 = arith.constant dense<0.000000e+00> : vector<8x8xf32>
    %55 = tpu.matmul %51, %54, %cst_34 {dimension_numbers = #tpu.dot_dimension_numbers<[1], [0], [0], [1], [0, 0, 1, 1], [], []>} : vector<8x8xf32>, vector<8x8xf32>, vector<8x8xf32> -> vector<8x8xf32>
    %cst_35 = arith.constant dense<0xFF800000> : vector<8xf32>
    %56 = vector.multi_reduction <maximumf>, %55, %cst_35 [1] : vector<8x8xf32> to vector<8xf32>
    %57 = vector.shape_cast %56 : vector<8xf32> to vector<8x1xf32>
    %58 = vector.broadcast %57 : vector<8x1xf32> to vector<8x8xf32>
    %59 = arith.subf %55, %58 : vector<8x8xf32>
    %60 = math.exp %59 : vector<8x8xf32>
    %cst_36 = arith.constant dense<0.000000e+00> : vector<8xf32>
    %61 = vector.multi_reduction <add>, %60, %cst_36 [1] : vector<8x8xf32> to vector<8xf32>
    %62 = vector.shape_cast %61 : vector<8xf32> to vector<8x1xf32>
    %63 = tpu.reciprocal %62 {approx = true} : vector<8x1xf32> -> vector<8x1xf32>
    %64 = vector.broadcast %63 : vector<8x1xf32> to vector<8x8xf32>
    %65 = arith.mulf %60, %64 : vector<8x8xf32>
    %cst_37 = arith.constant dense<0.000000e+00> : vector<8x8xf32>
    %66 = tpu.matmul %65, %53, %cst_37 {dimension_numbers = #tpu.dot_dimension_numbers<[1], [0], [0], [1], [0, 0, 1, 1], [], []>} : vector<8x8xf32>, vector<8x8xf32>, vector<8x8xf32> -> vector<8x8xf32>
    %67 = vector.extract_strided_slice %11 {offsets = [8, 0], sizes = [8, 32], strides = [1, 1]} : vector<32x32xf32> to vector<8x32xf32>
    %cst_38 = arith.constant dense<0.000000e+00> : vector<8x32xf32>
    %68 = tpu.matmul %66, %67, %cst_38 {dimension_numbers = #tpu.dot_dimension_numbers<[1], [0], [0], [1], [0, 0, 1, 1], [], []>} : vector<8x8xf32>, vector<8x32xf32>, vector<8x32xf32> -> vector<8x32xf32>
    %69 = arith.addf %50, %68 : vector<8x32xf32>
    %70 = vector.extract_strided_slice %30 {offsets = [0, 16], sizes = [8, 8], strides = [1, 1]} : vector<8x96xf32> to vector<8x8xf32>
    %71 = vector.extract_strided_slice %30 {offsets = [0, 48], sizes = [8, 8], strides = [1, 1]} : vector<8x96xf32> to vector<8x8xf32>
    %72 = vector.extract_strided_slice %30 {offsets = [0, 80], sizes = [8, 8], strides = [1, 1]} : vector<8x96xf32> to vector<8x8xf32>
    %73 = tpu.transpose %71, [1, 0] : vector<8x8xf32> -> vector<8x8xf32>
    %cst_39 = arith.constant dense<0.000000e+00> : vector<8x8xf32>
    %74 = tpu.matmul %70, %73, %cst_39 {dimension_numbers = #tpu.dot_dimension_numbers<[1], [0], [0], [1], [0, 0, 1, 1], [], []>} : vector<8x8xf32>, vector<8x8xf32>, vector<8x8xf32> -> vector<8x8xf32>
    %cst_40 = arith.constant dense<0xFF800000> : vector<8xf32>
    %75 = vector.multi_reduction <maximumf>, %74, %cst_40 [1] : vector<8x8xf32> to vector<8xf32>
    %76 = vector.shape_cast %75 : vector<8xf32> to vector<8x1xf32>
    %77 = vector.broadcast %76 : vector<8x1xf32> to vector<8x8xf32>
    %78 = arith.subf %74, %77 : vector<8x8xf32>
    %79 = math.exp %78 : vector<8x8xf32>
    %cst_41 = arith.constant dense<0.000000e+00> : vector<8xf32>
    %80 = vector.multi_reduction <add>, %79, %cst_41 [1] : vector<8x8xf32> to vector<8xf32>
    %81 = vector.shape_cast %80 : vector<8xf32> to vector<8x1xf32>
    %82 = tpu.reciprocal %81 {approx = true} : vector<8x1xf32> -> vector<8x1xf32>
    %83 = vector.broadcast %82 : vector<8x1xf32> to vector<8x8xf32>
    %84 = arith.mulf %79, %83 : vector<8x8xf32>
    %cst_42 = arith.constant dense<0.000000e+00> : vector<8x8xf32>
    %85 = tpu.matmul %84, %72, %cst_42 {dimension_numbers = #tpu.dot_dimension_numbers<[1], [0], [0], [1], [0, 0, 1, 1], [], []>} : vector<8x8xf32>, vector<8x8xf32>, vector<8x8xf32> -> vector<8x8xf32>
    %86 = vector.extract_strided_slice %11 {offsets = [16, 0], sizes = [8, 32], strides = [1, 1]} : vector<32x32xf32> to vector<8x32xf32>
    %cst_43 = arith.constant dense<0.000000e+00> : vector<8x32xf32>
    %87 = tpu.matmul %85, %86, %cst_43 {dimension_numbers = #tpu.dot_dimension_numbers<[1], [0], [0], [1], [0, 0, 1, 1], [], []>} : vector<8x8xf32>, vector<8x32xf32>, vector<8x32xf32> -> vector<8x32xf32>
    %88 = arith.addf %69, %87 : vector<8x32xf32>
    %89 = vector.extract_strided_slice %30 {offsets = [0, 24], sizes = [8, 8], strides = [1, 1]} : vector<8x96xf32> to vector<8x8xf32>
    %90 = vector.extract_strided_slice %30 {offsets = [0, 56], sizes = [8, 8], strides = [1, 1]} : vector<8x96xf32> to vector<8x8xf32>
    %91 = vector.extract_strided_slice %30 {offsets = [0, 88], sizes = [8, 8], strides = [1, 1]} : vector<8x96xf32> to vector<8x8xf32>
    %92 = tpu.transpose %90, [1, 0] : vector<8x8xf32> -> vector<8x8xf32>
    %cst_44 = arith.constant dense<0.000000e+00> : vector<8x8xf32>
    %93 = tpu.matmul %89, %92, %cst_44 {dimension_numbers = #tpu.dot_dimension_numbers<[1], [0], [0], [1], [0, 0, 1, 1], [], []>} : vector<8x8xf32>, vector<8x8xf32>, vector<8x8xf32> -> vector<8x8xf32>
    %cst_45 = arith.constant dense<0xFF800000> : vector<8xf32>
    %94 = vector.multi_reduction <maximumf>, %93, %cst_45 [1] : vector<8x8xf32> to vector<8xf32>
    %95 = vector.shape_cast %94 : vector<8xf32> to vector<8x1xf32>
    %96 = vector.broadcast %95 : vector<8x1xf32> to vector<8x8xf32>
    %97 = arith.subf %93, %96 : vector<8x8xf32>
    %98 = math.exp %97 : vector<8x8xf32>
    %cst_46 = arith.constant dense<0.000000e+00> : vector<8xf32>
    %99 = vector.multi_reduction <add>, %98, %cst_46 [1] : vector<8x8xf32> to vector<8xf32>
    %100 = vector.shape_cast %99 : vector<8xf32> to vector<8x1xf32>
    %101 = tpu.reciprocal %100 {approx = true} : vector<8x1xf32> -> vector<8x1xf32>
    %102 = vector.broadcast %101 : vector<8x1xf32> to vector<8x8xf32>
    %103 = arith.mulf %98, %102 : vector<8x8xf32>
    %cst_47 = arith.constant dense<0.000000e+00> : vector<8x8xf32>
    %104 = tpu.matmul %103, %91, %cst_47 {dimension_numbers = #tpu.dot_dimension_numbers<[1], [0], [0], [1], [0, 0, 1, 1], [], []>} : vector<8x8xf32>, vector<8x8xf32>, vector<8x8xf32> -> vector<8x8xf32>
    %105 = vector.extract_strided_slice %11 {offsets = [24, 0], sizes = [8, 32], strides = [1, 1]} : vector<32x32xf32> to vector<8x32xf32>
    %cst_48 = arith.constant dense<0.000000e+00> : vector<8x32xf32>
    %106 = tpu.matmul %104, %105, %cst_48 {dimension_numbers = #tpu.dot_dimension_numbers<[1], [0], [0], [1], [0, 0, 1, 1], [], []>} : vector<8x8xf32>, vector<8x32xf32>, vector<8x32xf32> -> vector<8x32xf32>
    %107 = arith.addf %88, %106 : vector<8x32xf32>
    %108 = arith.addf %5, %107 : vector<8x32xf32>
    %109 = vector.broadcast %14 : vector<1x32xf32> to vector<8x32xf32>
    %110 = arith.addf %108, %109 : vector<8x32xf32>
    %cst_49 = arith.constant dense<0.000000e+00> : vector<8xf32>
    %111 = vector.multi_reduction <add>, %110, %cst_49 [1] : vector<8x32xf32> to vector<8xf32>
    %112 = vector.shape_cast %111 : vector<8xf32> to vector<8x1xf32>
    %cst_50 = arith.constant 3.200000e+01 : f32
    %113 = vector.broadcast %cst_50 : f32 to vector<8x1xf32>
    %114 = arith.divf %112, %113 : vector<8x1xf32>
    %115 = vector.broadcast %114 : vector<8x1xf32> to vector<8x32xf32>
    %116 = arith.subf %110, %115 : vector<8x32xf32>
    %117 = arith.mulf %116, %116 : vector<8x32xf32>
    %cst_51 = arith.constant dense<0.000000e+00> : vector<8xf32>
    %118 = vector.multi_reduction <add>, %117, %cst_51 [1] : vector<8x32xf32> to vector<8xf32>
    %119 = vector.shape_cast %118 : vector<8xf32> to vector<8x1xf32>
    %cst_52 = arith.constant 3.200000e+01 : f32
    %120 = vector.broadcast %cst_52 : f32 to vector<8x1xf32>
    %121 = arith.divf %119, %120 : vector<8x1xf32>
    %cst_53 = arith.constant 9.99999974E-6 : f32
    %122 = vector.broadcast %cst_53 : f32 to vector<8x1xf32>
    %123 = arith.addf %121, %122 : vector<8x1xf32>
    %124 = math.rsqrt %123 : vector<8x1xf32>
    %125 = vector.broadcast %124 : vector<8x1xf32> to vector<8x32xf32>
    %126 = arith.mulf %116, %125 : vector<8x32xf32>
    %127 = vector.broadcast %15 : vector<1x32xf32> to vector<8x32xf32>
    %128 = arith.mulf %126, %127 : vector<8x32xf32>
    %129 = vector.broadcast %16 : vector<1x32xf32> to vector<8x32xf32>
    %130 = arith.addf %128, %129 : vector<8x32xf32>
    %cst_54 = arith.constant dense<0.000000e+00> : vector<8x2048xf32>
    %131 = tpu.matmul %130, %22, %cst_54 {dimension_numbers = #tpu.dot_dimension_numbers<[1], [0], [0], [1], [0, 0, 1, 1], [], []>} : vector<8x32xf32>, vector<32x2048xf32>, vector<8x2048xf32> -> vector<8x2048xf32>
    %132 = vector.broadcast %24 : vector<1x2048xf32> to vector<8x2048xf32>
    %133 = arith.addf %131, %132 : vector<8x2048xf32>
    %cst_55 = arith.constant 0.000000e+00 : f32
    %134 = vector.broadcast %cst_55 : f32 to vector<8x2048xf32>
    %135 = arith.maximumf %133, %134 : vector<8x2048xf32>
    %cst_56 = arith.constant dense<0.000000e+00> : vector<8x32xf32>
    %136 = tpu.matmul %135, %27, %cst_56 {dimension_numbers = #tpu.dot_dimension_numbers<[1], [0], [0], [1], [0, 0, 1, 1], [], []>} : vector<8x2048xf32>, vector<2048x32xf32>, vector<8x32xf32> -> vector<8x32xf32>
    %137 = vector.broadcast %17 : vector<1x32xf32> to vector<8x32xf32>
    %138 = arith.addf %136, %137 : vector<8x32xf32>
    %139 = arith.addf %130, %138 : vector<8x32xf32>
    %cst_57 = arith.constant dense<0.000000e+00> : vector<8xf32>
    %140 = vector.multi_reduction <add>, %139, %cst_57 [1] : vector<8x32xf32> to vector<8xf32>
    %141 = vector.shape_cast %140 : vector<8xf32> to vector<8x1xf32>
    %cst_58 = arith.constant 3.200000e+01 : f32
    %142 = vector.broadcast %cst_58 : f32 to vector<8x1xf32>
    %143 = arith.divf %141, %142 : vector<8x1xf32>
    %144 = vector.broadcast %143 : vector<8x1xf32> to vector<8x32xf32>
    %145 = arith.subf %139, %144 : vector<8x32xf32>
    %146 = arith.mulf %145, %145 : vector<8x32xf32>
    %cst_59 = arith.constant dense<0.000000e+00> : vector<8xf32>
    %147 = vector.multi_reduction <add>, %146, %cst_59 [1] : vector<8x32xf32> to vector<8xf32>
    %148 = vector.shape_cast %147 : vector<8xf32> to vector<8x1xf32>
    %cst_60 = arith.constant 3.200000e+01 : f32
    %149 = vector.broadcast %cst_60 : f32 to vector<8x1xf32>
    %150 = arith.divf %148, %149 : vector<8x1xf32>
    %cst_61 = arith.constant 9.99999974E-6 : f32
    %151 = vector.broadcast %cst_61 : f32 to vector<8x1xf32>
    %152 = arith.addf %150, %151 : vector<8x1xf32>
    %153 = math.rsqrt %152 : vector<8x1xf32>
    %154 = vector.broadcast %153 : vector<8x1xf32> to vector<8x32xf32>
    %155 = arith.mulf %145, %154 : vector<8x32xf32>
    %156 = vector.broadcast %18 : vector<1x32xf32> to vector<8x32xf32>
    %157 = arith.mulf %155, %156 : vector<8x32xf32>
    %158 = vector.broadcast %19 : vector<1x32xf32> to vector<8x32xf32>
    %159 = arith.addf %157, %158 : vector<8x32xf32>
    %c1 = arith.constant 1 : index
    %c0_62 = arith.constant 0 : index
    %c0_63 = arith.constant 0 : index
    %160 = vector.load %arg4[%c1, %c0_62, %c0_63] : memref<4x32x96xf32, #tpu.memory_space<vmem>>, vector<1x32x96xf32>
    %161 = vector.shape_cast %160 : vector<1x32x96xf32> to vector<32x96xf32>
    %c1_64 = arith.constant 1 : index
    %c0_65 = arith.constant 0 : index
    %c0_66 = arith.constant 0 : index
    %162 = vector.load %arg5[%c1_64, %c0_65, %c0_66] : memref<4x1x96xf32, #tpu.memory_space<vmem>>, vector<1x1x96xf32>
    %163 = vector.shape_cast %162 : vector<1x1x96xf32> to vector<1x96xf32>
    %c1_67 = arith.constant 1 : index
    %c0_68 = arith.constant 0 : index
    %c0_69 = arith.constant 0 : index
    %164 = vector.load %arg6[%c1_67, %c0_68, %c0_69] : memref<4x32x32xf32, #tpu.memory_space<vmem>>, vector<1x32x32xf32>
    %165 = vector.shape_cast %164 : vector<1x32x32xf32> to vector<32x32xf32>
    %c1_70 = arith.constant 1 : index
    %c0_71 = arith.constant 0 : index
    %c0_72 = arith.constant 0 : index
    %166 = vector.load %arg7[%c1_70, %c0_71, %c0_72] : memref<4x6x32xf32, #tpu.memory_space<vmem>>, vector<1x6x32xf32>
    %167 = vector.shape_cast %166 : vector<1x6x32xf32> to vector<6x32xf32>
    %168 = vector.extract_strided_slice %167 {offsets = [0, 0], sizes = [1, 32], strides = [1, 1]} : vector<6x32xf32> to vector<1x32xf32>
    %169 = vector.extract_strided_slice %167 {offsets = [1, 0], sizes = [1, 32], strides = [1, 1]} : vector<6x32xf32> to vector<1x32xf32>
    %170 = vector.extract_strided_slice %167 {offsets = [2, 0], sizes = [1, 32], strides = [1, 1]} : vector<6x32xf32> to vector<1x32xf32>
    %171 = vector.extract_strided_slice %167 {offsets = [3, 0], sizes = [1, 32], strides = [1, 1]} : vector<6x32xf32> to vector<1x32xf32>
    %172 = vector.extract_strided_slice %167 {offsets = [4, 0], sizes = [1, 32], strides = [1, 1]} : vector<6x32xf32> to vector<1x32xf32>
    %173 = vector.extract_strided_slice %167 {offsets = [5, 0], sizes = [1, 32], strides = [1, 1]} : vector<6x32xf32> to vector<1x32xf32>
    %c1_73 = arith.constant 1 : index
    %c0_74 = arith.constant 0 : index
    %c0_75 = arith.constant 0 : index
    %174 = vector.load %arg8[%c1_73, %c0_74, %c0_75] : memref<4x32x2048xbf16, #tpu.memory_space<vmem>>, vector<1x32x2048xbf16>
    %175 = vector.shape_cast %174 : vector<1x32x2048xbf16> to vector<32x2048xbf16>
    %176 = arith.extf %175 : vector<32x2048xbf16> to vector<32x2048xf32>
    %c1_76 = arith.constant 1 : index
    %c0_77 = arith.constant 0 : index
    %c0_78 = arith.constant 0 : index
    %177 = vector.load %arg9[%c1_76, %c0_77, %c0_78] : memref<4x1x2048xf32, #tpu.memory_space<vmem>>, vector<1x1x2048xf32>
    %178 = vector.shape_cast %177 : vector<1x1x2048xf32> to vector<1x2048xf32>
    %c1_79 = arith.constant 1 : index
    %c0_80 = arith.constant 0 : index
    %c0_81 = arith.constant 0 : index
    %179 = vector.load %arg10[%c1_79, %c0_80, %c0_81] : memref<4x2048x32xbf16, #tpu.memory_space<vmem>>, vector<1x2048x32xbf16>
    %180 = vector.shape_cast %179 : vector<1x2048x32xbf16> to vector<2048x32xbf16>
    %181 = arith.extf %180 : vector<2048x32xbf16> to vector<2048x32xf32>
    %cst_82 = arith.constant dense<0.000000e+00> : vector<8x96xf32>
    %182 = tpu.matmul %159, %161, %cst_82 {dimension_numbers = #tpu.dot_dimension_numbers<[1], [0], [0], [1], [0, 0, 1, 1], [], []>} : vector<8x32xf32>, vector<32x96xf32>, vector<8x96xf32> -> vector<8x96xf32>
    %183 = vector.broadcast %163 : vector<1x96xf32> to vector<8x96xf32>
    %184 = arith.addf %182, %183 : vector<8x96xf32>
    %cst_83 = arith.constant 0.000000e+00 : f32
    %185 = vector.broadcast %cst_83 : f32 to vector<8x32xf32>
    %186 = vector.extract_strided_slice %184 {offsets = [0, 0], sizes = [8, 8], strides = [1, 1]} : vector<8x96xf32> to vector<8x8xf32>
    %187 = vector.extract_strided_slice %184 {offsets = [0, 32], sizes = [8, 8], strides = [1, 1]} : vector<8x96xf32> to vector<8x8xf32>
    %188 = vector.extract_strided_slice %184 {offsets = [0, 64], sizes = [8, 8], strides = [1, 1]} : vector<8x96xf32> to vector<8x8xf32>
    %189 = tpu.transpose %187, [1, 0] : vector<8x8xf32> -> vector<8x8xf32>
    %cst_84 = arith.constant dense<0.000000e+00> : vector<8x8xf32>
    %190 = tpu.matmul %186, %189, %cst_84 {dimension_numbers = #tpu.dot_dimension_numbers<[1], [0], [0], [1], [0, 0, 1, 1], [], []>} : vector<8x8xf32>, vector<8x8xf32>, vector<8x8xf32> -> vector<8x8xf32>
    %cst_85 = arith.constant dense<0xFF800000> : vector<8xf32>
    %191 = vector.multi_reduction <maximumf>, %190, %cst_85 [1] : vector<8x8xf32> to vector<8xf32>
    %192 = vector.shape_cast %191 : vector<8xf32> to vector<8x1xf32>
    %193 = vector.broadcast %192 : vector<8x1xf32> to vector<8x8xf32>
    %194 = arith.subf %190, %193 : vector<8x8xf32>
    %195 = math.exp %194 : vector<8x8xf32>
    %cst_86 = arith.constant dense<0.000000e+00> : vector<8xf32>
    %196 = vector.multi_reduction <add>, %195, %cst_86 [1] : vector<8x8xf32> to vector<8xf32>
    %197 = vector.shape_cast %196 : vector<8xf32> to vector<8x1xf32>
    %198 = tpu.reciprocal %197 {approx = true} : vector<8x1xf32> -> vector<8x1xf32>
    %199 = vector.broadcast %198 : vector<8x1xf32> to vector<8x8xf32>
    %200 = arith.mulf %195, %199 : vector<8x8xf32>
    %cst_87 = arith.constant dense<0.000000e+00> : vector<8x8xf32>
    %201 = tpu.matmul %200, %188, %cst_87 {dimension_numbers = #tpu.dot_dimension_numbers<[1], [0], [0], [1], [0, 0, 1, 1], [], []>} : vector<8x8xf32>, vector<8x8xf32>, vector<8x8xf32> -> vector<8x8xf32>
    %202 = vector.extract_strided_slice %165 {offsets = [0, 0], sizes = [8, 32], strides = [1, 1]} : vector<32x32xf32> to vector<8x32xf32>
    %cst_88 = arith.constant dense<0.000000e+00> : vector<8x32xf32>
    %203 = tpu.matmul %201, %202, %cst_88 {dimension_numbers = #tpu.dot_dimension_numbers<[1], [0], [0], [1], [0, 0, 1, 1], [], []>} : vector<8x8xf32>, vector<8x32xf32>, vector<8x32xf32> -> vector<8x32xf32>
    %204 = arith.addf %185, %203 : vector<8x32xf32>
    %205 = vector.extract_strided_slice %184 {offsets = [0, 8], sizes = [8, 8], strides = [1, 1]} : vector<8x96xf32> to vector<8x8xf32>
    %206 = vector.extract_strided_slice %184 {offsets = [0, 40], sizes = [8, 8], strides = [1, 1]} : vector<8x96xf32> to vector<8x8xf32>
    %207 = vector.extract_strided_slice %184 {offsets = [0, 72], sizes = [8, 8], strides = [1, 1]} : vector<8x96xf32> to vector<8x8xf32>
    %208 = tpu.transpose %206, [1, 0] : vector<8x8xf32> -> vector<8x8xf32>
    %cst_89 = arith.constant dense<0.000000e+00> : vector<8x8xf32>
    %209 = tpu.matmul %205, %208, %cst_89 {dimension_numbers = #tpu.dot_dimension_numbers<[1], [0], [0], [1], [0, 0, 1, 1], [], []>} : vector<8x8xf32>, vector<8x8xf32>, vector<8x8xf32> -> vector<8x8xf32>
    %cst_90 = arith.constant dense<0xFF800000> : vector<8xf32>
    %210 = vector.multi_reduction <maximumf>, %209, %cst_90 [1] : vector<8x8xf32> to vector<8xf32>
    %211 = vector.shape_cast %210 : vector<8xf32> to vector<8x1xf32>
    %212 = vector.broadcast %211 : vector<8x1xf32> to vector<8x8xf32>
    %213 = arith.subf %209, %212 : vector<8x8xf32>
    %214 = math.exp %213 : vector<8x8xf32>
    %cst_91 = arith.constant dense<0.000000e+00> : vector<8xf32>
    %215 = vector.multi_reduction <add>, %214, %cst_91 [1] : vector<8x8xf32> to vector<8xf32>
    %216 = vector.shape_cast %215 : vector<8xf32> to vector<8x1xf32>
    %217 = tpu.reciprocal %216 {approx = true} : vector<8x1xf32> -> vector<8x1xf32>
    %218 = vector.broadcast %217 : vector<8x1xf32> to vector<8x8xf32>
    %219 = arith.mulf %214, %218 : vector<8x8xf32>
    %cst_92 = arith.constant dense<0.000000e+00> : vector<8x8xf32>
    %220 = tpu.matmul %219, %207, %cst_92 {dimension_numbers = #tpu.dot_dimension_numbers<[1], [0], [0], [1], [0, 0, 1, 1], [], []>} : vector<8x8xf32>, vector<8x8xf32>, vector<8x8xf32> -> vector<8x8xf32>
    %221 = vector.extract_strided_slice %165 {offsets = [8, 0], sizes = [8, 32], strides = [1, 1]} : vector<32x32xf32> to vector<8x32xf32>
    %cst_93 = arith.constant dense<0.000000e+00> : vector<8x32xf32>
    %222 = tpu.matmul %220, %221, %cst_93 {dimension_numbers = #tpu.dot_dimension_numbers<[1], [0], [0], [1], [0, 0, 1, 1], [], []>} : vector<8x8xf32>, vector<8x32xf32>, vector<8x32xf32> -> vector<8x32xf32>
    %223 = arith.addf %204, %222 : vector<8x32xf32>
    %224 = vector.extract_strided_slice %184 {offsets = [0, 16], sizes = [8, 8], strides = [1, 1]} : vector<8x96xf32> to vector<8x8xf32>
    %225 = vector.extract_strided_slice %184 {offsets = [0, 48], sizes = [8, 8], strides = [1, 1]} : vector<8x96xf32> to vector<8x8xf32>
    %226 = vector.extract_strided_slice %184 {offsets = [0, 80], sizes = [8, 8], strides = [1, 1]} : vector<8x96xf32> to vector<8x8xf32>
    %227 = tpu.transpose %225, [1, 0] : vector<8x8xf32> -> vector<8x8xf32>
    %cst_94 = arith.constant dense<0.000000e+00> : vector<8x8xf32>
    %228 = tpu.matmul %224, %227, %cst_94 {dimension_numbers = #tpu.dot_dimension_numbers<[1], [0], [0], [1], [0, 0, 1, 1], [], []>} : vector<8x8xf32>, vector<8x8xf32>, vector<8x8xf32> -> vector<8x8xf32>
    %cst_95 = arith.constant dense<0xFF800000> : vector<8xf32>
    %229 = vector.multi_reduction <maximumf>, %228, %cst_95 [1] : vector<8x8xf32> to vector<8xf32>
    %230 = vector.shape_cast %229 : vector<8xf32> to vector<8x1xf32>
    %231 = vector.broadcast %230 : vector<8x1xf32> to vector<8x8xf32>
    %232 = arith.subf %228, %231 : vector<8x8xf32>
    %233 = math.exp %232 : vector<8x8xf32>
    %cst_96 = arith.constant dense<0.000000e+00> : vector<8xf32>
    %234 = vector.multi_reduction <add>, %233, %cst_96 [1] : vector<8x8xf32> to vector<8xf32>
    %235 = vector.shape_cast %234 : vector<8xf32> to vector<8x1xf32>
    %236 = tpu.reciprocal %235 {approx = true} : vector<8x1xf32> -> vector<8x1xf32>
    %237 = vector.broadcast %236 : vector<8x1xf32> to vector<8x8xf32>
    %238 = arith.mulf %233, %237 : vector<8x8xf32>
    %cst_97 = arith.constant dense<0.000000e+00> : vector<8x8xf32>
    %239 = tpu.matmul %238, %226, %cst_97 {dimension_numbers = #tpu.dot_dimension_numbers<[1], [0], [0], [1], [0, 0, 1, 1], [], []>} : vector<8x8xf32>, vector<8x8xf32>, vector<8x8xf32> -> vector<8x8xf32>
    %240 = vector.extract_strided_slice %165 {offsets = [16, 0], sizes = [8, 32], strides = [1, 1]} : vector<32x32xf32> to vector<8x32xf32>
    %cst_98 = arith.constant dense<0.000000e+00> : vector<8x32xf32>
    %241 = tpu.matmul %239, %240, %cst_98 {dimension_numbers = #tpu.dot_dimension_numbers<[1], [0], [0], [1], [0, 0, 1, 1], [], []>} : vector<8x8xf32>, vector<8x32xf32>, vector<8x32xf32> -> vector<8x32xf32>
    %242 = arith.addf %223, %241 : vector<8x32xf32>
    %243 = vector.extract_strided_slice %184 {offsets = [0, 24], sizes = [8, 8], strides = [1, 1]} : vector<8x96xf32> to vector<8x8xf32>
    %244 = vector.extract_strided_slice %184 {offsets = [0, 56], sizes = [8, 8], strides = [1, 1]} : vector<8x96xf32> to vector<8x8xf32>
    %245 = vector.extract_strided_slice %184 {offsets = [0, 88], sizes = [8, 8], strides = [1, 1]} : vector<8x96xf32> to vector<8x8xf32>
    %246 = tpu.transpose %244, [1, 0] : vector<8x8xf32> -> vector<8x8xf32>
    %cst_99 = arith.constant dense<0.000000e+00> : vector<8x8xf32>
    %247 = tpu.matmul %243, %246, %cst_99 {dimension_numbers = #tpu.dot_dimension_numbers<[1], [0], [0], [1], [0, 0, 1, 1], [], []>} : vector<8x8xf32>, vector<8x8xf32>, vector<8x8xf32> -> vector<8x8xf32>
    %cst_100 = arith.constant dense<0xFF800000> : vector<8xf32>
    %248 = vector.multi_reduction <maximumf>, %247, %cst_100 [1] : vector<8x8xf32> to vector<8xf32>
    %249 = vector.shape_cast %248 : vector<8xf32> to vector<8x1xf32>
    %250 = vector.broadcast %249 : vector<8x1xf32> to vector<8x8xf32>
    %251 = arith.subf %247, %250 : vector<8x8xf32>
    %252 = math.exp %251 : vector<8x8xf32>
    %cst_101 = arith.constant dense<0.000000e+00> : vector<8xf32>
    %253 = vector.multi_reduction <add>, %252, %cst_101 [1] : vector<8x8xf32> to vector<8xf32>
    %254 = vector.shape_cast %253 : vector<8xf32> to vector<8x1xf32>
    %255 = tpu.reciprocal %254 {approx = true} : vector<8x1xf32> -> vector<8x1xf32>
    %256 = vector.broadcast %255 : vector<8x1xf32> to vector<8x8xf32>
    %257 = arith.mulf %252, %256 : vector<8x8xf32>
    %cst_102 = arith.constant dense<0.000000e+00> : vector<8x8xf32>
    %258 = tpu.matmul %257, %245, %cst_102 {dimension_numbers = #tpu.dot_dimension_numbers<[1], [0], [0], [1], [0, 0, 1, 1], [], []>} : vector<8x8xf32>, vector<8x8xf32>, vector<8x8xf32> -> vector<8x8xf32>
    %259 = vector.extract_strided_slice %165 {offsets = [24, 0], sizes = [8, 32], strides = [1, 1]} : vector<32x32xf32> to vector<8x32xf32>
    %cst_103 = arith.constant dense<0.000000e+00> : vector<8x32xf32>
    %260 = tpu.matmul %258, %259, %cst_103 {dimension_numbers = #tpu.dot_dimension_numbers<[1], [0], [0], [1], [0, 0, 1, 1], [], []>} : vector<8x8xf32>, vector<8x32xf32>, vector<8x32xf32> -> vector<8x32xf32>
    %261 = arith.addf %242, %260 : vector<8x32xf32>
    %262 = arith.addf %159, %261 : vector<8x32xf32>
    %263 = vector.broadcast %168 : vector<1x32xf32> to vector<8x32xf32>
    %264 = arith.addf %262, %263 : vector<8x32xf32>
    %cst_104 = arith.constant dense<0.000000e+00> : vector<8xf32>
    %265 = vector.multi_reduction <add>, %264, %cst_104 [1] : vector<8x32xf32> to vector<8xf32>
    %266 = vector.shape_cast %265 : vector<8xf32> to vector<8x1xf32>
    %cst_105 = arith.constant 3.200000e+01 : f32
    %267 = vector.broadcast %cst_105 : f32 to vector<8x1xf32>
    %268 = arith.divf %266, %267 : vector<8x1xf32>
    %269 = vector.broadcast %268 : vector<8x1xf32> to vector<8x32xf32>
    %270 = arith.subf %264, %269 : vector<8x32xf32>
    %271 = arith.mulf %270, %270 : vector<8x32xf32>
    %cst_106 = arith.constant dense<0.000000e+00> : vector<8xf32>
    %272 = vector.multi_reduction <add>, %271, %cst_106 [1] : vector<8x32xf32> to vector<8xf32>
    %273 = vector.shape_cast %272 : vector<8xf32> to vector<8x1xf32>
    %cst_107 = arith.constant 3.200000e+01 : f32
    %274 = vector.broadcast %cst_107 : f32 to vector<8x1xf32>
    %275 = arith.divf %273, %274 : vector<8x1xf32>
    %cst_108 = arith.constant 9.99999974E-6 : f32
    %276 = vector.broadcast %cst_108 : f32 to vector<8x1xf32>
    %277 = arith.addf %275, %276 : vector<8x1xf32>
    %278 = math.rsqrt %277 : vector<8x1xf32>
    %279 = vector.broadcast %278 : vector<8x1xf32> to vector<8x32xf32>
    %280 = arith.mulf %270, %279 : vector<8x32xf32>
    %281 = vector.broadcast %169 : vector<1x32xf32> to vector<8x32xf32>
    %282 = arith.mulf %280, %281 : vector<8x32xf32>
    %283 = vector.broadcast %170 : vector<1x32xf32> to vector<8x32xf32>
    %284 = arith.addf %282, %283 : vector<8x32xf32>
    %cst_109 = arith.constant dense<0.000000e+00> : vector<8x2048xf32>
    %285 = tpu.matmul %284, %176, %cst_109 {dimension_numbers = #tpu.dot_dimension_numbers<[1], [0], [0], [1], [0, 0, 1, 1], [], []>} : vector<8x32xf32>, vector<32x2048xf32>, vector<8x2048xf32> -> vector<8x2048xf32>
    %286 = vector.broadcast %178 : vector<1x2048xf32> to vector<8x2048xf32>
    %287 = arith.addf %285, %286 : vector<8x2048xf32>
    %cst_110 = arith.constant 0.000000e+00 : f32
    %288 = vector.broadcast %cst_110 : f32 to vector<8x2048xf32>
    %289 = arith.maximumf %287, %288 : vector<8x2048xf32>
    %cst_111 = arith.constant dense<0.000000e+00> : vector<8x32xf32>
    %290 = tpu.matmul %289, %181, %cst_111 {dimension_numbers = #tpu.dot_dimension_numbers<[1], [0], [0], [1], [0, 0, 1, 1], [], []>} : vector<8x2048xf32>, vector<2048x32xf32>, vector<8x32xf32> -> vector<8x32xf32>
    %291 = vector.broadcast %171 : vector<1x32xf32> to vector<8x32xf32>
    %292 = arith.addf %290, %291 : vector<8x32xf32>
    %293 = arith.addf %284, %292 : vector<8x32xf32>
    %cst_112 = arith.constant dense<0.000000e+00> : vector<8xf32>
    %294 = vector.multi_reduction <add>, %293, %cst_112 [1] : vector<8x32xf32> to vector<8xf32>
    %295 = vector.shape_cast %294 : vector<8xf32> to vector<8x1xf32>
    %cst_113 = arith.constant 3.200000e+01 : f32
    %296 = vector.broadcast %cst_113 : f32 to vector<8x1xf32>
    %297 = arith.divf %295, %296 : vector<8x1xf32>
    %298 = vector.broadcast %297 : vector<8x1xf32> to vector<8x32xf32>
    %299 = arith.subf %293, %298 : vector<8x32xf32>
    %300 = arith.mulf %299, %299 : vector<8x32xf32>
    %cst_114 = arith.constant dense<0.000000e+00> : vector<8xf32>
    %301 = vector.multi_reduction <add>, %300, %cst_114 [1] : vector<8x32xf32> to vector<8xf32>
    %302 = vector.shape_cast %301 : vector<8xf32> to vector<8x1xf32>
    %cst_115 = arith.constant 3.200000e+01 : f32
    %303 = vector.broadcast %cst_115 : f32 to vector<8x1xf32>
    %304 = arith.divf %302, %303 : vector<8x1xf32>
    %cst_116 = arith.constant 9.99999974E-6 : f32
    %305 = vector.broadcast %cst_116 : f32 to vector<8x1xf32>
    %306 = arith.addf %304, %305 : vector<8x1xf32>
    %307 = math.rsqrt %306 : vector<8x1xf32>
    %308 = vector.broadcast %307 : vector<8x1xf32> to vector<8x32xf32>
    %309 = arith.mulf %299, %308 : vector<8x32xf32>
    %310 = vector.broadcast %172 : vector<1x32xf32> to vector<8x32xf32>
    %311 = arith.mulf %309, %310 : vector<8x32xf32>
    %312 = vector.broadcast %173 : vector<1x32xf32> to vector<8x32xf32>
    %313 = arith.addf %311, %312 : vector<8x32xf32>
    %c2 = arith.constant 2 : index
    %c0_117 = arith.constant 0 : index
    %c0_118 = arith.constant 0 : index
    %314 = vector.load %arg4[%c2, %c0_117, %c0_118] : memref<4x32x96xf32, #tpu.memory_space<vmem>>, vector<1x32x96xf32>
    %315 = vector.shape_cast %314 : vector<1x32x96xf32> to vector<32x96xf32>
    %c2_119 = arith.constant 2 : index
    %c0_120 = arith.constant 0 : index
    %c0_121 = arith.constant 0 : index
    %316 = vector.load %arg5[%c2_119, %c0_120, %c0_121] : memref<4x1x96xf32, #tpu.memory_space<vmem>>, vector<1x1x96xf32>
    %317 = vector.shape_cast %316 : vector<1x1x96xf32> to vector<1x96xf32>
    %c2_122 = arith.constant 2 : index
    %c0_123 = arith.constant 0 : index
    %c0_124 = arith.constant 0 : index
    %318 = vector.load %arg6[%c2_122, %c0_123, %c0_124] : memref<4x32x32xf32, #tpu.memory_space<vmem>>, vector<1x32x32xf32>
    %319 = vector.shape_cast %318 : vector<1x32x32xf32> to vector<32x32xf32>
    %c2_125 = arith.constant 2 : index
    %c0_126 = arith.constant 0 : index
    %c0_127 = arith.constant 0 : index
    %320 = vector.load %arg7[%c2_125, %c0_126, %c0_127] : memref<4x6x32xf32, #tpu.memory_space<vmem>>, vector<1x6x32xf32>
    %321 = vector.shape_cast %320 : vector<1x6x32xf32> to vector<6x32xf32>
    %322 = vector.extract_strided_slice %321 {offsets = [0, 0], sizes = [1, 32], strides = [1, 1]} : vector<6x32xf32> to vector<1x32xf32>
    %323 = vector.extract_strided_slice %321 {offsets = [1, 0], sizes = [1, 32], strides = [1, 1]} : vector<6x32xf32> to vector<1x32xf32>
    %324 = vector.extract_strided_slice %321 {offsets = [2, 0], sizes = [1, 32], strides = [1, 1]} : vector<6x32xf32> to vector<1x32xf32>
    %325 = vector.extract_strided_slice %321 {offsets = [3, 0], sizes = [1, 32], strides = [1, 1]} : vector<6x32xf32> to vector<1x32xf32>
    %326 = vector.extract_strided_slice %321 {offsets = [4, 0], sizes = [1, 32], strides = [1, 1]} : vector<6x32xf32> to vector<1x32xf32>
    %327 = vector.extract_strided_slice %321 {offsets = [5, 0], sizes = [1, 32], strides = [1, 1]} : vector<6x32xf32> to vector<1x32xf32>
    %c2_128 = arith.constant 2 : index
    %c0_129 = arith.constant 0 : index
    %c0_130 = arith.constant 0 : index
    %328 = vector.load %arg8[%c2_128, %c0_129, %c0_130] : memref<4x32x2048xbf16, #tpu.memory_space<vmem>>, vector<1x32x2048xbf16>
    %329 = vector.shape_cast %328 : vector<1x32x2048xbf16> to vector<32x2048xbf16>
    %330 = arith.extf %329 : vector<32x2048xbf16> to vector<32x2048xf32>
    %c2_131 = arith.constant 2 : index
    %c0_132 = arith.constant 0 : index
    %c0_133 = arith.constant 0 : index
    %331 = vector.load %arg9[%c2_131, %c0_132, %c0_133] : memref<4x1x2048xf32, #tpu.memory_space<vmem>>, vector<1x1x2048xf32>
    %332 = vector.shape_cast %331 : vector<1x1x2048xf32> to vector<1x2048xf32>
    %c2_134 = arith.constant 2 : index
    %c0_135 = arith.constant 0 : index
    %c0_136 = arith.constant 0 : index
    %333 = vector.load %arg10[%c2_134, %c0_135, %c0_136] : memref<4x2048x32xbf16, #tpu.memory_space<vmem>>, vector<1x2048x32xbf16>
    %334 = vector.shape_cast %333 : vector<1x2048x32xbf16> to vector<2048x32xbf16>
    %335 = arith.extf %334 : vector<2048x32xbf16> to vector<2048x32xf32>
    %cst_137 = arith.constant dense<0.000000e+00> : vector<8x96xf32>
    %336 = tpu.matmul %313, %315, %cst_137 {dimension_numbers = #tpu.dot_dimension_numbers<[1], [0], [0], [1], [0, 0, 1, 1], [], []>} : vector<8x32xf32>, vector<32x96xf32>, vector<8x96xf32> -> vector<8x96xf32>
    %337 = vector.broadcast %317 : vector<1x96xf32> to vector<8x96xf32>
    %338 = arith.addf %336, %337 : vector<8x96xf32>
    %cst_138 = arith.constant 0.000000e+00 : f32
    %339 = vector.broadcast %cst_138 : f32 to vector<8x32xf32>
    %340 = vector.extract_strided_slice %338 {offsets = [0, 0], sizes = [8, 8], strides = [1, 1]} : vector<8x96xf32> to vector<8x8xf32>
    %341 = vector.extract_strided_slice %338 {offsets = [0, 32], sizes = [8, 8], strides = [1, 1]} : vector<8x96xf32> to vector<8x8xf32>
    %342 = vector.extract_strided_slice %338 {offsets = [0, 64], sizes = [8, 8], strides = [1, 1]} : vector<8x96xf32> to vector<8x8xf32>
    %343 = tpu.transpose %341, [1, 0] : vector<8x8xf32> -> vector<8x8xf32>
    %cst_139 = arith.constant dense<0.000000e+00> : vector<8x8xf32>
    %344 = tpu.matmul %340, %343, %cst_139 {dimension_numbers = #tpu.dot_dimension_numbers<[1], [0], [0], [1], [0, 0, 1, 1], [], []>} : vector<8x8xf32>, vector<8x8xf32>, vector<8x8xf32> -> vector<8x8xf32>
    %cst_140 = arith.constant dense<0xFF800000> : vector<8xf32>
    %345 = vector.multi_reduction <maximumf>, %344, %cst_140 [1] : vector<8x8xf32> to vector<8xf32>
    %346 = vector.shape_cast %345 : vector<8xf32> to vector<8x1xf32>
    %347 = vector.broadcast %346 : vector<8x1xf32> to vector<8x8xf32>
    %348 = arith.subf %344, %347 : vector<8x8xf32>
    %349 = math.exp %348 : vector<8x8xf32>
    %cst_141 = arith.constant dense<0.000000e+00> : vector<8xf32>
    %350 = vector.multi_reduction <add>, %349, %cst_141 [1] : vector<8x8xf32> to vector<8xf32>
    %351 = vector.shape_cast %350 : vector<8xf32> to vector<8x1xf32>
    %352 = tpu.reciprocal %351 {approx = true} : vector<8x1xf32> -> vector<8x1xf32>
    %353 = vector.broadcast %352 : vector<8x1xf32> to vector<8x8xf32>
    %354 = arith.mulf %349, %353 : vector<8x8xf32>
    %cst_142 = arith.constant dense<0.000000e+00> : vector<8x8xf32>
    %355 = tpu.matmul %354, %342, %cst_142 {dimension_numbers = #tpu.dot_dimension_numbers<[1], [0], [0], [1], [0, 0, 1, 1], [], []>} : vector<8x8xf32>, vector<8x8xf32>, vector<8x8xf32> -> vector<8x8xf32>
    %356 = vector.extract_strided_slice %319 {offsets = [0, 0], sizes = [8, 32], strides = [1, 1]} : vector<32x32xf32> to vector<8x32xf32>
    %cst_143 = arith.constant dense<0.000000e+00> : vector<8x32xf32>
    %357 = tpu.matmul %355, %356, %cst_143 {dimension_numbers = #tpu.dot_dimension_numbers<[1], [0], [0], [1], [0, 0, 1, 1], [], []>} : vector<8x8xf32>, vector<8x32xf32>, vector<8x32xf32> -> vector<8x32xf32>
    %358 = arith.addf %339, %357 : vector<8x32xf32>
    %359 = vector.extract_strided_slice %338 {offsets = [0, 8], sizes = [8, 8], strides = [1, 1]} : vector<8x96xf32> to vector<8x8xf32>
    %360 = vector.extract_strided_slice %338 {offsets = [0, 40], sizes = [8, 8], strides = [1, 1]} : vector<8x96xf32> to vector<8x8xf32>
    %361 = vector.extract_strided_slice %338 {offsets = [0, 72], sizes = [8, 8], strides = [1, 1]} : vector<8x96xf32> to vector<8x8xf32>
    %362 = tpu.transpose %360, [1, 0] : vector<8x8xf32> -> vector<8x8xf32>
    %cst_144 = arith.constant dense<0.000000e+00> : vector<8x8xf32>
    %363 = tpu.matmul %359, %362, %cst_144 {dimension_numbers = #tpu.dot_dimension_numbers<[1], [0], [0], [1], [0, 0, 1, 1], [], []>} : vector<8x8xf32>, vector<8x8xf32>, vector<8x8xf32> -> vector<8x8xf32>
    %cst_145 = arith.constant dense<0xFF800000> : vector<8xf32>
    %364 = vector.multi_reduction <maximumf>, %363, %cst_145 [1] : vector<8x8xf32> to vector<8xf32>
    %365 = vector.shape_cast %364 : vector<8xf32> to vector<8x1xf32>
    %366 = vector.broadcast %365 : vector<8x1xf32> to vector<8x8xf32>
    %367 = arith.subf %363, %366 : vector<8x8xf32>
    %368 = math.exp %367 : vector<8x8xf32>
    %cst_146 = arith.constant dense<0.000000e+00> : vector<8xf32>
    %369 = vector.multi_reduction <add>, %368, %cst_146 [1] : vector<8x8xf32> to vector<8xf32>
    %370 = vector.shape_cast %369 : vector<8xf32> to vector<8x1xf32>
    %371 = tpu.reciprocal %370 {approx = true} : vector<8x1xf32> -> vector<8x1xf32>
    %372 = vector.broadcast %371 : vector<8x1xf32> to vector<8x8xf32>
    %373 = arith.mulf %368, %372 : vector<8x8xf32>
    %cst_147 = arith.constant dense<0.000000e+00> : vector<8x8xf32>
    %374 = tpu.matmul %373, %361, %cst_147 {dimension_numbers = #tpu.dot_dimension_numbers<[1], [0], [0], [1], [0, 0, 1, 1], [], []>} : vector<8x8xf32>, vector<8x8xf32>, vector<8x8xf32> -> vector<8x8xf32>
    %375 = vector.extract_strided_slice %319 {offsets = [8, 0], sizes = [8, 32], strides = [1, 1]} : vector<32x32xf32> to vector<8x32xf32>
    %cst_148 = arith.constant dense<0.000000e+00> : vector<8x32xf32>
    %376 = tpu.matmul %374, %375, %cst_148 {dimension_numbers = #tpu.dot_dimension_numbers<[1], [0], [0], [1], [0, 0, 1, 1], [], []>} : vector<8x8xf32>, vector<8x32xf32>, vector<8x32xf32> -> vector<8x32xf32>
    %377 = arith.addf %358, %376 : vector<8x32xf32>
    %378 = vector.extract_strided_slice %338 {offsets = [0, 16], sizes = [8, 8], strides = [1, 1]} : vector<8x96xf32> to vector<8x8xf32>
    %379 = vector.extract_strided_slice %338 {offsets = [0, 48], sizes = [8, 8], strides = [1, 1]} : vector<8x96xf32> to vector<8x8xf32>
    %380 = vector.extract_strided_slice %338 {offsets = [0, 80], sizes = [8, 8], strides = [1, 1]} : vector<8x96xf32> to vector<8x8xf32>
    %381 = tpu.transpose %379, [1, 0] : vector<8x8xf32> -> vector<8x8xf32>
    %cst_149 = arith.constant dense<0.000000e+00> : vector<8x8xf32>
    %382 = tpu.matmul %378, %381, %cst_149 {dimension_numbers = #tpu.dot_dimension_numbers<[1], [0], [0], [1], [0, 0, 1, 1], [], []>} : vector<8x8xf32>, vector<8x8xf32>, vector<8x8xf32> -> vector<8x8xf32>
    %cst_150 = arith.constant dense<0xFF800000> : vector<8xf32>
    %383 = vector.multi_reduction <maximumf>, %382, %cst_150 [1] : vector<8x8xf32> to vector<8xf32>
    %384 = vector.shape_cast %383 : vector<8xf32> to vector<8x1xf32>
    %385 = vector.broadcast %384 : vector<8x1xf32> to vector<8x8xf32>
    %386 = arith.subf %382, %385 : vector<8x8xf32>
    %387 = math.exp %386 : vector<8x8xf32>
    %cst_151 = arith.constant dense<0.000000e+00> : vector<8xf32>
    %388 = vector.multi_reduction <add>, %387, %cst_151 [1] : vector<8x8xf32> to vector<8xf32>
    %389 = vector.shape_cast %388 : vector<8xf32> to vector<8x1xf32>
    %390 = tpu.reciprocal %389 {approx = true} : vector<8x1xf32> -> vector<8x1xf32>
    %391 = vector.broadcast %390 : vector<8x1xf32> to vector<8x8xf32>
    %392 = arith.mulf %387, %391 : vector<8x8xf32>
    %cst_152 = arith.constant dense<0.000000e+00> : vector<8x8xf32>
    %393 = tpu.matmul %392, %380, %cst_152 {dimension_numbers = #tpu.dot_dimension_numbers<[1], [0], [0], [1], [0, 0, 1, 1], [], []>} : vector<8x8xf32>, vector<8x8xf32>, vector<8x8xf32> -> vector<8x8xf32>
    %394 = vector.extract_strided_slice %319 {offsets = [16, 0], sizes = [8, 32], strides = [1, 1]} : vector<32x32xf32> to vector<8x32xf32>
    %cst_153 = arith.constant dense<0.000000e+00> : vector<8x32xf32>
    %395 = tpu.matmul %393, %394, %cst_153 {dimension_numbers = #tpu.dot_dimension_numbers<[1], [0], [0], [1], [0, 0, 1, 1], [], []>} : vector<8x8xf32>, vector<8x32xf32>, vector<8x32xf32> -> vector<8x32xf32>
    %396 = arith.addf %377, %395 : vector<8x32xf32>
    %397 = vector.extract_strided_slice %338 {offsets = [0, 24], sizes = [8, 8], strides = [1, 1]} : vector<8x96xf32> to vector<8x8xf32>
    %398 = vector.extract_strided_slice %338 {offsets = [0, 56], sizes = [8, 8], strides = [1, 1]} : vector<8x96xf32> to vector<8x8xf32>
    %399 = vector.extract_strided_slice %338 {offsets = [0, 88], sizes = [8, 8], strides = [1, 1]} : vector<8x96xf32> to vector<8x8xf32>
    %400 = tpu.transpose %398, [1, 0] : vector<8x8xf32> -> vector<8x8xf32>
    %cst_154 = arith.constant dense<0.000000e+00> : vector<8x8xf32>
    %401 = tpu.matmul %397, %400, %cst_154 {dimension_numbers = #tpu.dot_dimension_numbers<[1], [0], [0], [1], [0, 0, 1, 1], [], []>} : vector<8x8xf32>, vector<8x8xf32>, vector<8x8xf32> -> vector<8x8xf32>
    %cst_155 = arith.constant dense<0xFF800000> : vector<8xf32>
    %402 = vector.multi_reduction <maximumf>, %401, %cst_155 [1] : vector<8x8xf32> to vector<8xf32>
    %403 = vector.shape_cast %402 : vector<8xf32> to vector<8x1xf32>
    %404 = vector.broadcast %403 : vector<8x1xf32> to vector<8x8xf32>
    %405 = arith.subf %401, %404 : vector<8x8xf32>
    %406 = math.exp %405 : vector<8x8xf32>
    %cst_156 = arith.constant dense<0.000000e+00> : vector<8xf32>
    %407 = vector.multi_reduction <add>, %406, %cst_156 [1] : vector<8x8xf32> to vector<8xf32>
    %408 = vector.shape_cast %407 : vector<8xf32> to vector<8x1xf32>
    %409 = tpu.reciprocal %408 {approx = true} : vector<8x1xf32> -> vector<8x1xf32>
    %410 = vector.broadcast %409 : vector<8x1xf32> to vector<8x8xf32>
    %411 = arith.mulf %406, %410 : vector<8x8xf32>
    %cst_157 = arith.constant dense<0.000000e+00> : vector<8x8xf32>
    %412 = tpu.matmul %411, %399, %cst_157 {dimension_numbers = #tpu.dot_dimension_numbers<[1], [0], [0], [1], [0, 0, 1, 1], [], []>} : vector<8x8xf32>, vector<8x8xf32>, vector<8x8xf32> -> vector<8x8xf32>
    %413 = vector.extract_strided_slice %319 {offsets = [24, 0], sizes = [8, 32], strides = [1, 1]} : vector<32x32xf32> to vector<8x32xf32>
    %cst_158 = arith.constant dense<0.000000e+00> : vector<8x32xf32>
    %414 = tpu.matmul %412, %413, %cst_158 {dimension_numbers = #tpu.dot_dimension_numbers<[1], [0], [0], [1], [0, 0, 1, 1], [], []>} : vector<8x8xf32>, vector<8x32xf32>, vector<8x32xf32> -> vector<8x32xf32>
    %415 = arith.addf %396, %414 : vector<8x32xf32>
    %416 = arith.addf %313, %415 : vector<8x32xf32>
    %417 = vector.broadcast %322 : vector<1x32xf32> to vector<8x32xf32>
    %418 = arith.addf %416, %417 : vector<8x32xf32>
    %cst_159 = arith.constant dense<0.000000e+00> : vector<8xf32>
    %419 = vector.multi_reduction <add>, %418, %cst_159 [1] : vector<8x32xf32> to vector<8xf32>
    %420 = vector.shape_cast %419 : vector<8xf32> to vector<8x1xf32>
    %cst_160 = arith.constant 3.200000e+01 : f32
    %421 = vector.broadcast %cst_160 : f32 to vector<8x1xf32>
    %422 = arith.divf %420, %421 : vector<8x1xf32>
    %423 = vector.broadcast %422 : vector<8x1xf32> to vector<8x32xf32>
    %424 = arith.subf %418, %423 : vector<8x32xf32>
    %425 = arith.mulf %424, %424 : vector<8x32xf32>
    %cst_161 = arith.constant dense<0.000000e+00> : vector<8xf32>
    %426 = vector.multi_reduction <add>, %425, %cst_161 [1] : vector<8x32xf32> to vector<8xf32>
    %427 = vector.shape_cast %426 : vector<8xf32> to vector<8x1xf32>
    %cst_162 = arith.constant 3.200000e+01 : f32
    %428 = vector.broadcast %cst_162 : f32 to vector<8x1xf32>
    %429 = arith.divf %427, %428 : vector<8x1xf32>
    %cst_163 = arith.constant 9.99999974E-6 : f32
    %430 = vector.broadcast %cst_163 : f32 to vector<8x1xf32>
    %431 = arith.addf %429, %430 : vector<8x1xf32>
    %432 = math.rsqrt %431 : vector<8x1xf32>
    %433 = vector.broadcast %432 : vector<8x1xf32> to vector<8x32xf32>
    %434 = arith.mulf %424, %433 : vector<8x32xf32>
    %435 = vector.broadcast %323 : vector<1x32xf32> to vector<8x32xf32>
    %436 = arith.mulf %434, %435 : vector<8x32xf32>
    %437 = vector.broadcast %324 : vector<1x32xf32> to vector<8x32xf32>
    %438 = arith.addf %436, %437 : vector<8x32xf32>
    %cst_164 = arith.constant dense<0.000000e+00> : vector<8x2048xf32>
    %439 = tpu.matmul %438, %330, %cst_164 {dimension_numbers = #tpu.dot_dimension_numbers<[1], [0], [0], [1], [0, 0, 1, 1], [], []>} : vector<8x32xf32>, vector<32x2048xf32>, vector<8x2048xf32> -> vector<8x2048xf32>
    %440 = vector.broadcast %332 : vector<1x2048xf32> to vector<8x2048xf32>
    %441 = arith.addf %439, %440 : vector<8x2048xf32>
    %cst_165 = arith.constant 0.000000e+00 : f32
    %442 = vector.broadcast %cst_165 : f32 to vector<8x2048xf32>
    %443 = arith.maximumf %441, %442 : vector<8x2048xf32>
    %cst_166 = arith.constant dense<0.000000e+00> : vector<8x32xf32>
    %444 = tpu.matmul %443, %335, %cst_166 {dimension_numbers = #tpu.dot_dimension_numbers<[1], [0], [0], [1], [0, 0, 1, 1], [], []>} : vector<8x2048xf32>, vector<2048x32xf32>, vector<8x32xf32> -> vector<8x32xf32>
    %445 = vector.broadcast %325 : vector<1x32xf32> to vector<8x32xf32>
    %446 = arith.addf %444, %445 : vector<8x32xf32>
    %447 = arith.addf %438, %446 : vector<8x32xf32>
    %cst_167 = arith.constant dense<0.000000e+00> : vector<8xf32>
    %448 = vector.multi_reduction <add>, %447, %cst_167 [1] : vector<8x32xf32> to vector<8xf32>
    %449 = vector.shape_cast %448 : vector<8xf32> to vector<8x1xf32>
    %cst_168 = arith.constant 3.200000e+01 : f32
    %450 = vector.broadcast %cst_168 : f32 to vector<8x1xf32>
    %451 = arith.divf %449, %450 : vector<8x1xf32>
    %452 = vector.broadcast %451 : vector<8x1xf32> to vector<8x32xf32>
    %453 = arith.subf %447, %452 : vector<8x32xf32>
    %454 = arith.mulf %453, %453 : vector<8x32xf32>
    %cst_169 = arith.constant dense<0.000000e+00> : vector<8xf32>
    %455 = vector.multi_reduction <add>, %454, %cst_169 [1] : vector<8x32xf32> to vector<8xf32>
    %456 = vector.shape_cast %455 : vector<8xf32> to vector<8x1xf32>
    %cst_170 = arith.constant 3.200000e+01 : f32
    %457 = vector.broadcast %cst_170 : f32 to vector<8x1xf32>
    %458 = arith.divf %456, %457 : vector<8x1xf32>
    %cst_171 = arith.constant 9.99999974E-6 : f32
    %459 = vector.broadcast %cst_171 : f32 to vector<8x1xf32>
    %460 = arith.addf %458, %459 : vector<8x1xf32>
    %461 = math.rsqrt %460 : vector<8x1xf32>
    %462 = vector.broadcast %461 : vector<8x1xf32> to vector<8x32xf32>
    %463 = arith.mulf %453, %462 : vector<8x32xf32>
    %464 = vector.broadcast %326 : vector<1x32xf32> to vector<8x32xf32>
    %465 = arith.mulf %463, %464 : vector<8x32xf32>
    %466 = vector.broadcast %327 : vector<1x32xf32> to vector<8x32xf32>
    %467 = arith.addf %465, %466 : vector<8x32xf32>
    %c3 = arith.constant 3 : index
    %c0_172 = arith.constant 0 : index
    %c0_173 = arith.constant 0 : index
    %468 = vector.load %arg4[%c3, %c0_172, %c0_173] : memref<4x32x96xf32, #tpu.memory_space<vmem>>, vector<1x32x96xf32>
    %469 = vector.shape_cast %468 : vector<1x32x96xf32> to vector<32x96xf32>
    %c3_174 = arith.constant 3 : index
    %c0_175 = arith.constant 0 : index
    %c0_176 = arith.constant 0 : index
    %470 = vector.load %arg5[%c3_174, %c0_175, %c0_176] : memref<4x1x96xf32, #tpu.memory_space<vmem>>, vector<1x1x96xf32>
    %471 = vector.shape_cast %470 : vector<1x1x96xf32> to vector<1x96xf32>
    %c3_177 = arith.constant 3 : index
    %c0_178 = arith.constant 0 : index
    %c0_179 = arith.constant 0 : index
    %472 = vector.load %arg6[%c3_177, %c0_178, %c0_179] : memref<4x32x32xf32, #tpu.memory_space<vmem>>, vector<1x32x32xf32>
    %473 = vector.shape_cast %472 : vector<1x32x32xf32> to vector<32x32xf32>
    %c3_180 = arith.constant 3 : index
    %c0_181 = arith.constant 0 : index
    %c0_182 = arith.constant 0 : index
    %474 = vector.load %arg7[%c3_180, %c0_181, %c0_182] : memref<4x6x32xf32, #tpu.memory_space<vmem>>, vector<1x6x32xf32>
    %475 = vector.shape_cast %474 : vector<1x6x32xf32> to vector<6x32xf32>
    %476 = vector.extract_strided_slice %475 {offsets = [0, 0], sizes = [1, 32], strides = [1, 1]} : vector<6x32xf32> to vector<1x32xf32>
    %477 = vector.extract_strided_slice %475 {offsets = [1, 0], sizes = [1, 32], strides = [1, 1]} : vector<6x32xf32> to vector<1x32xf32>
    %478 = vector.extract_strided_slice %475 {offsets = [2, 0], sizes = [1, 32], strides = [1, 1]} : vector<6x32xf32> to vector<1x32xf32>
    %479 = vector.extract_strided_slice %475 {offsets = [3, 0], sizes = [1, 32], strides = [1, 1]} : vector<6x32xf32> to vector<1x32xf32>
    %480 = vector.extract_strided_slice %475 {offsets = [4, 0], sizes = [1, 32], strides = [1, 1]} : vector<6x32xf32> to vector<1x32xf32>
    %481 = vector.extract_strided_slice %475 {offsets = [5, 0], sizes = [1, 32], strides = [1, 1]} : vector<6x32xf32> to vector<1x32xf32>
    %c3_183 = arith.constant 3 : index
    %c0_184 = arith.constant 0 : index
    %c0_185 = arith.constant 0 : index
    %482 = vector.load %arg8[%c3_183, %c0_184, %c0_185] : memref<4x32x2048xbf16, #tpu.memory_space<vmem>>, vector<1x32x2048xbf16>
    %483 = vector.shape_cast %482 : vector<1x32x2048xbf16> to vector<32x2048xbf16>
    %484 = arith.extf %483 : vector<32x2048xbf16> to vector<32x2048xf32>
    %c3_186 = arith.constant 3 : index
    %c0_187 = arith.constant 0 : index
    %c0_188 = arith.constant 0 : index
    %485 = vector.load %arg9[%c3_186, %c0_187, %c0_188] : memref<4x1x2048xf32, #tpu.memory_space<vmem>>, vector<1x1x2048xf32>
    %486 = vector.shape_cast %485 : vector<1x1x2048xf32> to vector<1x2048xf32>
    %c3_189 = arith.constant 3 : index
    %c0_190 = arith.constant 0 : index
    %c0_191 = arith.constant 0 : index
    %487 = vector.load %arg10[%c3_189, %c0_190, %c0_191] : memref<4x2048x32xbf16, #tpu.memory_space<vmem>>, vector<1x2048x32xbf16>
    %488 = vector.shape_cast %487 : vector<1x2048x32xbf16> to vector<2048x32xbf16>
    %489 = arith.extf %488 : vector<2048x32xbf16> to vector<2048x32xf32>
    %cst_192 = arith.constant dense<0.000000e+00> : vector<8x96xf32>
    %490 = tpu.matmul %467, %469, %cst_192 {dimension_numbers = #tpu.dot_dimension_numbers<[1], [0], [0], [1], [0, 0, 1, 1], [], []>} : vector<8x32xf32>, vector<32x96xf32>, vector<8x96xf32> -> vector<8x96xf32>
    %491 = vector.broadcast %471 : vector<1x96xf32> to vector<8x96xf32>
    %492 = arith.addf %490, %491 : vector<8x96xf32>
    %cst_193 = arith.constant 0.000000e+00 : f32
    %493 = vector.broadcast %cst_193 : f32 to vector<8x32xf32>
    %494 = vector.extract_strided_slice %492 {offsets = [0, 0], sizes = [8, 8], strides = [1, 1]} : vector<8x96xf32> to vector<8x8xf32>
    %495 = vector.extract_strided_slice %492 {offsets = [0, 32], sizes = [8, 8], strides = [1, 1]} : vector<8x96xf32> to vector<8x8xf32>
    %496 = vector.extract_strided_slice %492 {offsets = [0, 64], sizes = [8, 8], strides = [1, 1]} : vector<8x96xf32> to vector<8x8xf32>
    %497 = tpu.transpose %495, [1, 0] : vector<8x8xf32> -> vector<8x8xf32>
    %cst_194 = arith.constant dense<0.000000e+00> : vector<8x8xf32>
    %498 = tpu.matmul %494, %497, %cst_194 {dimension_numbers = #tpu.dot_dimension_numbers<[1], [0], [0], [1], [0, 0, 1, 1], [], []>} : vector<8x8xf32>, vector<8x8xf32>, vector<8x8xf32> -> vector<8x8xf32>
    %cst_195 = arith.constant dense<0xFF800000> : vector<8xf32>
    %499 = vector.multi_reduction <maximumf>, %498, %cst_195 [1] : vector<8x8xf32> to vector<8xf32>
    %500 = vector.shape_cast %499 : vector<8xf32> to vector<8x1xf32>
    %501 = vector.broadcast %500 : vector<8x1xf32> to vector<8x8xf32>
    %502 = arith.subf %498, %501 : vector<8x8xf32>
    %503 = math.exp %502 : vector<8x8xf32>
    %cst_196 = arith.constant dense<0.000000e+00> : vector<8xf32>
    %504 = vector.multi_reduction <add>, %503, %cst_196 [1] : vector<8x8xf32> to vector<8xf32>
    %505 = vector.shape_cast %504 : vector<8xf32> to vector<8x1xf32>
    %506 = tpu.reciprocal %505 {approx = true} : vector<8x1xf32> -> vector<8x1xf32>
    %507 = vector.broadcast %506 : vector<8x1xf32> to vector<8x8xf32>
    %508 = arith.mulf %503, %507 : vector<8x8xf32>
    %cst_197 = arith.constant dense<0.000000e+00> : vector<8x8xf32>
    %509 = tpu.matmul %508, %496, %cst_197 {dimension_numbers = #tpu.dot_dimension_numbers<[1], [0], [0], [1], [0, 0, 1, 1], [], []>} : vector<8x8xf32>, vector<8x8xf32>, vector<8x8xf32> -> vector<8x8xf32>
    %510 = vector.extract_strided_slice %473 {offsets = [0, 0], sizes = [8, 32], strides = [1, 1]} : vector<32x32xf32> to vector<8x32xf32>
    %cst_198 = arith.constant dense<0.000000e+00> : vector<8x32xf32>
    %511 = tpu.matmul %509, %510, %cst_198 {dimension_numbers = #tpu.dot_dimension_numbers<[1], [0], [0], [1], [0, 0, 1, 1], [], []>} : vector<8x8xf32>, vector<8x32xf32>, vector<8x32xf32> -> vector<8x32xf32>
    %512 = arith.addf %493, %511 : vector<8x32xf32>
    %513 = vector.extract_strided_slice %492 {offsets = [0, 8], sizes = [8, 8], strides = [1, 1]} : vector<8x96xf32> to vector<8x8xf32>
    %514 = vector.extract_strided_slice %492 {offsets = [0, 40], sizes = [8, 8], strides = [1, 1]} : vector<8x96xf32> to vector<8x8xf32>
    %515 = vector.extract_strided_slice %492 {offsets = [0, 72], sizes = [8, 8], strides = [1, 1]} : vector<8x96xf32> to vector<8x8xf32>
    %516 = tpu.transpose %514, [1, 0] : vector<8x8xf32> -> vector<8x8xf32>
    %cst_199 = arith.constant dense<0.000000e+00> : vector<8x8xf32>
    %517 = tpu.matmul %513, %516, %cst_199 {dimension_numbers = #tpu.dot_dimension_numbers<[1], [0], [0], [1], [0, 0, 1, 1], [], []>} : vector<8x8xf32>, vector<8x8xf32>, vector<8x8xf32> -> vector<8x8xf32>
    %cst_200 = arith.constant dense<0xFF800000> : vector<8xf32>
    %518 = vector.multi_reduction <maximumf>, %517, %cst_200 [1] : vector<8x8xf32> to vector<8xf32>
    %519 = vector.shape_cast %518 : vector<8xf32> to vector<8x1xf32>
    %520 = vector.broadcast %519 : vector<8x1xf32> to vector<8x8xf32>
    %521 = arith.subf %517, %520 : vector<8x8xf32>
    %522 = math.exp %521 : vector<8x8xf32>
    %cst_201 = arith.constant dense<0.000000e+00> : vector<8xf32>
    %523 = vector.multi_reduction <add>, %522, %cst_201 [1] : vector<8x8xf32> to vector<8xf32>
    %524 = vector.shape_cast %523 : vector<8xf32> to vector<8x1xf32>
    %525 = tpu.reciprocal %524 {approx = true} : vector<8x1xf32> -> vector<8x1xf32>
    %526 = vector.broadcast %525 : vector<8x1xf32> to vector<8x8xf32>
    %527 = arith.mulf %522, %526 : vector<8x8xf32>
    %cst_202 = arith.constant dense<0.000000e+00> : vector<8x8xf32>
    %528 = tpu.matmul %527, %515, %cst_202 {dimension_numbers = #tpu.dot_dimension_numbers<[1], [0], [0], [1], [0, 0, 1, 1], [], []>} : vector<8x8xf32>, vector<8x8xf32>, vector<8x8xf32> -> vector<8x8xf32>
    %529 = vector.extract_strided_slice %473 {offsets = [8, 0], sizes = [8, 32], strides = [1, 1]} : vector<32x32xf32> to vector<8x32xf32>
    %cst_203 = arith.constant dense<0.000000e+00> : vector<8x32xf32>
    %530 = tpu.matmul %528, %529, %cst_203 {dimension_numbers = #tpu.dot_dimension_numbers<[1], [0], [0], [1], [0, 0, 1, 1], [], []>} : vector<8x8xf32>, vector<8x32xf32>, vector<8x32xf32> -> vector<8x32xf32>
    %531 = arith.addf %512, %530 : vector<8x32xf32>
    %532 = vector.extract_strided_slice %492 {offsets = [0, 16], sizes = [8, 8], strides = [1, 1]} : vector<8x96xf32> to vector<8x8xf32>
    %533 = vector.extract_strided_slice %492 {offsets = [0, 48], sizes = [8, 8], strides = [1, 1]} : vector<8x96xf32> to vector<8x8xf32>
    %534 = vector.extract_strided_slice %492 {offsets = [0, 80], sizes = [8, 8], strides = [1, 1]} : vector<8x96xf32> to vector<8x8xf32>
    %535 = tpu.transpose %533, [1, 0] : vector<8x8xf32> -> vector<8x8xf32>
    %cst_204 = arith.constant dense<0.000000e+00> : vector<8x8xf32>
    %536 = tpu.matmul %532, %535, %cst_204 {dimension_numbers = #tpu.dot_dimension_numbers<[1], [0], [0], [1], [0, 0, 1, 1], [], []>} : vector<8x8xf32>, vector<8x8xf32>, vector<8x8xf32> -> vector<8x8xf32>
    %cst_205 = arith.constant dense<0xFF800000> : vector<8xf32>
    %537 = vector.multi_reduction <maximumf>, %536, %cst_205 [1] : vector<8x8xf32> to vector<8xf32>
    %538 = vector.shape_cast %537 : vector<8xf32> to vector<8x1xf32>
    %539 = vector.broadcast %538 : vector<8x1xf32> to vector<8x8xf32>
    %540 = arith.subf %536, %539 : vector<8x8xf32>
    %541 = math.exp %540 : vector<8x8xf32>
    %cst_206 = arith.constant dense<0.000000e+00> : vector<8xf32>
    %542 = vector.multi_reduction <add>, %541, %cst_206 [1] : vector<8x8xf32> to vector<8xf32>
    %543 = vector.shape_cast %542 : vector<8xf32> to vector<8x1xf32>
    %544 = tpu.reciprocal %543 {approx = true} : vector<8x1xf32> -> vector<8x1xf32>
    %545 = vector.broadcast %544 : vector<8x1xf32> to vector<8x8xf32>
    %546 = arith.mulf %541, %545 : vector<8x8xf32>
    %cst_207 = arith.constant dense<0.000000e+00> : vector<8x8xf32>
    %547 = tpu.matmul %546, %534, %cst_207 {dimension_numbers = #tpu.dot_dimension_numbers<[1], [0], [0], [1], [0, 0, 1, 1], [], []>} : vector<8x8xf32>, vector<8x8xf32>, vector<8x8xf32> -> vector<8x8xf32>
    %548 = vector.extract_strided_slice %473 {offsets = [16, 0], sizes = [8, 32], strides = [1, 1]} : vector<32x32xf32> to vector<8x32xf32>
    %cst_208 = arith.constant dense<0.000000e+00> : vector<8x32xf32>
    %549 = tpu.matmul %547, %548, %cst_208 {dimension_numbers = #tpu.dot_dimension_numbers<[1], [0], [0], [1], [0, 0, 1, 1], [], []>} : vector<8x8xf32>, vector<8x32xf32>, vector<8x32xf32> -> vector<8x32xf32>
    %550 = arith.addf %531, %549 : vector<8x32xf32>
    %551 = vector.extract_strided_slice %492 {offsets = [0, 24], sizes = [8, 8], strides = [1, 1]} : vector<8x96xf32> to vector<8x8xf32>
    %552 = vector.extract_strided_slice %492 {offsets = [0, 56], sizes = [8, 8], strides = [1, 1]} : vector<8x96xf32> to vector<8x8xf32>
    %553 = vector.extract_strided_slice %492 {offsets = [0, 88], sizes = [8, 8], strides = [1, 1]} : vector<8x96xf32> to vector<8x8xf32>
    %554 = tpu.transpose %552, [1, 0] : vector<8x8xf32> -> vector<8x8xf32>
    %cst_209 = arith.constant dense<0.000000e+00> : vector<8x8xf32>
    %555 = tpu.matmul %551, %554, %cst_209 {dimension_numbers = #tpu.dot_dimension_numbers<[1], [0], [0], [1], [0, 0, 1, 1], [], []>} : vector<8x8xf32>, vector<8x8xf32>, vector<8x8xf32> -> vector<8x8xf32>
    %cst_210 = arith.constant dense<0xFF800000> : vector<8xf32>
    %556 = vector.multi_reduction <maximumf>, %555, %cst_210 [1] : vector<8x8xf32> to vector<8xf32>
    %557 = vector.shape_cast %556 : vector<8xf32> to vector<8x1xf32>
    %558 = vector.broadcast %557 : vector<8x1xf32> to vector<8x8xf32>
    %559 = arith.subf %555, %558 : vector<8x8xf32>
    %560 = math.exp %559 : vector<8x8xf32>
    %cst_211 = arith.constant dense<0.000000e+00> : vector<8xf32>
    %561 = vector.multi_reduction <add>, %560, %cst_211 [1] : vector<8x8xf32> to vector<8xf32>
    %562 = vector.shape_cast %561 : vector<8xf32> to vector<8x1xf32>
    %563 = tpu.reciprocal %562 {approx = true} : vector<8x1xf32> -> vector<8x1xf32>
    %564 = vector.broadcast %563 : vector<8x1xf32> to vector<8x8xf32>
    %565 = arith.mulf %560, %564 : vector<8x8xf32>
    %cst_212 = arith.constant dense<0.000000e+00> : vector<8x8xf32>
    %566 = tpu.matmul %565, %553, %cst_212 {dimension_numbers = #tpu.dot_dimension_numbers<[1], [0], [0], [1], [0, 0, 1, 1], [], []>} : vector<8x8xf32>, vector<8x8xf32>, vector<8x8xf32> -> vector<8x8xf32>
    %567 = vector.extract_strided_slice %473 {offsets = [24, 0], sizes = [8, 32], strides = [1, 1]} : vector<32x32xf32> to vector<8x32xf32>
    %cst_213 = arith.constant dense<0.000000e+00> : vector<8x32xf32>
    %568 = tpu.matmul %566, %567, %cst_213 {dimension_numbers = #tpu.dot_dimension_numbers<[1], [0], [0], [1], [0, 0, 1, 1], [], []>} : vector<8x8xf32>, vector<8x32xf32>, vector<8x32xf32> -> vector<8x32xf32>
    %569 = arith.addf %550, %568 : vector<8x32xf32>
    %570 = arith.addf %467, %569 : vector<8x32xf32>
    %571 = vector.broadcast %476 : vector<1x32xf32> to vector<8x32xf32>
    %572 = arith.addf %570, %571 : vector<8x32xf32>
    %cst_214 = arith.constant dense<0.000000e+00> : vector<8xf32>
    %573 = vector.multi_reduction <add>, %572, %cst_214 [1] : vector<8x32xf32> to vector<8xf32>
    %574 = vector.shape_cast %573 : vector<8xf32> to vector<8x1xf32>
    %cst_215 = arith.constant 3.200000e+01 : f32
    %575 = vector.broadcast %cst_215 : f32 to vector<8x1xf32>
    %576 = arith.divf %574, %575 : vector<8x1xf32>
    %577 = vector.broadcast %576 : vector<8x1xf32> to vector<8x32xf32>
    %578 = arith.subf %572, %577 : vector<8x32xf32>
    %579 = arith.mulf %578, %578 : vector<8x32xf32>
    %cst_216 = arith.constant dense<0.000000e+00> : vector<8xf32>
    %580 = vector.multi_reduction <add>, %579, %cst_216 [1] : vector<8x32xf32> to vector<8xf32>
    %581 = vector.shape_cast %580 : vector<8xf32> to vector<8x1xf32>
    %cst_217 = arith.constant 3.200000e+01 : f32
    %582 = vector.broadcast %cst_217 : f32 to vector<8x1xf32>
    %583 = arith.divf %581, %582 : vector<8x1xf32>
    %cst_218 = arith.constant 9.99999974E-6 : f32
    %584 = vector.broadcast %cst_218 : f32 to vector<8x1xf32>
    %585 = arith.addf %583, %584 : vector<8x1xf32>
    %586 = math.rsqrt %585 : vector<8x1xf32>
    %587 = vector.broadcast %586 : vector<8x1xf32> to vector<8x32xf32>
    %588 = arith.mulf %578, %587 : vector<8x32xf32>
    %589 = vector.broadcast %477 : vector<1x32xf32> to vector<8x32xf32>
    %590 = arith.mulf %588, %589 : vector<8x32xf32>
    %591 = vector.broadcast %478 : vector<1x32xf32> to vector<8x32xf32>
    %592 = arith.addf %590, %591 : vector<8x32xf32>
    %cst_219 = arith.constant dense<0.000000e+00> : vector<8x2048xf32>
    %593 = tpu.matmul %592, %484, %cst_219 {dimension_numbers = #tpu.dot_dimension_numbers<[1], [0], [0], [1], [0, 0, 1, 1], [], []>} : vector<8x32xf32>, vector<32x2048xf32>, vector<8x2048xf32> -> vector<8x2048xf32>
    %594 = vector.broadcast %486 : vector<1x2048xf32> to vector<8x2048xf32>
    %595 = arith.addf %593, %594 : vector<8x2048xf32>
    %cst_220 = arith.constant 0.000000e+00 : f32
    %596 = vector.broadcast %cst_220 : f32 to vector<8x2048xf32>
    %597 = arith.maximumf %595, %596 : vector<8x2048xf32>
    %cst_221 = arith.constant dense<0.000000e+00> : vector<8x32xf32>
    %598 = tpu.matmul %597, %489, %cst_221 {dimension_numbers = #tpu.dot_dimension_numbers<[1], [0], [0], [1], [0, 0, 1, 1], [], []>} : vector<8x2048xf32>, vector<2048x32xf32>, vector<8x32xf32> -> vector<8x32xf32>
    %599 = vector.broadcast %479 : vector<1x32xf32> to vector<8x32xf32>
    %600 = arith.addf %598, %599 : vector<8x32xf32>
    %601 = arith.addf %592, %600 : vector<8x32xf32>
    %cst_222 = arith.constant dense<0.000000e+00> : vector<8xf32>
    %602 = vector.multi_reduction <add>, %601, %cst_222 [1] : vector<8x32xf32> to vector<8xf32>
    %603 = vector.shape_cast %602 : vector<8xf32> to vector<8x1xf32>
    %cst_223 = arith.constant 3.200000e+01 : f32
    %604 = vector.broadcast %cst_223 : f32 to vector<8x1xf32>
    %605 = arith.divf %603, %604 : vector<8x1xf32>
    %606 = vector.broadcast %605 : vector<8x1xf32> to vector<8x32xf32>
    %607 = arith.subf %601, %606 : vector<8x32xf32>
    %608 = arith.mulf %607, %607 : vector<8x32xf32>
    %cst_224 = arith.constant dense<0.000000e+00> : vector<8xf32>
    %609 = vector.multi_reduction <add>, %608, %cst_224 [1] : vector<8x32xf32> to vector<8xf32>
    %610 = vector.shape_cast %609 : vector<8xf32> to vector<8x1xf32>
    %cst_225 = arith.constant 3.200000e+01 : f32
    %611 = vector.broadcast %cst_225 : f32 to vector<8x1xf32>
    %612 = arith.divf %610, %611 : vector<8x1xf32>
    %cst_226 = arith.constant 9.99999974E-6 : f32
    %613 = vector.broadcast %cst_226 : f32 to vector<8x1xf32>
    %614 = arith.addf %612, %613 : vector<8x1xf32>
    %615 = math.rsqrt %614 : vector<8x1xf32>
    %616 = vector.broadcast %615 : vector<8x1xf32> to vector<8x32xf32>
    %617 = arith.mulf %607, %616 : vector<8x32xf32>
    %618 = vector.broadcast %480 : vector<1x32xf32> to vector<8x32xf32>
    %619 = arith.mulf %617, %618 : vector<8x32xf32>
    %620 = vector.broadcast %481 : vector<1x32xf32> to vector<8x32xf32>
    %621 = arith.addf %619, %620 : vector<8x32xf32>
    %cst_227 = arith.constant dense<0.000000e+00> : vector<32xf32>
    %622 = vector.multi_reduction <add>, %621, %cst_227 [0] : vector<8x32xf32> to vector<32xf32>
    %623 = vector.shape_cast %622 : vector<32xf32> to vector<1x32xf32>
    %c0_228 = arith.constant 0 : index
    %c0_229 = arith.constant 0 : index
    %624 = vector.load %arg11[%c0_228, %c0_229] : memref<32x2xf32, #tpu.memory_space<vmem>>, vector<32x2xf32>
    %cst_230 = arith.constant dense<0.000000e+00> : vector<1x2xf32>
    %625 = tpu.matmul %623, %624, %cst_230 {dimension_numbers = #tpu.dot_dimension_numbers<[1], [0], [0], [1], [0, 0, 1, 1], [], []>} : vector<1x32xf32>, vector<32x2xf32>, vector<1x2xf32> -> vector<1x2xf32>
    %c0_231 = arith.constant 0 : index
    %c0_232 = arith.constant 0 : index
    %626 = vector.load %arg12[%c0_231, %c0_232] : memref<1x2xf32, #tpu.memory_space<vmem>>, vector<1x2xf32>
    %627 = arith.addf %625, %626 : vector<1x2xf32>
    %c0_233 = arith.constant 0 : index
    %c0_234 = arith.constant 0 : index
    %c0_235 = arith.constant 0 : index
    %628 = vector.load %arg13[%c0_233, %c0_234, %c0_235] : memref<1x1x2xf32, #tpu.memory_space<vmem>>, vector<1x1x2xf32>
    %629 = vector.shape_cast %628 : vector<1x1x2xf32> to vector<1x2xf32>
    %630 = vector.shape_cast %627 : vector<1x2xf32> to vector<1x1x2xf32>
    tpu.vector_store %arg13[%c0_233, %c0_234, %c0_235], %630 {strides = array<i32>} : memref<1x1x2xf32, #tpu.memory_space<vmem>>, vector<1x1x2xf32>,
    return
  }
  func.func @transform_0(%arg0: i32) -> (i32, i32, i32) {
    %c0_i32 = arith.constant 0 : i32
    %c0_i32_0 = arith.constant 0 : i32
    %c0_i32_1 = arith.constant 0 : i32
    return %arg0, %c0_i32, %c0_i32_0 : i32, i32, i32
  }
  func.func @transform_1(%arg0: i32) -> (i32, i32) {
    %c0_i32 = arith.constant 0 : i32
    %c0_i32_0 = arith.constant 0 : i32
    %c0_i32_1 = arith.constant 0 : i32
    return %c0_i32, %c0_i32_0 : i32, i32
  }
  func.func @transform_2(%arg0: i32) -> (i32, i32) {
    %c0_i32 = arith.constant 0 : i32
    %c0_i32_0 = arith.constant 0 : i32
    %c0_i32_1 = arith.constant 0 : i32
    return %c0_i32, %c0_i32_0 : i32, i32
  }
  func.func @transform_3(%arg0: i32) -> (i32, i32, i32) {
    %c0_i32 = arith.constant 0 : i32
    %c0_i32_0 = arith.constant 0 : i32
    %c0_i32_1 = arith.constant 0 : i32
    %c0_i32_2 = arith.constant 0 : i32
    return %c0_i32, %c0_i32_0, %c0_i32_1 : i32, i32, i32
  }
  func.func @transform_4(%arg0: i32) -> (i32, i32, i32) {
    %c0_i32 = arith.constant 0 : i32
    %c0_i32_0 = arith.constant 0 : i32
    %c0_i32_1 = arith.constant 0 : i32
    %c0_i32_2 = arith.constant 0 : i32
    return %c0_i32, %c0_i32_0, %c0_i32_1 : i32, i32, i32
  }
  func.func @transform_5(%arg0: i32) -> (i32, i32, i32) {
    %c0_i32 = arith.constant 0 : i32
    %c0_i32_0 = arith.constant 0 : i32
    %c0_i32_1 = arith.constant 0 : i32
    %c0_i32_2 = arith.constant 0 : i32
    return %c0_i32, %c0_i32_0, %c0_i32_1 : i32, i32, i32
  }
  func.func @transform_6(%arg0: i32) -> (i32, i32, i32) {
    %c0_i32 = arith.constant 0 : i32
    %c0_i32_0 = arith.constant 0 : i32
    %c0_i32_1 = arith.constant 0 : i32
    %c0_i32_2 = arith.constant 0 : i32
    return %c0_i32, %c0_i32_0, %c0_i32_1 : i32, i32, i32
  }
  func.func @transform_7(%arg0: i32) -> (i32, i32, i32) {
    %c0_i32 = arith.constant 0 : i32
    %c0_i32_0 = arith.constant 0 : i32
    %c0_i32_1 = arith.constant 0 : i32
    %c0_i32_2 = arith.constant 0 : i32
    return %c0_i32, %c0_i32_0, %c0_i32_1 : i32, i32, i32
  }
  func.func @transform_8(%arg0: i32) -> (i32, i32, i32) {
    %c0_i32 = arith.constant 0 : i32
    %c0_i32_0 = arith.constant 0 : i32
    %c0_i32_1 = arith.constant 0 : i32
    %c0_i32_2 = arith.constant 0 : i32
    return %c0_i32, %c0_i32_0, %c0_i32_1 : i32, i32, i32
  }
  func.func @transform_9(%arg0: i32) -> (i32, i32, i32) {
    %c0_i32 = arith.constant 0 : i32
    %c0_i32_0 = arith.constant 0 : i32
    %c0_i32_1 = arith.constant 0 : i32
    %c0_i32_2 = arith.constant 0 : i32
    return %c0_i32, %c0_i32_0, %c0_i32_1 : i32, i32, i32
  }
  func.func @transform_10(%arg0: i32) -> (i32, i32) {
    %c0_i32 = arith.constant 0 : i32
    %c0_i32_0 = arith.constant 0 : i32
    %c0_i32_1 = arith.constant 0 : i32
    return %c0_i32, %c0_i32_0 : i32, i32
  }
  func.func @transform_11(%arg0: i32) -> (i32, i32) {
    %c0_i32 = arith.constant 0 : i32
    %c0_i32_0 = arith.constant 0 : i32
    %c0_i32_1 = arith.constant 0 : i32
    return %c0_i32, %c0_i32_0 : i32, i32
  }
  func.func @transform_12(%arg0: i32) -> (i32, i32, i32) {
    %c0_i32 = arith.constant 0 : i32
    %c0_i32_0 = arith.constant 0 : i32
    %c0_i32_1 = arith.constant 0 : i32
    return %arg0, %c0_i32, %c0_i32_0 : i32, i32, i32
  }
}

</mosaic_0001>

<bundles_post_ra>
// kernel: forward.1
= control target key start
LH: loop header
LB: loop body
LE: loop exit
PB: predicated region body
PF: predicated region fallthrough
CT: control target
= control target key end

     0   :  { %s22276_s0 = inlined_call_operand.vmem [shape: f32[2,8,4], index: 0, kind: input, shape index: {}]   ;;  %s22277_s1 = inlined_call_operand.vmem [shape: f32[8,32], index: 1, kind: input, shape index: {}]   ;;  %s22278_s2 = inlined_call_operand.vmem [shape: f32[4,32], index: 2, kind: input, shape index: {}]   ;;  %s22279_s3 = inlined_call_operand.vmem [shape: f32[4,32,96], index: 3, kind: input, shape index: {}]   ;;  %s22280_s4 = inlined_call_operand.vmem [shape: f32[4,1,96], index: 4, kind: input, shape index: {}]   ;;  %s22281_s5 = inlined_call_operand.vmem [shape: f32[4,32,32], index: 5, kind: input, shape index: {}]   ;;  %s22282_s6 = inlined_call_operand.vmem [shape: f32[4,6,32], index: 6, kind: input, shape index: {}]   ;;  %s22283_s7 = inlined_call_operand.vmem [shape: bf16[4,32,2048], index: 7, kind: input, shape index: {}]   ;;  %s22284_s8 = inlined_call_operand.vmem [shape: f32[4,1,2048], index: 8, kind: input, shape index: {}]   ;;  %s22285_s9 = inlined_call_operand.vmem [shape: bf16[4,2048,32], index: 9, kind: input, shape index: {}]   ;;  %s22286_s10 = inlined_call_operand.vmem [shape: f32[32,2], index: 10, kind: input, shape index: {}]   ;;  %s22287_s11 = inlined_call_operand.vmem [shape: f32[1,2], index: 11, kind: input, shape index: {}]   ;;  %s22288_s12 = inlined_call_operand.hbm [shape: f32[2,1,2], index: 12, kind: output, shape index: {}]  }
   0x1   :  { %22320 = sst [smem:[#allocation12_spill]] %s22276_s0 }
   0x2   :  { %22321 = sst [smem:[#allocation13_spill]] %s22277_s1 }
   0x3   :  { %22322 = sst [smem:[#allocation14_spill]] %s22278_s2 }
   0x4   :  { %22323 = sst [smem:[#allocation15_spill]] %s22287_s11 }
   0x5   :  { %22324 = sst [smem:[#allocation16_spill]] %s22288_s12 }
   0x6   :  { %17 = vsyncpa [#allocation3], 0 }
   0x7   :  { %19 = vsyncpa [#allocation3 + $0x1], 0  ;;  %s19256_s21 = smov 0   ;;  %s19258_s22 = smov 0  }
   0x8   :  { %s19260_s23 = smov 0   ;;  %s19262_s24 = smov 0  }
   0x9 LB: > { %22325 = sst [smem:[#allocation5_spill]] %s19162_s21  ;;  %s19277_s25 = sadd.s32 4294967295, %s19174_s24   ;;  %s19174_s24 = sphi %s19262_s24, %s22355_s24   ;;  %s19170_s23 = sphi %s19260_s23, %s22357_s23   ;;  %s19166_s22 = sphi %s19258_s22, %s22359_s22   ;;  %s19162_s21 = sphi %s19256_s21, %s22358_s21  }
   0xa   : > { %22326 = sst [smem:[#allocation6_spill]] %s19170_s23  ;;  %s12420_s26 = sadd.s32 4294967294, %s19174_s24  }
   0xb   : > { %22327 = sst [smem:[#allocation7_spill]] %s19174_s24  ;;  %s19281_s27 = sadd.s32 1, %s19174_s24  }
   0xc   : > { %22328 = sst [smem:[#allocation8_spill]] %s19281_s27  ;;  %s289_s28 = sadd.s32 1, %s19170_s23 }
   0xd   : > { %s286_s29 = ssub.s32 %s19174_s24, %s19281_s27  ;;  %p299_p0 = scmp.ne.s32.totalorder %s19170_s23, %s19166_s22 }
   0xe   : > { %p287_p1 = scmp.eq.s32.totalorder %s286_s29, 0  ;;  %p300_p2 = scmp.eq.s32.totalorder %s19277_s25, 1 }
   0xf   : > { %p305_p3 = scmp.ne.s32.totalorder %s19166_s22, %s19162_s21  ;;  %p306_p4 = scmp.eq.s32.totalorder %s12420_s26, 1 }
  0x10   : > { %s19292_s30 = scalar_select %p287_p1, %s19170_s23, %s289_s28  }
  0x11   : > { %p19294_p5 = por %p300_p2, %p299_p0  ;;  %p19298_p6 = por %p306_p4, %p305_p3 }
  0x12   : > { %22329 = sst [smem:[#allocation9_spill]] %s19292_s30  ;;  %p12423_p7 = scmp.ge.s32.totalorder %s19174_s24, 1 }
  0x13   : > { %s22330_s13 = scalar_select %p19294_p5, 1, 0 }
  0x14   : > { %s22332_s14 = scalar_select %p19298_p6, 1, 0 }
  0x15   : > { %22331 = sst [smem:[#allocation10_spill]] %s22330_s13  ;;  %p364_p8 = scmp.lt.s32.totalorder %s19174_s24, 3 }
  0x16   : > { %22333 = sst [smem:[#allocation11_spill]] %s22332_s14 }
  0x17   : > { %p365_p9 = pnand %p12423_p7, %p364_p8 }
  0x18   : > { %s22334_s2 = sld [smem:[#allocation14_spill]] (!%p365_p9)  ;;  %vm415_vm0 = vcmask (!%p365_p9), 1043456   ;;  %p404_p10 = scmp.lt.s32.totalorder (!%p365_p9), %s19277_s25, 1  ;;  %v19176_v1 = vmov (!%p365_p9), 0.0   ;;  %vm19177_vm1 = vmmov (!%p365_p9), 0   ;;  %v489_v2 = vld [vmem:[%s22279_s3] sm:$0xff] (!%p365_p9) }
  0x19   : > { %368 = sbr.rel (%p365_p9) target bundleno = 15918 (0x3e2e), region = 68  ;;  %17237 = vmatprep.subr.mxu0 (!%p365_p9), %v19176_v1  ;;  %17239 = vmatprep.mubr.msk.f32.mxu0 (!%p365_p9), %vm19177_vm1, %v19176_v1  ;;  %v490_v3 = vld [vmem:[%s22279_s3 + $0x8] sm:$0xff] (!%p365_p9)  ;;  %v19178_v4 = vmov (!%p365_p9), 0.0|0.0   ;;  %vm411_vm2 = vcmask (!%p365_p9), 31744   ;;  %s22335_s0 = sld [smem:[#allocation12_spill]] (!%p365_p9)  ;;  %v491_v7 = vld [vmem:[%s22279_s3 + $0x10] sm:$0xff] (!%p365_p9) }
  0x1a   : > { %17537 = vmatprep.subr.bf16.mxu1 (!%p365_p9), %v19178_v4  ;;  %v17538_v5 = vpack.c.bf16 (!%p365_p9), %v490_v3, %v489_v2  ;;  %17250 = vmatprep.mubr.msk.f32.mxu1 (!%p365_p9), %vm19177_vm1, %v19176_v1  ;;  %v492_v8 = vld [vmem:[%s22279_s3 + $0x18] sm:$0xff] (!%p365_p9)  ;;  %s22336_s1 = sld [smem:[#allocation13_spill]] (!%p365_p9)  ;;  %vm1115_vm3 = vcmask (!%p365_p9), 261120   ;;  %v12427_v14 = vld [vmem:[%s22280_s4] ss:$0 sm:$0xff] (!%p365_p9)  ;;  %s22307_s17 = smov (!%p365_p9), 96  }
  0x1b   : > { %v17541_v9 = vpack.c.bf16 (!%p365_p9), %v492_v8, %v491_v7  ;;  %s22309_s18 = smov (!%p365_p9), 88   ;;  %vm1192_vm4 = vcmask (!%p365_p9), 64512   ;;  %s22305_s19 = smov (!%p365_p9), 120   ;;  %v495_v43 = vld [vmem:[%s22281_s5 + $0x8] sm:$0xff] (!%p365_p9)  ;;  %v494_v48 = vld [vmem:[%s22281_s5] sm:$0xff] (!%p365_p9)  ;;  %vm12350_vm5 = vcmask (!%p365_p9), 8192  }
  0x1c   : > { %17539 = vmatpush3.bf16.msra.mxu1 (!%p365_p9), %v17538_v5  ;;  %s22303_s20 = smov (!%p365_p9), 56   ;;  %s22295_s29 = smov (!%p365_p9), 104  }
  0x1d   : > { %17540 = vmatprep.subr.bf16.mxu1 (!%p365_p9), %v19178_v4  ;;  %s22342_s15 = smov (!%p365_p9), 80   ;;  %s22349_s27 = sld [smem:[#allocation15_spill]] (!%p365_p9) }
  0x1e   : > { %v409_v0 = vld [vmem:[%s22334_s2] sm:$0xf] (!%p365_p9)  ;;  %s13432_s21 = sshll.u32 (!%p365_p9), %s19277_s25, 4  ;;  %s22350_s24 = sld [smem:[#allocation16_spill]] (!%p365_p9) }
  0x1f   : > { %17238 = vmatpush3.msk.msra.mxu0 (!%p365_p9), %vm415_vm0, %v409_v0 }
  0x20   : > { %s405_s26 = scalar_select %p404_p10, %s19277_s25, 1  ;;  %17253 = vmatprep.subr.mxu0 %v19176_v1  ;;  %17542 = vmatpush3.bf16.msra.mxu1 %v17541_v9  ;;  %v410_v10 = vld [vmem:[%s22336_s1] sm:$0xff] }
  0x21   : > { %17273 = vmatprep.subr.mxu1 %v19176_v1  ;;  %s22347_s1 = smov 40   ;;  %s19190_s25 = smov [#allocation2]  }
  0x22   : > { %s12424_s28 = sshll.u32 %s405_s26, 3  ;;  %s22289_s26 = smov 80  }
  0x23   : > { %s407_s16 = scalar_lea.vmem %s22335_s0, %s12424_s28  ;;  %s22301_s28 = smov 112  }
  0x24   : > { %v408_v6 = vld [vmem:[%s407_s16] sm:$0xff]  ;;  %s22291_s16 = smov 64   ;;  %s22339_s0 = smov 120  }
  0x25   : > { %17240 = vmatmul.mubr.msk.f32.vlgmr.msra.gmra.mrb[0].mxu0 %vm411_vm2, %v408_v6  ;;  %s22351_s30 = smov %s22350_s24  ;;  %s22234_s2 = scalar_lea.hbm %s22350_s24, %s13432_s21 }
  0x26   : > { %17255 = vmatprep.mubr.msk.f32.mxu0 %vm19177_vm1, %v19176_v1 }
  0xf8   : > { %v485_v11 = vpop.f32.mrb[0].mxu0 }
  0xf9   : > { %v19338_v12 = vadd.f32 %v485_v11, %v410_v10  ;;  %v17241_v13 = vpop.f32.mrb[1].mxu0  ;;  %v496_v10 = vld [vmem:[%s22281_s5 + $0x10] sm:$0xff] }
  0xfb   : > { %17251 = vmatmul.mubr.msk.f32.vlgmr.msra.gmra.mrb[0].mxu1 %vm1115_vm3, %v19338_v12 }
  0xfc   : > { %17275 = vmatprep.mubr.msk.f32.mxu1 %vm19177_vm1, %v19176_v1  ;;  %17274 = vmatpush3.msra.mxu1 %v495_v43 }
  0xfd   : > { %17283 = vmatprep.subr.mxu1 %v19176_v1 }
 0x1ce   : > { %v1185_v15 = vpop.f32.mrb[0].mxu1 }
 0x1cf   : > { %v19347_v16 = vadd.f32 %v12427_v14, %v1185_v15  ;;  %v17252_v17 = vpop.f32.mrb[1].mxu1 }
 0x1d1   : > { %1278 = vrot.lane.b32.xlu1 %v19347_v16, %s22291_s16  ;;  %1190 = vrot.lane.b32.xlu0 %v19347_v16, %s22307_s17  ;;  %s22299_s16 = smov 48   ;;  %s22337_s17 = smov 88  }
 0x1d5   : > { %1356 = vrot.lane.b32.xlu1 %v19347_v16, %s22309_s18  ;;  %s22338_s18 = smov 96  }
 0x243   : > { %v1191_v18 = vpop.permute.xlu0 %1190  ;;  %v1279_v19 = vpop.permute.xlu1 %1278 }
 0x244   : > { %17254 = vmatpush3.xpose.msk.msra.mxu0 %vm1192_vm4, %v1191_v18 }
 0x245   : > { %17258 = vmatprep.subr.mxu0 %v19176_v1 }
 0x247   : > { %17256 = vmatmul.mubr.msk.f32.vlgmr.msra.gmra.mrb[2].mxu0 %vm1192_vm4, %v19347_v16  ;;  %v1357_v28 = vpop.permute.xlu1 %1356 }
 0x248   : > { %17259 = vmatpush3.msra.mxu0 %v1279_v19  ;;  %17260 = vmatprep.mubr.msk.f32.mxu0 %vm19177_vm1, %v19176_v1 }
 0x249   : > { %17263 = vmatprep.subr.mxu0 %v19176_v1 }
 0x31a   : > { %v1263_v20 = vpop.f32.mrb[2].mxu0 }
 0x31b   : > { %v17257_v21 = vpop.f32.mrb[3].mxu0  ;;  %v1267_v22 = vsel %vm1192_vm4, %v1263_v20, -inf }
 0x31c   : > { %1268 = vmax.xlane.f32.xlu0 %v1267_v22 }
 0x3a9   : > { %v1269_v23 = vpop.xlane.xlu0 %1268 }
 0x3aa   : > { %v1270_v24 = vsub.f32 %v1263_v20, %v1269_v23  ;;  %v497_v23 = vld [vmem:[%s22281_s5 + $0x18] sm:$0xff] }
 0x3ac   : > { %v1271_v25 = vmul.f32 1.442695, %v1270_v24 }
 0x3ae   : > { %19028 = vpow2.f32 %v1271_v25 }
 0x3b8   : > { %v19029_v26 = vpop.eup %19028 }
 0x3b9   : > { %v1273_v27 = vsel %vm1192_vm4, %v19029_v26, 0.0 }
 0x3ba   : > { %1274 = vadd.xlane.f32.xlu1 %v1273_v27 }
 0x3cb   : > { %1354 = vrot.lane.b32.xlu1 %v19347_v16, %s22305_s19  ;;  %s22340_s19 = smov 56  }
 0x447   : > { %v1275_v29 = vpop.xlane.xlu1 %1274 }
 0x448   : > { %19030 = vrcp.f32 %v1275_v29 }
 0x44b   : > { %v1355_v32 = vpop.permute.xlu1 %1354 }
 0x452   : > { %v19031_v30 = vpop.eup %19030 }
 0x453   : > { %v1277_v31 = vmul.f32 %v19031_v30, %v19029_v26 }
 0x455   : > { %17261 = vmatmul.mubr.msk.f32.vlgmr.msra.gmra.mrb[4].mxu0 %vm1192_vm4, %v1277_v31 }
 0x456   : > { %17264 = vmatpush3.xpose.msk.msra.mxu0 %vm1192_vm4, %v1357_v28  ;;  %17265 = vmatprep.mubr.msk.f32.mxu0 %vm19177_vm1, %v19176_v1 }
 0x457   : > { %17268 = vmatprep.subr.mxu0 %v19176_v1 }
 0x459   : > { %17266 = vmatmul.mubr.msk.f32.vlgmr.msra.gmra.mrb[6].mxu0 %vm1192_vm4, %v1355_v32  ;;  %v2144_v32 = vlaneseq }
 0x45a   : > { %17270 = vmatprep.mubr.msk.f32.mxu0 %vm19177_vm1, %v19176_v1 }
 0x528   : > { %v1350_v33 = vpop.f32.mrb[4].mxu0 }
 0x529   : > { %v17262_v34 = vpop.f32.mrb[5].mxu0 }
 0x52c   : > { %v1428_v35 = vpop.f32.mrb[6].mxu0 }
 0x52d   : > { %v17267_v36 = vpop.f32.mrb[7].mxu0  ;;  %v1432_v37 = vsel %vm1192_vm4, %v1428_v35, -inf }
 0x52e   : > { %1433 = vmax.xlane.f32.xlu1 %v1432_v37 }
 0x5bb   : > { %v1434_v38 = vpop.xlane.xlu1 %1433 }
 0x5bc   : > { %v1435_v39 = vsub.f32 %v1428_v35, %v1434_v38  ;;  %v19448_v35 = vld [vmem:[%s22282_s6] sm:$0x3f] }
 0x5be   : > { %v1436_v40 = vmul.f32 1.442695, %v1435_v39 }
 0x5c0   : > { %19032 = vpow2.f32 %v1436_v40 }
 0x5ca   : > { %v19033_v41 = vpop.eup %19032 }
 0x5cb   : > { %v1438_v42 = vsel %vm1192_vm4, %v19033_v41, 0.0 }
 0x5cc   : > { %1439 = vadd.xlane.f32.xlu0 %v1438_v42 }
 0x5e2   : > { %1443 = vrot.lane.b32.xlu0 %v19347_v16, %s22303_s20  ;;  %s22344_s20 = smov 48  }
 0x5e6   : > { %1667 = vrot.lane.b32.xlu0 %v19347_v16, %s22289_s26  ;;  %s22293_s26 = smov 72  }
 0x5ea   : > { %1665 = vrot.lane.b32.xlu0 %v19347_v16, %s22301_s28  ;;  %s22345_s28 = smov 104  }
 0x659   : > { %v1440_v44 = vpop.xlane.xlu0 %1439 }
 0x65a   : > { %19034 = vrcp.f32 %v1440_v44 }
 0x65d   : > { %v1444_v45 = vpop.permute.xlu0 %1443 }
 0x65e   : > { %17269 = vmatpush3.msra.mxu0 %v1444_v45 }
 0x65f   : > { %17278 = vmatprep.subr.mxu0 %v19176_v1 }
 0x661   : > { %v1668_v49 = vpop.permute.xlu0 %1667 }
 0x664   : > { %v19035_v46 = vpop.eup %19034 }
 0x665   : > { %v1442_v47 = vmul.f32 %v19035_v46, %v19033_v41  ;;  %v1666_v52 = vpop.permute.xlu0 %1665 }
 0x667   : > { %17271 = vmatmul.mubr.msk.f32.vlgmr.msra.gmra.mrb[8].mxu0 %vm1192_vm4, %v1442_v47 }
 0x668   : > { %17279 = vmatpush3.msra.mxu0 %v494_v48  ;;  %17280 = vmatprep.mubr.msk.f32.mxu0 %vm19177_vm1, %v19176_v1  ;;  %v499_v48 = vld [vmem:[%s22283_s7] sm:$0xff] }
 0x669   : > { %17288 = vmatprep.subr.mxu0 %v19176_v1 }
 0x66b   : > { %17281 = vmatmul.mubr.msk.f32.vlgmr.msra.gmra.mrb[10].mxu0 %vm1192_vm4, %v1350_v33  ;;  %v19440_v33 = vshrl.u32 %v2144_v32, 7 }
 0x66c   : > { %17290 = vmatprep.mubr.msk.f32.mxu0 %vm19177_vm1, %v19176_v1 }
 0x66d   : > { %v19443_v34 = vsub.s32 0, %v19440_v33 }
 0x66f   : > { %v2147_v39 = vrot.slane %v19448_v35, %v19443_v34 }
 0x73a   : > { %v1515_v50 = vpop.f32.mrb[8].mxu0 }
 0x73b   : > { %v17272_v51 = vpop.f32.mrb[9].mxu0  ;;  %17276 = vmatmul.mubr.msk.f32.vlgmr.msra.gmra.mrb[2].mxu1 %vm1192_vm4, %v1515_v50 }
 0x73c   : > { %17284 = vmatpush3.xpose.msk.msra.mxu1 %vm1192_vm4, %v1668_v49  ;;  %17285 = vmatprep.mubr.msk.f32.mxu1 %vm19177_vm1, %v19176_v1  ;;  %v507_v49 = vld [vmem:[%s22283_s7 + $0x40] sm:$0xff]  ;;  %v508_v51 = vld [vmem:[%s22283_s7 + $0x48] sm:$0xff] }
 0x73d   : > { %17293 = vmatprep.subr.mxu1 %v19176_v1  ;;  %v18847_v50 = vcombine.high %v499_v48, %v507_v49 }
 0x73e   : > { %v1661_v53 = vpop.f32.mrb[10].mxu0 }
 0x73f   : > { %v17282_v54 = vpop.f32.mrb[11].mxu0  ;;  %17286 = vmatmul.mubr.msk.f32.vlgmr.msra.gmra.mrb[4].mxu1 %vm1192_vm4, %v1666_v52  ;;  %v18848_v52 = vcombine.low %v499_v48, %v507_v49  ;;  %v506_v48 = vld [vmem:[%s22283_s7 + $0x38] sm:$0xff] }
 0x740   : > { %17295 = vmatprep.mubr.msk.f32.mxu1 %vm19177_vm1, %v19176_v1  ;;  %17294 = vmatpush3.msra.mxu1 %v496_v10  ;;  %v514_v49 = vld [vmem:[%s22283_s7 + $0x78] sm:$0xff] }
 0x741   : > { %17303 = vmatprep.subr.mxu1 %v19176_v1 }
 0x80e   : > { %v1588_v55 = vpop.f32.mrb[2].mxu1 }
 0x80f   : > { %v1662_v56 = vadd.f32 %v1661_v53, %v1588_v55  ;;  %v17277_v57 = vpop.f32.mrb[3].mxu1  ;;  %v515_v55 = vld [vmem:[%s22283_s7 + $0x80] sm:$0xff] }
 0x810   : > { %v516_v57 = vld [vmem:[%s22283_s7 + $0x88] sm:$0xff] }
 0x812   : > { %v1739_v58 = vpop.f32.mrb[4].mxu1 }
 0x813   : > { %v17287_v59 = vpop.f32.mrb[5].mxu1  ;;  %v1743_v60 = vsel %vm1192_vm4, %v1739_v58, -inf }
 0x814   : > { %1744 = vmax.xlane.f32.xlu1 %v1743_v60  ;;  %v524_v59 = vld [vmem:[%s22283_s7 + $0xc8] sm:$0xff] }
 0x825   : > { %1754 = vrot.lane.b32.xlu1 %v19347_v16, %s22299_s16  ;;  %s22343_s16 = smov 112  }
 0x829   : > { %1906 = vrot.lane.b32.xlu1 %v19347_v16, %s22293_s26  ;;  %s22297_s26 = smov 40  }
 0x82d   : > { %1904 = vrot.lane.b32.xlu1 %v19347_v16, %s22295_s29  ;;  %s22341_s29 = smov 64  }
 0x8a1   : > { %v1745_v61 = vpop.xlane.xlu1 %1744 }
 0x8a2   : > { %v1746_v62 = vsub.f32 %v1739_v58, %v1745_v61  ;;  %v18853_v61 = vcombine.high %v516_v57, %v524_v59 }
 0x8a4   : > { %v1747_v63 = vmul.f32 1.442695, %v1746_v62  ;;  %v18854_v62 = vcombine.low %v516_v57, %v524_v59 }
 0x8a5   : > { %v1755_v0 = vpop.permute.xlu1 %1754 }
 0x8a6   : > { %19036 = vpow2.f32 %v1747_v63  ;;  %17289 = vmatpush3.msra.mxu0 %v1755_v0  ;;  %v501_v63 = vld [vmem:[%s22283_s7 + $0x10] sm:$0xff] }
 0x8a7   : > { %17298 = vmatprep.subr.mxu0 %v19176_v1  ;;  %v509_v0 = vld [vmem:[%s22283_s7 + $0x50] sm:$0xff] }
 0x8a9   : > { %v1907_v7 = vpop.permute.xlu1 %1906 }
 0x8ad   : > { %v1905_v9 = vpop.permute.xlu1 %1904 }
 0x8b0   : > { %v19037_v2 = vpop.eup %19036 }
 0x8b1   : > { %v1749_v3 = vsel %vm1192_vm4, %v19037_v2, 0.0 }
 0x8b2   : > { %1750 = vadd.xlane.f32.xlu0 %v1749_v3  ;;  %v18855_v3 = vcombine.high %v501_v63, %v509_v0 }
 0x93f   : > { %v1751_v5 = vpop.xlane.xlu0 %1750 }
 0x940   : > { %19038 = vrcp.f32 %v1751_v5  ;;  %v18856_v5 = vcombine.low %v501_v63, %v509_v0  ;;  %v15490_v63 = vld [vmem:[%s22285_s9 + $0x40] sm:$0xff]  }
 0x941   : > { %v15506_v0 = vld [vmem:[%s22285_s9 + $0xc0] sm:$0xff]  }
 0x94a   : > { %v19039_v6 = vpop.eup %19038 }
 0x94b   : > { %v1753_v8 = vmul.f32 %v19039_v6, %v19037_v2  ;;  %v502_v2 = vld [vmem:[%s22283_s7 + $0x18] sm:$0xff] }
 0x94c   : > { %v510_v6 = vld [vmem:[%s22283_s7 + $0x58] sm:$0xff] }
 0x94d   : > { %17291 = vmatmul.mubr.msk.f32.vlgmr.msra.gmra.mrb[12].mxu0 %vm1192_vm4, %v1753_v8  ;;  %v18860_v8 = vcombine.low %v502_v2, %v510_v6 }
 0x94e   : > { %17299 = vmatpush3.xpose.msk.msra.mxu0 %vm1192_vm4, %v1907_v7  ;;  %17300 = vmatprep.mubr.msk.f32.mxu0 %vm19177_vm1, %v19176_v1  ;;  %v18859_v7 = vcombine.high %v502_v2, %v510_v6  ;;  %v13436_v2 = vld [vmem:[%s22285_s9] sm:$0xff]   ;;  %v15507_v6 = vld [vmem:[%s22285_s9 + $0xc8] sm:$0xff]  }
 0x94f   : > { %17308 = vmatprep.subr.mxu0 %v19176_v1 }
 0x951   : > { %17301 = vmatmul.mubr.msk.f32.vlgmr.msra.gmra.mrb[14].mxu0 %vm1192_vm4, %v1905_v9 }
 0x952   : > { %17310 = vmatprep.mubr.msk.f32.mxu0 %vm19177_vm1, %v19176_v1  ;;  %17309 = vmatpush3.msra.mxu0 %v497_v23  ;;  %v526_v23 = vld [vmem:[%s22283_s7 + $0xd8] sm:$0xff] }
 0xa20   : > { %v1826_v11 = vpop.f32.mrb[12].mxu0 }
 0xa21   : > { %v17292_v13 = vpop.f32.mrb[13].mxu0  ;;  %17296 = vmatmul.mubr.msk.f32.vlgmr.msra.gmra.mrb[6].mxu1 %vm1192_vm4, %v1826_v11 }
 0xa22   : > { %17305 = vmatprep.mubr.msk.f32.mxu1 %vm19177_vm1, %v19176_v1  ;;  %v19492_v13 = vsub.s32 1, %v19440_v33 }
 0xa24   : > { %v1978_v14 = vpop.f32.mrb[14].mxu0 }
 0xa25   : > { %v17302_v15 = vpop.f32.mrb[15].mxu0  ;;  %v1982_v17 = vsel %vm1192_vm4, %v1978_v14, -inf }
 0xa26   : > { %1983 = vmax.xlane.f32.xlu1 %v1982_v17  ;;  %v2166_v15 = vrot.slane %v19448_v35, %v19492_v13 }
 0xab3   : > { %v1984_v18 = vpop.xlane.xlu1 %1983 }
 0xab4   : > { %v1985_v19 = vsub.f32 %v1978_v14, %v1984_v18  ;;  %v19495_v14 = vsub.s32 2, %v19440_v33 }
 0xab6   : > { %v1986_v20 = vmul.f32 1.442695, %v1985_v19  ;;  %v2171_v18 = vrot.slane %v19448_v35, %v19495_v14 }
 0xab8   : > { %19040 = vpow2.f32 %v1986_v20  ;;  %v517_v20 = vld [vmem:[%s22283_s7 + $0x90] sm:$0xff] }
 0xac2   : > { %v19041_v21 = vpop.eup %19040 }
 0xac3   : > { %v1988_v22 = vsel %vm1192_vm4, %v19041_v21, 0.0 }
 0xac4   : > { %1989 = vadd.xlane.f32.xlu0 %v1988_v22  ;;  %v518_v22 = vld [vmem:[%s22283_s7 + $0x98] sm:$0xff] }
 0xac5   : > { %v18862_v32 = vcombine.low %v518_v22, %v526_v23 }
 0xada   : > { %1993 = vrot.lane.b32.xlu0 %v19347_v16, %s22297_s26  ;;  %s22346_s26 = smov 72  }
 0xaf4   : > { %v1899_v24 = vpop.f32.mrb[6].mxu1 }
 0xaf5   : > { %v1903_v25 = vadd.f32 %v1899_v24, %v1662_v56  ;;  %v17297_v26 = vpop.f32.mrb[7].mxu1  ;;  %v523_v56 = vld [vmem:[%s22283_s7 + $0xc0] sm:$0xff] }
 0xaf6   : > { %v18849_v58 = vcombine.high %v515_v55, %v523_v56  ;;  %v18850_v60 = vcombine.low %v515_v55, %v523_v56  ;;  %v522_v55 = vld [vmem:[%s22283_s7 + $0xb8] sm:$0xff] }
 0xaf7   : > { %v530_v56 = vld [vmem:[%s22283_s7 + $0xf8] sm:$0xff] }
 0xb51   : > { %v1990_v27 = vpop.xlane.xlu0 %1989 }
 0xb52   : > { %19042 = vrcp.f32 %v1990_v27  ;;  %v18861_v27 = vcombine.high %v518_v22, %v526_v23  ;;  %v15510_v22 = vld [vmem:[%s22285_s9 + $0xe0] sm:$0xff]  }
 0xb53   : > { %v15486_v23 = vld [vmem:[%s22285_s9 + $0x20] sm:$0xff]  }
 0xb55   : > { %v1994_v28 = vpop.permute.xlu0 %1993 }
 0xb56   : > { %17304 = vmatpush3.msra.mxu1 %v1994_v28  ;;  %v503_v28 = vld [vmem:[%s22283_s7 + $0x20] sm:$0xff] }
 0xb57   : > { %17544 = vmatprep.subr.bf16.mxu1 %v18847_v50 }
 0xb5c   : > { %v19043_v29 = vpop.eup %19042 }
 0xb5d   : > { %v1992_v30 = vmul.f32 %v19043_v29, %v19041_v21  ;;  %v525_v21 = vld [vmem:[%s22283_s7 + $0xd0] sm:$0xff]  ;;  %v511_v29 = vld [vmem:[%s22283_s7 + $0x60] sm:$0xff] }
 0xb5e   : > { %v18857_v26 = vcombine.high %v517_v20, %v525_v21 }
 0xb5f   : > { %17306 = vmatmul.mubr.msk.f32.vlgmr.msra.gmra.mrb[8].mxu1 %vm1192_vm4, %v1992_v30  ;;  %v504_v30 = vld [vmem:[%s22283_s7 + $0x28] sm:$0xff] }
 0xb60   : > { %2322 = vmatprep.mubr.f32.mxu1 %v19176_v1  ;;  %17546 = vmatpush1.bf16.msra.mxu1 %v18848_v52  ;;  %v18875_v52 = vcombine.high %v506_v48, %v514_v49 }
 0xb61   : > { %17548 = vmatprep.subr.bf16.mxu1 %v18849_v58  ;;  %v18876_v58 = vcombine.low %v506_v48, %v514_v49 }
 0xb64   : > { %17550 = vmatpush1.bf16.msra.mxu1 %v18850_v60  ;;  %v18877_v60 = vcombine.high %v522_v55, %v530_v56 }
 0xb65   : > { %17560 = vmatprep.subr.bf16.mxu1 %v18855_v3  ;;  %v15498_v3 = vld [vmem:[%s22285_s9 + $0x80] sm:$0xff]  }
 0xc32   : > { %v2065_v31 = vpop.f32.mrb[8].mxu1 }
 0xc33   : > { %v17307_v16 = vpop.f32.mrb[9].mxu1  ;;  %17311 = vmatmul.mubr.msk.f32.vlgmr.msra.gmra.mrb[16].mxu0 %vm1192_vm4, %v2065_v31  ;;  %v512_v31 = vld [vmem:[%s22283_s7 + $0x68] sm:$0xff] }
 0xc34   : > { %2393 = vmatprep.mubr.f32.mxu0 %v19176_v1  ;;  %v18858_v16 = vcombine.low %v517_v20, %v525_v21  ;;  %v15501_v20 = vld [vmem:[%s22285_s9 + $0x98] sm:$0xff]   ;;  %v15494_v21 = vld [vmem:[%s22285_s9 + $0x60] sm:$0xff]  }
 0xd06   : > { %v2138_v36 = vpop.f32.mrb[16].mxu0 }
 0xd07   : > { %v2142_v37 = vadd.f32 %v2138_v36, %v1903_v25  ;;  %v17312_v38 = vpop.f32.mrb[17].mxu0  ;;  %v18863_v36 = vcombine.high %v503_v28, %v511_v29 }
 0xd08   : > { %v519_v38 = vld [vmem:[%s22283_s7 + $0xa0] sm:$0xff] }
 0xd09   : > { %v2143_v40 = vadd.f32 %v2142_v37, %v19338_v12  ;;  %v500_v12 = vld [vmem:[%s22283_s7 + $0x8] sm:$0xff]  ;;  %v18867_v37 = vcombine.high %v504_v30, %v512_v31 }
 0xd0a   : > { %v18851_v53 = vcombine.high %v500_v12, %v508_v51  ;;  %v18852_v54 = vcombine.low %v500_v12, %v508_v51 }
 0xd0b   : > { %v2148_v41 = vadd.f32 %v2147_v39, %v2143_v40  ;;  %v527_v39 = vld [vmem:[%s22283_s7 + $0xe0] sm:$0xff]  ;;  %v520_v40 = vld [vmem:[%s22283_s7 + $0xa8] sm:$0xff] }
 0xd0c   : > { %17552 = vmatprep.subr.bf16.mxu0 %v18851_v53  ;;  %v18866_v12 = vcombine.low %v519_v38, %v527_v39  ;;  %v521_v53 = vld [vmem:[%s22283_s7 + $0xb0] sm:$0xff] }
 0xd0d   : > { %v2149_v42 = vsel %vm1115_vm3, %v2148_v41, 0.0  ;;  %17554 = vmatpush1.bf16.msra.mxu0 %v18852_v54  ;;  %v529_v54 = vld [vmem:[%s22283_s7 + $0xf0] sm:$0xff] }
 0xd0e   : > { %2150 = vadd.xlane.f32.xlu0 %v2149_v42  ;;  %17556 = vmatprep.subr.bf16.mxu0 %v18853_v61  ;;  %v18864_v42 = vcombine.low %v503_v28, %v511_v29  ;;  %v18873_v59 = vcombine.high %v521_v53, %v529_v54  ;;  %v18874_v61 = vcombine.low %v521_v53, %v529_v54  ;;  %v15487_v28 = vld [vmem:[%s22285_s9 + $0x28] sm:$0xff]  }
 0xd0f   : > { %v15503_v29 = vld [vmem:[%s22285_s9 + $0xa8] sm:$0xff]  }
 0xd11   : > { %17558 = vmatpush1.bf16.msra.mxu0 %v18854_v62  ;;  %v18878_v62 = vcombine.low %v522_v55, %v530_v56  ;;  %v19704_v55 = vsub.s32 5, %v19440_v33  ;;  %v19707_v56 = vsub.s32 7, %v19440_v33 }
 0xd12   : > { %17568 = vmatprep.subr.bf16.mxu0 %v18859_v7  ;;  %v15483_v7 = vld [vmem:[%s22285_s9 + $0x8] sm:$0xff]  }
 0xd9b   : > { %v2151_v43 = vpop.xlane.xlu0 %2150 }
 0xd9c   : > { %v2153_v44 = vmul.f32 0.03125, %v2151_v43  ;;  %v18868_v43 = vcombine.low %v504_v30, %v512_v31  ;;  %v15496_v30 = vld [vmem:[%s22285_s9 + $0x70] sm:$0xff]  }
 0xd9d   : > { %v15512_v31 = vld [vmem:[%s22285_s9 + $0xf0] sm:$0xff]  }
 0xd9e   : > { %v2154_v45 = vsub.f32 %v2148_v41, %v2153_v44  ;;  %v528_v41 = vld [vmem:[%s22283_s7 + $0xe8] sm:$0xff]  ;;  %v18865_v44 = vcombine.high %v519_v38, %v527_v39  ;;  %v15489_v38 = vld [vmem:[%s22285_s9 + $0x38] sm:$0xff]  }
 0xd9f   : > { %v18870_v50 = vcombine.low %v520_v40, %v528_v41  ;;  %v15505_v39 = vld [vmem:[%s22285_s9 + $0xb8] sm:$0xff]  }
 0xda0   : > { %v2155_v46 = vmul.f32 %v2154_v45, %v2154_v45 }
 0xda2   : > { %v2156_v47 = vsel %vm1115_vm3, %v2155_v46, 0.0  ;;  %v505_v46 = vld [vmem:[%s22283_s7 + $0x30] sm:$0xff] }
 0xda3   : > { %2157 = vadd.xlane.f32.xlu1 %v2156_v47  ;;  %v513_v47 = vld [vmem:[%s22283_s7 + $0x70] sm:$0xff] }
 0xda4   : > { %v18871_v51 = vcombine.high %v505_v46, %v513_v47  ;;  %v18872_v57 = vcombine.low %v505_v46, %v513_v47 }
 0xe30   : > { %v2158_v9 = vpop.xlane.xlu1 %2157 }
 0xe31   : > { %v2159_v10 = vmul.f32 0.03125, %v2158_v9  ;;  %v15492_v9 = vld [vmem:[%s22285_s9 + $0x50] sm:$0xff]  }
 0xe33   : > { %v2160_v11 = vadd.f32 1e-05, %v2159_v10  ;;  %v15508_v10 = vld [vmem:[%s22285_s9 + $0xd0] sm:$0xff]  }
 0xe35   : > { %19044 = vrsqrt.f32 %v2160_v11  ;;  %v15484_v11 = vld [vmem:[%s22285_s9 + $0x10] sm:$0xff]  }
 0xe3f   : > { %v19045_v17 = vpop.eup %19044 }
 0xe40   : > { %v2162_v19 = vmul.f32 %v19045_v17, %v2154_v45  ;;  %v18869_v45 = vcombine.high %v520_v40, %v528_v41  ;;  %v15493_v17 = vld [vmem:[%s22285_s9 + $0x58] sm:$0xff]   ;;  %v15522_v40 = vld [vmem:[%s22285_s9 + $0x140] sm:$0xff]  }
 0xe41   : > { %v15538_v41 = vld [vmem:[%s22285_s9 + $0x1c0] sm:$0xff]  }
 0xe42   : > { %v2167_v24 = vmul.f32 %v2166_v15, %v2162_v19  ;;  %v15500_v15 = vld [vmem:[%s22285_s9 + $0x90] sm:$0xff]   ;;  %v15485_v19 = vld [vmem:[%s22285_s9 + $0x18] sm:$0xff]  }
 0xe44   : > { %v19513_v25 = vadd.f32 %v2171_v18, %v2167_v24  ;;  %v15509_v18 = vld [vmem:[%s22285_s9 + $0xd8] sm:$0xff]   ;;  %v15502_v24 = vld [vmem:[%s22285_s9 + $0xa0] sm:$0xff]  }
 0xe46   : > { %12445 = vmatmul.mubr.msk.f32.vlgmr.msra.gmra.mrb[10].mxu1 %vm1115_vm3, %v19513_v25  ;;  %12446 = vmatmul.mubr.msk.f32.vlgmr.msra.gmra.mrb[18].mxu0 %vm1115_vm3, %v19513_v25 }
 0xe47   : > { %17562 = vmatpush1.bf16.msra.mxu1 %v18856_v5  ;;  %17570 = vmatpush1.bf16.msra.mxu0 %v18860_v8  ;;  %v15491_v5 = vld [vmem:[%s22285_s9 + $0x48] sm:$0xff]  }
 0xe48   : > { %17564 = vmatprep.subr.bf16.mxu1 %v18857_v26  ;;  %17572 = vmatprep.subr.bf16.mxu0 %v18861_v27  ;;  %v15499_v8 = vld [vmem:[%s22285_s9 + $0x88] sm:$0xff]  }
 0xe49   : > { %2464 = vmatprep.mubr.f32.mxu1 %v19176_v1  ;;  %2535 = vmatprep.mubr.f32.mxu0 %v19176_v1  ;;  %v15495_v26 = vld [vmem:[%s22285_s9 + $0x68] sm:$0xff]  }
 0xe4a   : > { %v15511_v27 = vld [vmem:[%s22285_s9 + $0xe8] sm:$0xff]  }
 0xe4b   : > { %17566 = vmatpush1.bf16.msra.mxu1 %v18858_v16  ;;  %17574 = vmatpush1.bf16.msra.mxu0 %v18862_v32  ;;  %v15488_v16 = vld [vmem:[%s22285_s9 + $0x30] sm:$0xff]  }
 0xe4c   : > { %17576 = vmatprep.subr.bf16.mxu1 %v18863_v36  ;;  %17584 = vmatprep.subr.bf16.mxu0 %v18867_v37  ;;  %v15504_v32 = vld [vmem:[%s22285_s9 + $0xb0] sm:$0xff]   ;;  %v15497_v36 = vld [vmem:[%s22285_s9 + $0x78] sm:$0xff]  }
 0xe4d   : > { %v15513_v37 = vld [vmem:[%s22285_s9 + $0xf8] sm:$0xff]  }
 0xe4e   : > { %12447 = vmatmul.mubr.msk.f32.vlgmr.msra.gmra.mrb[12].mxu1 %vm1115_vm3, %v19513_v25  ;;  %12448 = vmatmul.mubr.msk.f32.vlgmr.msra.gmra.mrb[20].mxu0 %vm1115_vm3, %v19513_v25 }
 0xe4f   : > { %17578 = vmatpush1.bf16.msra.mxu1 %v18864_v42  ;;  %17586 = vmatpush1.bf16.msra.mxu0 %v18868_v43  ;;  %v19690_v42 = vld [vmem:[%s22284_s8] sm:$0xff]  ;;  %v19693_v43 = vsub.s32 3, %v19440_v33 }
 0xe50   : > { %17580 = vmatprep.subr.bf16.mxu1 %v18865_v44  ;;  %17588 = vmatprep.subr.bf16.mxu0 %v18869_v45  ;;  %v2178_v44 = vrot.slane %v19690_v42, %v19443_v34  ;;  %v2186_v45 = vrot.slane %v19690_v42, %v19495_v14  ;;  %v2182_v46 = vrot.slane %v19690_v42, %v19492_v13 }
 0xe51   : > { %2606 = vmatprep.mubr.f32.mxu1 %v19176_v1  ;;  %2677 = vmatprep.mubr.f32.mxu0 %v19176_v1  ;;  %v2190_v47 = vrot.slane %v19690_v42, %v19693_v43 }
 0xe53   : > { %17582 = vmatpush1.bf16.msra.mxu1 %v18866_v12  ;;  %17590 = vmatpush1.bf16.msra.mxu0 %v18870_v50 }
 0xe54   : > { %17592 = vmatprep.subr.bf16.mxu1 %v18871_v51  ;;  %17600 = vmatprep.subr.bf16.mxu0 %v18875_v52 }
 0xe56   : > { %12449 = vmatmul.mubr.msk.f32.vlgmr.msra.gmra.mrb[14].mxu1 %vm1115_vm3, %v19513_v25  ;;  %12450 = vmatmul.mubr.msk.f32.vlgmr.msra.gmra.mrb[22].mxu0 %vm1115_vm3, %v19513_v25 }
 0xe57   : > { %17594 = vmatpush1.bf16.msra.mxu1 %v18872_v57  ;;  %17602 = vmatpush1.bf16.msra.mxu0 %v18876_v58 }
 0xe58   : > { %17596 = vmatprep.subr.bf16.mxu1 %v18873_v59  ;;  %17604 = vmatprep.subr.bf16.mxu0 %v18877_v60 }
 0xe59   : > { %2748 = vmatprep.mubr.f32.mxu1 %v19176_v1  ;;  %2819 = vmatprep.mubr.f32.mxu0 %v19176_v1 }
 0xe5b   : > { %17598 = vmatpush1.bf16.msra.mxu1 %v18874_v61  ;;  %17606 = vmatpush1.bf16.msra.mxu0 %v18878_v62  ;;  %v15514_v61 = vld [vmem:[%s22285_s9 + $0x100] sm:$0xff]  }
 0xe5c   : > { %17608 = vmatprep.subr.bf16.mxu1 %v15490_v63  ;;  %17640 = vmatprep.subr.bf16.mxu0 %v15506_v0  ;;  %v15530_v62 = vld [vmem:[%s22285_s9 + $0x180] sm:$0xff]   ;;  %v2198_v63 = vrot.slane %v19690_v42, %v19704_v55  ;;  %v2206_v0 = vrot.slane %v19690_v42, %v19707_v56 }
 0xe5e   : > { %12451 = vmatmul.mubr.msk.f32.vlgmr.msra.gmra.mrb[16].mxu1 %vm1115_vm3, %v19513_v25  ;;  %12452 = vmatmul.mubr.msk.f32.vlgmr.msra.gmra.mrb[24].mxu0 %vm1115_vm3, %v19513_v25 }
 0xe5f   : > { %17610 = vmatpush3.bf16.msra.mxu1 %v13436_v2  ;;  %17642 = vmatpush3.bf16.msra.mxu0 %v15498_v3  ;;  %v15523_v2 = vld [vmem:[%s22285_s9 + $0x148] sm:$0xff]  }
 0xe60   : > { %17612 = vmatprep.subr.bf16.mxu1 %v15491_v5  ;;  %17644 = vmatprep.subr.bf16.mxu0 %v15507_v6  ;;  %v15539_v3 = vld [vmem:[%s22285_s9 + $0x1c8] sm:$0xff]  }
 0xe63   : > { %17614 = vmatpush3.bf16.msra.mxu1 %v15483_v7  ;;  %17646 = vmatpush3.bf16.msra.mxu0 %v15499_v8 }
 0xe64   : > { %17616 = vmatprep.subr.bf16.mxu1 %v15492_v9  ;;  %17648 = vmatprep.subr.bf16.mxu0 %v15508_v10  ;;  %v15515_v9 = vld [vmem:[%s22285_s9 + $0x108] sm:$0xff]  }
 0xe65   : > { %v15531_v10 = vld [vmem:[%s22285_s9 + $0x188] sm:$0xff]  }
 0xe67   : > { %17618 = vmatpush3.bf16.msra.mxu1 %v15484_v11  ;;  %17650 = vmatpush3.bf16.msra.mxu0 %v15500_v15 }
 0xe68   : > { %17620 = vmatprep.subr.bf16.mxu1 %v15493_v17  ;;  %17652 = vmatprep.subr.bf16.mxu0 %v15509_v18  ;;  %v15524_v17 = vld [vmem:[%s22285_s9 + $0x150] sm:$0xff]  }
 0xe69   : > { %v15540_v18 = vld [vmem:[%s22285_s9 + $0x1d0] sm:$0xff]  }
 0xe6b   : > { %17622 = vmatpush3.bf16.msra.mxu1 %v15485_v19  ;;  %17654 = vmatpush3.bf16.msra.mxu0 %v15501_v20 }
 0xe6c   : > { %17624 = vmatprep.subr.bf16.mxu1 %v15494_v21  ;;  %17656 = vmatprep.subr.bf16.mxu0 %v15510_v22  ;;  %v15516_v21 = vld [vmem:[%s22285_s9 + $0x110] sm:$0xff]  }
 0xe6d   : > { %v15532_v22 = vld [vmem:[%s22285_s9 + $0x190] sm:$0xff]  }
 0xe6f   : > { %17626 = vmatpush3.bf16.msra.mxu1 %v15486_v23  ;;  %17658 = vmatpush3.bf16.msra.mxu0 %v15502_v24  ;;  %v15525_v23 = vld [vmem:[%s22285_s9 + $0x158] sm:$0xff]  }
 0xe70   : > { %17628 = vmatprep.subr.bf16.mxu1 %v15495_v26  ;;  %17660 = vmatprep.subr.bf16.mxu0 %v15511_v27  ;;  %v15541_v24 = vld [vmem:[%s22285_s9 + $0x1d8] sm:$0xff]  }
 0xe73   : > { %17630 = vmatpush3.bf16.msra.mxu1 %v15487_v28  ;;  %17662 = vmatpush3.bf16.msra.mxu0 %v15503_v29 }
 0xe74   : > { %17632 = vmatprep.subr.bf16.mxu1 %v15496_v30  ;;  %17664 = vmatprep.subr.bf16.mxu0 %v15512_v31  ;;  %v15517_v30 = vld [vmem:[%s22285_s9 + $0x118] sm:$0xff]  }
 0xe75   : > { %v15533_v31 = vld [vmem:[%s22285_s9 + $0x198] sm:$0xff]  }
 0xe77   : > { %17634 = vmatpush3.bf16.msra.mxu1 %v15488_v16  ;;  %17666 = vmatpush3.bf16.msra.mxu0 %v15504_v32  ;;  %v15526_v16 = vld [vmem:[%s22285_s9 + $0x160] sm:$0xff]  }
 0xe78   : > { %17636 = vmatprep.subr.bf16.mxu1 %v15497_v36  ;;  %17668 = vmatprep.subr.bf16.mxu0 %v15513_v37  ;;  %v15542_v32 = vld [vmem:[%s22285_s9 + $0x1e0] sm:$0xff]   ;;  %v19770_v36 = vsub.s32 6, %v19440_v33  ;;  %v19775_v37 = vld [vmem:[%s22284_s8 + $0x8] sm:$0xff] }
 0xe7b   : > { %17638 = vmatpush3.bf16.msra.mxu1 %v15489_v38  ;;  %17670 = vmatpush3.bf16.msra.mxu0 %v15505_v39  ;;  %v2234_v38 = vrot.slane %v19775_v37, %v19770_v36  ;;  %v15518_v39 = vld [vmem:[%s22285_s9 + $0x120] sm:$0xff]  }
 0xe7c   : > { %17672 = vmatprep.subr.bf16.mxu1 %v15522_v40  ;;  %17704 = vmatprep.subr.bf16.mxu0 %v15538_v41  ;;  %v15534_v40 = vld [vmem:[%s22285_s9 + $0x1a0] sm:$0xff]   ;;  %v15527_v41 = vld [vmem:[%s22285_s9 + $0x168] sm:$0xff]  }
 0xf19   : > { %v2324_v48 = vpop.f32.mrb[10].mxu1  ;;  %v2395_v49 = vpop.f32.mrb[18].mxu0 }
 0xf1a   : > { %v2325_v12 = vadd.f32 %v2324_v48, %v2178_v44  ;;  %v2396_v50 = vadd.f32 %v2395_v49, %v2186_v45  ;;  %v2326_v51 = vpop.f32.mrb[11].mxu1  ;;  %v2397_v52 = vpop.f32.mrb[19].mxu0  ;;  %v15543_v44 = vld [vmem:[%s22285_s9 + $0x1e8] sm:$0xff]  }
 0xf1b   : > { %v2327_v53 = vadd.f32 %v2326_v51, %v2182_v46  ;;  %v2398_v54 = vadd.f32 %v2397_v52, %v2190_v47  ;;  %v19794_v47 = vsub.s32 4, %v19440_v33  ;;  %v15535_v51 = vld [vmem:[%s22285_s9 + $0x1a8] sm:$0xff]   ;;  %v15528_v33 = vld [vmem:[%s22285_s9 + $0x170] sm:$0xff]  }
 0xf1c   : > { %v2826_v59 = vmax.f32 %v2325_v12, 0.0  ;;  %v2828_v60 = vmax.f32 %v2396_v50, 0.0  ;;  %v15519_v50 = vld [vmem:[%s22285_s9 + $0x128] sm:$0xff]   ;;  %v15544_v52 = vld [vmem:[%s22285_s9 + $0x1f0] sm:$0xff]  }
 0xf1d   : > { %v2827_v57 = vmax.f32 %v2327_v53, 0.0  ;;  %v2829_v58 = vmax.f32 %v2398_v54, 0.0  ;;  %v2194_v53 = vrot.slane %v19690_v42, %v19794_v47  ;;  %v2202_v54 = vrot.slane %v19690_v42, %v19770_v36  ;;  %v15545_v42 = vld [vmem:[%s22285_s9 + $0x1f8] sm:$0xff]  }
 0xf1f   : > { %2910 = vmatprep.mubr.f32.mxu1 %v2827_v57  ;;  %2980 = vmatprep.mubr.f32.mxu0 %v2829_v58  ;;  %v15520_v57 = vld [vmem:[%s22285_s9 + $0x130] sm:$0xff]  }
 0xf20   : > { %2911 = vmatmul.mubr.f32.vlgmr.msra.gmra.mrb[18].mxu1 %v2826_v59  ;;  %2981 = vmatmul.mubr.f32.vlgmr.msra.gmra.mrb[26].mxu0 %v2828_v60  ;;  %v15536_v58 = vld [vmem:[%s22285_s9 + $0x1b0] sm:$0xff]   ;;  %v2214_v59 = vrot.slane %v19775_v37, %v19492_v13  ;;  %v15529_v60 = vld [vmem:[%s22285_s9 + $0x178] sm:$0xff]  }
 0xf21   : > { %v19725_v5 = vpop.f32.mrb[12].mxu1  ;;  %v19727_v6 = vpop.f32.mrb[20].mxu0  ;;  %17674 = vmatpush3.bf16.msra.mxu1 %v15514_v61  ;;  %17706 = vmatpush3.bf16.msra.mxu0 %v15530_v62  ;;  %v2222_v61 = vrot.slane %v19775_v37, %v19693_v43 }
 0xf22   : > { %v2468_v7 = vpop.f32.mrb[13].mxu1  ;;  %v2539_v8 = vpop.f32.mrb[21].mxu0  ;;  %17676 = vmatprep.subr.bf16.mxu1 %v15523_v2  ;;  %17708 = vmatprep.subr.bf16.mxu0 %v15539_v3  ;;  %v2467_v62 = vadd.f32 %v19725_v5, %v2194_v53  ;;  %v15537_v2 = vld [vmem:[%s22285_s9 + $0x1b8] sm:$0xff]   ;;  %v15570_v5 = vld [vmem:[%s22285_s9 + $0x2c0] sm:$0xff]   ;;  %v15552_v53 = vld [vmem:[%s22285_s9 + $0x230] sm:$0xff]  }
 0xf23   : > { %v2469_v11 = vadd.f32 %v2468_v7, %v2198_v63  ;;  %v2540_v15 = vadd.f32 %v2539_v8, %v2206_v0  ;;  %v2538_v63 = vadd.f32 %v19727_v6, %v2202_v54  ;;  %v15521_v0 = vld [vmem:[%s22285_s9 + $0x138] sm:$0xff]   ;;  %v15554_v7 = vld [vmem:[%s22285_s9 + $0x240] sm:$0xff]   ;;  %v2218_v54 = vrot.slane %v19775_v37, %v19495_v14 }
 0xf24   : > { %v2830_v8 = vmax.f32 %v2467_v62, 0.0  ;;  %v15553_v62 = vld [vmem:[%s22285_s9 + $0x238] sm:$0xff]  }
 0xf25   : > { %v2831_v19 = vmax.f32 %v2469_v11, 0.0  ;;  %v2833_v20 = vmax.f32 %v2540_v15, 0.0  ;;  %17678 = vmatpush3.bf16.msra.mxu1 %v15515_v9  ;;  %17710 = vmatpush3.bf16.msra.mxu0 %v15531_v10  ;;  %v2832_v9 = vmax.f32 %v2538_v63, 0.0  ;;  %v15546_v10 = vld [vmem:[%s22285_s9 + $0x200] sm:$0xff]  }
 0xf26   : > { %17680 = vmatprep.subr.bf16.mxu1 %v15524_v17  ;;  %17712 = vmatprep.subr.bf16.mxu0 %v15540_v18  ;;  %v15562_v15 = vld [vmem:[%s22285_s9 + $0x280] sm:$0xff]   ;;  %v15555_v18 = vld [vmem:[%s22285_s9 + $0x248] sm:$0xff]  }
 0xf27   : > { %3050 = vmatprep.mubr.f32.mxu1 %v2831_v19  ;;  %3120 = vmatprep.mubr.f32.mxu0 %v2833_v20  ;;  %v15571_v19 = vld [vmem:[%s22285_s9 + $0x2c8] sm:$0xff]  }
 0xf28   : > { %v15547_v20 = vld [vmem:[%s22285_s9 + $0x208] sm:$0xff]  }
 0xf29   : > { %v19753_v26 = vpop.f32.mrb[14].mxu1  ;;  %v19755_v27 = vpop.f32.mrb[22].mxu0  ;;  %17682 = vmatpush3.bf16.msra.mxu1 %v15516_v21  ;;  %17714 = vmatpush3.bf16.msra.mxu0 %v15532_v22  ;;  %v15563_v21 = vld [vmem:[%s22285_s9 + $0x288] sm:$0xff]   ;;  %v15556_v22 = vld [vmem:[%s22285_s9 + $0x250] sm:$0xff]  }
 0xf2a   : > { %v2610_v28 = vpop.f32.mrb[15].mxu1  ;;  %v2681_v29 = vpop.f32.mrb[23].mxu0  ;;  %17684 = vmatprep.subr.bf16.mxu1 %v15525_v23  ;;  %17716 = vmatprep.subr.bf16.mxu0 %v15541_v24  ;;  %v15572_v23 = vld [vmem:[%s22285_s9 + $0x2d0] sm:$0xff]   ;;  %v2680_v63 = vadd.f32 %v19755_v27, %v2218_v54  ;;  %v15578_v27 = vld [vmem:[%s22285_s9 + $0x300] sm:$0xff]  }
 0xf2b   : > { %v2611_v3 = vadd.f32 %v2610_v28, %v2214_v59  ;;  %v2682_v6 = vadd.f32 %v2681_v29, %v2222_v61  ;;  %v15548_v24 = vld [vmem:[%s22285_s9 + $0x210] sm:$0xff]   ;;  %v15557_v29 = vld [vmem:[%s22285_s9 + $0x258] sm:$0xff]   ;;  %v2230_v59 = vrot.slane %v19775_v37, %v19704_v55 }
 0xf2c   : > { %v15564_v28 = vld [vmem:[%s22285_s9 + $0x290] sm:$0xff]  }
 0xf2d   : > { %17686 = vmatpush3.bf16.msra.mxu1 %v15517_v30  ;;  %17718 = vmatpush3.bf16.msra.mxu0 %v15533_v31  ;;  %v2835_v11 = vmax.f32 %v2611_v3, 0.0  ;;  %v2837_v17 = vmax.f32 %v2682_v6, 0.0  ;;  %v15573_v30 = vld [vmem:[%s22285_s9 + $0x2d8] sm:$0xff]   ;;  %v2836_v6 = vmax.f32 %v2680_v63, 0.0 }
 0xf2e   : > { %17688 = vmatprep.subr.bf16.mxu1 %v15526_v16  ;;  %17720 = vmatprep.subr.bf16.mxu0 %v15542_v32  ;;  %v15549_v31 = vld [vmem:[%s22285_s9 + $0x218] sm:$0xff]   ;;  %v15558_v32 = vld [vmem:[%s22285_s9 + $0x260] sm:$0xff]  }
 0xf2f   : > { %v15565_v16 = vld [vmem:[%s22285_s9 + $0x298] sm:$0xff]  }
 0xf31   : > { %v19791_v45 = vpop.f32.mrb[16].mxu1  ;;  %v2821_v46 = vpop.f32.mrb[24].mxu0  ;;  %17690 = vmatpush3.bf16.msra.mxu1 %v15518_v39  ;;  %17722 = vmatpush3.bf16.msra.mxu0 %v15534_v40  ;;  %v15550_v39 = vld [vmem:[%s22285_s9 + $0x220] sm:$0xff]  }
 0xf32   : > { %v19796_v48 = vadd.f32 %v2821_v46, %v2234_v38  ;;  %v19798_v49 = vpop.f32.mrb[17].mxu1  ;;  %v19800_v12 = vpop.f32.mrb[25].mxu0  ;;  %17692 = vmatprep.subr.bf16.mxu1 %v15527_v41  ;;  %17724 = vmatprep.subr.bf16.mxu0 %v15543_v44  ;;  %v15574_v38 = vld [vmem:[%s22285_s9 + $0x2e0] sm:$0xff]   ;;  %v15559_v41 = vld [vmem:[%s22285_s9 + $0x268] sm:$0xff]  }
 0xf33   : > { %v15566_v40 = vld [vmem:[%s22285_s9 + $0x2a0] sm:$0xff]   ;;  %v15575_v44 = vld [vmem:[%s22285_s9 + $0x2e8] sm:$0xff]   ;;  %v2753_v3 = vadd.f32 %v19798_v49, %v2230_v59  ;;  %v2845_v59 = vrot.slane %v19448_v35, %v19693_v43 }
 0xf34   : > { %v15551_v46 = vld [vmem:[%s22285_s9 + $0x228] sm:$0xff]   ;;  %v15594_v49 = vld [vmem:[%s22285_s9 + $0x380] sm:$0xff]  }
 0xf35   : > { %17694 = vmatpush3.bf16.msra.mxu1 %v15519_v50  ;;  %17726 = vmatpush3.bf16.msra.mxu0 %v15535_v51  ;;  %v15567_v50 = vld [vmem:[%s22285_s9 + $0x2a8] sm:$0xff]   ;;  %v15560_v51 = vld [vmem:[%s22285_s9 + $0x270] sm:$0xff]  }
 0xf36   : > { %17696 = vmatprep.subr.bf16.mxu1 %v15528_v33  ;;  %17728 = vmatprep.subr.bf16.mxu0 %v15544_v52  ;;  %v15576_v33 = vld [vmem:[%s22285_s9 + $0x2f0] sm:$0xff]   ;;  %v2210_v52 = vrot.slane %v19775_v37, %v19443_v34 }
 0xf38   : > { %v2609_v61 = vadd.f32 %v19753_v26, %v2210_v52  ;;  %v15602_v26 = vld [vmem:[%s22285_s9 + $0x3c0] sm:$0xff]   ;;  %v15585_v52 = vld [vmem:[%s22285_s9 + $0x338] sm:$0xff]  }
 0xf39   : > { %17698 = vmatpush3.bf16.msra.mxu1 %v15520_v57  ;;  %17730 = vmatpush3.bf16.msra.mxu0 %v15536_v58  ;;  %v15568_v57 = vld [vmem:[%s22285_s9 + $0x2b0] sm:$0xff]   ;;  %v15561_v58 = vld [vmem:[%s22285_s9 + $0x278] sm:$0xff]  }
 0xf3a   : > { %17700 = vmatprep.subr.bf16.mxu1 %v15529_v60  ;;  %17732 = vmatprep.subr.bf16.mxu0 %v15545_v42  ;;  %v15577_v60 = vld [vmem:[%s22285_s9 + $0x2f8] sm:$0xff]   ;;  %v2238_v42 = vrot.slane %v19775_v37, %v19707_v56 }
 0xf3d   : > { %17702 = vmatpush3.bf16.msra.mxu1 %v15521_v0  ;;  %17734 = vmatpush3.bf16.msra.mxu0 %v15537_v2  ;;  %v15569_v0 = vld [vmem:[%s22285_s9 + $0x2b8] sm:$0xff]   ;;  %v15586_v2 = vld [vmem:[%s22285_s9 + $0x340] sm:$0xff]  }
 0xf3e   : > { %17736 = vmatprep.subr.bf16.mxu1 %v15554_v7  ;;  %17768 = vmatprep.subr.bf16.mxu0 %v15570_v5  ;;  %v2824_v7 = vadd.f32 %v19800_v12, %v2238_v42  ;;  %v2834_v5 = vmax.f32 %v2609_v61, 0.0  ;;  %v15587_v12 = vld [vmem:[%s22285_s9 + $0x348] sm:$0xff]  }
 0xf40   : > { %3051 = vmatmul.mubr.f32.vlgmr.msra.gmra.mrb[20].mxu1 %v2830_v8  ;;  %3121 = vmatmul.mubr.f32.vlgmr.msra.gmra.mrb[28].mxu0 %v2832_v9  ;;  %v2839_v8 = vmax.f32 %v2753_v3, 0.0  ;;  %v2841_v9 = vmax.f32 %v2824_v7, 0.0 }
 0xf41   : > { %17738 = vmatpush3.bf16.msra.mxu1 %v15546_v10  ;;  %3190 = vmatprep.mubr.f32.mxu1 %v2835_v11  ;;  %v15603_v10 = vld [vmem:[%s22285_s9 + $0x3c8] sm:$0xff]  }
 0xf42   : > { %17770 = vmatpush3.bf16.msra.mxu0 %v15562_v15  ;;  %3260 = vmatprep.mubr.f32.mxu0 %v2837_v17  ;;  %v15579_v11 = vld [vmem:[%s22285_s9 + $0x308] sm:$0xff]   ;;  %v15588_v17 = vld [vmem:[%s22285_s9 + $0x350] sm:$0xff]  }
 0xf43   : > { %17740 = vmatprep.subr.bf16.mxu1 %v15555_v18  ;;  %17772 = vmatprep.subr.bf16.mxu0 %v15571_v19  ;;  %v15595_v15 = vld [vmem:[%s22285_s9 + $0x388] sm:$0xff]   ;;  %v15604_v18 = vld [vmem:[%s22285_s9 + $0x3d0] sm:$0xff]  }
 0xf44   : > { %v15580_v19 = vld [vmem:[%s22285_s9 + $0x310] sm:$0xff]  }
 0xf45   : > { %17742 = vmatpush3.bf16.msra.mxu1 %v15547_v20  ;;  %v15596_v20 = vld [vmem:[%s22285_s9 + $0x390] sm:$0xff]  }
 0xf46   : > { %17774 = vmatpush3.bf16.msra.mxu0 %v15563_v21  ;;  %17744 = vmatprep.subr.bf16.mxu1 %v15556_v22  ;;  %v15589_v21 = vld [vmem:[%s22285_s9 + $0x358] sm:$0xff]  }
 0xf47   : > { %17776 = vmatprep.subr.bf16.mxu0 %v15572_v23  ;;  %v15605_v22 = vld [vmem:[%s22285_s9 + $0x3d8] sm:$0xff]  }
 0xf48   : > { %v15581_v23 = vld [vmem:[%s22285_s9 + $0x318] sm:$0xff]  }
 0xf49   : > { %17746 = vmatpush3.bf16.msra.mxu1 %v15548_v24  ;;  %v15597_v24 = vld [vmem:[%s22285_s9 + $0x398] sm:$0xff]  }
 0xf4a   : > { %17778 = vmatpush3.bf16.msra.mxu0 %v15564_v28  ;;  %17748 = vmatprep.subr.bf16.mxu1 %v15557_v29  ;;  %v15590_v28 = vld [vmem:[%s22285_s9 + $0x360] sm:$0xff]  }
 0xf4b   : > { %17780 = vmatprep.subr.bf16.mxu0 %v15573_v30  ;;  %v15606_v29 = vld [vmem:[%s22285_s9 + $0x3e0] sm:$0xff]  }
 0xf4c   : > { %v15582_v30 = vld [vmem:[%s22285_s9 + $0x320] sm:$0xff]  }
 0xf4d   : > { %17750 = vmatpush3.bf16.msra.mxu1 %v15549_v31  ;;  %v15598_v31 = vld [vmem:[%s22285_s9 + $0x3a0] sm:$0xff]  }
 0xf4e   : > { %17782 = vmatpush3.bf16.msra.mxu0 %v15565_v16  ;;  %17752 = vmatprep.subr.bf16.mxu1 %v15558_v32  ;;  %v15591_v16 = vld [vmem:[%s22285_s9 + $0x368] sm:$0xff]  }
 0xf4f   : > { %17784 = vmatprep.subr.bf16.mxu0 %v15574_v38  ;;  %v15607_v32 = vld [vmem:[%s22285_s9 + $0x3e8] sm:$0xff]  }
 0xf50   : > { %v15583_v38 = vld [vmem:[%s22285_s9 + $0x328] sm:$0xff]  }
 0xf51   : > { %17754 = vmatpush3.bf16.msra.mxu1 %v15550_v39  ;;  %v15599_v39 = vld [vmem:[%s22285_s9 + $0x3a8] sm:$0xff]  }
 0xf52   : > { %17786 = vmatpush3.bf16.msra.mxu0 %v15566_v40  ;;  %17756 = vmatprep.subr.bf16.mxu1 %v15559_v41  ;;  %v15592_v40 = vld [vmem:[%s22285_s9 + $0x370] sm:$0xff]  }
 0xf53   : > { %17788 = vmatprep.subr.bf16.mxu0 %v15575_v44  ;;  %v15608_v41 = vld [vmem:[%s22285_s9 + $0x3f0] sm:$0xff]   ;;  %v2226_v44 = vrot.slane %v19775_v37, %v19794_v47 }
 0xf55   : > { %17758 = vmatpush3.bf16.msra.mxu1 %v15551_v46  ;;  %v15584_v46 = vld [vmem:[%s22285_s9 + $0x330] sm:$0xff]   ;;  %v2751_v37 = vadd.f32 %v19791_v45, %v2226_v44  ;;  %v12456_v44 = vld [vmem:[%s22279_s3 + $0x38] sm:$0xff] }
 0xf56   : > { %17790 = vmatpush3.bf16.msra.mxu0 %v15567_v50  ;;  %17760 = vmatprep.subr.bf16.mxu1 %v15560_v51  ;;  %v15600_v50 = vld [vmem:[%s22285_s9 + $0x3b0] sm:$0xff]   ;;  %v15593_v51 = vld [vmem:[%s22285_s9 + $0x378] sm:$0xff]  }
 0xf57   : > { %17792 = vmatprep.subr.bf16.mxu0 %v15576_v33  ;;  %v15609_v33 = vld [vmem:[%s22285_s9 + $0x3f8] sm:$0xff]   ;;  %v2838_v54 = vmax.f32 %v2751_v37, 0.0  ;;  %v19108_v37 = vld [vmem:[%s22282_s6] sm:$0x3f] }
 0xf59   : > { %17762 = vmatpush3.bf16.msra.mxu1 %v15552_v53  ;;  %v15601_v53 = vld [vmem:[%s22285_s9 + $0x3b8] sm:$0xff]  }
 0xf5a   : > { %17794 = vmatpush3.bf16.msra.mxu0 %v15568_v57  ;;  %17764 = vmatprep.subr.bf16.mxu1 %v15561_v58  ;;  %v2840_v57 = vmax.f32 %v19796_v48, 0.0 }
 0xf5b   : > { %17796 = vmatprep.subr.bf16.mxu0 %v15577_v60 }
 0xf5d   : > { %17766 = vmatpush3.bf16.msra.mxu1 %v15553_v62 }
 0xf5e   : > { %17798 = vmatpush3.bf16.msra.mxu0 %v15569_v0  ;;  %17800 = vmatprep.subr.bf16.mxu1 %v15586_v2 }
 0xf5f   : > { %17832 = vmatprep.subr.bf16.mxu0 %v15602_v26 }
 0xf60   : > { %3191 = vmatmul.mubr.f32.vlgmr.msra.gmra.mrb[22].mxu1 %v2834_v5 }
 0xf61   : > { %3261 = vmatmul.mubr.f32.vlgmr.msra.gmra.mrb[30].mxu0 %v2836_v6  ;;  %17802 = vmatpush3.bf16.msra.mxu1 %v15578_v27 }
 0xf62   : > { %3330 = vmatprep.mubr.f32.mxu1 %v2839_v8  ;;  %17834 = vmatpush3.bf16.msra.mxu0 %v15594_v49 }
 0xf63   : > { %3400 = vmatprep.mubr.f32.mxu0 %v2841_v9  ;;  %17804 = vmatprep.subr.bf16.mxu1 %v15587_v12 }
 0xf64   : > { %17836 = vmatprep.subr.bf16.mxu0 %v15603_v10 }
 0xf65   : > { %17806 = vmatpush3.bf16.msra.mxu1 %v15579_v11 }
 0xf66   : > { %17838 = vmatpush3.bf16.msra.mxu0 %v15595_v15  ;;  %17808 = vmatprep.subr.bf16.mxu1 %v15588_v17 }
 0xf67   : > { %17840 = vmatprep.subr.bf16.mxu0 %v15604_v18 }
 0xf69   : > { %17810 = vmatpush3.bf16.msra.mxu1 %v15580_v19 }
 0xf6a   : > { %17842 = vmatpush3.bf16.msra.mxu0 %v15596_v20  ;;  %17812 = vmatprep.subr.bf16.mxu1 %v15589_v21 }
 0xf6b   : > { %17844 = vmatprep.subr.bf16.mxu0 %v15605_v22 }
 0xf6d   : > { %17814 = vmatpush3.bf16.msra.mxu1 %v15581_v23 }
 0xf6e   : > { %17846 = vmatpush3.bf16.msra.mxu0 %v15597_v24  ;;  %17816 = vmatprep.subr.bf16.mxu1 %v15590_v28 }
 0xf6f   : > { %17848 = vmatprep.subr.bf16.mxu0 %v15606_v29 }
 0xf71   : > { %17818 = vmatpush3.bf16.msra.mxu1 %v15582_v30 }
 0xf72   : > { %17850 = vmatpush3.bf16.msra.mxu0 %v15598_v31  ;;  %17820 = vmatprep.subr.bf16.mxu1 %v15591_v16 }
 0xf73   : > { %17852 = vmatprep.subr.bf16.mxu0 %v15607_v32 }
 0xf75   : > { %17822 = vmatpush3.bf16.msra.mxu1 %v15583_v38 }
 0xf76   : > { %17854 = vmatpush3.bf16.msra.mxu0 %v15599_v39  ;;  %17824 = vmatprep.subr.bf16.mxu1 %v15592_v40  ;;  %v12453_v39 = vld [vmem:[%s22279_s3 + $0x20] sm:$0xff]  ;;  %v12454_v40 = vld [vmem:[%s22279_s3 + $0x28] sm:$0xff] }
 0xf77   : > { %17856 = vmatprep.subr.bf16.mxu0 %v15608_v41  ;;  %v17864_v41 = vpack.c.bf16 %v12454_v40, %v12453_v39 }
 0xf79   : > { %17826 = vmatpush3.bf16.msra.mxu1 %v15584_v46 }
 0xf7a   : > { %17858 = vmatpush3.bf16.msra.mxu0 %v15600_v50  ;;  %17828 = vmatprep.subr.bf16.mxu1 %v15593_v51 }
 0xf7b   : > { %17860 = vmatprep.subr.bf16.mxu0 %v15609_v33 }
 0xf7d   : > { %17830 = vmatpush3.bf16.msra.mxu1 %v15585_v52  ;;  %v3423_v52 = vrot.slane %v19108_v37, %v19794_v47 }
 0xf7e   : > { %17862 = vmatpush3.bf16.msra.mxu0 %v15601_v53  ;;  %17863 = vmatprep.subr.bf16.mxu1 %v19178_v4 }
 0xf7f   : > { %17324 = vmatprep.subr.mxu0 %v19176_v1 }
 0xf80   : > { %3331 = vmatmul.mubr.f32.vlgmr.msra.gmra.mrb[24].mxu1 %v2838_v54 }
 0xf81   : > { %3401 = vmatmul.mubr.f32.vlgmr.msra.gmra.mrb[32].mxu0 %v2840_v57  ;;  %17321 = vmatprep.mubr.msk.f32.mxu1 %vm19177_vm1, %v19176_v1  ;;  %v3428_v57 = vrot.slane %v19108_v37, %v19704_v55 }
 0xf82   : > { %17326 = vmatprep.mubr.msk.f32.mxu0 %vm19177_vm1, %v19176_v1  ;;  %17865 = vmatpush3.bf16.msra.mxu1 %v17864_v41 }
 0xf83   : > { %17866 = vmatprep.subr.bf16.mxu1 %v19178_v4 }
 0xff3   : > { %v16057_v45 = vpop.f32.mrb[18].mxu1  ;;  %v16092_v58 = vpop.f32.mrb[26].mxu0 }
 0xff4   : > { %v16058_v60 = vpop.f32.mrb[19].mxu1  ;;  %v16093_v42 = vpop.f32.mrb[27].mxu0 }
 0xff5   : > { %v16059_v61 = vadd.f32 %v16058_v60, %v16057_v45  ;;  %v16094_v62 = vadd.f32 %v16093_v42, %v16092_v58 }
 0xff7   : > { %v2913_v48 = vadd.f32 %v16059_v61, %v2845_v59  ;;  %v12753_v59 = vld [vmem:[%s22280_s4 + $0x1] ss:$0 sm:$0xff] }
 0xff9   : > { %v2983_v63 = vadd.f32 %v16094_v62, %v2913_v48 }
0x1013   : > { %v16127_v0 = vpop.f32.mrb[20].mxu1  ;;  %v16162_v2 = vpop.f32.mrb[28].mxu0 }
0x1014   : > { %v16128_v3 = vpop.f32.mrb[21].mxu1  ;;  %v16163_v26 = vpop.f32.mrb[29].mxu0 }
0x1015   : > { %v16129_v7 = vadd.f32 %v16128_v3, %v16127_v0  ;;  %v16164_v5 = vadd.f32 %v16163_v26, %v16162_v2 }
0x1017   : > { %v3053_v27 = vadd.f32 %v16129_v7, %v2983_v63 }
0x1019   : > { %v3123_v6 = vadd.f32 %v16164_v5, %v3053_v27 }
0x1033   : > { %v16197_v49 = vpop.f32.mrb[22].mxu1 }
0x1034   : > { %v16232_v8 = vpop.f32.mrb[30].mxu0  ;;  %v16198_v12 = vpop.f32.mrb[23].mxu1 }
0x1035   : > { %v16199_v9 = vadd.f32 %v16198_v12, %v16197_v49  ;;  %v16233_v10 = vpop.f32.mrb[31].mxu0 }
0x1036   : > { %v16234_v35 = vadd.f32 %v16233_v10, %v16232_v8 }
0x1037   : > { %v3193_v11 = vadd.f32 %v16199_v9, %v3123_v6 }
0x1039   : > { %v3263_v15 = vadd.f32 %v16234_v35, %v3193_v11 }
0x1053   : > { %v16267_v17 = vpop.f32.mrb[24].mxu1 }
0x1054   : > { %v16302_v18 = vpop.f32.mrb[32].mxu0  ;;  %v16268_v19 = vpop.f32.mrb[25].mxu1 }
0x1055   : > { %v16269_v20 = vadd.f32 %v16268_v19, %v16267_v17  ;;  %v16303_v21 = vpop.f32.mrb[33].mxu0  ;;  %v12459_v17 = vld [vmem:[%s22281_s5 + $0x28] sm:$0xff] }
0x1056   : > { %v16304_v22 = vadd.f32 %v16303_v21, %v16302_v18 }
0x1057   : > { %v3333_v23 = vadd.f32 %v16269_v20, %v3263_v15 }
0x1059   : > { %v3403_v24 = vadd.f32 %v16304_v22, %v3333_v23 }
0x105b   : > { %v3406_v28 = vadd.f32 %v3403_v24, %v19513_v25  ;;  %v12455_v25 = vld [vmem:[%s22279_s3 + $0x30] sm:$0xff] }
0x105c   : > { %v17867_v46 = vpack.c.bf16 %v12456_v44, %v12455_v25 }
0x105d   : > { %v3407_v29 = vsel %vm1115_vm3, %v3406_v28, 0.0 }
0x105e   : > { %3408 = vadd.xlane.f32.xlu1 %v3407_v29  ;;  %17868 = vmatpush3.bf16.msra.mxu1 %v17867_v46  ;;  %v12458_v29 = vld [vmem:[%s22281_s5 + $0x20] sm:$0xff] }
0x105f   : > { %17334 = vmatprep.subr.mxu1 %v19176_v1 }
0x10eb   : > { %v3409_v30 = vpop.xlane.xlu1 %3408 }
0x10ec   : > { %v3410_v31 = vmul.f32 0.03125, %v3409_v30 }
0x10ee   : > { %v3411_v16 = vsub.f32 %v3406_v28, %v3410_v31 }
0x10f0   : > { %v3412_v32 = vmul.f32 %v3411_v16, %v3411_v16 }
0x10f2   : > { %v3413_v38 = vsel %vm1115_vm3, %v3412_v32, 0.0 }
0x10f3   : > { %3414 = vadd.xlane.f32.xlu1 %v3413_v38 }
0x1180   : > { %v3415_v50 = vpop.xlane.xlu1 %3414 }
0x1181   : > { %v3416_v51 = vmul.f32 0.03125, %v3415_v50 }
0x1183   : > { %v3417_v33 = vadd.f32 1e-05, %v3416_v51 }
0x1185   : > { %19046 = vrsqrt.f32 %v3417_v33 }
0x118f   : > { %v19047_v53 = vpop.eup %19046 }
0x1190   : > { %v3419_v54 = vmul.f32 %v19047_v53, %v3411_v16 }
0x1192   : > { %v3424_v45 = vmul.f32 %v3423_v52, %v3419_v54 }
0x1194   : > { %v20080_v58 = vadd.f32 %v3428_v57, %v3424_v45 }
0x1196   : > { %17322 = vmatmul.mubr.msk.f32.vlgmr.msra.gmra.mrb[26].mxu1 %vm1115_vm3, %v20080_v58 }
0x1197   : > { %17336 = vmatprep.mubr.msk.f32.mxu1 %vm19177_vm1, %v19176_v1 }
0x1269   : > { %v4132_v60 = vpop.f32.mrb[26].mxu1 }
0x126a   : > { %v20089_v42 = vadd.f32 %v12753_v59, %v4132_v60  ;;  %v17323_v61 = vpop.f32.mrb[27].mxu1 }
0x126c   : > { %4302 = vrot.lane.b32.xlu0 %v20089_v42, %s22337_s17  ;;  %4137 = vrot.lane.b32.xlu1 %v20089_v42, %s22338_s18 }
0x1270   : > { %4300 = vrot.lane.b32.xlu1 %v20089_v42, %s22339_s0 }
0x12de   : > { %v4303_v62 = vpop.permute.xlu0 %4302  ;;  %v4138_v48 = vpop.permute.xlu1 %4137 }
0x12df   : > { %17325 = vmatpush3.xpose.msk.msra.mxu0 %vm1192_vm4, %v4138_v48  ;;  %17335 = vmatpush3.xpose.msk.msra.mxu1 %vm1192_vm4, %v4303_v62 }
0x12e0   : > { %17329 = vmatprep.subr.mxu0 %v19176_v1  ;;  %17344 = vmatprep.subr.mxu1 %v19176_v1 }
0x12e2   : > { %17327 = vmatmul.mubr.msk.f32.vlgmr.msra.gmra.mrb[34].mxu0 %vm1192_vm4, %v20089_v42  ;;  %v4301_v63 = vpop.permute.xlu1 %4300 }
0x12e3   : > { %17337 = vmatmul.mubr.msk.f32.vlgmr.msra.gmra.mrb[28].mxu1 %vm1192_vm4, %v4301_v63  ;;  %17331 = vmatprep.mubr.msk.f32.mxu0 %vm19177_vm1, %v19176_v1  ;;  %v12460_v63 = vld [vmem:[%s22281_s5 + $0x30] sm:$0xff] }
0x12e4   : > { %17346 = vmatprep.mubr.msk.f32.mxu1 %vm19177_vm1, %v19176_v1  ;;  %17345 = vmatpush3.msra.mxu1 %v12459_v17 }
0x12e5   : > { %17354 = vmatprep.subr.mxu1 %v19176_v1 }
0x13b5   : > { %v4209_v0 = vpop.f32.mrb[34].mxu0 }
0x13b6   : > { %v17328_v2 = vpop.f32.mrb[35].mxu0  ;;  %v4374_v3 = vpop.f32.mrb[28].mxu1  ;;  %v4213_v26 = vsel %vm1192_vm4, %v4209_v0, -inf }
0x13b7   : > { %4214 = vmax.xlane.f32.xlu1 %v4213_v26  ;;  %v17338_v7 = vpop.f32.mrb[29].mxu1  ;;  %v4378_v5 = vsel %vm1192_vm4, %v4374_v3, -inf }
0x13b8   : > { %4379 = vmax.xlane.f32.xlu0 %v4378_v5 }
0x13ce   : > { %4389 = vrot.lane.b32.xlu0 %v20089_v42, %s22340_s19 }
0x1444   : > { %v4215_v27 = vpop.xlane.xlu1 %4214 }
0x1445   : > { %v4216_v6 = vsub.f32 %v4209_v0, %v4215_v27  ;;  %v4380_v49 = vpop.xlane.xlu0 %4379 }
0x1446   : > { %v4381_v8 = vsub.f32 %v4374_v3, %v4380_v49 }
0x1447   : > { %v4217_v12 = vmul.f32 1.442695, %v4216_v6 }
0x1448   : > { %v4382_v9 = vmul.f32 1.442695, %v4381_v8 }
0x1449   : > { %19048 = vpow2.f32 %v4217_v12  ;;  %v4390_v23 = vpop.permute.xlu0 %4389  ;;  %v12461_v12 = vld [vmem:[%s22281_s5 + $0x38] sm:$0xff] }
0x144a   : > { %19050 = vpow2.f32 %v4382_v9 }
0x1453   : > { %v19049_v10 = vpop.eup %19048 }
0x1454   : > { %v4219_v35 = vsel %vm1192_vm4, %v19049_v10, 0.0  ;;  %v19051_v11 = vpop.eup %19050 }
0x1455   : > { %4220 = vadd.xlane.f32.xlu1 %v4219_v35  ;;  %v4384_v15 = vsel %vm1192_vm4, %v19051_v11, 0.0 }
0x1459   : > { %4385 = vadd.xlane.f32.xlu1 %v4384_v15 }
0x146a   : > { %4224 = vrot.lane.b32.xlu1 %v20089_v42, %s22341_s29 }
0x146e   : > { %4613 = vrot.lane.b32.xlu1 %v20089_v42, %s22342_s15 }
0x1472   : > { %4611 = vrot.lane.b32.xlu1 %v20089_v42, %s22343_s16 }
0x14e2   : > { %v4221_v18 = vpop.xlane.xlu1 %4220 }
0x14e3   : > { %19052 = vrcp.f32 %v4221_v18 }
0x14e6   : > { %v4386_v19 = vpop.xlane.xlu1 %4385 }
0x14e7   : > { %19054 = vrcp.f32 %v4386_v19 }
0x14ea   : > { %v4225_v20 = vpop.permute.xlu1 %4224 }
0x14eb   : > { %17330 = vmatpush3.msra.mxu0 %v4225_v20  ;;  %v20185_v20 = vld [vmem:[%s22282_s6 + $0x8] sm:$0x3f] }
0x14ec   : > { %17339 = vmatprep.subr.mxu0 %v19176_v1 }
0x14ed   : > { %v19053_v21 = vpop.eup %19052 }
0x14ee   : > { %v4223_v22 = vmul.f32 %v19053_v21, %v19049_v10  ;;  %v4614_v16 = vpop.permute.xlu1 %4613 }
0x14f0   : > { %17332 = vmatmul.mubr.msk.f32.vlgmr.msra.gmra.mrb[36].mxu0 %vm1192_vm4, %v4223_v22 }
0x14f1   : > { %v19055_v24 = vpop.eup %19054  ;;  %17340 = vmatpush3.msra.mxu0 %v4390_v23  ;;  %17341 = vmatprep.mubr.msk.f32.mxu0 %vm19177_vm1, %v19176_v1 }
0x14f2   : > { %v4388_v28 = vmul.f32 %v19055_v24, %v19051_v11  ;;  %17349 = vmatprep.subr.mxu0 %v19176_v1  ;;  %v4612_v39 = vpop.permute.xlu1 %4611  ;;  %v5093_v24 = vrot.slane %v20185_v20, %v19443_v34 }
0x14f4   : > { %17342 = vmatmul.mubr.msk.f32.vlgmr.msra.gmra.mrb[38].mxu0 %vm1192_vm4, %v4388_v28 }
0x14f5   : > { %17351 = vmatprep.mubr.msk.f32.mxu0 %vm19177_vm1, %v19176_v1  ;;  %17350 = vmatpush3.msra.mxu0 %v12458_v29 }
0x14f6   : > { %17359 = vmatprep.subr.mxu0 %v19176_v1 }
0x15c3   : > { %v4296_v30 = vpop.f32.mrb[36].mxu0 }
0x15c4   : > { %v17333_v31 = vpop.f32.mrb[37].mxu0  ;;  %17352 = vmatmul.mubr.msk.f32.vlgmr.msra.gmra.mrb[40].mxu0 %vm1192_vm4, %v4296_v30 }
0x15c5   : > { %17361 = vmatprep.mubr.msk.f32.mxu0 %vm19177_vm1, %v19176_v1 }
0x15c7   : > { %v4461_v32 = vpop.f32.mrb[38].mxu0 }
0x15c8   : > { %v17343_v38 = vpop.f32.mrb[39].mxu0  ;;  %17347 = vmatmul.mubr.msk.f32.vlgmr.msra.gmra.mrb[30].mxu1 %vm1192_vm4, %v4461_v32 }
0x15c9   : > { %17355 = vmatpush3.xpose.msk.msra.mxu1 %vm1192_vm4, %v4614_v16  ;;  %17356 = vmatprep.mubr.msk.f32.mxu1 %vm19177_vm1, %v19176_v1 }
0x15ca   : > { %17364 = vmatprep.subr.mxu1 %v19176_v1 }
0x15cc   : > { %17357 = vmatmul.mubr.msk.f32.vlgmr.msra.gmra.mrb[32].mxu1 %vm1192_vm4, %v4612_v39 }
0x15cd   : > { %17366 = vmatprep.mubr.msk.f32.mxu1 %vm19177_vm1, %v19176_v1  ;;  %17365 = vmatpush3.msra.mxu1 %v12460_v63 }
0x15ce   : > { %17374 = vmatprep.subr.mxu1 %v19176_v1 }
0x1697   : > { %v4607_v40 = vpop.f32.mrb[40].mxu0 }
0x1698   : > { %v17353_v41 = vpop.f32.mrb[41].mxu0 }
0x1699   : > { %v12471_v41 = vld [vmem:[%s22283_s7 + $0x140] sm:$0xff] }
0x169b   : > { %v4534_v25 = vpop.f32.mrb[30].mxu1 }
0x169c   : > { %v4608_v44 = vadd.f32 %v4607_v40, %v4534_v25  ;;  %v17348_v46 = vpop.f32.mrb[31].mxu1  ;;  %v12463_v40 = vld [vmem:[%s22283_s7 + $0x100] sm:$0xff] }
0x169d   : > { %v18879_v25 = vcombine.high %v12463_v40, %v12471_v41  ;;  %v18880_v46 = vcombine.low %v12463_v40, %v12471_v41 }
0x169f   : > { %v4685_v50 = vpop.f32.mrb[32].mxu1 }
0x16a0   : > { %v17358_v51 = vpop.f32.mrb[33].mxu1  ;;  %v4689_v33 = vsel %vm1192_vm4, %v4685_v50, -inf }
0x16a1   : > { %4690 = vmax.xlane.f32.xlu0 %v4689_v33  ;;  %v12479_v33 = vld [vmem:[%s22283_s7 + $0x180] sm:$0xff] }
0x16b7   : > { %4700 = vrot.lane.b32.xlu0 %v20089_v42, %s22344_s20 }
0x16bb   : > { %4850 = vrot.lane.b32.xlu0 %v20089_v42, %s22345_s28 }
0x172e   : > { %v4691_v37 = vpop.xlane.xlu0 %4690 }
0x172f   : > { %v4692_v52 = vsub.f32 %v4685_v50, %v4691_v37  ;;  %v12487_v37 = vld [vmem:[%s22283_s7 + $0x1c0] sm:$0xff] }
0x1731   : > { %v4693_v53 = vmul.f32 1.442695, %v4692_v52  ;;  %v12480_v52 = vld [vmem:[%s22283_s7 + $0x188] sm:$0xff] }
0x1732   : > { %v4701_v54 = vpop.permute.xlu0 %4700 }
0x1733   : > { %19056 = vpow2.f32 %v4693_v53  ;;  %17360 = vmatpush3.msra.mxu0 %v4701_v54  ;;  %v18881_v53 = vcombine.high %v12479_v33, %v12487_v37  ;;  %v12488_v54 = vld [vmem:[%s22283_s7 + $0x1c8] sm:$0xff] }
0x1734   : > { %17369 = vmatprep.subr.mxu0 %v19176_v1 }
0x1736   : > { %v4851_v48 = vpop.permute.xlu0 %4850 }
0x173d   : > { %v19057_v57 = vpop.eup %19056 }
0x173e   : > { %v4695_v45 = vsel %vm1192_vm4, %v19057_v57, 0.0 }
0x173f   : > { %4696 = vadd.xlane.f32.xlu1 %v4695_v45  ;;  %v18885_v45 = vcombine.high %v12480_v52, %v12488_v54 }
0x1750   : > { %4852 = vrot.lane.b32.xlu1 %v20089_v42, %s22346_s26 }
0x17cc   : > { %v4697_v59 = vpop.xlane.xlu1 %4696 }
0x17cd   : > { %19058 = vrcp.f32 %v4697_v59  ;;  %v18886_v59 = vcombine.low %v12480_v52, %v12488_v54  ;;  %v12485_v52 = vld [vmem:[%s22283_s7 + $0x1b0] sm:$0xff]  ;;  %v12486_v54 = vld [vmem:[%s22283_s7 + $0x1b8] sm:$0xff] }
0x17d0   : > { %v4853_v62 = vpop.permute.xlu1 %4852 }
0x17d7   : > { %v19059_v60 = vpop.eup %19058 }
0x17d8   : > { %v4699_v61 = vmul.f32 %v19059_v60, %v19057_v57  ;;  %v18882_v57 = vcombine.low %v12479_v33, %v12487_v37  ;;  %v12465_v60 = vld [vmem:[%s22283_s7 + $0x110] sm:$0xff] }
0x17da   : > { %17362 = vmatmul.mubr.msk.f32.vlgmr.msra.gmra.mrb[42].mxu0 %vm1192_vm4, %v4699_v61  ;;  %v12473_v61 = vld [vmem:[%s22283_s7 + $0x150] sm:$0xff] }
0x17db   : > { %17370 = vmatpush3.xpose.msk.msra.mxu0 %vm1192_vm4, %v4853_v62  ;;  %17371 = vmatprep.mubr.msk.f32.mxu0 %vm19177_vm1, %v19176_v1  ;;  %v12466_v62 = vld [vmem:[%s22283_s7 + $0x118] sm:$0xff]  ;;  %v18888_v63 = vcombine.low %v12465_v60, %v12473_v61 }
0x17dc   : > { %17379 = vmatprep.subr.mxu0 %v19176_v1 }
0x17de   : > { %17372 = vmatmul.mubr.msk.f32.vlgmr.msra.gmra.mrb[44].mxu0 %vm1192_vm4, %v4851_v48  ;;  %v18887_v48 = vcombine.high %v12465_v60, %v12473_v61 }
0x17df   : > { %17381 = vmatprep.mubr.msk.f32.mxu0 %vm19177_vm1, %v19176_v1  ;;  %17380 = vmatpush3.msra.mxu0 %v12461_v12  ;;  %v12481_v12 = vld [vmem:[%s22283_s7 + $0x190] sm:$0xff] }
0x18ad   : > { %v4772_v0 = vpop.f32.mrb[42].mxu0 }
0x18ae   : > { %v17363_v2 = vpop.f32.mrb[43].mxu0  ;;  %17367 = vmatmul.mubr.msk.f32.vlgmr.msra.gmra.mrb[34].mxu1 %vm1192_vm4, %v4772_v0  ;;  %v12474_v0 = vld [vmem:[%s22283_s7 + $0x158] sm:$0xff] }
0x18af   : > { %17376 = vmatprep.mubr.msk.f32.mxu1 %vm19177_vm1, %v19176_v1  ;;  %v18891_v2 = vcombine.high %v12466_v62, %v12474_v0 }
0x18b1   : > { %v4924_v3 = vpop.f32.mrb[44].mxu0 }
0x18b2   : > { %v17373_v26 = vpop.f32.mrb[45].mxu0  ;;  %v4928_v7 = vsel %vm1192_vm4, %v4924_v3, -inf }
0x18b3   : > { %4929 = vmax.xlane.f32.xlu1 %v4928_v7 }
0x1940   : > { %v4930_v5 = vpop.xlane.xlu1 %4929 }
0x1941   : > { %v4931_v27 = vsub.f32 %v4924_v3, %v4930_v5  ;;  %v18892_v3 = vcombine.low %v12466_v62, %v12474_v0  ;;  %v15634_v0 = vld [vmem:[%s22285_s9 + $0x4c0] sm:$0xff]  }
0x1943   : > { %v4932_v6 = vmul.f32 1.442695, %v4931_v27  ;;  %v5111_v27 = vrot.slane %v20185_v20, %v19492_v13 }
0x1945   : > { %19060 = vpow2.f32 %v4932_v6 }
0x194f   : > { %v19061_v49 = vpop.eup %19060 }
0x1950   : > { %v4934_v8 = vsel %vm1192_vm4, %v19061_v49, 0.0 }
0x1951   : > { %4935 = vadd.xlane.f32.xlu0 %v4934_v8 }
0x1967   : > { %4939 = vrot.lane.b32.xlu0 %v20089_v42, %s22347_s1 }
0x1981   : > { %v4845_v9 = vpop.f32.mrb[34].mxu1 }
0x1982   : > { %v4849_v10 = vadd.f32 %v4845_v9, %v4608_v44  ;;  %v17368_v35 = vpop.f32.mrb[35].mxu1  ;;  %v12472_v44 = vld [vmem:[%s22283_s7 + $0x148] sm:$0xff]  ;;  %v12489_v9 = vld [vmem:[%s22283_s7 + $0x1d0] sm:$0xff] }
0x1983   : > { %v12490_v35 = vld [vmem:[%s22283_s7 + $0x1d8] sm:$0xff] }
0x19de   : > { %v4936_v11 = vpop.xlane.xlu0 %4935 }
0x19df   : > { %19062 = vrcp.f32 %v4936_v11 }
0x19e2   : > { %v4940_v15 = vpop.permute.xlu0 %4939 }
0x19e3   : > { %17375 = vmatpush3.msra.mxu1 %v4940_v15 }
0x19e4   : > { %17870 = vmatprep.subr.bf16.mxu1 %v18879_v25  ;;  %v12477_v25 = vld [vmem:[%s22283_s7 + $0x170] sm:$0xff] }
0x19e9   : > { %v19063_v17 = vpop.eup %19062 }
0x19ea   : > { %v4938_v18 = vmul.f32 %v19063_v17, %v19061_v49  ;;  %v5116_v49 = vrot.slane %v20185_v20, %v19495_v14  ;;  %v18889_v17 = vcombine.high %v12481_v12, %v12489_v9 }
0x19ec   : > { %17377 = vmatmul.mubr.msk.f32.vlgmr.msra.gmra.mrb[36].mxu1 %vm1192_vm4, %v4938_v18 }
0x19ed   : > { %5267 = vmatprep.mubr.f32.mxu1 %v19176_v1  ;;  %17872 = vmatpush1.bf16.msra.mxu1 %v18880_v46  ;;  %v12478_v46 = vld [vmem:[%s22283_s7 + $0x178] sm:$0xff] }
0x19ee   : > { %17874 = vmatprep.subr.bf16.mxu1 %v18881_v53  ;;  %v12493_v53 = vld [vmem:[%s22283_s7 + $0x1f0] sm:$0xff] }
0x19ef   : > { %v18905_v60 = vcombine.high %v12485_v52, %v12493_v53  ;;  %v18906_v62 = vcombine.low %v12485_v52, %v12493_v53 }
0x19f1   : > { %17876 = vmatpush1.bf16.msra.mxu1 %v18882_v57  ;;  %v12494_v57 = vld [vmem:[%s22283_s7 + $0x1f8] sm:$0xff] }
0x19f2   : > { %17886 = vmatprep.subr.bf16.mxu1 %v18887_v48  ;;  %v18909_v61 = vcombine.high %v12486_v54, %v12494_v57  ;;  %v18910_v48 = vcombine.low %v12486_v54, %v12494_v57 }
0x1abf   : > { %v5011_v19 = vpop.f32.mrb[36].mxu1 }
0x1ac0   : > { %v17378_v42 = vpop.f32.mrb[37].mxu1  ;;  %17382 = vmatmul.mubr.msk.f32.vlgmr.msra.gmra.mrb[46].mxu0 %vm1192_vm4, %v5011_v19  ;;  %v12467_v19 = vld [vmem:[%s22283_s7 + $0x120] sm:$0xff] }
0x1ac1   : > { %5338 = vmatprep.mubr.f32.mxu0 %v19176_v1  ;;  %v12475_v42 = vld [vmem:[%s22283_s7 + $0x160] sm:$0xff] }
0x1b93   : > { %v5084_v21 = vpop.f32.mrb[46].mxu0 }
0x1b94   : > { %v5088_v22 = vadd.f32 %v5084_v21, %v4849_v10  ;;  %v17383_v23 = vpop.f32.mrb[47].mxu0  ;;  %v12482_v10 = vld [vmem:[%s22283_s7 + $0x198] sm:$0xff]  ;;  %v12468_v21 = vld [vmem:[%s22283_s7 + $0x128] sm:$0xff] }
0x1b95   : > { %v18893_v18 = vcombine.high %v12482_v10, %v12490_v35  ;;  %v18890_v23 = vcombine.low %v12481_v12, %v12489_v9  ;;  %v15628_v12 = vld [vmem:[%s22285_s9 + $0x490] sm:$0xff]   ;;  %v15621_v9 = vld [vmem:[%s22285_s9 + $0x458] sm:$0xff]  }
0x1b96   : > { %v5089_v28 = vadd.f32 %v5088_v22, %v20080_v58  ;;  %v12464_v58 = vld [vmem:[%s22283_s7 + $0x108] sm:$0xff] }
0x1b97   : > { %v18883_v50 = vcombine.high %v12464_v58, %v12472_v44  ;;  %v18884_v51 = vcombine.low %v12464_v58, %v12472_v44  ;;  %v12476_v22 = vld [vmem:[%s22283_s7 + $0x168] sm:$0xff]  ;;  %v12469_v58 = vld [vmem:[%s22283_s7 + $0x130] sm:$0xff]  ;;  %v12470_v44 = vld [vmem:[%s22283_s7 + $0x138] sm:$0xff] }
0x1b98   : > { %v5094_v29 = vadd.f32 %v5093_v24, %v5089_v28  ;;  %v18894_v24 = vcombine.low %v12482_v10, %v12490_v35  ;;  %v18895_v28 = vcombine.high %v12467_v19, %v12475_v42  ;;  %v18903_v33 = vcombine.high %v12469_v58, %v12477_v25  ;;  %v15637_v10 = vld [vmem:[%s22285_s9 + $0x4d8] sm:$0xff]  }
0x1b99   : > { %17878 = vmatprep.subr.bf16.mxu0 %v18883_v50  ;;  %v18907_v37 = vcombine.high %v12470_v44, %v12478_v46  ;;  %v15613_v35 = vld [vmem:[%s22285_s9 + $0x418] sm:$0xff]  }
0x1b9a   : > { %v5095_v30 = vsel %vm1115_vm3, %v5094_v29, 0.0  ;;  %17880 = vmatpush1.bf16.msra.mxu0 %v18884_v51 }
0x1b9b   : > { %5096 = vadd.xlane.f32.xlu1 %v5095_v30  ;;  %17882 = vmatprep.subr.bf16.mxu0 %v18885_v45  ;;  %v12483_v30 = vld [vmem:[%s22283_s7 + $0x1a0] sm:$0xff]  ;;  %v18904_v45 = vcombine.low %v12469_v58, %v12477_v25  ;;  %v20421_v58 = vld [vmem:[%s22284_s8 + $0x10] sm:$0xff] }
0x1b9c   : > { %v5123_v25 = vrot.slane %v20421_v58, %v19443_v34 }
0x1b9e   : > { %17884 = vmatpush1.bf16.msra.mxu0 %v18886_v59  ;;  %v18908_v59 = vcombine.low %v12470_v44, %v12478_v46  ;;  %v5131_v44 = vrot.slane %v20421_v58, %v19495_v14  ;;  %v5127_v46 = vrot.slane %v20421_v58, %v19492_v13 }
0x1b9f   : > { %17894 = vmatprep.subr.bf16.mxu0 %v18891_v2  ;;  %v15610_v2 = vld [vmem:[%s22285_s9 + $0x400] sm:$0xff]  }
0x1c28   : > { %v5097_v31 = vpop.xlane.xlu1 %5096 }
0x1c29   : > { %v5098_v16 = vmul.f32 0.03125, %v5097_v31  ;;  %v12491_v31 = vld [vmem:[%s22283_s7 + $0x1e0] sm:$0xff] }
0x1c2a   : > { %v18897_v40 = vcombine.high %v12483_v30, %v12491_v31  ;;  %v18898_v50 = vcombine.low %v12483_v30, %v12491_v31  ;;  %v15616_v30 = vld [vmem:[%s22285_s9 + $0x430] sm:$0xff]  }
0x1c2b   : > { %v5099_v32 = vsub.f32 %v5094_v29, %v5098_v16  ;;  %v18899_v29 = vcombine.high %v12468_v21, %v12476_v22  ;;  %v12484_v16 = vld [vmem:[%s22283_s7 + $0x1a8] sm:$0xff]  ;;  %v15632_v31 = vld [vmem:[%s22285_s9 + $0x4b0] sm:$0xff]  }
0x1c2d   : > { %v5100_v38 = vmul.f32 %v5099_v32, %v5099_v32 }
0x1c2f   : > { %v5101_v39 = vsel %vm1115_vm3, %v5100_v38, 0.0  ;;  %v18896_v38 = vcombine.low %v12467_v19, %v12475_v42  ;;  %v15614_v19 = vld [vmem:[%s22285_s9 + $0x420] sm:$0xff]  }
0x1c30   : > { %5102 = vadd.xlane.f32.xlu1 %v5101_v39  ;;  %v18900_v39 = vcombine.low %v12468_v21, %v12476_v22  ;;  %v15630_v42 = vld [vmem:[%s22285_s9 + $0x4a0] sm:$0xff]   ;;  %v15623_v21 = vld [vmem:[%s22285_s9 + $0x468] sm:$0xff]  }
0x1c31   : > { %v15639_v22 = vld [vmem:[%s22285_s9 + $0x4e8] sm:$0xff]  }
0x1cbd   : > { %v5103_v26 = vpop.xlane.xlu1 %5102 }
0x1cbe   : > { %v5104_v7 = vmul.f32 0.03125, %v5103_v26  ;;  %v15619_v26 = vld [vmem:[%s22285_s9 + $0x448] sm:$0xff]  }
0x1cc0   : > { %v5105_v5 = vadd.f32 1e-05, %v5104_v7  ;;  %v15635_v7 = vld [vmem:[%s22285_s9 + $0x4c8] sm:$0xff]  }
0x1cc2   : > { %19064 = vrsqrt.f32 %v5105_v5  ;;  %v15611_v5 = vld [vmem:[%s22285_s9 + $0x408] sm:$0xff]  }
0x1ccc   : > { %v19065_v6 = vpop.eup %19064 }
0x1ccd   : > { %v5107_v8 = vmul.f32 %v19065_v6, %v5099_v32  ;;  %v12492_v32 = vld [vmem:[%s22283_s7 + $0x1e8] sm:$0xff]  ;;  %v15620_v6 = vld [vmem:[%s22285_s9 + $0x450] sm:$0xff]  }
0x1cce   : > { %v18901_v41 = vcombine.high %v12484_v16, %v12492_v32  ;;  %v18902_v51 = vcombine.low %v12484_v16, %v12492_v32  ;;  %v15625_v16 = vld [vmem:[%s22285_s9 + $0x478] sm:$0xff]  }
0x1ccf   : > { %v5112_v11 = vmul.f32 %v5111_v27, %v5107_v8  ;;  %v15627_v27 = vld [vmem:[%s22285_s9 + $0x488] sm:$0xff]   ;;  %v15612_v8 = vld [vmem:[%s22285_s9 + $0x410] sm:$0xff]   ;;  %v15641_v32 = vld [vmem:[%s22285_s9 + $0x4f8] sm:$0xff]  }
0x1cd1   : > { %v20244_v15 = vadd.f32 %v5116_v49, %v5112_v11  ;;  %v15636_v49 = vld [vmem:[%s22285_s9 + $0x4d0] sm:$0xff]   ;;  %v15629_v11 = vld [vmem:[%s22285_s9 + $0x498] sm:$0xff]  }
0x1cd3   : > { %12771 = vmatmul.mubr.msk.f32.vlgmr.msra.gmra.mrb[38].mxu1 %vm1115_vm3, %v20244_v15  ;;  %12772 = vmatmul.mubr.msk.f32.vlgmr.msra.gmra.mrb[48].mxu0 %vm1115_vm3, %v20244_v15 }
0x1cd4   : > { %17888 = vmatpush1.bf16.msra.mxu1 %v18888_v63  ;;  %17896 = vmatpush1.bf16.msra.mxu0 %v18892_v3  ;;  %v15618_v63 = vld [vmem:[%s22285_s9 + $0x440] sm:$0xff]  }
0x1cd5   : > { %17890 = vmatprep.subr.bf16.mxu1 %v18889_v17  ;;  %17898 = vmatprep.subr.bf16.mxu0 %v18893_v18  ;;  %v15626_v3 = vld [vmem:[%s22285_s9 + $0x480] sm:$0xff]  }
0x1cd6   : > { %5409 = vmatprep.mubr.f32.mxu1 %v19176_v1  ;;  %5480 = vmatprep.mubr.f32.mxu0 %v19176_v1  ;;  %v15622_v17 = vld [vmem:[%s22285_s9 + $0x460] sm:$0xff]  }
0x1cd7   : > { %v15638_v18 = vld [vmem:[%s22285_s9 + $0x4e0] sm:$0xff]  }
0x1cd8   : > { %17892 = vmatpush1.bf16.msra.mxu1 %v18890_v23  ;;  %17900 = vmatpush1.bf16.msra.mxu0 %v18894_v24  ;;  %v15615_v23 = vld [vmem:[%s22285_s9 + $0x428] sm:$0xff]  }
0x1cd9   : > { %17902 = vmatprep.subr.bf16.mxu1 %v18895_v28  ;;  %17910 = vmatprep.subr.bf16.mxu0 %v18899_v29  ;;  %v15631_v24 = vld [vmem:[%s22285_s9 + $0x4a8] sm:$0xff]   ;;  %v15624_v28 = vld [vmem:[%s22285_s9 + $0x470] sm:$0xff]  }
0x1cda   : > { %v15640_v29 = vld [vmem:[%s22285_s9 + $0x4f0] sm:$0xff]  }
0x1cdb   : > { %12773 = vmatmul.mubr.msk.f32.vlgmr.msra.gmra.mrb[40].mxu1 %vm1115_vm3, %v20244_v15  ;;  %12774 = vmatmul.mubr.msk.f32.vlgmr.msra.gmra.mrb[50].mxu0 %vm1115_vm3, %v20244_v15 }
0x1cdc   : > { %17904 = vmatpush1.bf16.msra.mxu1 %v18896_v38  ;;  %17912 = vmatpush1.bf16.msra.mxu0 %v18900_v39  ;;  %v15617_v38 = vld [vmem:[%s22285_s9 + $0x438] sm:$0xff]  }
0x1cdd   : > { %17906 = vmatprep.subr.bf16.mxu1 %v18897_v40  ;;  %17914 = vmatprep.subr.bf16.mxu0 %v18901_v41  ;;  %v15633_v39 = vld [vmem:[%s22285_s9 + $0x4b8] sm:$0xff]   ;;  %v15650_v40 = vld [vmem:[%s22285_s9 + $0x540] sm:$0xff]  }
0x1cde   : > { %5551 = vmatprep.mubr.f32.mxu1 %v19176_v1  ;;  %5622 = vmatprep.mubr.f32.mxu0 %v19176_v1  ;;  %v15666_v41 = vld [vmem:[%s22285_s9 + $0x5c0] sm:$0xff]  }
0x1ce0   : > { %17908 = vmatpush1.bf16.msra.mxu1 %v18898_v50  ;;  %17916 = vmatpush1.bf16.msra.mxu0 %v18902_v51  ;;  %v5135_v50 = vrot.slane %v20421_v58, %v19693_v43 }
0x1ce1   : > { %17918 = vmatprep.subr.bf16.mxu1 %v18903_v33  ;;  %17926 = vmatprep.subr.bf16.mxu0 %v18907_v37 }
0x1ce3   : > { %12775 = vmatmul.mubr.msk.f32.vlgmr.msra.gmra.mrb[42].mxu1 %vm1115_vm3, %v20244_v15  ;;  %12776 = vmatmul.mubr.msk.f32.vlgmr.msra.gmra.mrb[52].mxu0 %vm1115_vm3, %v20244_v15 }
0x1ce4   : > { %17920 = vmatpush1.bf16.msra.mxu1 %v18904_v45  ;;  %17928 = vmatpush1.bf16.msra.mxu0 %v18908_v59 }
0x1ce5   : > { %17922 = vmatprep.subr.bf16.mxu1 %v18905_v60  ;;  %17930 = vmatprep.subr.bf16.mxu0 %v18909_v61 }
0x1ce6   : > { %5693 = vmatprep.mubr.f32.mxu1 %v19176_v1  ;;  %5764 = vmatprep.mubr.f32.mxu0 %v19176_v1 }
0x1ce8   : > { %17924 = vmatpush1.bf16.msra.mxu1 %v18906_v62  ;;  %17932 = vmatpush1.bf16.msra.mxu0 %v18910_v48  ;;  %v15642_v48 = vld [vmem:[%s22285_s9 + $0x500] sm:$0xff]  }
0x1ce9   : > { %17934 = vmatprep.subr.bf16.mxu1 %v15618_v63  ;;  %17966 = vmatprep.subr.bf16.mxu0 %v15634_v0  ;;  %v15658_v63 = vld [vmem:[%s22285_s9 + $0x580] sm:$0xff]   ;;  %v5143_v0 = vrot.slane %v20421_v58, %v19704_v55 }
0x1ceb   : > { %12777 = vmatmul.mubr.msk.f32.vlgmr.msra.gmra.mrb[44].mxu1 %vm1115_vm3, %v20244_v15  ;;  %12778 = vmatmul.mubr.msk.f32.vlgmr.msra.gmra.mrb[54].mxu0 %vm1115_vm3, %v20244_v15 }
0x1cec   : > { %17936 = vmatpush3.bf16.msra.mxu1 %v15610_v2  ;;  %17968 = vmatpush3.bf16.msra.mxu0 %v15626_v3  ;;  %v5151_v2 = vrot.slane %v20421_v58, %v19707_v56  ;;  %v15651_v3 = vld [vmem:[%s22285_s9 + $0x548] sm:$0xff]  }
0x1ced   : > { %17938 = vmatprep.subr.bf16.mxu1 %v15619_v26  ;;  %17970 = vmatprep.subr.bf16.mxu0 %v15635_v7  ;;  %v15667_v26 = vld [vmem:[%s22285_s9 + $0x5c8] sm:$0xff]  }
0x1cf0   : > { %17940 = vmatpush3.bf16.msra.mxu1 %v15611_v5  ;;  %17972 = vmatpush3.bf16.msra.mxu0 %v15627_v27 }
0x1cf1   : > { %17942 = vmatprep.subr.bf16.mxu1 %v15620_v6  ;;  %17974 = vmatprep.subr.bf16.mxu0 %v15636_v49  ;;  %v15643_v49 = vld [vmem:[%s22285_s9 + $0x508] sm:$0xff]  }
0x1cf4   : > { %17944 = vmatpush3.bf16.msra.mxu1 %v15612_v8  ;;  %17976 = vmatpush3.bf16.msra.mxu0 %v15628_v12  ;;  %v15659_v8 = vld [vmem:[%s22285_s9 + $0x588] sm:$0xff]  }
0x1cf5   : > { %17946 = vmatprep.subr.bf16.mxu1 %v15621_v9  ;;  %17978 = vmatprep.subr.bf16.mxu0 %v15637_v10  ;;  %v15652_v10 = vld [vmem:[%s22285_s9 + $0x550] sm:$0xff]  }
0x1cf8   : > { %17948 = vmatpush3.bf16.msra.mxu1 %v15613_v35  ;;  %17980 = vmatpush3.bf16.msra.mxu0 %v15629_v11  ;;  %v15668_v35 = vld [vmem:[%s22285_s9 + $0x5d0] sm:$0xff]  }
0x1cf9   : > { %17950 = vmatprep.subr.bf16.mxu1 %v15622_v17  ;;  %17982 = vmatprep.subr.bf16.mxu0 %v15638_v18  ;;  %v15644_v18 = vld [vmem:[%s22285_s9 + $0x510] sm:$0xff]  }
0x1cfc   : > { %17952 = vmatpush3.bf16.msra.mxu1 %v15614_v19  ;;  %17984 = vmatpush3.bf16.msra.mxu0 %v15630_v42  ;;  %v15660_v19 = vld [vmem:[%s22285_s9 + $0x590] sm:$0xff]   ;;  %v15653_v42 = vld [vmem:[%s22285_s9 + $0x558] sm:$0xff]  }
0x1cfd   : > { %17954 = vmatprep.subr.bf16.mxu1 %v15623_v21  ;;  %17986 = vmatprep.subr.bf16.mxu0 %v15639_v22  ;;  %v15669_v21 = vld [vmem:[%s22285_s9 + $0x5d8] sm:$0xff]  }
0x1d00   : > { %17956 = vmatpush3.bf16.msra.mxu1 %v15615_v23  ;;  %17988 = vmatpush3.bf16.msra.mxu0 %v15631_v24 }
0x1d01   : > { %17958 = vmatprep.subr.bf16.mxu1 %v15624_v28  ;;  %17990 = vmatprep.subr.bf16.mxu0 %v15640_v29  ;;  %v15645_v29 = vld [vmem:[%s22285_s9 + $0x518] sm:$0xff]  }
0x1d04   : > { %17960 = vmatpush3.bf16.msra.mxu1 %v15616_v30  ;;  %17992 = vmatpush3.bf16.msra.mxu0 %v15632_v31  ;;  %v15661_v30 = vld [vmem:[%s22285_s9 + $0x598] sm:$0xff]   ;;  %v15654_v31 = vld [vmem:[%s22285_s9 + $0x560] sm:$0xff]  }
0x1d05   : > { %17962 = vmatprep.subr.bf16.mxu1 %v15625_v16  ;;  %17994 = vmatprep.subr.bf16.mxu0 %v15641_v32  ;;  %v15670_v16 = vld [vmem:[%s22285_s9 + $0x5e0] sm:$0xff]   ;;  %v20494_v32 = vld [vmem:[%s22284_s8 + $0x18] sm:$0xff] }
0x1d08   : > { %17964 = vmatpush3.bf16.msra.mxu1 %v15617_v38  ;;  %17996 = vmatpush3.bf16.msra.mxu0 %v15633_v39  ;;  %v5179_v38 = vrot.slane %v20494_v32, %v19770_v36  ;;  %v15646_v39 = vld [vmem:[%s22285_s9 + $0x520] sm:$0xff]  }
0x1d09   : > { %17998 = vmatprep.subr.bf16.mxu1 %v15650_v40  ;;  %18030 = vmatprep.subr.bf16.mxu0 %v15666_v41  ;;  %v15662_v40 = vld [vmem:[%s22285_s9 + $0x5a0] sm:$0xff]   ;;  %v15655_v41 = vld [vmem:[%s22285_s9 + $0x568] sm:$0xff]  }
0x1da6   : > { %v5269_v51 = vpop.f32.mrb[38].mxu1  ;;  %v5340_v33 = vpop.f32.mrb[48].mxu0 }
0x1da7   : > { %v5270_v37 = vadd.f32 %v5269_v51, %v5123_v25  ;;  %v5341_v52 = vadd.f32 %v5340_v33, %v5131_v44  ;;  %v5271_v53 = vpop.f32.mrb[39].mxu1  ;;  %v5342_v54 = vpop.f32.mrb[49].mxu0  ;;  %v15671_v25 = vld [vmem:[%s22285_s9 + $0x5e8] sm:$0xff]  }
0x1da8   : > { %v5272_v57 = vadd.f32 %v5271_v53, %v5127_v46  ;;  %v5343_v45 = vadd.f32 %v5342_v54, %v5135_v50  ;;  %v15656_v53 = vld [vmem:[%s22285_s9 + $0x570] sm:$0xff]  }
0x1da9   : > { %v5771_v61 = vmax.f32 %v5270_v37, 0.0  ;;  %v5773_v62 = vmax.f32 %v5341_v52, 0.0  ;;  %v15647_v37 = vld [vmem:[%s22285_s9 + $0x528] sm:$0xff]   ;;  %v15672_v54 = vld [vmem:[%s22285_s9 + $0x5f0] sm:$0xff]  }
0x1daa   : > { %v5772_v59 = vmax.f32 %v5272_v57, 0.0  ;;  %v5774_v60 = vmax.f32 %v5343_v45, 0.0  ;;  %v15663_v52 = vld [vmem:[%s22285_s9 + $0x5a8] sm:$0xff]   ;;  %v5139_v57 = vrot.slane %v20421_v58, %v19794_v47  ;;  %v5147_v45 = vrot.slane %v20421_v58, %v19770_v36  ;;  %v15673_v58 = vld [vmem:[%s22285_s9 + $0x5f8] sm:$0xff]  }
0x1dac   : > { %5855 = vmatprep.mubr.f32.mxu1 %v5772_v59  ;;  %5925 = vmatprep.mubr.f32.mxu0 %v5774_v60  ;;  %v15648_v59 = vld [vmem:[%s22285_s9 + $0x530] sm:$0xff]  }
0x1dad   : > { %5856 = vmatmul.mubr.f32.vlgmr.msra.gmra.mrb[46].mxu1 %v5771_v61  ;;  %5926 = vmatmul.mubr.f32.vlgmr.msra.gmra.mrb[56].mxu0 %v5773_v62  ;;  %v15664_v60 = vld [vmem:[%s22285_s9 + $0x5b0] sm:$0xff]   ;;  %v5159_v61 = vrot.slane %v20494_v32, %v19492_v13  ;;  %v15657_v62 = vld [vmem:[%s22285_s9 + $0x578] sm:$0xff]  }
0x1dae   : > { %v20447_v7 = vpop.f32.mrb[40].mxu1  ;;  %v20449_v5 = vpop.f32.mrb[50].mxu0  ;;  %18000 = vmatpush3.bf16.msra.mxu1 %v15642_v48  ;;  %18032 = vmatpush3.bf16.msra.mxu0 %v15658_v63  ;;  %v5167_v48 = vrot.slane %v20494_v32, %v19693_v43 }
0x1daf   : > { %v5413_v27 = vpop.f32.mrb[41].mxu1  ;;  %v5484_v6 = vpop.f32.mrb[51].mxu0  ;;  %18002 = vmatprep.subr.bf16.mxu1 %v15651_v3  ;;  %18034 = vmatprep.subr.bf16.mxu0 %v15667_v26  ;;  %v5412_v63 = vadd.f32 %v20447_v7, %v5139_v57  ;;  %v15665_v3 = vld [vmem:[%s22285_s9 + $0x5b8] sm:$0xff]   ;;  %v15698_v7 = vld [vmem:[%s22285_s9 + $0x6c0] sm:$0xff]   ;;  %v15680_v57 = vld [vmem:[%s22285_s9 + $0x630] sm:$0xff]  }
0x1db0   : > { %v5414_v12 = vadd.f32 %v5413_v27, %v5143_v0  ;;  %v5485_v9 = vadd.f32 %v5484_v6, %v5151_v2  ;;  %v5483_v0 = vadd.f32 %v20449_v5, %v5147_v45  ;;  %v15649_v2 = vld [vmem:[%s22285_s9 + $0x538] sm:$0xff]   ;;  %v15682_v27 = vld [vmem:[%s22285_s9 + $0x640] sm:$0xff]   ;;  %v5163_v45 = vrot.slane %v20494_v32, %v19495_v14 }
0x1db1   : > { %v5775_v6 = vmax.f32 %v5412_v63, 0.0  ;;  %v15681_v63 = vld [vmem:[%s22285_s9 + $0x638] sm:$0xff]  }
0x1db2   : > { %v5776_v11 = vmax.f32 %v5414_v12, 0.0  ;;  %v5778_v17 = vmax.f32 %v5485_v9, 0.0  ;;  %18004 = vmatpush3.bf16.msra.mxu1 %v15643_v49  ;;  %18036 = vmatpush3.bf16.msra.mxu0 %v15659_v8  ;;  %v5777_v49 = vmax.f32 %v5483_v0, 0.0  ;;  %v15674_v8 = vld [vmem:[%s22285_s9 + $0x600] sm:$0xff]  }
0x1db3   : > { %18006 = vmatprep.subr.bf16.mxu1 %v15652_v10  ;;  %18038 = vmatprep.subr.bf16.mxu0 %v15668_v35  ;;  %v15690_v9 = vld [vmem:[%s22285_s9 + $0x680] sm:$0xff]   ;;  %v15683_v35 = vld [vmem:[%s22285_s9 + $0x648] sm:$0xff]  }
0x1db4   : > { %5995 = vmatprep.mubr.f32.mxu1 %v5776_v11  ;;  %6065 = vmatprep.mubr.f32.mxu0 %v5778_v17  ;;  %v15699_v11 = vld [vmem:[%s22285_s9 + $0x6c8] sm:$0xff]  }
0x1db5   : > { %v15675_v17 = vld [vmem:[%s22285_s9 + $0x608] sm:$0xff]  }
0x1db6   : > { %v20475_v22 = vpop.f32.mrb[42].mxu1  ;;  %v20477_v23 = vpop.f32.mrb[52].mxu0  ;;  %18008 = vmatpush3.bf16.msra.mxu1 %v15644_v18  ;;  %18040 = vmatpush3.bf16.msra.mxu0 %v15660_v19  ;;  %v15691_v18 = vld [vmem:[%s22285_s9 + $0x688] sm:$0xff]   ;;  %v15684_v19 = vld [vmem:[%s22285_s9 + $0x650] sm:$0xff]  }
0x1db7   : > { %v5555_v24 = vpop.f32.mrb[43].mxu1  ;;  %v5626_v28 = vpop.f32.mrb[53].mxu0  ;;  %18010 = vmatprep.subr.bf16.mxu1 %v15653_v42  ;;  %18042 = vmatprep.subr.bf16.mxu0 %v15669_v21  ;;  %v15700_v42 = vld [vmem:[%s22285_s9 + $0x6d0] sm:$0xff]   ;;  %v5625_v0 = vadd.f32 %v20477_v23, %v5163_v45  ;;  %v15706_v23 = vld [vmem:[%s22285_s9 + $0x700] sm:$0xff]  }
0x1db8   : > { %v5556_v26 = vadd.f32 %v5555_v24, %v5159_v61  ;;  %v5627_v5 = vadd.f32 %v5626_v28, %v5167_v48  ;;  %v15676_v21 = vld [vmem:[%s22285_s9 + $0x610] sm:$0xff]   ;;  %v15685_v28 = vld [vmem:[%s22285_s9 + $0x658] sm:$0xff]   ;;  %v5175_v61 = vrot.slane %v20494_v32, %v19704_v55 }
0x1db9   : > { %v15692_v24 = vld [vmem:[%s22285_s9 + $0x690] sm:$0xff]  }
0x1dba   : > { %18012 = vmatpush3.bf16.msra.mxu1 %v15645_v29  ;;  %18044 = vmatpush3.bf16.msra.mxu0 %v15661_v30  ;;  %v5780_v12 = vmax.f32 %v5556_v26, 0.0  ;;  %v5782_v10 = vmax.f32 %v5627_v5, 0.0  ;;  %v15701_v29 = vld [vmem:[%s22285_s9 + $0x6d8] sm:$0xff]   ;;  %v5781_v5 = vmax.f32 %v5625_v0, 0.0 }
0x1dbb   : > { %18014 = vmatprep.subr.bf16.mxu1 %v15654_v31  ;;  %18046 = vmatprep.subr.bf16.mxu0 %v15670_v16  ;;  %v15677_v30 = vld [vmem:[%s22285_s9 + $0x618] sm:$0xff]   ;;  %v15686_v16 = vld [vmem:[%s22285_s9 + $0x660] sm:$0xff]  }
0x1dbc   : > { %v15693_v31 = vld [vmem:[%s22285_s9 + $0x698] sm:$0xff]  }
0x1dbe   : > { %v20510_v44 = vpop.f32.mrb[44].mxu1  ;;  %v5766_v46 = vpop.f32.mrb[54].mxu0  ;;  %18016 = vmatpush3.bf16.msra.mxu1 %v15646_v39  ;;  %18048 = vmatpush3.bf16.msra.mxu0 %v15662_v40  ;;  %v15678_v39 = vld [vmem:[%s22285_s9 + $0x620] sm:$0xff]  }
0x1dbf   : > { %v20512_v50 = vadd.f32 %v5766_v46, %v5179_v38  ;;  %v20514_v51 = vpop.f32.mrb[45].mxu1  ;;  %v20516_v33 = vpop.f32.mrb[55].mxu0  ;;  %18018 = vmatprep.subr.bf16.mxu1 %v15655_v41  ;;  %18050 = vmatprep.subr.bf16.mxu0 %v15671_v25  ;;  %v15702_v38 = vld [vmem:[%s22285_s9 + $0x6e0] sm:$0xff]   ;;  %v15687_v41 = vld [vmem:[%s22285_s9 + $0x668] sm:$0xff]  }
0x1dc0   : > { %v15694_v40 = vld [vmem:[%s22285_s9 + $0x6a0] sm:$0xff]   ;;  %v15703_v25 = vld [vmem:[%s22285_s9 + $0x6e8] sm:$0xff]   ;;  %v5698_v26 = vadd.f32 %v20514_v51, %v5175_v61  ;;  %v5790_v61 = vrot.slane %v20185_v20, %v19693_v43 }
0x1dc1   : > { %v15679_v46 = vld [vmem:[%s22285_s9 + $0x628] sm:$0xff]   ;;  %v15722_v51 = vld [vmem:[%s22285_s9 + $0x780] sm:$0xff]  }
0x1dc2   : > { %18020 = vmatpush3.bf16.msra.mxu1 %v15647_v37  ;;  %18052 = vmatpush3.bf16.msra.mxu0 %v15663_v52  ;;  %v15695_v37 = vld [vmem:[%s22285_s9 + $0x6a8] sm:$0xff]   ;;  %v15688_v52 = vld [vmem:[%s22285_s9 + $0x670] sm:$0xff]  }
0x1dc3   : > { %18022 = vmatprep.subr.bf16.mxu1 %v15656_v53  ;;  %18054 = vmatprep.subr.bf16.mxu0 %v15672_v54  ;;  %v15704_v53 = vld [vmem:[%s22285_s9 + $0x6f0] sm:$0xff]   ;;  %v5155_v54 = vrot.slane %v20494_v32, %v19443_v34 }
0x1dc5   : > { %v5554_v48 = vadd.f32 %v20475_v22, %v5155_v54  ;;  %v15730_v22 = vld [vmem:[%s22285_s9 + $0x7c0] sm:$0xff]   ;;  %v15713_v54 = vld [vmem:[%s22285_s9 + $0x738] sm:$0xff]  }
0x1dc6   : > { %18024 = vmatpush3.bf16.msra.mxu1 %v15648_v59  ;;  %18056 = vmatpush3.bf16.msra.mxu0 %v15664_v60  ;;  %v15696_v59 = vld [vmem:[%s22285_s9 + $0x6b0] sm:$0xff]   ;;  %v15689_v60 = vld [vmem:[%s22285_s9 + $0x678] sm:$0xff]  }
0x1dc7   : > { %18026 = vmatprep.subr.bf16.mxu1 %v15657_v62  ;;  %18058 = vmatprep.subr.bf16.mxu0 %v15673_v58  ;;  %v15705_v62 = vld [vmem:[%s22285_s9 + $0x6f8] sm:$0xff]   ;;  %v5183_v58 = vrot.slane %v20494_v32, %v19707_v56 }
0x1dca   : > { %18028 = vmatpush3.bf16.msra.mxu1 %v15649_v2  ;;  %18060 = vmatpush3.bf16.msra.mxu0 %v15665_v3  ;;  %v15697_v2 = vld [vmem:[%s22285_s9 + $0x6b8] sm:$0xff]   ;;  %v15714_v3 = vld [vmem:[%s22285_s9 + $0x740] sm:$0xff]  }
0x1dcb   : > { %18062 = vmatprep.subr.bf16.mxu1 %v15682_v27  ;;  %18094 = vmatprep.subr.bf16.mxu0 %v15698_v7  ;;  %v5769_v27 = vadd.f32 %v20516_v33, %v5183_v58  ;;  %v5779_v7 = vmax.f32 %v5554_v48, 0.0  ;;  %v15715_v33 = vld [vmem:[%s22285_s9 + $0x748] sm:$0xff]  }
0x1dcd   : > { %5996 = vmatmul.mubr.f32.vlgmr.msra.gmra.mrb[48].mxu1 %v5775_v6  ;;  %6066 = vmatmul.mubr.f32.vlgmr.msra.gmra.mrb[58].mxu0 %v5777_v49  ;;  %v5784_v6 = vmax.f32 %v5698_v26, 0.0  ;;  %v5786_v49 = vmax.f32 %v5769_v27, 0.0 }
0x1dce   : > { %18064 = vmatpush3.bf16.msra.mxu1 %v15674_v8  ;;  %6135 = vmatprep.mubr.f32.mxu1 %v5780_v12  ;;  %v15731_v8 = vld [vmem:[%s22285_s9 + $0x7c8] sm:$0xff]  }
0x1dcf   : > { %18096 = vmatpush3.bf16.msra.mxu0 %v15690_v9  ;;  %6205 = vmatprep.mubr.f32.mxu0 %v5782_v10  ;;  %v15707_v12 = vld [vmem:[%s22285_s9 + $0x708] sm:$0xff]   ;;  %v15716_v10 = vld [vmem:[%s22285_s9 + $0x750] sm:$0xff]  }
0x1dd0   : > { %18066 = vmatprep.subr.bf16.mxu1 %v15683_v35  ;;  %18098 = vmatprep.subr.bf16.mxu0 %v15699_v11  ;;  %v15723_v9 = vld [vmem:[%s22285_s9 + $0x788] sm:$0xff]   ;;  %v15732_v35 = vld [vmem:[%s22285_s9 + $0x7d0] sm:$0xff]  }
0x1dd1   : > { %v15708_v11 = vld [vmem:[%s22285_s9 + $0x710] sm:$0xff]  }
0x1dd2   : > { %18068 = vmatpush3.bf16.msra.mxu1 %v15675_v17  ;;  %v15724_v17 = vld [vmem:[%s22285_s9 + $0x790] sm:$0xff]  }
0x1dd3   : > { %18100 = vmatpush3.bf16.msra.mxu0 %v15691_v18  ;;  %18070 = vmatprep.subr.bf16.mxu1 %v15684_v19  ;;  %v15717_v18 = vld [vmem:[%s22285_s9 + $0x758] sm:$0xff]  }
0x1dd4   : > { %18102 = vmatprep.subr.bf16.mxu0 %v15700_v42  ;;  %v15733_v19 = vld [vmem:[%s22285_s9 + $0x7d8] sm:$0xff]  }
0x1dd5   : > { %v15709_v42 = vld [vmem:[%s22285_s9 + $0x718] sm:$0xff]  }
0x1dd6   : > { %18072 = vmatpush3.bf16.msra.mxu1 %v15676_v21  ;;  %v15725_v21 = vld [vmem:[%s22285_s9 + $0x798] sm:$0xff]  }
0x1dd7   : > { %18104 = vmatpush3.bf16.msra.mxu0 %v15692_v24  ;;  %18074 = vmatprep.subr.bf16.mxu1 %v15685_v28  ;;  %v15718_v24 = vld [vmem:[%s22285_s9 + $0x760] sm:$0xff]  }
0x1dd8   : > { %18106 = vmatprep.subr.bf16.mxu0 %v15701_v29  ;;  %v15734_v28 = vld [vmem:[%s22285_s9 + $0x7e0] sm:$0xff]  }
0x1dd9   : > { %v15710_v29 = vld [vmem:[%s22285_s9 + $0x720] sm:$0xff]  }
0x1dda   : > { %18076 = vmatpush3.bf16.msra.mxu1 %v15677_v30  ;;  %v15726_v30 = vld [vmem:[%s22285_s9 + $0x7a0] sm:$0xff]  }
0x1ddb   : > { %18108 = vmatpush3.bf16.msra.mxu0 %v15693_v31  ;;  %18078 = vmatprep.subr.bf16.mxu1 %v15686_v16  ;;  %v15719_v31 = vld [vmem:[%s22285_s9 + $0x768] sm:$0xff]  }
0x1ddc   : > { %18110 = vmatprep.subr.bf16.mxu0 %v15702_v38  ;;  %v15735_v16 = vld [vmem:[%s22285_s9 + $0x7e8] sm:$0xff]  }
0x1ddd   : > { %v15711_v38 = vld [vmem:[%s22285_s9 + $0x728] sm:$0xff]  }
0x1dde   : > { %18080 = vmatpush3.bf16.msra.mxu1 %v15678_v39  ;;  %v15727_v39 = vld [vmem:[%s22285_s9 + $0x7a8] sm:$0xff]  }
0x1ddf   : > { %18112 = vmatpush3.bf16.msra.mxu0 %v15694_v40  ;;  %18082 = vmatprep.subr.bf16.mxu1 %v15687_v41  ;;  %v15720_v40 = vld [vmem:[%s22285_s9 + $0x770] sm:$0xff]  }
0x1de0   : > { %18114 = vmatprep.subr.bf16.mxu0 %v15703_v25  ;;  %v15736_v41 = vld [vmem:[%s22285_s9 + $0x7f0] sm:$0xff]   ;;  %v5171_v25 = vrot.slane %v20494_v32, %v19794_v47 }
0x1de2   : > { %18084 = vmatpush3.bf16.msra.mxu1 %v15679_v46  ;;  %v15712_v46 = vld [vmem:[%s22285_s9 + $0x730] sm:$0xff]   ;;  %v5696_v32 = vadd.f32 %v20510_v44, %v5171_v25  ;;  %v12782_v25 = vld [vmem:[%s22279_s3 + $0x58] sm:$0xff] }
0x1de3   : > { %18116 = vmatpush3.bf16.msra.mxu0 %v15695_v37  ;;  %18086 = vmatprep.subr.bf16.mxu1 %v15688_v52  ;;  %v15728_v37 = vld [vmem:[%s22285_s9 + $0x7b0] sm:$0xff]   ;;  %v15721_v52 = vld [vmem:[%s22285_s9 + $0x778] sm:$0xff]  }
0x1de4   : > { %18118 = vmatprep.subr.bf16.mxu0 %v15704_v53  ;;  %v15737_v53 = vld [vmem:[%s22285_s9 + $0x7f8] sm:$0xff]   ;;  %v5783_v45 = vmax.f32 %v5696_v32, 0.0  ;;  %v19109_v32 = vld [vmem:[%s22282_s6 + $0x8] sm:$0x3f] }
0x1de6   : > { %18088 = vmatpush3.bf16.msra.mxu1 %v15680_v57  ;;  %v15729_v57 = vld [vmem:[%s22285_s9 + $0x7b8] sm:$0xff]  }
0x1de7   : > { %18120 = vmatpush3.bf16.msra.mxu0 %v15696_v59  ;;  %18090 = vmatprep.subr.bf16.mxu1 %v15689_v60  ;;  %v5785_v59 = vmax.f32 %v20512_v50, 0.0 }
0x1de8   : > { %18122 = vmatprep.subr.bf16.mxu0 %v15705_v62 }
0x1dea   : > { %18092 = vmatpush3.bf16.msra.mxu1 %v15681_v63 }
0x1deb   : > { %18124 = vmatpush3.bf16.msra.mxu0 %v15697_v2  ;;  %18126 = vmatprep.subr.bf16.mxu1 %v15714_v3 }
0x1dec   : > { %18158 = vmatprep.subr.bf16.mxu0 %v15730_v22 }
0x1ded   : > { %6136 = vmatmul.mubr.f32.vlgmr.msra.gmra.mrb[50].mxu1 %v5779_v7 }
0x1dee   : > { %6206 = vmatmul.mubr.f32.vlgmr.msra.gmra.mrb[60].mxu0 %v5781_v5  ;;  %18128 = vmatpush3.bf16.msra.mxu1 %v15706_v23 }
0x1def   : > { %6275 = vmatprep.mubr.f32.mxu1 %v5784_v6  ;;  %18160 = vmatpush3.bf16.msra.mxu0 %v15722_v51 }
0x1df0   : > { %6345 = vmatprep.mubr.f32.mxu0 %v5786_v49  ;;  %18130 = vmatprep.subr.bf16.mxu1 %v15715_v33 }
0x1df1   : > { %18162 = vmatprep.subr.bf16.mxu0 %v15731_v8 }
0x1df2   : > { %18132 = vmatpush3.bf16.msra.mxu1 %v15707_v12 }
0x1df3   : > { %18164 = vmatpush3.bf16.msra.mxu0 %v15723_v9  ;;  %18134 = vmatprep.subr.bf16.mxu1 %v15716_v10 }
0x1df4   : > { %18166 = vmatprep.subr.bf16.mxu0 %v15732_v35 }
0x1df6   : > { %18136 = vmatpush3.bf16.msra.mxu1 %v15708_v11 }
0x1df7   : > { %18168 = vmatpush3.bf16.msra.mxu0 %v15724_v17  ;;  %18138 = vmatprep.subr.bf16.mxu1 %v15717_v18 }
0x1df8   : > { %18170 = vmatprep.subr.bf16.mxu0 %v15733_v19 }
0x1dfa   : > { %18140 = vmatpush3.bf16.msra.mxu1 %v15709_v42 }
0x1dfb   : > { %18172 = vmatpush3.bf16.msra.mxu0 %v15725_v21  ;;  %18142 = vmatprep.subr.bf16.mxu1 %v15718_v24 }
0x1dfc   : > { %18174 = vmatprep.subr.bf16.mxu0 %v15734_v28 }
0x1dfe   : > { %18144 = vmatpush3.bf16.msra.mxu1 %v15710_v29 }
0x1dff   : > { %18176 = vmatpush3.bf16.msra.mxu0 %v15726_v30  ;;  %18146 = vmatprep.subr.bf16.mxu1 %v15719_v31 }
0x1e00   : > { %18178 = vmatprep.subr.bf16.mxu0 %v15735_v16 }
0x1e02   : > { %18148 = vmatpush3.bf16.msra.mxu1 %v15711_v38 }
0x1e03   : > { %18180 = vmatpush3.bf16.msra.mxu0 %v15727_v39  ;;  %18150 = vmatprep.subr.bf16.mxu1 %v15720_v40  ;;  %v12779_v39 = vld [vmem:[%s22279_s3 + $0x40] sm:$0xff]  ;;  %v12780_v40 = vld [vmem:[%s22279_s3 + $0x48] sm:$0xff] }
0x1e04   : > { %18182 = vmatprep.subr.bf16.mxu0 %v15736_v41  ;;  %v18190_v41 = vpack.c.bf16 %v12780_v40, %v12779_v39 }
0x1e06   : > { %18152 = vmatpush3.bf16.msra.mxu1 %v15712_v46 }
0x1e07   : > { %18184 = vmatpush3.bf16.msra.mxu0 %v15728_v37  ;;  %18154 = vmatprep.subr.bf16.mxu1 %v15721_v52 }
0x1e08   : > { %18186 = vmatprep.subr.bf16.mxu0 %v15737_v53 }
0x1e0a   : > { %18156 = vmatpush3.bf16.msra.mxu1 %v15713_v54  ;;  %v6368_v54 = vrot.slane %v19109_v32, %v19794_v47 }
0x1e0b   : > { %18188 = vmatpush3.bf16.msra.mxu0 %v15729_v57  ;;  %18189 = vmatprep.subr.bf16.mxu1 %v19178_v4 }
0x1e0c   : > { %17395 = vmatprep.subr.mxu0 %v19176_v1 }
0x1e0d   : > { %6276 = vmatmul.mubr.f32.vlgmr.msra.gmra.mrb[52].mxu1 %v5783_v45 }
0x1e0e   : > { %6346 = vmatmul.mubr.f32.vlgmr.msra.gmra.mrb[62].mxu0 %v5785_v59  ;;  %17392 = vmatprep.mubr.msk.f32.mxu1 %vm19177_vm1, %v19176_v1  ;;  %v6373_v59 = vrot.slane %v19109_v32, %v19704_v55 }
0x1e0f   : > { %17397 = vmatprep.mubr.msk.f32.mxu0 %vm19177_vm1, %v19176_v1  ;;  %18191 = vmatpush3.bf16.msra.mxu1 %v18190_v41 }
0x1e10   : > { %18192 = vmatprep.subr.bf16.mxu1 %v19178_v4 }
0x1e80   : > { %v16366_v44 = vpop.f32.mrb[46].mxu1  ;;  %v16401_v60 = vpop.f32.mrb[56].mxu0 }
0x1e81   : > { %v16367_v62 = vpop.f32.mrb[47].mxu1  ;;  %v16402_v58 = vpop.f32.mrb[57].mxu0 }
0x1e82   : > { %v16368_v48 = vadd.f32 %v16367_v62, %v16366_v44  ;;  %v16403_v63 = vadd.f32 %v16402_v58, %v16401_v60 }
0x1e84   : > { %v5858_v50 = vadd.f32 %v16368_v48, %v5790_v61  ;;  %v13079_v61 = vld [vmem:[%s22280_s4 + $0x2] ss:$0 sm:$0xff] }
0x1e86   : > { %v5928_v0 = vadd.f32 %v16403_v63, %v5858_v50 }
0x1ea0   : > { %v16436_v2 = vpop.f32.mrb[48].mxu1  ;;  %v16471_v3 = vpop.f32.mrb[58].mxu0 }
0x1ea1   : > { %v16437_v26 = vpop.f32.mrb[49].mxu1  ;;  %v16472_v22 = vpop.f32.mrb[59].mxu0 }
0x1ea2   : > { %v16438_v27 = vadd.f32 %v16437_v26, %v16436_v2  ;;  %v16473_v7 = vadd.f32 %v16472_v22, %v16471_v3 }
0x1ea4   : > { %v5998_v23 = vadd.f32 %v16438_v27, %v5928_v0 }
0x1ea6   : > { %v6068_v5 = vadd.f32 %v16473_v7, %v5998_v23 }
0x1ec0   : > { %v16506_v51 = vpop.f32.mrb[50].mxu1 }
0x1ec1   : > { %v16541_v6 = vpop.f32.mrb[60].mxu0  ;;  %v16507_v33 = vpop.f32.mrb[51].mxu1 }
0x1ec2   : > { %v16508_v49 = vadd.f32 %v16507_v33, %v16506_v51  ;;  %v16542_v8 = vpop.f32.mrb[61].mxu0 }
0x1ec3   : > { %v16543_v20 = vadd.f32 %v16542_v8, %v16541_v6 }
0x1ec4   : > { %v6138_v12 = vadd.f32 %v16508_v49, %v6068_v5 }
0x1ec6   : > { %v6208_v9 = vadd.f32 %v16543_v20, %v6138_v12 }
0x1ee0   : > { %v16576_v10 = vpop.f32.mrb[52].mxu1 }
0x1ee1   : > { %v16611_v35 = vpop.f32.mrb[62].mxu0  ;;  %v16577_v11 = vpop.f32.mrb[53].mxu1 }
0x1ee2   : > { %v16578_v17 = vadd.f32 %v16577_v11, %v16576_v10  ;;  %v16612_v18 = vpop.f32.mrb[63].mxu0  ;;  %v12785_v10 = vld [vmem:[%s22281_s5 + $0x48] sm:$0xff] }
0x1ee3   : > { %v16613_v19 = vadd.f32 %v16612_v18, %v16611_v35 }
0x1ee4   : > { %v6278_v42 = vadd.f32 %v16578_v17, %v6208_v9 }
0x1ee6   : > { %v6348_v21 = vadd.f32 %v16613_v19, %v6278_v42 }
0x1ee8   : > { %v6351_v24 = vadd.f32 %v6348_v21, %v20244_v15  ;;  %v12781_v15 = vld [vmem:[%s22279_s3 + $0x50] sm:$0xff] }
0x1ee9   : > { %v18193_v46 = vpack.c.bf16 %v12782_v25, %v12781_v15 }
0x1eea   : > { %v6352_v28 = vsel %vm1115_vm3, %v6351_v24, 0.0 }
0x1eeb   : > { %6353 = vadd.xlane.f32.xlu1 %v6352_v28  ;;  %18194 = vmatpush3.bf16.msra.mxu1 %v18193_v46  ;;  %v12784_v28 = vld [vmem:[%s22281_s5 + $0x40] sm:$0xff] }
0x1eec   : > { %17405 = vmatprep.subr.mxu1 %v19176_v1 }
0x1f78   : > { %v6354_v29 = vpop.xlane.xlu1 %6353 }
0x1f79   : > { %v6355_v30 = vmul.f32 0.03125, %v6354_v29 }
0x1f7b   : > { %v6356_v31 = vsub.f32 %v6351_v24, %v6355_v30 }
0x1f7d   : > { %v6357_v16 = vmul.f32 %v6356_v31, %v6356_v31 }
0x1f7f   : > { %v6358_v38 = vsel %vm1115_vm3, %v6357_v16, 0.0 }
0x1f80   : > { %6359 = vadd.xlane.f32.xlu1 %v6358_v38 }
0x200d   : > { %v6360_v37 = vpop.xlane.xlu1 %6359 }
0x200e   : > { %v6361_v52 = vmul.f32 0.03125, %v6360_v37 }
0x2010   : > { %v6362_v53 = vadd.f32 1e-05, %v6361_v52 }
0x2012   : > { %19066 = vrsqrt.f32 %v6362_v53 }
0x201c   : > { %v19067_v57 = vpop.eup %19066 }
0x201d   : > { %v6364_v45 = vmul.f32 %v19067_v57, %v6356_v31 }
0x201f   : > { %v6369_v44 = vmul.f32 %v6368_v54, %v6364_v45 }
0x2021   : > { %v20796_v60 = vadd.f32 %v6373_v59, %v6369_v44 }
0x2023   : > { %17393 = vmatmul.mubr.msk.f32.vlgmr.msra.gmra.mrb[54].mxu1 %vm1115_vm3, %v20796_v60 }
0x2024   : > { %17407 = vmatprep.mubr.msk.f32.mxu1 %vm19177_vm1, %v19176_v1 }
0x20f6   : > { %v7077_v62 = vpop.f32.mrb[54].mxu1 }
0x20f7   : > { %v20805_v58 = vadd.f32 %v13079_v61, %v7077_v62  ;;  %v17394_v48 = vpop.f32.mrb[55].mxu1 }
0x20f9   : > { %7247 = vrot.lane.b32.xlu0 %v20805_v58, %s22337_s17  ;;  %7082 = vrot.lane.b32.xlu1 %v20805_v58, %s22338_s18 }
0x20fd   : > { %7245 = vrot.lane.b32.xlu0 %v20805_v58, %s22339_s0 }
0x216b   : > { %v7248_v63 = vpop.permute.xlu0 %7247  ;;  %v7083_v50 = vpop.permute.xlu1 %7082 }
0x216c   : > { %17396 = vmatpush3.xpose.msk.msra.mxu0 %vm1192_vm4, %v7083_v50  ;;  %17406 = vmatpush3.xpose.msk.msra.mxu1 %vm1192_vm4, %v7248_v63 }
0x216d   : > { %17400 = vmatprep.subr.mxu0 %v19176_v1  ;;  %17415 = vmatprep.subr.mxu1 %v19176_v1 }
0x216f   : > { %v7246_v0 = vpop.permute.xlu0 %7245  ;;  %17398 = vmatmul.mubr.msk.f32.vlgmr.msra.gmra.mrb[64].mxu0 %vm1192_vm4, %v20805_v58 }
0x2170   : > { %17408 = vmatmul.mubr.msk.f32.vlgmr.msra.gmra.mrb[56].mxu1 %vm1192_vm4, %v7246_v0  ;;  %17402 = vmatprep.mubr.msk.f32.mxu0 %vm19177_vm1, %v19176_v1  ;;  %v12786_v0 = vld [vmem:[%s22281_s5 + $0x50] sm:$0xff] }
0x2171   : > { %17417 = vmatprep.mubr.msk.f32.mxu1 %vm19177_vm1, %v19176_v1  ;;  %17416 = vmatpush3.msra.mxu1 %v12785_v10 }
0x2172   : > { %17425 = vmatprep.subr.mxu1 %v19176_v1 }
0x2242   : > { %v7154_v2 = vpop.f32.mrb[64].mxu0 }
0x2243   : > { %v17399_v3 = vpop.f32.mrb[65].mxu0  ;;  %v7319_v26 = vpop.f32.mrb[56].mxu1  ;;  %v7158_v22 = vsel %vm1192_vm4, %v7154_v2, -inf }
0x2244   : > { %7159 = vmax.xlane.f32.xlu0 %v7158_v22  ;;  %v17409_v27 = vpop.f32.mrb[57].mxu1  ;;  %v7323_v7 = vsel %vm1192_vm4, %v7319_v26, -inf }
0x2245   : > { %7324 = vmax.xlane.f32.xlu1 %v7323_v7 }
0x2256   : > { %7334 = vrot.lane.b32.xlu1 %v20805_v58, %s22340_s19 }
0x225a   : > { %7558 = vrot.lane.b32.xlu1 %v20805_v58, %s22342_s15 }
0x22d1   : > { %v7160_v23 = vpop.xlane.xlu0 %7159 }
0x22d2   : > { %v7161_v5 = vsub.f32 %v7154_v2, %v7160_v23  ;;  %v7325_v51 = vpop.xlane.xlu1 %7324 }
0x22d3   : > { %v7326_v6 = vsub.f32 %v7319_v26, %v7325_v51 }
0x22d4   : > { %v7162_v33 = vmul.f32 1.442695, %v7161_v5 }
0x22d5   : > { %v7327_v49 = vmul.f32 1.442695, %v7326_v6 }
0x22d6   : > { %19068 = vpow2.f32 %v7162_v33  ;;  %v7335_v42 = vpop.permute.xlu1 %7334 }
0x22d7   : > { %19070 = vpow2.f32 %v7327_v49  ;;  %v12787_v49 = vld [vmem:[%s22281_s5 + $0x58] sm:$0xff] }
0x22da   : > { %v7559_v16 = vpop.permute.xlu1 %7558 }
0x22e0   : > { %v19069_v8 = vpop.eup %19068 }
0x22e1   : > { %v7164_v20 = vsel %vm1192_vm4, %v19069_v8, 0.0  ;;  %v19071_v12 = vpop.eup %19070 }
0x22e2   : > { %7165 = vadd.xlane.f32.xlu0 %v7164_v20  ;;  %v7329_v9 = vsel %vm1192_vm4, %v19071_v12, 0.0 }
0x22e6   : > { %7330 = vadd.xlane.f32.xlu0 %v7329_v9 }
0x22fc   : > { %7169 = vrot.lane.b32.xlu0 %v20805_v58, %s22341_s29 }
0x2300   : > { %7556 = vrot.lane.b32.xlu0 %v20805_v58, %s22343_s16 }
0x236f   : > { %v7166_v35 = vpop.xlane.xlu0 %7165 }
0x2370   : > { %19072 = vrcp.f32 %v7166_v35 }
0x2373   : > { %v7331_v11 = vpop.xlane.xlu0 %7330 }
0x2374   : > { %19074 = vrcp.f32 %v7331_v11 }
0x2377   : > { %v7170_v17 = vpop.permute.xlu0 %7169 }
0x2378   : > { %17401 = vmatpush3.msra.mxu0 %v7170_v17  ;;  %v20901_v17 = vld [vmem:[%s22282_s6 + $0x10] sm:$0x3f] }
0x2379   : > { %17410 = vmatprep.subr.mxu0 %v19176_v1 }
0x237a   : > { %v19073_v18 = vpop.eup %19072 }
0x237b   : > { %v7168_v19 = vmul.f32 %v19073_v18, %v19069_v8  ;;  %v7557_v39 = vpop.permute.xlu0 %7556 }
0x237d   : > { %17403 = vmatmul.mubr.msk.f32.vlgmr.msra.gmra.mrb[66].mxu0 %vm1192_vm4, %v7168_v19 }
0x237e   : > { %v19075_v21 = vpop.eup %19074  ;;  %17411 = vmatpush3.msra.mxu0 %v7335_v42  ;;  %17412 = vmatprep.mubr.msk.f32.mxu0 %vm19177_vm1, %v19176_v1 }
0x237f   : > { %v7333_v24 = vmul.f32 %v19075_v21, %v19071_v12  ;;  %17420 = vmatprep.subr.mxu0 %v19176_v1  ;;  %v8038_v21 = vrot.slane %v20901_v17, %v19443_v34 }
0x2381   : > { %17413 = vmatmul.mubr.msk.f32.vlgmr.msra.gmra.mrb[68].mxu0 %vm1192_vm4, %v7333_v24 }
0x2382   : > { %17422 = vmatprep.mubr.msk.f32.mxu0 %vm19177_vm1, %v19176_v1  ;;  %17421 = vmatpush3.msra.mxu0 %v12784_v28 }
0x2383   : > { %17430 = vmatprep.subr.mxu0 %v19176_v1 }
0x2450   : > { %v7241_v29 = vpop.f32.mrb[66].mxu0 }
0x2451   : > { %v17404_v30 = vpop.f32.mrb[67].mxu0  ;;  %17423 = vmatmul.mubr.msk.f32.vlgmr.msra.gmra.mrb[70].mxu0 %vm1192_vm4, %v7241_v29 }
0x2452   : > { %17432 = vmatprep.mubr.msk.f32.mxu0 %vm19177_vm1, %v19176_v1 }
0x2454   : > { %v7406_v31 = vpop.f32.mrb[68].mxu0 }
0x2455   : > { %v17414_v38 = vpop.f32.mrb[69].mxu0  ;;  %17418 = vmatmul.mubr.msk.f32.vlgmr.msra.gmra.mrb[58].mxu1 %vm1192_vm4, %v7406_v31 }
0x2456   : > { %17426 = vmatpush3.xpose.msk.msra.mxu1 %vm1192_vm4, %v7559_v16  ;;  %17427 = vmatprep.mubr.msk.f32.mxu1 %vm19177_vm1, %v19176_v1 }
0x2457   : > { %17435 = vmatprep.subr.mxu1 %v19176_v1 }
0x2459   : > { %17428 = vmatmul.mubr.msk.f32.vlgmr.msra.gmra.mrb[60].mxu1 %vm1192_vm4, %v7557_v39 }
0x245a   : > { %17437 = vmatprep.mubr.msk.f32.mxu1 %vm19177_vm1, %v19176_v1  ;;  %17436 = vmatpush3.msra.mxu1 %v12786_v0 }
0x245b   : > { %17445 = vmatprep.subr.mxu1 %v19176_v1 }
0x2524   : > { %v7552_v40 = vpop.f32.mrb[70].mxu0 }
0x2525   : > { %v17424_v41 = vpop.f32.mrb[71].mxu0 }
0x2526   : > { %v12797_v41 = vld [vmem:[%s22283_s7 + $0x240] sm:$0xff] }
0x2528   : > { %v7479_v15 = vpop.f32.mrb[58].mxu1 }
0x2529   : > { %v7553_v25 = vadd.f32 %v7552_v40, %v7479_v15  ;;  %v17419_v46 = vpop.f32.mrb[59].mxu1  ;;  %v12789_v40 = vld [vmem:[%s22283_s7 + $0x200] sm:$0xff] }
0x252a   : > { %v18911_v15 = vcombine.high %v12789_v40, %v12797_v41  ;;  %v18912_v46 = vcombine.low %v12789_v40, %v12797_v41 }
0x252c   : > { %v7630_v37 = vpop.f32.mrb[60].mxu1 }
0x252d   : > { %v17429_v52 = vpop.f32.mrb[61].mxu1  ;;  %v7634_v53 = vsel %vm1192_vm4, %v7630_v37, -inf }
0x252e   : > { %7635 = vmax.xlane.f32.xlu1 %v7634_v53  ;;  %v12805_v53 = vld [vmem:[%s22283_s7 + $0x280] sm:$0xff] }
0x253f   : > { %7797 = vrot.lane.b32.xlu1 %v20805_v58, %s22346_s26 }
0x2543   : > { %7795 = vrot.lane.b32.xlu1 %v20805_v58, %s22345_s28 }
0x25bb   : > { %v7636_v32 = vpop.xlane.xlu1 %7635 }
0x25bc   : > { %v7637_v54 = vsub.f32 %v7630_v37, %v7636_v32  ;;  %v12813_v32 = vld [vmem:[%s22283_s7 + $0x2c0] sm:$0xff] }
0x25be   : > { %v7638_v57 = vmul.f32 1.442695, %v7637_v54  ;;  %v12806_v54 = vld [vmem:[%s22283_s7 + $0x288] sm:$0xff] }
0x25bf   : > { %v7798_v48 = vpop.permute.xlu1 %7797 }
0x25c0   : > { %19076 = vpow2.f32 %v7638_v57  ;;  %v18913_v57 = vcombine.high %v12805_v53, %v12813_v32 }
0x25c3   : > { %v7796_v50 = vpop.permute.xlu1 %7795 }
0x25ca   : > { %v19077_v45 = vpop.eup %19076 }
0x25cb   : > { %v7640_v59 = vsel %vm1192_vm4, %v19077_v45, 0.0 }
0x25cc   : > { %7641 = vadd.xlane.f32.xlu0 %v7640_v59  ;;  %v18914_v59 = vcombine.low %v12805_v53, %v12813_v32 }
0x25e2   : > { %7645 = vrot.lane.b32.xlu0 %v20805_v58, %s22344_s20 }
0x2659   : > { %v7642_v44 = vpop.xlane.xlu0 %7641 }
0x265a   : > { %19078 = vrcp.f32 %v7642_v44 }
0x265d   : > { %v7646_v61 = vpop.permute.xlu0 %7645 }
0x265e   : > { %17431 = vmatpush3.msra.mxu0 %v7646_v61 }
0x265f   : > { %17440 = vmatprep.subr.mxu0 %v19176_v1 }
0x2664   : > { %v19079_v62 = vpop.eup %19078 }
0x2665   : > { %v7644_v63 = vmul.f32 %v19079_v62, %v19077_v45  ;;  %v12814_v45 = vld [vmem:[%s22283_s7 + $0x2c8] sm:$0xff]  ;;  %v12791_v62 = vld [vmem:[%s22283_s7 + $0x210] sm:$0xff] }
0x2666   : > { %v18917_v44 = vcombine.high %v12806_v54, %v12814_v45  ;;  %v18918_v61 = vcombine.low %v12806_v54, %v12814_v45  ;;  %v12811_v54 = vld [vmem:[%s22283_s7 + $0x2b0] sm:$0xff]  ;;  %v12812_v45 = vld [vmem:[%s22283_s7 + $0x2b8] sm:$0xff] }
0x2667   : > { %17433 = vmatmul.mubr.msk.f32.vlgmr.msra.gmra.mrb[72].mxu0 %vm1192_vm4, %v7644_v63  ;;  %v12792_v63 = vld [vmem:[%s22283_s7 + $0x218] sm:$0xff] }
0x2668   : > { %17441 = vmatpush3.xpose.msk.msra.mxu0 %vm1192_vm4, %v7798_v48  ;;  %17442 = vmatprep.mubr.msk.f32.mxu0 %vm19177_vm1, %v19176_v1  ;;  %v12799_v48 = vld [vmem:[%s22283_s7 + $0x250] sm:$0xff] }
0x2669   : > { %17450 = vmatprep.subr.mxu0 %v19176_v1  ;;  %v18920_v0 = vcombine.low %v12791_v62, %v12799_v48 }
0x266b   : > { %17443 = vmatmul.mubr.msk.f32.vlgmr.msra.gmra.mrb[74].mxu0 %vm1192_vm4, %v7796_v50  ;;  %v18919_v50 = vcombine.high %v12791_v62, %v12799_v48 }
0x266c   : > { %17452 = vmatprep.mubr.msk.f32.mxu0 %vm19177_vm1, %v19176_v1  ;;  %17451 = vmatpush3.msra.mxu0 %v12787_v49  ;;  %v12815_v49 = vld [vmem:[%s22283_s7 + $0x2d0] sm:$0xff] }
0x273a   : > { %v7717_v2 = vpop.f32.mrb[72].mxu0 }
0x273b   : > { %v17434_v3 = vpop.f32.mrb[73].mxu0  ;;  %17438 = vmatmul.mubr.msk.f32.vlgmr.msra.gmra.mrb[62].mxu1 %vm1192_vm4, %v7717_v2  ;;  %v12800_v2 = vld [vmem:[%s22283_s7 + $0x258] sm:$0xff] }
0x273c   : > { %17447 = vmatprep.mubr.msk.f32.mxu1 %vm19177_vm1, %v19176_v1  ;;  %v18923_v3 = vcombine.high %v12792_v63, %v12800_v2 }
0x273e   : > { %v7869_v26 = vpop.f32.mrb[74].mxu0 }
0x273f   : > { %v17444_v22 = vpop.f32.mrb[75].mxu0  ;;  %v7873_v27 = vsel %vm1192_vm4, %v7869_v26, -inf }
0x2740   : > { %7874 = vmax.xlane.f32.xlu0 %v7873_v27 }
0x2756   : > { %7884 = vrot.lane.b32.xlu0 %v20805_v58, %s22347_s1 }
0x27cd   : > { %v7875_v7 = vpop.xlane.xlu0 %7874 }
0x27ce   : > { %v7876_v23 = vsub.f32 %v7869_v26, %v7875_v7  ;;  %v18924_v26 = vcombine.low %v12792_v63, %v12800_v2  ;;  %v15762_v2 = vld [vmem:[%s22285_s9 + $0x8c0] sm:$0xff]  }
0x27d0   : > { %v7877_v5 = vmul.f32 1.442695, %v7876_v23  ;;  %v8056_v23 = vrot.slane %v20901_v17, %v19492_v13 }
0x27d1   : > { %v7885_v51 = vpop.permute.xlu0 %7884 }
0x27d2   : > { %19080 = vpow2.f32 %v7877_v5  ;;  %17446 = vmatpush3.msra.mxu1 %v7885_v51  ;;  %v8061_v51 = vrot.slane %v20901_v17, %v19495_v14 }
0x27d3   : > { %18196 = vmatprep.subr.bf16.mxu1 %v18911_v15  ;;  %v12803_v15 = vld [vmem:[%s22283_s7 + $0x270] sm:$0xff] }
0x27dc   : > { %v19081_v6 = vpop.eup %19080 }
0x27dd   : > { %v7879_v33 = vsel %vm1192_vm4, %v19081_v6, 0.0 }
0x27de   : > { %7880 = vadd.xlane.f32.xlu1 %v7879_v33  ;;  %v12807_v33 = vld [vmem:[%s22283_s7 + $0x290] sm:$0xff] }
0x280e   : > { %v7790_v8 = vpop.f32.mrb[62].mxu1 }
0x280f   : > { %v7794_v20 = vadd.f32 %v7790_v8, %v7553_v25  ;;  %v17439_v12 = vpop.f32.mrb[63].mxu1  ;;  %v12798_v25 = vld [vmem:[%s22283_s7 + $0x248] sm:$0xff]  ;;  %v12808_v8 = vld [vmem:[%s22283_s7 + $0x298] sm:$0xff] }
0x286b   : > { %v7881_v9 = vpop.xlane.xlu1 %7880 }
0x286c   : > { %19082 = vrcp.f32 %v7881_v9 }
0x2876   : > { %v19083_v58 = vpop.eup %19082 }
0x2877   : > { %v7883_v10 = vmul.f32 %v19083_v58, %v19081_v6  ;;  %v18921_v58 = vcombine.high %v12807_v33, %v12815_v49 }
0x2879   : > { %17448 = vmatmul.mubr.msk.f32.vlgmr.msra.gmra.mrb[64].mxu1 %vm1192_vm4, %v7883_v10 }
0x287a   : > { %8212 = vmatprep.mubr.f32.mxu1 %v19176_v1  ;;  %18198 = vmatpush1.bf16.msra.mxu1 %v18912_v46  ;;  %v12804_v46 = vld [vmem:[%s22283_s7 + $0x278] sm:$0xff] }
0x287b   : > { %18200 = vmatprep.subr.bf16.mxu1 %v18913_v57  ;;  %v12819_v57 = vld [vmem:[%s22283_s7 + $0x2f0] sm:$0xff] }
0x287c   : > { %v18937_v62 = vcombine.high %v12811_v54, %v12819_v57  ;;  %v18938_v63 = vcombine.low %v12811_v54, %v12819_v57 }
0x287e   : > { %18202 = vmatpush1.bf16.msra.mxu1 %v18914_v59  ;;  %v12820_v59 = vld [vmem:[%s22283_s7 + $0x2f8] sm:$0xff] }
0x287f   : > { %18212 = vmatprep.subr.bf16.mxu1 %v18919_v50  ;;  %v18941_v48 = vcombine.high %v12812_v45, %v12820_v59  ;;  %v18942_v50 = vcombine.low %v12812_v45, %v12820_v59 }
0x294c   : > { %v7956_v35 = vpop.f32.mrb[64].mxu1 }
0x294d   : > { %v17449_v11 = vpop.f32.mrb[65].mxu1  ;;  %17453 = vmatmul.mubr.msk.f32.vlgmr.msra.gmra.mrb[76].mxu0 %vm1192_vm4, %v7956_v35  ;;  %v12793_v35 = vld [vmem:[%s22283_s7 + $0x220] sm:$0xff] }
0x294e   : > { %8283 = vmatprep.mubr.f32.mxu0 %v19176_v1  ;;  %v12801_v11 = vld [vmem:[%s22283_s7 + $0x260] sm:$0xff] }
0x2a20   : > { %v8029_v18 = vpop.f32.mrb[76].mxu0 }
0x2a21   : > { %v8033_v19 = vadd.f32 %v8029_v18, %v7794_v20  ;;  %v17454_v42 = vpop.f32.mrb[77].mxu0  ;;  %v12816_v20 = vld [vmem:[%s22283_s7 + $0x2d8] sm:$0xff]  ;;  %v12794_v18 = vld [vmem:[%s22283_s7 + $0x228] sm:$0xff] }
0x2a22   : > { %v18925_v10 = vcombine.high %v12808_v8, %v12816_v20  ;;  %v18922_v42 = vcombine.low %v12807_v33, %v12815_v49  ;;  %v15756_v33 = vld [vmem:[%s22285_s9 + $0x890] sm:$0xff]   ;;  %v15749_v49 = vld [vmem:[%s22285_s9 + $0x858] sm:$0xff]  }
0x2a23   : > { %v8034_v24 = vadd.f32 %v8033_v19, %v20796_v60  ;;  %v12790_v60 = vld [vmem:[%s22283_s7 + $0x208] sm:$0xff] }
0x2a24   : > { %v18915_v37 = vcombine.high %v12790_v60, %v12798_v25  ;;  %v18916_v52 = vcombine.low %v12790_v60, %v12798_v25  ;;  %v12802_v19 = vld [vmem:[%s22283_s7 + $0x268] sm:$0xff]  ;;  %v12795_v60 = vld [vmem:[%s22283_s7 + $0x230] sm:$0xff]  ;;  %v12796_v25 = vld [vmem:[%s22283_s7 + $0x238] sm:$0xff] }
0x2a25   : > { %v8039_v28 = vadd.f32 %v8038_v21, %v8034_v24  ;;  %v18926_v21 = vcombine.low %v12808_v8, %v12816_v20  ;;  %v18927_v24 = vcombine.high %v12793_v35, %v12801_v11  ;;  %v18935_v53 = vcombine.high %v12795_v60, %v12803_v15  ;;  %v15765_v8 = vld [vmem:[%s22285_s9 + $0x8d8] sm:$0xff]  }
0x2a26   : > { %18204 = vmatprep.subr.bf16.mxu0 %v18915_v37  ;;  %v18939_v32 = vcombine.high %v12796_v25, %v12804_v46  ;;  %v15741_v20 = vld [vmem:[%s22285_s9 + $0x818] sm:$0xff]  }
0x2a27   : > { %v8040_v29 = vsel %vm1115_vm3, %v8039_v28, 0.0  ;;  %18206 = vmatpush1.bf16.msra.mxu0 %v18916_v52 }
0x2a28   : > { %8041 = vadd.xlane.f32.xlu1 %v8040_v29  ;;  %18208 = vmatprep.subr.bf16.mxu0 %v18917_v44  ;;  %v12809_v29 = vld [vmem:[%s22283_s7 + $0x2a0] sm:$0xff]  ;;  %v18936_v44 = vcombine.low %v12795_v60, %v12803_v15 }
0x2a29   : > { %v21137_v60 = vld [vmem:[%s22284_s8 + $0x20] sm:$0xff] }
0x2a2a   : > { %v8068_v15 = vrot.slane %v21137_v60, %v19443_v34 }
0x2a2b   : > { %18210 = vmatpush1.bf16.msra.mxu0 %v18918_v61  ;;  %v18940_v61 = vcombine.low %v12796_v25, %v12804_v46  ;;  %v8076_v25 = vrot.slane %v21137_v60, %v19495_v14  ;;  %v8072_v46 = vrot.slane %v21137_v60, %v19492_v13 }
0x2a2c   : > { %18220 = vmatprep.subr.bf16.mxu0 %v18923_v3  ;;  %v15738_v3 = vld [vmem:[%s22285_s9 + $0x800] sm:$0xff]  }
0x2ab5   : > { %v8042_v30 = vpop.xlane.xlu1 %8041 }
0x2ab6   : > { %v8043_v31 = vmul.f32 0.03125, %v8042_v30  ;;  %v12817_v30 = vld [vmem:[%s22283_s7 + $0x2e0] sm:$0xff] }
0x2ab7   : > { %v18929_v40 = vcombine.high %v12809_v29, %v12817_v30  ;;  %v18930_v37 = vcombine.low %v12809_v29, %v12817_v30  ;;  %v15744_v29 = vld [vmem:[%s22285_s9 + $0x830] sm:$0xff]  }
0x2ab8   : > { %v8044_v16 = vsub.f32 %v8039_v28, %v8043_v31  ;;  %v18931_v28 = vcombine.high %v12794_v18, %v12802_v19  ;;  %v12810_v31 = vld [vmem:[%s22283_s7 + $0x2a8] sm:$0xff]  ;;  %v15760_v30 = vld [vmem:[%s22285_s9 + $0x8b0] sm:$0xff]  }
0x2aba   : > { %v8045_v38 = vmul.f32 %v8044_v16, %v8044_v16 }
0x2abc   : > { %v8046_v39 = vsel %vm1115_vm3, %v8045_v38, 0.0  ;;  %v18928_v38 = vcombine.low %v12793_v35, %v12801_v11  ;;  %v15742_v35 = vld [vmem:[%s22285_s9 + $0x820] sm:$0xff]  }
0x2abd   : > { %8047 = vadd.xlane.f32.xlu1 %v8046_v39  ;;  %v18932_v39 = vcombine.low %v12794_v18, %v12802_v19  ;;  %v15758_v11 = vld [vmem:[%s22285_s9 + $0x8a0] sm:$0xff]   ;;  %v15751_v18 = vld [vmem:[%s22285_s9 + $0x868] sm:$0xff]  }
0x2abe   : > { %v15767_v19 = vld [vmem:[%s22285_s9 + $0x8e8] sm:$0xff]  }
0x2b4a   : > { %v8048_v22 = vpop.xlane.xlu1 %8047 }
0x2b4b   : > { %v8049_v27 = vmul.f32 0.03125, %v8048_v22  ;;  %v15747_v22 = vld [vmem:[%s22285_s9 + $0x848] sm:$0xff]  }
0x2b4d   : > { %v8050_v7 = vadd.f32 1e-05, %v8049_v27  ;;  %v15763_v27 = vld [vmem:[%s22285_s9 + $0x8c8] sm:$0xff]  }
0x2b4f   : > { %19084 = vrsqrt.f32 %v8050_v7  ;;  %v15739_v7 = vld [vmem:[%s22285_s9 + $0x808] sm:$0xff]  }
0x2b59   : > { %v19085_v5 = vpop.eup %19084 }
0x2b5a   : > { %v8052_v6 = vmul.f32 %v19085_v5, %v8044_v16  ;;  %v12818_v16 = vld [vmem:[%s22283_s7 + $0x2e8] sm:$0xff]  ;;  %v15748_v5 = vld [vmem:[%s22285_s9 + $0x850] sm:$0xff]  }
0x2b5b   : > { %v18933_v41 = vcombine.high %v12810_v31, %v12818_v16  ;;  %v18934_v52 = vcombine.low %v12810_v31, %v12818_v16  ;;  %v15753_v31 = vld [vmem:[%s22285_s9 + $0x878] sm:$0xff]  }
0x2b5c   : > { %v8057_v12 = vmul.f32 %v8056_v23, %v8052_v6  ;;  %v15755_v23 = vld [vmem:[%s22285_s9 + $0x888] sm:$0xff]   ;;  %v15740_v6 = vld [vmem:[%s22285_s9 + $0x810] sm:$0xff]   ;;  %v15769_v16 = vld [vmem:[%s22285_s9 + $0x8f8] sm:$0xff]  }
0x2b5e   : > { %v20960_v9 = vadd.f32 %v8061_v51, %v8057_v12  ;;  %v15764_v51 = vld [vmem:[%s22285_s9 + $0x8d0] sm:$0xff]   ;;  %v15757_v12 = vld [vmem:[%s22285_s9 + $0x898] sm:$0xff]  }
0x2b60   : > { %13097 = vmatmul.mubr.msk.f32.vlgmr.msra.gmra.mrb[66].mxu1 %vm1115_vm3, %v20960_v9  ;;  %13098 = vmatmul.mubr.msk.f32.vlgmr.msra.gmra.mrb[78].mxu0 %vm1115_vm3, %v20960_v9 }
0x2b61   : > { %18214 = vmatpush1.bf16.msra.mxu1 %v18920_v0  ;;  %18222 = vmatpush1.bf16.msra.mxu0 %v18924_v26  ;;  %v15746_v0 = vld [vmem:[%s22285_s9 + $0x840] sm:$0xff]  }
0x2b62   : > { %18216 = vmatprep.subr.bf16.mxu1 %v18921_v58  ;;  %18224 = vmatprep.subr.bf16.mxu0 %v18925_v10  ;;  %v15754_v26 = vld [vmem:[%s22285_s9 + $0x880] sm:$0xff]  }
0x2b63   : > { %8354 = vmatprep.mubr.f32.mxu1 %v19176_v1  ;;  %8425 = vmatprep.mubr.f32.mxu0 %v19176_v1  ;;  %v15750_v58 = vld [vmem:[%s22285_s9 + $0x860] sm:$0xff]  }
0x2b64   : > { %v15766_v10 = vld [vmem:[%s22285_s9 + $0x8e0] sm:$0xff]  }
0x2b65   : > { %18218 = vmatpush1.bf16.msra.mxu1 %v18922_v42  ;;  %18226 = vmatpush1.bf16.msra.mxu0 %v18926_v21  ;;  %v15743_v42 = vld [vmem:[%s22285_s9 + $0x828] sm:$0xff]  }
0x2b66   : > { %18228 = vmatprep.subr.bf16.mxu1 %v18927_v24  ;;  %18236 = vmatprep.subr.bf16.mxu0 %v18931_v28  ;;  %v15759_v21 = vld [vmem:[%s22285_s9 + $0x8a8] sm:$0xff]   ;;  %v15752_v24 = vld [vmem:[%s22285_s9 + $0x870] sm:$0xff]  }
0x2b67   : > { %v15768_v28 = vld [vmem:[%s22285_s9 + $0x8f0] sm:$0xff]  }
0x2b68   : > { %13099 = vmatmul.mubr.msk.f32.vlgmr.msra.gmra.mrb[68].mxu1 %vm1115_vm3, %v20960_v9  ;;  %13100 = vmatmul.mubr.msk.f32.vlgmr.msra.gmra.mrb[80].mxu0 %vm1115_vm3, %v20960_v9 }
0x2b69   : > { %18230 = vmatpush1.bf16.msra.mxu1 %v18928_v38  ;;  %18238 = vmatpush1.bf16.msra.mxu0 %v18932_v39  ;;  %v15745_v38 = vld [vmem:[%s22285_s9 + $0x838] sm:$0xff]  }
0x2b6a   : > { %18232 = vmatprep.subr.bf16.mxu1 %v18929_v40  ;;  %18240 = vmatprep.subr.bf16.mxu0 %v18933_v41  ;;  %v15761_v39 = vld [vmem:[%s22285_s9 + $0x8b8] sm:$0xff]   ;;  %v15778_v40 = vld [vmem:[%s22285_s9 + $0x940] sm:$0xff]  }
0x2b6b   : > { %8496 = vmatprep.mubr.f32.mxu1 %v19176_v1  ;;  %8567 = vmatprep.mubr.f32.mxu0 %v19176_v1  ;;  %v15794_v41 = vld [vmem:[%s22285_s9 + $0x9c0] sm:$0xff]  }
0x2b6d   : > { %18234 = vmatpush1.bf16.msra.mxu1 %v18930_v37  ;;  %18242 = vmatpush1.bf16.msra.mxu0 %v18934_v52  ;;  %v8080_v37 = vrot.slane %v21137_v60, %v19693_v43 }
0x2b6e   : > { %18244 = vmatprep.subr.bf16.mxu1 %v18935_v53  ;;  %18252 = vmatprep.subr.bf16.mxu0 %v18939_v32 }
0x2b70   : > { %13101 = vmatmul.mubr.msk.f32.vlgmr.msra.gmra.mrb[70].mxu1 %vm1115_vm3, %v20960_v9  ;;  %13102 = vmatmul.mubr.msk.f32.vlgmr.msra.gmra.mrb[82].mxu0 %vm1115_vm3, %v20960_v9 }
0x2b71   : > { %18246 = vmatpush1.bf16.msra.mxu1 %v18936_v44  ;;  %18254 = vmatpush1.bf16.msra.mxu0 %v18940_v61 }
0x2b72   : > { %18248 = vmatprep.subr.bf16.mxu1 %v18937_v62  ;;  %18256 = vmatprep.subr.bf16.mxu0 %v18941_v48 }
0x2b73   : > { %8638 = vmatprep.mubr.f32.mxu1 %v19176_v1  ;;  %8709 = vmatprep.mubr.f32.mxu0 %v19176_v1 }
0x2b75   : > { %18250 = vmatpush1.bf16.msra.mxu1 %v18938_v63  ;;  %18258 = vmatpush1.bf16.msra.mxu0 %v18942_v50  ;;  %v15770_v50 = vld [vmem:[%s22285_s9 + $0x900] sm:$0xff]  }
0x2b76   : > { %18260 = vmatprep.subr.bf16.mxu1 %v15746_v0  ;;  %18292 = vmatprep.subr.bf16.mxu0 %v15762_v2  ;;  %v15786_v0 = vld [vmem:[%s22285_s9 + $0x980] sm:$0xff]   ;;  %v8088_v2 = vrot.slane %v21137_v60, %v19704_v55 }
0x2b78   : > { %13103 = vmatmul.mubr.msk.f32.vlgmr.msra.gmra.mrb[72].mxu1 %vm1115_vm3, %v20960_v9  ;;  %13104 = vmatmul.mubr.msk.f32.vlgmr.msra.gmra.mrb[84].mxu0 %vm1115_vm3, %v20960_v9 }
0x2b79   : > { %18262 = vmatpush3.bf16.msra.mxu1 %v15738_v3  ;;  %18294 = vmatpush3.bf16.msra.mxu0 %v15754_v26  ;;  %v8096_v3 = vrot.slane %v21137_v60, %v19707_v56  ;;  %v15779_v26 = vld [vmem:[%s22285_s9 + $0x948] sm:$0xff]  }
0x2b7a   : > { %18264 = vmatprep.subr.bf16.mxu1 %v15747_v22  ;;  %18296 = vmatprep.subr.bf16.mxu0 %v15763_v27  ;;  %v15795_v22 = vld [vmem:[%s22285_s9 + $0x9c8] sm:$0xff]  }
0x2b7d   : > { %18266 = vmatpush3.bf16.msra.mxu1 %v15739_v7  ;;  %18298 = vmatpush3.bf16.msra.mxu0 %v15755_v23 }
0x2b7e   : > { %18268 = vmatprep.subr.bf16.mxu1 %v15748_v5  ;;  %18300 = vmatprep.subr.bf16.mxu0 %v15764_v51  ;;  %v15771_v51 = vld [vmem:[%s22285_s9 + $0x908] sm:$0xff]  }
0x2b81   : > { %18270 = vmatpush3.bf16.msra.mxu1 %v15740_v6  ;;  %18302 = vmatpush3.bf16.msra.mxu0 %v15756_v33  ;;  %v15787_v6 = vld [vmem:[%s22285_s9 + $0x988] sm:$0xff]  }
0x2b82   : > { %18272 = vmatprep.subr.bf16.mxu1 %v15749_v49  ;;  %18304 = vmatprep.subr.bf16.mxu0 %v15765_v8  ;;  %v15780_v8 = vld [vmem:[%s22285_s9 + $0x950] sm:$0xff]  }
0x2b85   : > { %18274 = vmatpush3.bf16.msra.mxu1 %v15741_v20  ;;  %18306 = vmatpush3.bf16.msra.mxu0 %v15757_v12  ;;  %v15796_v20 = vld [vmem:[%s22285_s9 + $0x9d0] sm:$0xff]  }
0x2b86   : > { %18276 = vmatprep.subr.bf16.mxu1 %v15750_v58  ;;  %18308 = vmatprep.subr.bf16.mxu0 %v15766_v10  ;;  %v15772_v10 = vld [vmem:[%s22285_s9 + $0x910] sm:$0xff]  }
0x2b89   : > { %18278 = vmatpush3.bf16.msra.mxu1 %v15742_v35  ;;  %18310 = vmatpush3.bf16.msra.mxu0 %v15758_v11  ;;  %v15788_v35 = vld [vmem:[%s22285_s9 + $0x990] sm:$0xff]   ;;  %v15781_v11 = vld [vmem:[%s22285_s9 + $0x958] sm:$0xff]  }
0x2b8a   : > { %18280 = vmatprep.subr.bf16.mxu1 %v15751_v18  ;;  %18312 = vmatprep.subr.bf16.mxu0 %v15767_v19  ;;  %v15797_v18 = vld [vmem:[%s22285_s9 + $0x9d8] sm:$0xff]  }
0x2b8d   : > { %18282 = vmatpush3.bf16.msra.mxu1 %v15743_v42  ;;  %18314 = vmatpush3.bf16.msra.mxu0 %v15759_v21 }
0x2b8e   : > { %18284 = vmatprep.subr.bf16.mxu1 %v15752_v24  ;;  %18316 = vmatprep.subr.bf16.mxu0 %v15768_v28  ;;  %v15773_v28 = vld [vmem:[%s22285_s9 + $0x918] sm:$0xff]  }
0x2b91   : > { %18286 = vmatpush3.bf16.msra.mxu1 %v15744_v29  ;;  %18318 = vmatpush3.bf16.msra.mxu0 %v15760_v30  ;;  %v15789_v29 = vld [vmem:[%s22285_s9 + $0x998] sm:$0xff]   ;;  %v15782_v30 = vld [vmem:[%s22285_s9 + $0x960] sm:$0xff]  }
0x2b92   : > { %18288 = vmatprep.subr.bf16.mxu1 %v15753_v31  ;;  %18320 = vmatprep.subr.bf16.mxu0 %v15769_v16  ;;  %v15798_v31 = vld [vmem:[%s22285_s9 + $0x9e0] sm:$0xff]   ;;  %v21210_v16 = vld [vmem:[%s22284_s8 + $0x28] sm:$0xff] }
0x2b95   : > { %18290 = vmatpush3.bf16.msra.mxu1 %v15745_v38  ;;  %18322 = vmatpush3.bf16.msra.mxu0 %v15761_v39  ;;  %v8124_v38 = vrot.slane %v21210_v16, %v19770_v36  ;;  %v15774_v39 = vld [vmem:[%s22285_s9 + $0x920] sm:$0xff]  }
0x2b96   : > { %18324 = vmatprep.subr.bf16.mxu1 %v15778_v40  ;;  %18356 = vmatprep.subr.bf16.mxu0 %v15794_v41  ;;  %v15790_v40 = vld [vmem:[%s22285_s9 + $0x9a0] sm:$0xff]   ;;  %v15783_v41 = vld [vmem:[%s22285_s9 + $0x968] sm:$0xff]  }
0x2c33   : > { %v8214_v52 = vpop.f32.mrb[66].mxu1  ;;  %v8285_v53 = vpop.f32.mrb[78].mxu0 }
0x2c34   : > { %v8215_v32 = vadd.f32 %v8214_v52, %v8068_v15  ;;  %v8286_v54 = vadd.f32 %v8285_v53, %v8076_v25  ;;  %v8216_v57 = vpop.f32.mrb[67].mxu1  ;;  %v8287_v45 = vpop.f32.mrb[79].mxu0  ;;  %v15799_v15 = vld [vmem:[%s22285_s9 + $0x9e8] sm:$0xff]  }
0x2c35   : > { %v8217_v59 = vadd.f32 %v8216_v57, %v8072_v46  ;;  %v8288_v44 = vadd.f32 %v8287_v45, %v8080_v37  ;;  %v15784_v57 = vld [vmem:[%s22285_s9 + $0x970] sm:$0xff]  }
0x2c36   : > { %v8716_v48 = vmax.f32 %v8215_v32, 0.0  ;;  %v8718_v63 = vmax.f32 %v8286_v54, 0.0  ;;  %v15775_v32 = vld [vmem:[%s22285_s9 + $0x928] sm:$0xff]   ;;  %v15800_v45 = vld [vmem:[%s22285_s9 + $0x9f0] sm:$0xff]  }
0x2c37   : > { %v8717_v61 = vmax.f32 %v8217_v59, 0.0  ;;  %v8719_v62 = vmax.f32 %v8288_v44, 0.0  ;;  %v15791_v54 = vld [vmem:[%s22285_s9 + $0x9a8] sm:$0xff]   ;;  %v8084_v59 = vrot.slane %v21137_v60, %v19794_v47  ;;  %v8092_v44 = vrot.slane %v21137_v60, %v19770_v36  ;;  %v15801_v60 = vld [vmem:[%s22285_s9 + $0x9f8] sm:$0xff]  }
0x2c39   : > { %8800 = vmatprep.mubr.f32.mxu1 %v8717_v61  ;;  %8870 = vmatprep.mubr.f32.mxu0 %v8719_v62  ;;  %v15776_v61 = vld [vmem:[%s22285_s9 + $0x930] sm:$0xff]  }
0x2c3a   : > { %8801 = vmatmul.mubr.f32.vlgmr.msra.gmra.mrb[74].mxu1 %v8716_v48  ;;  %8871 = vmatmul.mubr.f32.vlgmr.msra.gmra.mrb[86].mxu0 %v8718_v63  ;;  %v15792_v62 = vld [vmem:[%s22285_s9 + $0x9b0] sm:$0xff]   ;;  %v8104_v48 = vrot.slane %v21210_v16, %v19492_v13  ;;  %v15785_v63 = vld [vmem:[%s22285_s9 + $0x978] sm:$0xff]  }
0x2c3b   : > { %v21163_v27 = vpop.f32.mrb[68].mxu1  ;;  %v21165_v7 = vpop.f32.mrb[80].mxu0  ;;  %18326 = vmatpush3.bf16.msra.mxu1 %v15770_v50  ;;  %18358 = vmatpush3.bf16.msra.mxu0 %v15786_v0  ;;  %v8112_v50 = vrot.slane %v21210_v16, %v19693_v43 }
0x2c3c   : > { %v8358_v23 = vpop.f32.mrb[69].mxu1  ;;  %v8429_v5 = vpop.f32.mrb[81].mxu0  ;;  %18328 = vmatprep.subr.bf16.mxu1 %v15779_v26  ;;  %18360 = vmatprep.subr.bf16.mxu0 %v15795_v22  ;;  %v8357_v0 = vadd.f32 %v21163_v27, %v8084_v59  ;;  %v15793_v26 = vld [vmem:[%s22285_s9 + $0x9b8] sm:$0xff]   ;;  %v15826_v27 = vld [vmem:[%s22285_s9 + $0xac0] sm:$0xff]   ;;  %v15808_v59 = vld [vmem:[%s22285_s9 + $0xa30] sm:$0xff]  }
0x2c3d   : > { %v8359_v33 = vadd.f32 %v8358_v23, %v8088_v2  ;;  %v8430_v49 = vadd.f32 %v8429_v5, %v8096_v3  ;;  %v8428_v2 = vadd.f32 %v21165_v7, %v8092_v44  ;;  %v15777_v3 = vld [vmem:[%s22285_s9 + $0x938] sm:$0xff]   ;;  %v15810_v23 = vld [vmem:[%s22285_s9 + $0xa40] sm:$0xff]   ;;  %v8108_v44 = vrot.slane %v21210_v16, %v19495_v14 }
0x2c3e   : > { %v8720_v5 = vmax.f32 %v8357_v0, 0.0  ;;  %v15809_v0 = vld [vmem:[%s22285_s9 + $0xa38] sm:$0xff]  }
0x2c3f   : > { %v8721_v12 = vmax.f32 %v8359_v33, 0.0  ;;  %v8723_v58 = vmax.f32 %v8430_v49, 0.0  ;;  %18330 = vmatpush3.bf16.msra.mxu1 %v15771_v51  ;;  %18362 = vmatpush3.bf16.msra.mxu0 %v15787_v6  ;;  %v8722_v51 = vmax.f32 %v8428_v2, 0.0  ;;  %v15802_v6 = vld [vmem:[%s22285_s9 + $0xa00] sm:$0xff]  }
0x2c40   : > { %18332 = vmatprep.subr.bf16.mxu1 %v15780_v8  ;;  %18364 = vmatprep.subr.bf16.mxu0 %v15796_v20  ;;  %v15818_v49 = vld [vmem:[%s22285_s9 + $0xa80] sm:$0xff]   ;;  %v15811_v20 = vld [vmem:[%s22285_s9 + $0xa48] sm:$0xff]  }
0x2c41   : > { %8940 = vmatprep.mubr.f32.mxu1 %v8721_v12  ;;  %9010 = vmatprep.mubr.f32.mxu0 %v8723_v58  ;;  %v15827_v12 = vld [vmem:[%s22285_s9 + $0xac8] sm:$0xff]  }
0x2c42   : > { %v15803_v58 = vld [vmem:[%s22285_s9 + $0xa08] sm:$0xff]  }
0x2c43   : > { %v21191_v19 = vpop.f32.mrb[70].mxu1  ;;  %v21193_v42 = vpop.f32.mrb[82].mxu0  ;;  %18334 = vmatpush3.bf16.msra.mxu1 %v15772_v10  ;;  %18366 = vmatpush3.bf16.msra.mxu0 %v15788_v35  ;;  %v15819_v10 = vld [vmem:[%s22285_s9 + $0xa88] sm:$0xff]   ;;  %v15812_v35 = vld [vmem:[%s22285_s9 + $0xa50] sm:$0xff]  }
0x2c44   : > { %v8500_v21 = vpop.f32.mrb[71].mxu1  ;;  %v8571_v24 = vpop.f32.mrb[83].mxu0  ;;  %18336 = vmatprep.subr.bf16.mxu1 %v15781_v11  ;;  %18368 = vmatprep.subr.bf16.mxu0 %v15797_v18  ;;  %v15828_v11 = vld [vmem:[%s22285_s9 + $0xad0] sm:$0xff]   ;;  %v8570_v2 = vadd.f32 %v21193_v42, %v8108_v44  ;;  %v15834_v42 = vld [vmem:[%s22285_s9 + $0xb00] sm:$0xff]  }
0x2c45   : > { %v8501_v22 = vadd.f32 %v8500_v21, %v8104_v48  ;;  %v8572_v7 = vadd.f32 %v8571_v24, %v8112_v50  ;;  %v15804_v18 = vld [vmem:[%s22285_s9 + $0xa10] sm:$0xff]   ;;  %v15813_v24 = vld [vmem:[%s22285_s9 + $0xa58] sm:$0xff]   ;;  %v8120_v48 = vrot.slane %v21210_v16, %v19704_v55 }
0x2c46   : > { %v15820_v21 = vld [vmem:[%s22285_s9 + $0xa90] sm:$0xff]  }
0x2c47   : > { %18338 = vmatpush3.bf16.msra.mxu1 %v15773_v28  ;;  %18370 = vmatpush3.bf16.msra.mxu0 %v15789_v29  ;;  %v8725_v33 = vmax.f32 %v8501_v22, 0.0  ;;  %v8727_v8 = vmax.f32 %v8572_v7, 0.0  ;;  %v15829_v28 = vld [vmem:[%s22285_s9 + $0xad8] sm:$0xff]   ;;  %v8726_v7 = vmax.f32 %v8570_v2, 0.0 }
0x2c48   : > { %18340 = vmatprep.subr.bf16.mxu1 %v15782_v30  ;;  %18372 = vmatprep.subr.bf16.mxu0 %v15798_v31  ;;  %v15805_v29 = vld [vmem:[%s22285_s9 + $0xa18] sm:$0xff]   ;;  %v15814_v31 = vld [vmem:[%s22285_s9 + $0xa60] sm:$0xff]  }
0x2c49   : > { %v15821_v30 = vld [vmem:[%s22285_s9 + $0xa98] sm:$0xff]  }
0x2c4b   : > { %v21226_v25 = vpop.f32.mrb[72].mxu1  ;;  %v8711_v46 = vpop.f32.mrb[84].mxu0  ;;  %18342 = vmatpush3.bf16.msra.mxu1 %v15774_v39  ;;  %18374 = vmatpush3.bf16.msra.mxu0 %v15790_v40  ;;  %v15806_v39 = vld [vmem:[%s22285_s9 + $0xa20] sm:$0xff]  }
0x2c4c   : > { %v21228_v37 = vadd.f32 %v8711_v46, %v8124_v38  ;;  %v21230_v52 = vpop.f32.mrb[73].mxu1  ;;  %v21232_v53 = vpop.f32.mrb[85].mxu0  ;;  %18344 = vmatprep.subr.bf16.mxu1 %v15783_v41  ;;  %18376 = vmatprep.subr.bf16.mxu0 %v15799_v15  ;;  %v15830_v38 = vld [vmem:[%s22285_s9 + $0xae0] sm:$0xff]   ;;  %v15815_v41 = vld [vmem:[%s22285_s9 + $0xa68] sm:$0xff]  }
0x2c4d   : > { %v15822_v40 = vld [vmem:[%s22285_s9 + $0xaa0] sm:$0xff]   ;;  %v15831_v15 = vld [vmem:[%s22285_s9 + $0xae8] sm:$0xff]   ;;  %v8643_v22 = vadd.f32 %v21230_v52, %v8120_v48  ;;  %v8735_v48 = vrot.slane %v20901_v17, %v19693_v43 }
0x2c4e   : > { %v15807_v46 = vld [vmem:[%s22285_s9 + $0xa28] sm:$0xff]   ;;  %v15850_v52 = vld [vmem:[%s22285_s9 + $0xb80] sm:$0xff]  }
0x2c4f   : > { %18346 = vmatpush3.bf16.msra.mxu1 %v15775_v32  ;;  %18378 = vmatpush3.bf16.msra.mxu0 %v15791_v54  ;;  %v15823_v32 = vld [vmem:[%s22285_s9 + $0xaa8] sm:$0xff]   ;;  %v15816_v54 = vld [vmem:[%s22285_s9 + $0xa70] sm:$0xff]  }
0x2c50   : > { %18348 = vmatprep.subr.bf16.mxu1 %v15784_v57  ;;  %18380 = vmatprep.subr.bf16.mxu0 %v15800_v45  ;;  %v15832_v57 = vld [vmem:[%s22285_s9 + $0xaf0] sm:$0xff]   ;;  %v8100_v45 = vrot.slane %v21210_v16, %v19443_v34 }
0x2c52   : > { %v8499_v50 = vadd.f32 %v21191_v19, %v8100_v45  ;;  %v15858_v19 = vld [vmem:[%s22285_s9 + $0xbc0] sm:$0xff]   ;;  %v15841_v45 = vld [vmem:[%s22285_s9 + $0xb38] sm:$0xff]  }
0x2c53   : > { %18350 = vmatpush3.bf16.msra.mxu1 %v15776_v61  ;;  %18382 = vmatpush3.bf16.msra.mxu0 %v15792_v62  ;;  %v15824_v61 = vld [vmem:[%s22285_s9 + $0xab0] sm:$0xff]   ;;  %v15817_v62 = vld [vmem:[%s22285_s9 + $0xa78] sm:$0xff]  }
0x2c54   : > { %18352 = vmatprep.subr.bf16.mxu1 %v15785_v63  ;;  %18384 = vmatprep.subr.bf16.mxu0 %v15801_v60  ;;  %v15833_v63 = vld [vmem:[%s22285_s9 + $0xaf8] sm:$0xff]   ;;  %v8128_v60 = vrot.slane %v21210_v16, %v19707_v56 }
0x2c57   : > { %18354 = vmatpush3.bf16.msra.mxu1 %v15777_v3  ;;  %18386 = vmatpush3.bf16.msra.mxu0 %v15793_v26  ;;  %v15825_v3 = vld [vmem:[%s22285_s9 + $0xab8] sm:$0xff]   ;;  %v15842_v26 = vld [vmem:[%s22285_s9 + $0xb40] sm:$0xff]  }
0x2c58   : > { %18388 = vmatprep.subr.bf16.mxu1 %v15810_v23  ;;  %18420 = vmatprep.subr.bf16.mxu0 %v15826_v27  ;;  %v8714_v23 = vadd.f32 %v21232_v53, %v8128_v60  ;;  %v8724_v27 = vmax.f32 %v8499_v50, 0.0  ;;  %v15843_v53 = vld [vmem:[%s22285_s9 + $0xb48] sm:$0xff]  }
0x2c5a   : > { %8941 = vmatmul.mubr.f32.vlgmr.msra.gmra.mrb[76].mxu1 %v8720_v5  ;;  %9011 = vmatmul.mubr.f32.vlgmr.msra.gmra.mrb[88].mxu0 %v8722_v51  ;;  %v8729_v5 = vmax.f32 %v8643_v22, 0.0  ;;  %v8731_v51 = vmax.f32 %v8714_v23, 0.0 }
0x2c5b   : > { %18390 = vmatpush3.bf16.msra.mxu1 %v15802_v6  ;;  %9080 = vmatprep.mubr.f32.mxu1 %v8725_v33  ;;  %v15859_v6 = vld [vmem:[%s22285_s9 + $0xbc8] sm:$0xff]  }
0x2c5c   : > { %18422 = vmatpush3.bf16.msra.mxu0 %v15818_v49  ;;  %9150 = vmatprep.mubr.f32.mxu0 %v8727_v8  ;;  %v15835_v33 = vld [vmem:[%s22285_s9 + $0xb08] sm:$0xff]   ;;  %v15844_v8 = vld [vmem:[%s22285_s9 + $0xb50] sm:$0xff]  }
0x2c5d   : > { %18392 = vmatprep.subr.bf16.mxu1 %v15811_v20  ;;  %18424 = vmatprep.subr.bf16.mxu0 %v15827_v12  ;;  %v15851_v49 = vld [vmem:[%s22285_s9 + $0xb88] sm:$0xff]   ;;  %v15860_v20 = vld [vmem:[%s22285_s9 + $0xbd0] sm:$0xff]  }
0x2c5e   : > { %v15836_v12 = vld [vmem:[%s22285_s9 + $0xb10] sm:$0xff]  }
0x2c5f   : > { %18394 = vmatpush3.bf16.msra.mxu1 %v15803_v58  ;;  %v15852_v58 = vld [vmem:[%s22285_s9 + $0xb90] sm:$0xff]  }
0x2c60   : > { %18426 = vmatpush3.bf16.msra.mxu0 %v15819_v10  ;;  %18396 = vmatprep.subr.bf16.mxu1 %v15812_v35  ;;  %v15845_v10 = vld [vmem:[%s22285_s9 + $0xb58] sm:$0xff]  }
0x2c61   : > { %18428 = vmatprep.subr.bf16.mxu0 %v15828_v11  ;;  %v15861_v35 = vld [vmem:[%s22285_s9 + $0xbd8] sm:$0xff]  }
0x2c62   : > { %v15837_v11 = vld [vmem:[%s22285_s9 + $0xb18] sm:$0xff]  }
0x2c63   : > { %18398 = vmatpush3.bf16.msra.mxu1 %v15804_v18  ;;  %v15853_v18 = vld [vmem:[%s22285_s9 + $0xb98] sm:$0xff]  }
0x2c64   : > { %18430 = vmatpush3.bf16.msra.mxu0 %v15820_v21  ;;  %18400 = vmatprep.subr.bf16.mxu1 %v15813_v24  ;;  %v15846_v21 = vld [vmem:[%s22285_s9 + $0xb60] sm:$0xff]  }
0x2c65   : > { %18432 = vmatprep.subr.bf16.mxu0 %v15829_v28  ;;  %v15862_v24 = vld [vmem:[%s22285_s9 + $0xbe0] sm:$0xff]  }
0x2c66   : > { %v15838_v28 = vld [vmem:[%s22285_s9 + $0xb20] sm:$0xff]  }
0x2c67   : > { %18402 = vmatpush3.bf16.msra.mxu1 %v15805_v29  ;;  %v15854_v29 = vld [vmem:[%s22285_s9 + $0xba0] sm:$0xff]  }
0x2c68   : > { %18434 = vmatpush3.bf16.msra.mxu0 %v15821_v30  ;;  %18404 = vmatprep.subr.bf16.mxu1 %v15814_v31  ;;  %v15847_v30 = vld [vmem:[%s22285_s9 + $0xb68] sm:$0xff]  }
0x2c69   : > { %18436 = vmatprep.subr.bf16.mxu0 %v15830_v38  ;;  %v15863_v31 = vld [vmem:[%s22285_s9 + $0xbe8] sm:$0xff]  }
0x2c6a   : > { %v15839_v38 = vld [vmem:[%s22285_s9 + $0xb28] sm:$0xff]  }
0x2c6b   : > { %18406 = vmatpush3.bf16.msra.mxu1 %v15806_v39  ;;  %v15855_v39 = vld [vmem:[%s22285_s9 + $0xba8] sm:$0xff]  }
0x2c6c   : > { %18438 = vmatpush3.bf16.msra.mxu0 %v15822_v40  ;;  %18408 = vmatprep.subr.bf16.mxu1 %v15815_v41  ;;  %v15848_v40 = vld [vmem:[%s22285_s9 + $0xb70] sm:$0xff]  }
0x2c6d   : > { %18440 = vmatprep.subr.bf16.mxu0 %v15831_v15  ;;  %v15864_v41 = vld [vmem:[%s22285_s9 + $0xbf0] sm:$0xff]   ;;  %v8116_v15 = vrot.slane %v21210_v16, %v19794_v47 }
0x2c6f   : > { %18410 = vmatpush3.bf16.msra.mxu1 %v15807_v46  ;;  %v15840_v46 = vld [vmem:[%s22285_s9 + $0xb30] sm:$0xff]   ;;  %v8641_v16 = vadd.f32 %v21226_v25, %v8116_v15  ;;  %v13108_v15 = vld [vmem:[%s22279_s3 + $0x78] sm:$0xff] }
0x2c70   : > { %18442 = vmatpush3.bf16.msra.mxu0 %v15823_v32  ;;  %18412 = vmatprep.subr.bf16.mxu1 %v15816_v54  ;;  %v15856_v32 = vld [vmem:[%s22285_s9 + $0xbb0] sm:$0xff]   ;;  %v15849_v54 = vld [vmem:[%s22285_s9 + $0xb78] sm:$0xff]  }
0x2c71   : > { %18444 = vmatprep.subr.bf16.mxu0 %v15832_v57  ;;  %v15865_v57 = vld [vmem:[%s22285_s9 + $0xbf8] sm:$0xff]   ;;  %v8728_v44 = vmax.f32 %v8641_v16, 0.0  ;;  %v19110_v16 = vld [vmem:[%s22282_s6 + $0x10] sm:$0x3f] }
0x2c73   : > { %18414 = vmatpush3.bf16.msra.mxu1 %v15808_v59  ;;  %v15857_v59 = vld [vmem:[%s22285_s9 + $0xbb8] sm:$0xff]  }
0x2c74   : > { %18446 = vmatpush3.bf16.msra.mxu0 %v15824_v61  ;;  %18416 = vmatprep.subr.bf16.mxu1 %v15817_v62  ;;  %v8730_v61 = vmax.f32 %v21228_v37, 0.0 }
0x2c75   : > { %18448 = vmatprep.subr.bf16.mxu0 %v15833_v63 }
0x2c77   : > { %18418 = vmatpush3.bf16.msra.mxu1 %v15809_v0 }
0x2c78   : > { %18450 = vmatpush3.bf16.msra.mxu0 %v15825_v3  ;;  %18452 = vmatprep.subr.bf16.mxu1 %v15842_v26 }
0x2c79   : > { %18484 = vmatprep.subr.bf16.mxu0 %v15858_v19 }
0x2c7a   : > { %9081 = vmatmul.mubr.f32.vlgmr.msra.gmra.mrb[78].mxu1 %v8724_v27 }
0x2c7b   : > { %9151 = vmatmul.mubr.f32.vlgmr.msra.gmra.mrb[90].mxu0 %v8726_v7  ;;  %18454 = vmatpush3.bf16.msra.mxu1 %v15834_v42 }
0x2c7c   : > { %9220 = vmatprep.mubr.f32.mxu1 %v8729_v5  ;;  %18486 = vmatpush3.bf16.msra.mxu0 %v15850_v52 }
0x2c7d   : > { %9290 = vmatprep.mubr.f32.mxu0 %v8731_v51  ;;  %18456 = vmatprep.subr.bf16.mxu1 %v15843_v53 }
0x2c7e   : > { %18488 = vmatprep.subr.bf16.mxu0 %v15859_v6 }
0x2c7f   : > { %18458 = vmatpush3.bf16.msra.mxu1 %v15835_v33 }
0x2c80   : > { %18490 = vmatpush3.bf16.msra.mxu0 %v15851_v49  ;;  %18460 = vmatprep.subr.bf16.mxu1 %v15844_v8 }
0x2c81   : > { %18492 = vmatprep.subr.bf16.mxu0 %v15860_v20 }
0x2c83   : > { %18462 = vmatpush3.bf16.msra.mxu1 %v15836_v12 }
0x2c84   : > { %18494 = vmatpush3.bf16.msra.mxu0 %v15852_v58  ;;  %18464 = vmatprep.subr.bf16.mxu1 %v15845_v10 }
0x2c85   : > { %18496 = vmatprep.subr.bf16.mxu0 %v15861_v35 }
0x2c87   : > { %18466 = vmatpush3.bf16.msra.mxu1 %v15837_v11 }
0x2c88   : > { %18498 = vmatpush3.bf16.msra.mxu0 %v15853_v18  ;;  %18468 = vmatprep.subr.bf16.mxu1 %v15846_v21 }
0x2c89   : > { %18500 = vmatprep.subr.bf16.mxu0 %v15862_v24 }
0x2c8b   : > { %18470 = vmatpush3.bf16.msra.mxu1 %v15838_v28 }
0x2c8c   : > { %18502 = vmatpush3.bf16.msra.mxu0 %v15854_v29  ;;  %18472 = vmatprep.subr.bf16.mxu1 %v15847_v30 }
0x2c8d   : > { %18504 = vmatprep.subr.bf16.mxu0 %v15863_v31 }
0x2c8f   : > { %18474 = vmatpush3.bf16.msra.mxu1 %v15839_v38 }
0x2c90   : > { %18506 = vmatpush3.bf16.msra.mxu0 %v15855_v39  ;;  %18476 = vmatprep.subr.bf16.mxu1 %v15848_v40  ;;  %v13105_v39 = vld [vmem:[%s22279_s3 + $0x60] sm:$0xff]  ;;  %v13106_v40 = vld [vmem:[%s22279_s3 + $0x68] sm:$0xff] }
0x2c91   : > { %18508 = vmatprep.subr.bf16.mxu0 %v15864_v41  ;;  %v18516_v41 = vpack.c.bf16 %v13106_v40, %v13105_v39 }
0x2c93   : > { %18478 = vmatpush3.bf16.msra.mxu1 %v15840_v46 }
0x2c94   : > { %18510 = vmatpush3.bf16.msra.mxu0 %v15856_v32  ;;  %18480 = vmatprep.subr.bf16.mxu1 %v15849_v54 }
0x2c95   : > { %18512 = vmatprep.subr.bf16.mxu0 %v15865_v57 }
0x2c97   : > { %18482 = vmatpush3.bf16.msra.mxu1 %v15841_v45  ;;  %v9313_v45 = vrot.slane %v19110_v16, %v19794_v47 }
0x2c98   : > { %18514 = vmatpush3.bf16.msra.mxu0 %v15857_v59  ;;  %18515 = vmatprep.subr.bf16.mxu1 %v19178_v4 }
0x2c99   : > { %17466 = vmatprep.subr.mxu0 %v19176_v1 }
0x2c9a   : > { %9221 = vmatmul.mubr.f32.vlgmr.msra.gmra.mrb[80].mxu1 %v8728_v44 }
0x2c9b   : > { %9291 = vmatmul.mubr.f32.vlgmr.msra.gmra.mrb[92].mxu0 %v8730_v61  ;;  %17463 = vmatprep.mubr.msk.f32.mxu1 %vm19177_vm1, %v19176_v1  ;;  %v9318_v61 = vrot.slane %v19110_v16, %v19704_v55 }
0x2c9c   : > { %17468 = vmatprep.mubr.msk.f32.mxu0 %vm19177_vm1, %v19176_v1  ;;  %18517 = vmatpush3.bf16.msra.mxu1 %v18516_v41 }
0x2c9d   : > { %18518 = vmatprep.subr.bf16.mxu1 %v19178_v4 }
0x2d0d   : > { %v16675_v25 = vpop.f32.mrb[74].mxu1  ;;  %v16710_v62 = vpop.f32.mrb[86].mxu0 }
0x2d0e   : > { %v16676_v63 = vpop.f32.mrb[75].mxu1  ;;  %v16711_v60 = vpop.f32.mrb[87].mxu0 }
0x2d0f   : > { %v16677_v50 = vadd.f32 %v16676_v63, %v16675_v25  ;;  %v16712_v0 = vadd.f32 %v16711_v60, %v16710_v62 }
0x2d11   : > { %v8803_v37 = vadd.f32 %v16677_v50, %v8735_v48  ;;  %v13405_v48 = vld [vmem:[%s22280_s4 + $0x3] ss:$0 sm:$0xff] }
0x2d13   : > { %v8873_v2 = vadd.f32 %v16712_v0, %v8803_v37 }
0x2d2d   : > { %v16745_v3 = vpop.f32.mrb[76].mxu1  ;;  %v16780_v26 = vpop.f32.mrb[88].mxu0 }
0x2d2e   : > { %v16746_v22 = vpop.f32.mrb[77].mxu1  ;;  %v16781_v19 = vpop.f32.mrb[89].mxu0 }
0x2d2f   : > { %v16747_v23 = vadd.f32 %v16746_v22, %v16745_v3  ;;  %v16782_v27 = vadd.f32 %v16781_v19, %v16780_v26 }
0x2d31   : > { %v8943_v42 = vadd.f32 %v16747_v23, %v8873_v2 }
0x2d33   : > { %v9013_v7 = vadd.f32 %v16782_v27, %v8943_v42 }
0x2d4d   : > { %v16815_v52 = vpop.f32.mrb[78].mxu1 }
0x2d4e   : > { %v16850_v5 = vpop.f32.mrb[90].mxu0  ;;  %v16816_v53 = vpop.f32.mrb[79].mxu1 }
0x2d4f   : > { %v16817_v51 = vadd.f32 %v16816_v53, %v16815_v52  ;;  %v16851_v6 = vpop.f32.mrb[91].mxu0 }
0x2d50   : > { %v16852_v17 = vadd.f32 %v16851_v6, %v16850_v5 }
0x2d51   : > { %v9083_v33 = vadd.f32 %v16817_v51, %v9013_v7 }
0x2d53   : > { %v9153_v49 = vadd.f32 %v16852_v17, %v9083_v33 }
0x2d6d   : > { %v16885_v8 = vpop.f32.mrb[80].mxu1 }
0x2d6e   : > { %v16920_v20 = vpop.f32.mrb[92].mxu0  ;;  %v16886_v12 = vpop.f32.mrb[81].mxu1 }
0x2d6f   : > { %v16887_v58 = vadd.f32 %v16886_v12, %v16885_v8  ;;  %v16921_v10 = vpop.f32.mrb[93].mxu0  ;;  %v13111_v8 = vld [vmem:[%s22281_s5 + $0x68] sm:$0xff] }
0x2d70   : > { %v16922_v35 = vadd.f32 %v16921_v10, %v16920_v20 }
0x2d71   : > { %v9223_v11 = vadd.f32 %v16887_v58, %v9153_v49 }
0x2d73   : > { %v9293_v18 = vadd.f32 %v16922_v35, %v9223_v11 }
0x2d75   : > { %v9296_v21 = vadd.f32 %v9293_v18, %v20960_v9  ;;  %v13107_v9 = vld [vmem:[%s22279_s3 + $0x70] sm:$0xff] }
0x2d76   : > { %v18519_v46 = vpack.c.bf16 %v13108_v15, %v13107_v9 }
0x2d77   : > { %v9297_v24 = vsel %vm1115_vm3, %v9296_v21, 0.0 }
0x2d78   : > { %9298 = vadd.xlane.f32.xlu1 %v9297_v24  ;;  %18520 = vmatpush3.bf16.msra.mxu1 %v18519_v46  ;;  %v13110_v24 = vld [vmem:[%s22281_s5 + $0x60] sm:$0xff] }
0x2d79   : > { %17476 = vmatprep.subr.mxu1 %v19176_v1 }
0x2e05   : > { %v9299_v28 = vpop.xlane.xlu1 %9298 }
0x2e06   : > { %v9300_v29 = vmul.f32 0.03125, %v9299_v28 }
0x2e08   : > { %v9301_v30 = vsub.f32 %v9296_v21, %v9300_v29 }
0x2e0a   : > { %v9302_v31 = vmul.f32 %v9301_v30, %v9301_v30 }
0x2e0c   : > { %v9303_v38 = vsel %vm1115_vm3, %v9302_v31, 0.0 }
0x2e0d   : > { %9304 = vadd.xlane.f32.xlu1 %v9303_v38 }
0x2e9a   : > { %v9305_v32 = vpop.xlane.xlu1 %9304 }
0x2e9b   : > { %v9306_v54 = vmul.f32 0.03125, %v9305_v32 }
0x2e9d   : > { %v9307_v57 = vadd.f32 1e-05, %v9306_v54 }
0x2e9f   : > { %19086 = vrsqrt.f32 %v9307_v57 }
0x2ea9   : > { %v19087_v59 = vpop.eup %19086 }
0x2eaa   : > { %v9309_v44 = vmul.f32 %v19087_v59, %v9301_v30 }
0x2eac   : > { %v9314_v25 = vmul.f32 %v9313_v45, %v9309_v44 }
0x2eae   : > { %v21512_v62 = vadd.f32 %v9318_v61, %v9314_v25 }
0x2eb0   : > { %17464 = vmatmul.mubr.msk.f32.vlgmr.msra.gmra.mrb[82].mxu1 %vm1115_vm3, %v21512_v62 }
0x2eb1   : > { %17478 = vmatprep.mubr.msk.f32.mxu1 %vm19177_vm1, %v19176_v1 }
0x2f83   : > { %v10022_v63 = vpop.f32.mrb[82].mxu1 }
0x2f84   : > { %v21521_v60 = vadd.f32 %v13405_v48, %v10022_v63  ;;  %v17465_v50 = vpop.f32.mrb[83].mxu1 }
0x2f86   : > { %10192 = vrot.lane.b32.xlu0 %v21521_v60, %s22337_s17  ;;  %10027 = vrot.lane.b32.xlu1 %v21521_v60, %s22338_s18 }
0x2f8a   : > { %10190 = vrot.lane.b32.xlu0 %v21521_v60, %s22339_s0  ;;  %s19116_s0 = sshll.u32 %s19190_s25, 4  ;;  %s19117_s0 = int_to_ptr.vmem [resolvable:$false] %s19116_s0 }
0x2ff8   : > { %v10193_v0 = vpop.permute.xlu0 %10192  ;;  %v10028_v37 = vpop.permute.xlu1 %10027 }
0x2ff9   : > { %17467 = vmatpush3.xpose.msk.msra.mxu0 %vm1192_vm4, %v10028_v37  ;;  %17477 = vmatpush3.xpose.msk.msra.mxu1 %vm1192_vm4, %v10193_v0 }
0x2ffa   : > { %17471 = vmatprep.subr.mxu0 %v19176_v1  ;;  %17486 = vmatprep.subr.mxu1 %v19176_v1 }
0x2ffc   : > { %v10191_v2 = vpop.permute.xlu0 %10190  ;;  %17469 = vmatmul.mubr.msk.f32.vlgmr.msra.gmra.mrb[94].mxu0 %vm1192_vm4, %v21521_v60 }
0x2ffd   : > { %17479 = vmatmul.mubr.msk.f32.vlgmr.msra.gmra.mrb[84].mxu1 %vm1192_vm4, %v10191_v2  ;;  %17473 = vmatprep.mubr.msk.f32.mxu0 %vm19177_vm1, %v19176_v1  ;;  %v13112_v2 = vld [vmem:[%s22281_s5 + $0x70] sm:$0xff] }
0x2ffe   : > { %17488 = vmatprep.mubr.msk.f32.mxu1 %vm19177_vm1, %v19176_v1  ;;  %17487 = vmatpush3.msra.mxu1 %v13111_v8 }
0x2fff   : > { %17496 = vmatprep.subr.mxu1 %v19176_v1 }
0x30cf   : > { %v10099_v3 = vpop.f32.mrb[94].mxu0 }
0x30d0   : > { %v17470_v26 = vpop.f32.mrb[95].mxu0  ;;  %v10264_v22 = vpop.f32.mrb[84].mxu1  ;;  %v10103_v19 = vsel %vm1192_vm4, %v10099_v3, -inf }
0x30d1   : > { %10104 = vmax.xlane.f32.xlu0 %v10103_v19  ;;  %v17480_v23 = vpop.f32.mrb[85].mxu1  ;;  %v10268_v27 = vsel %vm1192_vm4, %v10264_v22, -inf }
0x30d2   : > { %10269 = vmax.xlane.f32.xlu1 %v10268_v27 }
0x30e3   : > { %10279 = vrot.lane.b32.xlu1 %v21521_v60, %s22340_s19  ;;  %s19118_s19 = scalar_lea.vmem %s19117_s0, 32 }
0x30e7   : > { %10501 = vrot.lane.b32.xlu1 %v21521_v60, %s22343_s16 }
0x315e   : > { %v10105_v42 = vpop.xlane.xlu0 %10104 }
0x315f   : > { %v10106_v7 = vsub.f32 %v10099_v3, %v10105_v42  ;;  %v10270_v52 = vpop.xlane.xlu1 %10269 }
0x3160   : > { %v10271_v5 = vsub.f32 %v10264_v22, %v10270_v52 }
0x3161   : > { %v10107_v53 = vmul.f32 1.442695, %v10106_v7 }
0x3162   : > { %v10272_v51 = vmul.f32 1.442695, %v10271_v5 }
0x3163   : > { %19088 = vpow2.f32 %v10107_v53  ;;  %v10280_v11 = vpop.permute.xlu1 %10279  ;;  %v13113_v53 = vld [vmem:[%s22281_s5 + $0x78] sm:$0xff] }
0x3164   : > { %19090 = vpow2.f32 %v10272_v51 }
0x3167   : > { %v10502_v39 = vpop.permute.xlu1 %10501 }
0x316d   : > { %v19089_v6 = vpop.eup %19088 }
0x316e   : > { %v10109_v17 = vsel %vm1192_vm4, %v19089_v6, 0.0  ;;  %v19091_v33 = vpop.eup %19090 }
0x316f   : > { %10110 = vadd.xlane.f32.xlu0 %v10109_v17  ;;  %v10274_v49 = vsel %vm1192_vm4, %v19091_v33, 0.0 }
0x3173   : > { %10275 = vadd.xlane.f32.xlu0 %v10274_v49 }
0x3189   : > { %10114 = vrot.lane.b32.xlu0 %v21521_v60, %s22341_s29 }
0x318d   : > { %10503 = vrot.lane.b32.xlu0 %v21521_v60, %s22342_s15 }
0x31fc   : > { %v10111_v20 = vpop.xlane.xlu0 %10110 }
0x31fd   : > { %19092 = vrcp.f32 %v10111_v20 }
0x3200   : > { %v10276_v12 = vpop.xlane.xlu0 %10275 }
0x3201   : > { %19094 = vrcp.f32 %v10276_v12 }
0x3204   : > { %v10115_v58 = vpop.permute.xlu0 %10114 }
0x3205   : > { %17472 = vmatpush3.msra.mxu0 %v10115_v58  ;;  %v21617_v58 = vld [vmem:[%s22282_s6 + $0x18] sm:$0x3f] }
0x3206   : > { %17481 = vmatprep.subr.mxu0 %v19176_v1 }
0x3207   : > { %v19093_v10 = vpop.eup %19092 }
0x3208   : > { %v10113_v35 = vmul.f32 %v19093_v10, %v19089_v6  ;;  %v10504_v31 = vpop.permute.xlu0 %10503 }
0x320a   : > { %17474 = vmatmul.mubr.msk.f32.vlgmr.msra.gmra.mrb[96].mxu0 %vm1192_vm4, %v10113_v35 }
0x320b   : > { %v19095_v18 = vpop.eup %19094  ;;  %17482 = vmatpush3.msra.mxu0 %v10280_v11  ;;  %17483 = vmatprep.mubr.msk.f32.mxu0 %vm19177_vm1, %v19176_v1 }
0x320c   : > { %v10278_v21 = vmul.f32 %v19095_v18, %v19091_v33  ;;  %17491 = vmatprep.subr.mxu0 %v19176_v1  ;;  %v10983_v18 = vrot.slane %v21617_v58, %v19443_v34 }
0x320e   : > { %17484 = vmatmul.mubr.msk.f32.vlgmr.msra.gmra.mrb[98].mxu0 %vm1192_vm4, %v10278_v21 }
0x320f   : > { %17493 = vmatprep.mubr.msk.f32.mxu0 %vm19177_vm1, %v19176_v1  ;;  %17492 = vmatpush3.msra.mxu0 %v13110_v24 }
0x3210   : > { %17501 = vmatprep.subr.mxu0 %v19176_v1 }
0x32dd   : > { %v10186_v28 = vpop.f32.mrb[96].mxu0 }
0x32de   : > { %v17475_v29 = vpop.f32.mrb[97].mxu0  ;;  %17494 = vmatmul.mubr.msk.f32.vlgmr.msra.gmra.mrb[100].mxu0 %vm1192_vm4, %v10186_v28 }
0x32df   : > { %17503 = vmatprep.mubr.msk.f32.mxu0 %vm19177_vm1, %v19176_v1 }
0x32e1   : > { %v10351_v30 = vpop.f32.mrb[98].mxu0 }
0x32e2   : > { %v17485_v38 = vpop.f32.mrb[99].mxu0  ;;  %17489 = vmatmul.mubr.msk.f32.vlgmr.msra.gmra.mrb[86].mxu1 %vm1192_vm4, %v10351_v30 }
0x32e3   : > { %17497 = vmatpush3.xpose.msk.msra.mxu1 %vm1192_vm4, %v10504_v31  ;;  %17498 = vmatprep.mubr.msk.f32.mxu1 %vm19177_vm1, %v19176_v1 }
0x32e4   : > { %17506 = vmatprep.subr.mxu1 %v19176_v1 }
0x32e6   : > { %17499 = vmatmul.mubr.msk.f32.vlgmr.msra.gmra.mrb[88].mxu1 %vm1192_vm4, %v10502_v39 }
0x32e7   : > { %17508 = vmatprep.mubr.msk.f32.mxu1 %vm19177_vm1, %v19176_v1  ;;  %17507 = vmatpush3.msra.mxu1 %v13112_v2 }
0x32e8   : > { %17516 = vmatprep.subr.mxu1 %v19176_v1 }
0x33b1   : > { %v10497_v40 = vpop.f32.mrb[100].mxu0 }
0x33b2   : > { %v17495_v41 = vpop.f32.mrb[101].mxu0 }
0x33b3   : > { %v13123_v41 = vld [vmem:[%s22283_s7 + $0x340] sm:$0xff] }
0x33b5   : > { %v10424_v9 = vpop.f32.mrb[86].mxu1 }
0x33b6   : > { %v10498_v15 = vadd.f32 %v10497_v40, %v10424_v9  ;;  %v17490_v46 = vpop.f32.mrb[87].mxu1  ;;  %v13115_v40 = vld [vmem:[%s22283_s7 + $0x300] sm:$0xff] }
0x33b7   : > { %v18943_v9 = vcombine.high %v13115_v40, %v13123_v41  ;;  %v18944_v46 = vcombine.low %v13115_v40, %v13123_v41 }
0x33b9   : > { %v10575_v32 = vpop.f32.mrb[88].mxu1 }
0x33ba   : > { %v17500_v54 = vpop.f32.mrb[89].mxu1  ;;  %v10579_v57 = vsel %vm1192_vm4, %v10575_v32, -inf }
0x33bb   : > { %10580 = vmax.xlane.f32.xlu0 %v10579_v57  ;;  %v13131_v57 = vld [vmem:[%s22283_s7 + $0x380] sm:$0xff] }
0x33d1   : > { %10590 = vrot.lane.b32.xlu0 %v21521_v60, %s22344_s20 }
0x33d5   : > { %10740 = vrot.lane.b32.xlu0 %v21521_v60, %s22345_s28 }
0x3448   : > { %v10581_v16 = vpop.xlane.xlu0 %10580 }
0x3449   : > { %v10582_v45 = vsub.f32 %v10575_v32, %v10581_v16  ;;  %v13139_v16 = vld [vmem:[%s22283_s7 + $0x3c0] sm:$0xff] }
0x344b   : > { %v10583_v59 = vmul.f32 1.442695, %v10582_v45  ;;  %v13132_v45 = vld [vmem:[%s22283_s7 + $0x388] sm:$0xff] }
0x344c   : > { %v10591_v44 = vpop.permute.xlu0 %10590 }
0x344d   : > { %19096 = vpow2.f32 %v10583_v59  ;;  %17502 = vmatpush3.msra.mxu0 %v10591_v44  ;;  %v18945_v59 = vcombine.high %v13131_v57, %v13139_v16  ;;  %v13140_v44 = vld [vmem:[%s22283_s7 + $0x3c8] sm:$0xff] }
0x344e   : > { %17511 = vmatprep.subr.mxu0 %v19176_v1 }
0x3450   : > { %v10741_v37 = vpop.permute.xlu0 %10740 }
0x3457   : > { %v19097_v61 = vpop.eup %19096 }
0x3458   : > { %v10585_v25 = vsel %vm1192_vm4, %v19097_v61, 0.0 }
0x3459   : > { %10586 = vadd.xlane.f32.xlu1 %v10585_v25  ;;  %v18949_v25 = vcombine.high %v13132_v45, %v13140_v44 }
0x346a   : > { %10742 = vrot.lane.b32.xlu1 %v21521_v60, %s22346_s26  ;;  %s402_s26 = sand.u32 1, %s19166_s22  }
0x346b   : > { %s403_s14 = scalar_lea.vmem [#allocation2], %s402_s26  ;;  %s12353_s17 = scalar_lea.sflag [#allocation3], %s402_s26 }
0x346c   : > { %s12365_s12 = sshll.u32 %s403_s14, 4  ;;  %s22236_s12 = int_to_ptr.vmem [resolvable:$true] %s12365_s12 }
0x346d   : > { %s19112_s18 = scalar_lea.vmem %s22236_s12, 16  ;;  %p19119_p0 = scmp.lt.s32.totalorder %s22236_s12, %s19117_s0 }
0x346e   : > { %p19113_p11 = scmp.ne.s32.totalorder %s22236_s12, %s19112_s18  ;;  %p19120_p1 = scmp.lt.s32.totalorder %s19118_s19, %s19112_s18 }
0x3470   : > { %p19114_p12 = pnand %p19113_p11, %p19294_p5  ;;  %p19121_p2 = por %p19120_p1, %p19119_p0 }
0x3472   : > { %p19115_p13 = pneg %p19114_p12 }
0x3474   : > { %p19122_p3 = pnand %p19121_p2, %p19115_p13 }
0x34e6   : > { %v10587_v48 = vpop.xlane.xlu1 %10586 }
0x34e7   : > { %19098 = vrcp.f32 %v10587_v48  ;;  %v18950_v48 = vcombine.low %v13132_v45, %v13140_v44  ;;  %v13137_v45 = vld [vmem:[%s22283_s7 + $0x3b0] sm:$0xff]  ;;  %v13138_v44 = vld [vmem:[%s22283_s7 + $0x3b8] sm:$0xff] }
0x34ea   : > { %v10743_v0 = vpop.permute.xlu1 %10742 }
0x34f1   : > { %v19099_v63 = vpop.eup %19098 }
0x34f2   : > { %v10589_v50 = vmul.f32 %v19099_v63, %v19097_v61  ;;  %v18946_v61 = vcombine.low %v13131_v57, %v13139_v16  ;;  %v13117_v63 = vld [vmem:[%s22283_s7 + $0x310] sm:$0xff] }
0x34f4   : > { %17504 = vmatmul.mubr.msk.f32.vlgmr.msra.gmra.mrb[102].mxu0 %vm1192_vm4, %v10589_v50  ;;  %v13125_v50 = vld [vmem:[%s22283_s7 + $0x350] sm:$0xff] }
0x34f5   : > { %17512 = vmatpush3.xpose.msk.msra.mxu0 %vm1192_vm4, %v10743_v0  ;;  %17513 = vmatprep.mubr.msk.f32.mxu0 %vm19177_vm1, %v19176_v1  ;;  %v13118_v0 = vld [vmem:[%s22283_s7 + $0x318] sm:$0xff]  ;;  %v18952_v2 = vcombine.low %v13117_v63, %v13125_v50 }
0x34f6   : > { %17521 = vmatprep.subr.mxu0 %v19176_v1 }
0x34f8   : > { %17514 = vmatmul.mubr.msk.f32.vlgmr.msra.gmra.mrb[104].mxu0 %vm1192_vm4, %v10741_v37  ;;  %v18951_v37 = vcombine.high %v13117_v63, %v13125_v50 }
0x34f9   : > { %17523 = vmatprep.mubr.msk.f32.mxu0 %vm19177_vm1, %v19176_v1  ;;  %17522 = vmatpush3.msra.mxu0 %v13113_v53  ;;  %v13133_v53 = vld [vmem:[%s22283_s7 + $0x390] sm:$0xff] }
0x35c7   : > { %v10662_v3 = vpop.f32.mrb[102].mxu0 }
0x35c8   : > { %v17505_v26 = vpop.f32.mrb[103].mxu0  ;;  %17509 = vmatmul.mubr.msk.f32.vlgmr.msra.gmra.mrb[90].mxu1 %vm1192_vm4, %v10662_v3  ;;  %v13126_v3 = vld [vmem:[%s22283_s7 + $0x358] sm:$0xff] }
0x35c9   : > { %17518 = vmatprep.mubr.msk.f32.mxu1 %vm19177_vm1, %v19176_v1  ;;  %v18955_v26 = vcombine.high %v13118_v0, %v13126_v3 }
0x35cb   : > { %v10814_v22 = vpop.f32.mrb[104].mxu0 }
0x35cc   : > { %v17515_v19 = vpop.f32.mrb[105].mxu0  ;;  %v10818_v23 = vsel %vm1192_vm4, %v10814_v22, -inf }
0x35cd   : > { %10819 = vmax.xlane.f32.xlu1 %v10818_v23 }
0x365a   : > { %v10820_v27 = vpop.xlane.xlu1 %10819 }
0x365b   : > { %v10821_v42 = vsub.f32 %v10814_v22, %v10820_v27  ;;  %v18956_v22 = vcombine.low %v13118_v0, %v13126_v3  ;;  %v15890_v3 = vld [vmem:[%s22285_s9 + $0xcc0] sm:$0xff]  }
0x365d   : > { %v10822_v7 = vmul.f32 1.442695, %v10821_v42  ;;  %v11001_v42 = vrot.slane %v21617_v58, %v19492_v13 }
0x365f   : > { %19100 = vpow2.f32 %v10822_v7 }
0x3669   : > { %v19101_v52 = vpop.eup %19100 }
0x366a   : > { %v10824_v5 = vsel %vm1192_vm4, %v19101_v52, 0.0 }
0x366b   : > { %10825 = vadd.xlane.f32.xlu0 %v10824_v5 }
0x3681   : > { %10829 = vrot.lane.b32.xlu0 %v21521_v60, %s22347_s1 }
0x369b   : > { %v10735_v51 = vpop.f32.mrb[90].mxu1 }
0x369c   : > { %v10739_v6 = vadd.f32 %v10735_v51, %v10498_v15  ;;  %v17510_v17 = vpop.f32.mrb[91].mxu1  ;;  %v13124_v15 = vld [vmem:[%s22283_s7 + $0x348] sm:$0xff]  ;;  %v13141_v51 = vld [vmem:[%s22283_s7 + $0x3d0] sm:$0xff] }
0x369d   : > { %v13142_v17 = vld [vmem:[%s22283_s7 + $0x3d8] sm:$0xff] }
0x36f8   : > { %v10826_v33 = vpop.xlane.xlu0 %10825 }
0x36f9   : > { %19102 = vrcp.f32 %v10826_v33 }
0x36fc   : > { %v10830_v49 = vpop.permute.xlu0 %10829 }
0x36fd   : > { %17517 = vmatpush3.msra.mxu1 %v10830_v49 }
0x36fe   : > { %18522 = vmatprep.subr.bf16.mxu1 %v18943_v9  ;;  %v13129_v9 = vld [vmem:[%s22283_s7 + $0x370] sm:$0xff] }
0x3703   : > { %v19103_v8 = vpop.eup %19102 }
0x3704   : > { %v10828_v20 = vmul.f32 %v19103_v8, %v19101_v52  ;;  %v11006_v52 = vrot.slane %v21617_v58, %v19495_v14  ;;  %v18953_v8 = vcombine.high %v13133_v53, %v13141_v51 }
0x3706   : > { %17519 = vmatmul.mubr.msk.f32.vlgmr.msra.gmra.mrb[92].mxu1 %vm1192_vm4, %v10828_v20 }
0x3707   : > { %11157 = vmatprep.mubr.f32.mxu1 %v19176_v1  ;;  %18524 = vmatpush1.bf16.msra.mxu1 %v18944_v46  ;;  %v13130_v46 = vld [vmem:[%s22283_s7 + $0x378] sm:$0xff] }
0x3708   : > { %18526 = vmatprep.subr.bf16.mxu1 %v18945_v59  ;;  %v13145_v59 = vld [vmem:[%s22283_s7 + $0x3f0] sm:$0xff] }
0x3709   : > { %v18969_v63 = vcombine.high %v13137_v45, %v13145_v59  ;;  %v18970_v0 = vcombine.low %v13137_v45, %v13145_v59 }
0x370b   : > { %18528 = vmatpush1.bf16.msra.mxu1 %v18946_v61  ;;  %v13146_v61 = vld [vmem:[%s22283_s7 + $0x3f8] sm:$0xff] }
0x370c   : > { %18538 = vmatprep.subr.bf16.mxu1 %v18951_v37  ;;  %v18973_v50 = vcombine.high %v13138_v44, %v13146_v61  ;;  %v18974_v37 = vcombine.low %v13138_v44, %v13146_v61 }
0x37d9   : > { %v10901_v12 = vpop.f32.mrb[92].mxu1 }
0x37da   : > { %v17520_v60 = vpop.f32.mrb[93].mxu1  ;;  %17524 = vmatmul.mubr.msk.f32.vlgmr.msra.gmra.mrb[106].mxu0 %vm1192_vm4, %v10901_v12  ;;  %v13119_v12 = vld [vmem:[%s22283_s7 + $0x320] sm:$0xff] }
0x37db   : > { %11228 = vmatprep.mubr.f32.mxu0 %v19176_v1  ;;  %v13127_v60 = vld [vmem:[%s22283_s7 + $0x360] sm:$0xff] }
0x38ad   : > { %v10974_v10 = vpop.f32.mrb[106].mxu0 }
0x38ae   : > { %v10978_v35 = vadd.f32 %v10974_v10, %v10739_v6  ;;  %v17525_v11 = vpop.f32.mrb[107].mxu0  ;;  %v13134_v6 = vld [vmem:[%s22283_s7 + $0x398] sm:$0xff]  ;;  %v13120_v10 = vld [vmem:[%s22283_s7 + $0x328] sm:$0xff] }
0x38af   : > { %v18957_v20 = vcombine.high %v13134_v6, %v13142_v17  ;;  %v18954_v11 = vcombine.low %v13133_v53, %v13141_v51  ;;  %v15884_v53 = vld [vmem:[%s22285_s9 + $0xc90] sm:$0xff]   ;;  %v15877_v51 = vld [vmem:[%s22285_s9 + $0xc58] sm:$0xff]  }
0x38b0   : > { %v10979_v21 = vadd.f32 %v10978_v35, %v21512_v62  ;;  %v13116_v62 = vld [vmem:[%s22283_s7 + $0x308] sm:$0xff] }
0x38b1   : > { %v18947_v32 = vcombine.high %v13116_v62, %v13124_v15  ;;  %v18948_v54 = vcombine.low %v13116_v62, %v13124_v15  ;;  %v13128_v35 = vld [vmem:[%s22283_s7 + $0x368] sm:$0xff]  ;;  %v13121_v62 = vld [vmem:[%s22283_s7 + $0x330] sm:$0xff]  ;;  %v13122_v15 = vld [vmem:[%s22283_s7 + $0x338] sm:$0xff] }
0x38b2   : > { %v10984_v24 = vadd.f32 %v10983_v18, %v10979_v21  ;;  %v18958_v18 = vcombine.low %v13134_v6, %v13142_v17  ;;  %v18959_v21 = vcombine.high %v13119_v12, %v13127_v60  ;;  %v18967_v57 = vcombine.high %v13121_v62, %v13129_v9  ;;  %v15893_v6 = vld [vmem:[%s22285_s9 + $0xcd8] sm:$0xff]  }
0x38b3   : > { %18530 = vmatprep.subr.bf16.mxu0 %v18947_v32  ;;  %v18971_v16 = vcombine.high %v13122_v15, %v13130_v46  ;;  %v15869_v17 = vld [vmem:[%s22285_s9 + $0xc18] sm:$0xff]  }
0x38b4   : > { %v10985_v28 = vsel %vm1115_vm3, %v10984_v24, 0.0  ;;  %18532 = vmatpush1.bf16.msra.mxu0 %v18948_v54 }
0x38b5   : > { %10986 = vadd.xlane.f32.xlu1 %v10985_v28  ;;  %18534 = vmatprep.subr.bf16.mxu0 %v18949_v25  ;;  %v13135_v28 = vld [vmem:[%s22283_s7 + $0x3a0] sm:$0xff]  ;;  %v18968_v25 = vcombine.low %v13121_v62, %v13129_v9  ;;  %v21853_v62 = vld [vmem:[%s22284_s8 + $0x30] sm:$0xff] }
0x38b6   : > { %v11013_v9 = vrot.slane %v21853_v62, %v19443_v34 }
0x38b8   : > { %18536 = vmatpush1.bf16.msra.mxu0 %v18950_v48  ;;  %v18972_v48 = vcombine.low %v13122_v15, %v13130_v46  ;;  %v11021_v15 = vrot.slane %v21853_v62, %v19495_v14  ;;  %v11017_v46 = vrot.slane %v21853_v62, %v19492_v13 }
0x38b9   : > { %18546 = vmatprep.subr.bf16.mxu0 %v18955_v26  ;;  %v15866_v26 = vld [vmem:[%s22285_s9 + $0xc00] sm:$0xff]  }
0x3942   : > { %v10987_v29 = vpop.xlane.xlu1 %10986 }
0x3943   : > { %v10988_v30 = vmul.f32 0.03125, %v10987_v29  ;;  %v13143_v29 = vld [vmem:[%s22283_s7 + $0x3e0] sm:$0xff] }
0x3944   : > { %v18961_v40 = vcombine.high %v13135_v28, %v13143_v29  ;;  %v18962_v32 = vcombine.low %v13135_v28, %v13143_v29  ;;  %v15872_v28 = vld [vmem:[%s22285_s9 + $0xc30] sm:$0xff]  }
0x3945   : > { %v10989_v31 = vsub.f32 %v10984_v24, %v10988_v30  ;;  %v18963_v24 = vcombine.high %v13120_v10, %v13128_v35  ;;  %v13136_v30 = vld [vmem:[%s22283_s7 + $0x3a8] sm:$0xff]  ;;  %v15888_v29 = vld [vmem:[%s22285_s9 + $0xcb0] sm:$0xff]  }
0x3947   : > { %v10990_v38 = vmul.f32 %v10989_v31, %v10989_v31 }
0x3949   : > { %v10991_v39 = vsel %vm1115_vm3, %v10990_v38, 0.0  ;;  %v18960_v38 = vcombine.low %v13119_v12, %v13127_v60  ;;  %v15870_v12 = vld [vmem:[%s22285_s9 + $0xc20] sm:$0xff]  }
0x394a   : > { %10992 = vadd.xlane.f32.xlu1 %v10991_v39  ;;  %v18964_v39 = vcombine.low %v13120_v10, %v13128_v35  ;;  %v15886_v60 = vld [vmem:[%s22285_s9 + $0xca0] sm:$0xff]   ;;  %v15879_v10 = vld [vmem:[%s22285_s9 + $0xc68] sm:$0xff]  }
0x394b   : > { %v15895_v35 = vld [vmem:[%s22285_s9 + $0xce8] sm:$0xff]  }
0x39d7   : > { %v10993_v19 = vpop.xlane.xlu1 %10992 }
0x39d8   : > { %v10994_v23 = vmul.f32 0.03125, %v10993_v19  ;;  %v15875_v19 = vld [vmem:[%s22285_s9 + $0xc48] sm:$0xff]  }
0x39da   : > { %v10995_v27 = vadd.f32 1e-05, %v10994_v23  ;;  %v15891_v23 = vld [vmem:[%s22285_s9 + $0xcc8] sm:$0xff]  }
0x39dc   : > { %19104 = vrsqrt.f32 %v10995_v27  ;;  %v15867_v27 = vld [vmem:[%s22285_s9 + $0xc08] sm:$0xff]  }
0x39e6   : > { %v19105_v7 = vpop.eup %19104 }
0x39e7   : > { %v10997_v5 = vmul.f32 %v19105_v7, %v10989_v31  ;;  %v13144_v31 = vld [vmem:[%s22283_s7 + $0x3e8] sm:$0xff]  ;;  %v15876_v7 = vld [vmem:[%s22285_s9 + $0xc50] sm:$0xff]  }
0x39e8   : > { %v18965_v41 = vcombine.high %v13136_v30, %v13144_v31  ;;  %v18966_v54 = vcombine.low %v13136_v30, %v13144_v31  ;;  %v15881_v30 = vld [vmem:[%s22285_s9 + $0xc78] sm:$0xff]  }
0x39e9   : > { %v11002_v33 = vmul.f32 %v11001_v42, %v10997_v5  ;;  %v15883_v42 = vld [vmem:[%s22285_s9 + $0xc88] sm:$0xff]   ;;  %v15868_v5 = vld [vmem:[%s22285_s9 + $0xc10] sm:$0xff]   ;;  %v15897_v31 = vld [vmem:[%s22285_s9 + $0xcf8] sm:$0xff]  }
0x39eb   : > { %v21676_v49 = vadd.f32 %v11006_v52, %v11002_v33  ;;  %v15892_v52 = vld [vmem:[%s22285_s9 + $0xcd0] sm:$0xff]   ;;  %v15885_v33 = vld [vmem:[%s22285_s9 + $0xc98] sm:$0xff]  }
0x39ed   : > { %13423 = vmatmul.mubr.msk.f32.vlgmr.msra.gmra.mrb[94].mxu1 %vm1115_vm3, %v21676_v49  ;;  %13424 = vmatmul.mubr.msk.f32.vlgmr.msra.gmra.mrb[108].mxu0 %vm1115_vm3, %v21676_v49 }
0x39ee   : > { %18540 = vmatpush1.bf16.msra.mxu1 %v18952_v2  ;;  %18548 = vmatpush1.bf16.msra.mxu0 %v18956_v22  ;;  %v15874_v2 = vld [vmem:[%s22285_s9 + $0xc40] sm:$0xff]  }
0x39ef   : > { %18542 = vmatprep.subr.bf16.mxu1 %v18953_v8  ;;  %18550 = vmatprep.subr.bf16.mxu0 %v18957_v20  ;;  %v15882_v22 = vld [vmem:[%s22285_s9 + $0xc80] sm:$0xff]  }
0x39f0   : > { %11299 = vmatprep.mubr.f32.mxu1 %v19176_v1  ;;  %11370 = vmatprep.mubr.f32.mxu0 %v19176_v1  ;;  %v15878_v8 = vld [vmem:[%s22285_s9 + $0xc60] sm:$0xff]  }
0x39f1   : > { %v15894_v20 = vld [vmem:[%s22285_s9 + $0xce0] sm:$0xff]  }
0x39f2   : > { %18544 = vmatpush1.bf16.msra.mxu1 %v18954_v11  ;;  %18552 = vmatpush1.bf16.msra.mxu0 %v18958_v18  ;;  %v15871_v11 = vld [vmem:[%s22285_s9 + $0xc28] sm:$0xff]  }
0x39f3   : > { %18554 = vmatprep.subr.bf16.mxu1 %v18959_v21  ;;  %18562 = vmatprep.subr.bf16.mxu0 %v18963_v24  ;;  %v15887_v18 = vld [vmem:[%s22285_s9 + $0xca8] sm:$0xff]   ;;  %v15880_v21 = vld [vmem:[%s22285_s9 + $0xc70] sm:$0xff]  }
0x39f4   : > { %v15896_v24 = vld [vmem:[%s22285_s9 + $0xcf0] sm:$0xff]  }
0x39f5   : > { %13425 = vmatmul.mubr.msk.f32.vlgmr.msra.gmra.mrb[96].mxu1 %vm1115_vm3, %v21676_v49  ;;  %13426 = vmatmul.mubr.msk.f32.vlgmr.msra.gmra.mrb[110].mxu0 %vm1115_vm3, %v21676_v49 }
0x39f6   : > { %18556 = vmatpush1.bf16.msra.mxu1 %v18960_v38  ;;  %18564 = vmatpush1.bf16.msra.mxu0 %v18964_v39  ;;  %v15873_v38 = vld [vmem:[%s22285_s9 + $0xc38] sm:$0xff]  }
0x39f7   : > { %18558 = vmatprep.subr.bf16.mxu1 %v18961_v40  ;;  %18566 = vmatprep.subr.bf16.mxu0 %v18965_v41  ;;  %v15889_v39 = vld [vmem:[%s22285_s9 + $0xcb8] sm:$0xff]   ;;  %v15906_v40 = vld [vmem:[%s22285_s9 + $0xd40] sm:$0xff]  }
0x39f8   : > { %11441 = vmatprep.mubr.f32.mxu1 %v19176_v1  ;;  %11512 = vmatprep.mubr.f32.mxu0 %v19176_v1  ;;  %v15922_v41 = vld [vmem:[%s22285_s9 + $0xdc0] sm:$0xff]  }
0x39fa   : > { %18560 = vmatpush1.bf16.msra.mxu1 %v18962_v32  ;;  %18568 = vmatpush1.bf16.msra.mxu0 %v18966_v54  ;;  %v11025_v32 = vrot.slane %v21853_v62, %v19693_v43 }
0x39fb   : > { %18570 = vmatprep.subr.bf16.mxu1 %v18967_v57  ;;  %18578 = vmatprep.subr.bf16.mxu0 %v18971_v16 }
0x39fd   : > { %13427 = vmatmul.mubr.msk.f32.vlgmr.msra.gmra.mrb[98].mxu1 %vm1115_vm3, %v21676_v49  ;;  %13428 = vmatmul.mubr.msk.f32.vlgmr.msra.gmra.mrb[112].mxu0 %vm1115_vm3, %v21676_v49 }
0x39fe   : > { %18572 = vmatpush1.bf16.msra.mxu1 %v18968_v25  ;;  %18580 = vmatpush1.bf16.msra.mxu0 %v18972_v48 }
0x39ff   : > { %18574 = vmatprep.subr.bf16.mxu1 %v18969_v63  ;;  %18582 = vmatprep.subr.bf16.mxu0 %v18973_v50 }
0x3a00   : > { %11583 = vmatprep.mubr.f32.mxu1 %v19176_v1  ;;  %11654 = vmatprep.mubr.f32.mxu0 %v19176_v1 }
0x3a02   : > { %18576 = vmatpush1.bf16.msra.mxu1 %v18970_v0  ;;  %18584 = vmatpush1.bf16.msra.mxu0 %v18974_v37  ;;  %v15898_v37 = vld [vmem:[%s22285_s9 + $0xd00] sm:$0xff]  }
0x3a03   : > { %18586 = vmatprep.subr.bf16.mxu1 %v15874_v2  ;;  %18618 = vmatprep.subr.bf16.mxu0 %v15890_v3  ;;  %v15914_v2 = vld [vmem:[%s22285_s9 + $0xd80] sm:$0xff]   ;;  %v11033_v3 = vrot.slane %v21853_v62, %v19704_v55 }
0x3a05   : > { %13429 = vmatmul.mubr.msk.f32.vlgmr.msra.gmra.mrb[100].mxu1 %vm1115_vm3, %v21676_v49  ;;  %13430 = vmatmul.mubr.msk.f32.vlgmr.msra.gmra.mrb[114].mxu0 %vm1115_vm3, %v21676_v49 }
0x3a06   : > { %18588 = vmatpush3.bf16.msra.mxu1 %v15866_v26  ;;  %18620 = vmatpush3.bf16.msra.mxu0 %v15882_v22  ;;  %v11041_v26 = vrot.slane %v21853_v62, %v19707_v56  ;;  %v15907_v22 = vld [vmem:[%s22285_s9 + $0xd48] sm:$0xff]  }
0x3a07   : > { %18590 = vmatprep.subr.bf16.mxu1 %v15875_v19  ;;  %18622 = vmatprep.subr.bf16.mxu0 %v15891_v23  ;;  %v15923_v19 = vld [vmem:[%s22285_s9 + $0xdc8] sm:$0xff]  }
0x3a0a   : > { %18592 = vmatpush3.bf16.msra.mxu1 %v15867_v27  ;;  %18624 = vmatpush3.bf16.msra.mxu0 %v15883_v42 }
0x3a0b   : > { %18594 = vmatprep.subr.bf16.mxu1 %v15876_v7  ;;  %18626 = vmatprep.subr.bf16.mxu0 %v15892_v52  ;;  %v15899_v52 = vld [vmem:[%s22285_s9 + $0xd08] sm:$0xff]  }
0x3a0e   : > { %18596 = vmatpush3.bf16.msra.mxu1 %v15868_v5  ;;  %18628 = vmatpush3.bf16.msra.mxu0 %v15884_v53  ;;  %v15915_v5 = vld [vmem:[%s22285_s9 + $0xd88] sm:$0xff]  }
0x3a0f   : > { %18598 = vmatprep.subr.bf16.mxu1 %v15877_v51  ;;  %18630 = vmatprep.subr.bf16.mxu0 %v15893_v6  ;;  %v15908_v6 = vld [vmem:[%s22285_s9 + $0xd50] sm:$0xff]  }
0x3a12   : > { %18600 = vmatpush3.bf16.msra.mxu1 %v15869_v17  ;;  %18632 = vmatpush3.bf16.msra.mxu0 %v15885_v33  ;;  %v15924_v17 = vld [vmem:[%s22285_s9 + $0xdd0] sm:$0xff]  }
0x3a13   : > { %18602 = vmatprep.subr.bf16.mxu1 %v15878_v8  ;;  %18634 = vmatprep.subr.bf16.mxu0 %v15894_v20  ;;  %v15900_v20 = vld [vmem:[%s22285_s9 + $0xd10] sm:$0xff]  }
0x3a16   : > { %18604 = vmatpush3.bf16.msra.mxu1 %v15870_v12  ;;  %18636 = vmatpush3.bf16.msra.mxu0 %v15886_v60  ;;  %v15916_v12 = vld [vmem:[%s22285_s9 + $0xd90] sm:$0xff]   ;;  %v15909_v60 = vld [vmem:[%s22285_s9 + $0xd58] sm:$0xff]  }
0x3a17   : > { %18606 = vmatprep.subr.bf16.mxu1 %v15879_v10  ;;  %18638 = vmatprep.subr.bf16.mxu0 %v15895_v35  ;;  %v15925_v10 = vld [vmem:[%s22285_s9 + $0xdd8] sm:$0xff]  }
0x3a1a   : > { %18608 = vmatpush3.bf16.msra.mxu1 %v15871_v11  ;;  %18640 = vmatpush3.bf16.msra.mxu0 %v15887_v18 }
0x3a1b   : > { %18610 = vmatprep.subr.bf16.mxu1 %v15880_v21  ;;  %18642 = vmatprep.subr.bf16.mxu0 %v15896_v24  ;;  %v15901_v24 = vld [vmem:[%s22285_s9 + $0xd18] sm:$0xff]  }
0x3a1e   : > { %18612 = vmatpush3.bf16.msra.mxu1 %v15872_v28  ;;  %18644 = vmatpush3.bf16.msra.mxu0 %v15888_v29  ;;  %v15917_v28 = vld [vmem:[%s22285_s9 + $0xd98] sm:$0xff]   ;;  %v15910_v29 = vld [vmem:[%s22285_s9 + $0xd60] sm:$0xff]  }
0x3a1f   : > { %18614 = vmatprep.subr.bf16.mxu1 %v15881_v30  ;;  %18646 = vmatprep.subr.bf16.mxu0 %v15897_v31  ;;  %v15926_v30 = vld [vmem:[%s22285_s9 + $0xde0] sm:$0xff]   ;;  %v21926_v31 = vld [vmem:[%s22284_s8 + $0x38] sm:$0xff] }
0x3a22   : > { %18616 = vmatpush3.bf16.msra.mxu1 %v15873_v38  ;;  %18648 = vmatpush3.bf16.msra.mxu0 %v15889_v39  ;;  %v11069_v38 = vrot.slane %v21926_v31, %v19770_v36  ;;  %v15902_v39 = vld [vmem:[%s22285_s9 + $0xd20] sm:$0xff]  }
0x3a23   : > { %18650 = vmatprep.subr.bf16.mxu1 %v15906_v40  ;;  %18682 = vmatprep.subr.bf16.mxu0 %v15922_v41  ;;  %v15918_v40 = vld [vmem:[%s22285_s9 + $0xda0] sm:$0xff]   ;;  %v15911_v41 = vld [vmem:[%s22285_s9 + $0xd68] sm:$0xff]  }
0x3ac0   : > { %v11159_v54 = vpop.f32.mrb[94].mxu1  ;;  %v11230_v57 = vpop.f32.mrb[108].mxu0 }
0x3ac1   : > { %v11160_v16 = vadd.f32 %v11159_v54, %v11013_v9  ;;  %v11231_v45 = vadd.f32 %v11230_v57, %v11021_v15  ;;  %v11161_v59 = vpop.f32.mrb[95].mxu1  ;;  %v11232_v44 = vpop.f32.mrb[109].mxu0  ;;  %v15927_v9 = vld [vmem:[%s22285_s9 + $0xde8] sm:$0xff]  }
0x3ac2   : > { %v11162_v61 = vadd.f32 %v11161_v59, %v11017_v46  ;;  %v11233_v25 = vadd.f32 %v11232_v44, %v11025_v32  ;;  %v15912_v59 = vld [vmem:[%s22285_s9 + $0xd70] sm:$0xff]  }
0x3ac3   : > { %v11661_v50 = vmax.f32 %v11160_v16, 0.0  ;;  %v11663_v0 = vmax.f32 %v11231_v45, 0.0  ;;  %v15903_v16 = vld [vmem:[%s22285_s9 + $0xd28] sm:$0xff]   ;;  %v15928_v44 = vld [vmem:[%s22285_s9 + $0xdf0] sm:$0xff]  }
0x3ac4   : > { %v11662_v48 = vmax.f32 %v11162_v61, 0.0  ;;  %v11664_v63 = vmax.f32 %v11233_v25, 0.0  ;;  %v15919_v45 = vld [vmem:[%s22285_s9 + $0xda8] sm:$0xff]   ;;  %v11029_v61 = vrot.slane %v21853_v62, %v19794_v47  ;;  %v11037_v25 = vrot.slane %v21853_v62, %v19770_v36  ;;  %v15929_v36 = vld [vmem:[%s22285_s9 + $0xdf8] sm:$0xff]  }
0x3ac5   : > { %v11057_v62 = vrot.slane %v21926_v31, %v19693_v43 }
0x3ac6   : > { %11745 = vmatprep.mubr.f32.mxu1 %v11662_v48  ;;  %11815 = vmatprep.mubr.f32.mxu0 %v11664_v63  ;;  %v15904_v48 = vld [vmem:[%s22285_s9 + $0xd30] sm:$0xff]  }
0x3ac7   : > { %11746 = vmatmul.mubr.f32.vlgmr.msra.gmra.mrb[102].mxu1 %v11661_v50  ;;  %11816 = vmatmul.mubr.f32.vlgmr.msra.gmra.mrb[116].mxu0 %v11663_v0  ;;  %v15920_v63 = vld [vmem:[%s22285_s9 + $0xdb0] sm:$0xff]   ;;  %v11049_v50 = vrot.slane %v21926_v31, %v19492_v13  ;;  %v15913_v0 = vld [vmem:[%s22285_s9 + $0xd78] sm:$0xff]  }
0x3ac8   : > { %v21879_v23 = vpop.f32.mrb[96].mxu1  ;;  %v21881_v27 = vpop.f32.mrb[110].mxu0  ;;  %18652 = vmatpush3.bf16.msra.mxu1 %v15898_v37  ;;  %18684 = vmatpush3.bf16.msra.mxu0 %v15914_v2  ;;  %v15905_v13 = vld [vmem:[%s22285_s9 + $0xd38] sm:$0xff]  }
0x3ac9   : > { %v11303_v42 = vpop.f32.mrb[97].mxu1  ;;  %v11374_v7 = vpop.f32.mrb[111].mxu0  ;;  %18654 = vmatprep.subr.bf16.mxu1 %v15907_v22  ;;  %18686 = vmatprep.subr.bf16.mxu0 %v15923_v19  ;;  %v11302_v37 = vadd.f32 %v21879_v23, %v11029_v61  ;;  %v11373_v2 = vadd.f32 %v21881_v27, %v11037_v25  ;;  %v15938_v22 = vld [vmem:[%s22285_s9 + $0xe40] sm:$0xff]   ;;  %v15952_v61 = vld [vmem:[%s22285_s9 + $0xeb0] sm:$0xff]   ;;  %v15945_v25 = vld [vmem:[%s22285_s9 + $0xe78] sm:$0xff]  }
0x3aca   : > { %v11304_v53 = vadd.f32 %v11303_v42, %v11033_v3  ;;  %v11375_v51 = vadd.f32 %v11374_v7, %v11041_v26  ;;  %v15921_v3 = vld [vmem:[%s22285_s9 + $0xdb8] sm:$0xff]   ;;  %v15954_v19 = vld [vmem:[%s22285_s9 + $0xec0] sm:$0xff]  }
0x3acb   : > { %v11665_v27 = vmax.f32 %v11302_v37, 0.0  ;;  %v11667_v42 = vmax.f32 %v11373_v2, 0.0  ;;  %v15930_v7 = vld [vmem:[%s22285_s9 + $0xe00] sm:$0xff]  }
0x3acc   : > { %v11666_v33 = vmax.f32 %v11304_v53, 0.0  ;;  %v11668_v8 = vmax.f32 %v11375_v51, 0.0  ;;  %18656 = vmatpush3.bf16.msra.mxu1 %v15899_v52  ;;  %18688 = vmatpush3.bf16.msra.mxu0 %v15915_v5  ;;  %v15946_v5 = vld [vmem:[%s22285_s9 + $0xe80] sm:$0xff]   ;;  %v15939_v51 = vld [vmem:[%s22285_s9 + $0xe48] sm:$0xff]  }
0x3acd   : > { %18658 = vmatprep.subr.bf16.mxu1 %v15908_v6  ;;  %18690 = vmatprep.subr.bf16.mxu0 %v15924_v17  ;;  %v15955_v6 = vld [vmem:[%s22285_s9 + $0xec8] sm:$0xff]  }
0x3ace   : > { %11885 = vmatprep.mubr.f32.mxu1 %v11666_v33  ;;  %11955 = vmatprep.mubr.f32.mxu0 %v11668_v8  ;;  %v15931_v17 = vld [vmem:[%s22285_s9 + $0xe08] sm:$0xff]   ;;  %v15940_v8 = vld [vmem:[%s22285_s9 + $0xe50] sm:$0xff]  }
0x3acf   : > { %v15947_v33 = vld [vmem:[%s22285_s9 + $0xe88] sm:$0xff]  }
0x3ad0   : > { %v21907_v35 = vpop.f32.mrb[98].mxu1  ;;  %v21909_v11 = vpop.f32.mrb[112].mxu0  ;;  %18660 = vmatpush3.bf16.msra.mxu1 %v15900_v20  ;;  %18692 = vmatpush3.bf16.msra.mxu0 %v15916_v12  ;;  %v15956_v20 = vld [vmem:[%s22285_s9 + $0xed0] sm:$0xff]  }
0x3ad1   : > { %v11445_v18 = vpop.f32.mrb[99].mxu1  ;;  %v11516_v21 = vpop.f32.mrb[113].mxu0  ;;  %18662 = vmatprep.subr.bf16.mxu1 %v15909_v60  ;;  %18694 = vmatprep.subr.bf16.mxu0 %v15925_v10  ;;  %v15932_v12 = vld [vmem:[%s22285_s9 + $0xe10] sm:$0xff]   ;;  %v15941_v10 = vld [vmem:[%s22285_s9 + $0xe58] sm:$0xff]  }
0x3ad2   : > { %v11446_v26 = vadd.f32 %v11445_v18, %v11049_v50  ;;  %v11517_v23 = vadd.f32 %v11516_v21, %v11057_v62  ;;  %v15948_v60 = vld [vmem:[%s22285_s9 + $0xe90] sm:$0xff]   ;;  %v15957_v18 = vld [vmem:[%s22285_s9 + $0xed8] sm:$0xff]  }
0x3ad3   : > { %v15933_v21 = vld [vmem:[%s22285_s9 + $0xe18] sm:$0xff]  }
0x3ad4   : > { %18664 = vmatpush3.bf16.msra.mxu1 %v15901_v24  ;;  %18696 = vmatpush3.bf16.msra.mxu0 %v15917_v28  ;;  %v11670_v52 = vmax.f32 %v11446_v26, 0.0  ;;  %v11672_v53 = vmax.f32 %v11517_v23, 0.0  ;;  %v15949_v24 = vld [vmem:[%s22285_s9 + $0xe98] sm:$0xff]   ;;  %v15942_v28 = vld [vmem:[%s22285_s9 + $0xe60] sm:$0xff]   ;;  %v15979_v23 = vld [vmem:[%s22285_s9 + $0xf88] sm:$0xff]  }
0x3ad5   : > { %18666 = vmatprep.subr.bf16.mxu1 %v15910_v29  ;;  %18698 = vmatprep.subr.bf16.mxu0 %v15926_v30  ;;  %v15958_v29 = vld [vmem:[%s22285_s9 + $0xee0] sm:$0xff]   ;;  %v15937_v50 = vld [vmem:[%s22285_s9 + $0xe38] sm:$0xff]  }
0x3ad6   : > { %v15934_v30 = vld [vmem:[%s22285_s9 + $0xe20] sm:$0xff]  }
0x3ad8   : > { %v21942_v15 = vpop.f32.mrb[100].mxu1  ;;  %v11656_v46 = vpop.f32.mrb[114].mxu0  ;;  %18668 = vmatpush3.bf16.msra.mxu1 %v15902_v39  ;;  %18700 = vmatpush3.bf16.msra.mxu0 %v15918_v40  ;;  %v15943_v39 = vld [vmem:[%s22285_s9 + $0xe68] sm:$0xff]  }
0x3ad9   : > { %v21944_v32 = vadd.f32 %v11656_v46, %v11069_v38  ;;  %v21946_v54 = vpop.f32.mrb[101].mxu1  ;;  %v21948_v57 = vpop.f32.mrb[115].mxu0  ;;  %18670 = vmatprep.subr.bf16.mxu1 %v15911_v41  ;;  %18702 = vmatprep.subr.bf16.mxu0 %v15927_v9  ;;  %v15950_v38 = vld [vmem:[%s22285_s9 + $0xea0] sm:$0xff]   ;;  %v15959_v40 = vld [vmem:[%s22285_s9 + $0xee8] sm:$0xff]   ;;  %v15944_v46 = vld [vmem:[%s22285_s9 + $0xe70] sm:$0xff]  }
0x3ada   : > { %v15935_v41 = vld [vmem:[%s22285_s9 + $0xe28] sm:$0xff]  }
0x3adb   : > { %v15951_v9 = vld [vmem:[%s22285_s9 + $0xea8] sm:$0xff]  }
0x3adc   : > { %18672 = vmatpush3.bf16.msra.mxu1 %v15903_v16  ;;  %18704 = vmatpush3.bf16.msra.mxu0 %v15919_v45  ;;  %v15960_v16 = vld [vmem:[%s22285_s9 + $0xef0] sm:$0xff]   ;;  %v11045_v45 = vrot.slane %v21926_v31, %v19443_v34  ;;  %v11065_v34 = vrot.slane %v21926_v31, %v19704_v55 }
0x3add   : > { %18674 = vmatprep.subr.bf16.mxu1 %v15912_v59  ;;  %18706 = vmatprep.subr.bf16.mxu0 %v15928_v44  ;;  %v15936_v59 = vld [vmem:[%s22285_s9 + $0xe30] sm:$0xff]   ;;  %v11053_v44 = vrot.slane %v21926_v31, %v19495_v14 }
0x3ade   : > { %v11444_v14 = vadd.f32 %v21907_v35, %v11045_v45  ;;  %v11588_v62 = vadd.f32 %v21946_v54, %v11065_v34  ;;  %v15986_v35 = vld [vmem:[%s22285_s9 + $0xfc0] sm:$0xff]   ;;  %v11680_v45 = vrot.slane %v21617_v58, %v19693_v43 }
0x3adf   : > { %v15978_v54 = vld [vmem:[%s22285_s9 + $0xf80] sm:$0xff]  }
0x3ae0   : > { %18676 = vmatpush3.bf16.msra.mxu1 %v15904_v48  ;;  %18708 = vmatpush3.bf16.msra.mxu0 %v15920_v63  ;;  %v15961_v48 = vld [vmem:[%s22285_s9 + $0xef8] sm:$0xff]   ;;  %v11073_v63 = vrot.slane %v21926_v31, %v19707_v56  ;;  %v15970_v56 = vld [vmem:[%s22285_s9 + $0xf40] sm:$0xff]   ;;  %v11669_v2 = vmax.f32 %v11444_v14, 0.0 }
0x3ae1   : > { %18678 = vmatprep.subr.bf16.mxu1 %v15913_v0  ;;  %18710 = vmatprep.subr.bf16.mxu0 %v15929_v36  ;;  %v11515_v0 = vadd.f32 %v21909_v11, %v11053_v44  ;;  %v15953_v36 = vld [vmem:[%s22285_s9 + $0xeb8] sm:$0xff]   ;;  %v15962_v11 = vld [vmem:[%s22285_s9 + $0xf00] sm:$0xff]  }
0x3ae2   : > { %v11659_v37 = vadd.f32 %v21948_v57, %v11073_v63  ;;  %v15971_v57 = vld [vmem:[%s22285_s9 + $0xf48] sm:$0xff]  }
0x3ae4   : > { %18680 = vmatpush3.bf16.msra.mxu1 %v15905_v13  ;;  %18712 = vmatpush3.bf16.msra.mxu0 %v15921_v3  ;;  %v11671_v13 = vmax.f32 %v11515_v0, 0.0  ;;  %v11674_v3 = vmax.f32 %v11588_v62, 0.0  ;;  %v11676_v26 = vmax.f32 %v11659_v37, 0.0 }
0x3ae5   : > { %18714 = vmatprep.subr.bf16.mxu1 %v15938_v22  ;;  %18746 = vmatprep.subr.bf16.mxu0 %v15954_v19  ;;  %v15987_v22 = vld [vmem:[%s22285_s9 + $0xfc8] sm:$0xff]  }
0x3ae6   : > { %v15963_v19 = vld [vmem:[%s22285_s9 + $0xf08] sm:$0xff]  }
0x3ae7   : > { %11886 = vmatmul.mubr.f32.vlgmr.msra.gmra.mrb[104].mxu1 %v11665_v27  ;;  %11956 = vmatmul.mubr.f32.vlgmr.msra.gmra.mrb[118].mxu0 %v11667_v42  ;;  %v15972_v27 = vld [vmem:[%s22285_s9 + $0xf50] sm:$0xff]  }
0x3ae8   : > { %18716 = vmatpush3.bf16.msra.mxu1 %v15930_v7  ;;  %12025 = vmatprep.mubr.f32.mxu1 %v11670_v52  ;;  %v15988_v42 = vld [vmem:[%s22285_s9 + $0xfd0] sm:$0xff]  }
0x3ae9   : > { %18748 = vmatpush3.bf16.msra.mxu0 %v15946_v5  ;;  %12095 = vmatprep.mubr.f32.mxu0 %v11672_v53  ;;  %v15964_v7 = vld [vmem:[%s22285_s9 + $0xf10] sm:$0xff]   ;;  %v15973_v5 = vld [vmem:[%s22285_s9 + $0xf58] sm:$0xff]  }
0x3aea   : > { %18718 = vmatprep.subr.bf16.mxu1 %v15939_v51  ;;  %18750 = vmatprep.subr.bf16.mxu0 %v15955_v6  ;;  %v15980_v52 = vld [vmem:[%s22285_s9 + $0xf90] sm:$0xff]   ;;  %v15989_v53 = vld [vmem:[%s22285_s9 + $0xfd8] sm:$0xff]  }
0x3aeb   : > { %v15965_v51 = vld [vmem:[%s22285_s9 + $0xf18] sm:$0xff]  }
0x3aec   : > { %18720 = vmatpush3.bf16.msra.mxu1 %v15931_v17  ;;  %v15981_v6 = vld [vmem:[%s22285_s9 + $0xf98] sm:$0xff]   ;;  %v15974_v17 = vld [vmem:[%s22285_s9 + $0xf60] sm:$0xff]  }
0x3aed   : > { %18752 = vmatpush3.bf16.msra.mxu0 %v15947_v33  ;;  %18722 = vmatprep.subr.bf16.mxu1 %v15940_v8  ;;  %v15990_v33 = vld [vmem:[%s22285_s9 + $0xfe0] sm:$0xff]  }
0x3aee   : > { %18754 = vmatprep.subr.bf16.mxu0 %v15956_v20  ;;  %v15966_v8 = vld [vmem:[%s22285_s9 + $0xf20] sm:$0xff]  }
0x3aef   : > { %v15982_v20 = vld [vmem:[%s22285_s9 + $0xfa0] sm:$0xff]  }
0x3af0   : > { %18724 = vmatpush3.bf16.msra.mxu1 %v15932_v12  ;;  %v15975_v12 = vld [vmem:[%s22285_s9 + $0xf68] sm:$0xff]  }
0x3af1   : > { %18756 = vmatpush3.bf16.msra.mxu0 %v15948_v60  ;;  %18726 = vmatprep.subr.bf16.mxu1 %v15941_v10  ;;  %v15991_v60 = vld [vmem:[%s22285_s9 + $0xfe8] sm:$0xff]  }
0x3af2   : > { %18758 = vmatprep.subr.bf16.mxu0 %v15957_v18  ;;  %v15967_v10 = vld [vmem:[%s22285_s9 + $0xf28] sm:$0xff]  }
0x3af3   : > { %v15983_v18 = vld [vmem:[%s22285_s9 + $0xfa8] sm:$0xff]  }
0x3af4   : > { %18728 = vmatpush3.bf16.msra.mxu1 %v15933_v21  ;;  %v15976_v21 = vld [vmem:[%s22285_s9 + $0xf70] sm:$0xff]  }
0x3af5   : > { %18760 = vmatpush3.bf16.msra.mxu0 %v15949_v24  ;;  %18730 = vmatprep.subr.bf16.mxu1 %v15942_v28  ;;  %v15992_v24 = vld [vmem:[%s22285_s9 + $0xff0] sm:$0xff]   ;;  %v11061_v28 = vrot.slane %v21926_v31, %v19794_v47 }
0x3af6   : > { %18762 = vmatprep.subr.bf16.mxu0 %v15958_v29  ;;  %v15968_v29 = vld [vmem:[%s22285_s9 + $0xf30] sm:$0xff]  }
0x3af7   : > { %v11586_v31 = vadd.f32 %v21942_v15, %v11061_v28 }
0x3af8   : > { %18732 = vmatpush3.bf16.msra.mxu1 %v15934_v30  ;;  %v15984_v30 = vld [vmem:[%s22285_s9 + $0xfb0] sm:$0xff]  }
0x3af9   : > { %18764 = vmatpush3.bf16.msra.mxu0 %v15950_v38  ;;  %18734 = vmatprep.subr.bf16.mxu1 %v15943_v39  ;;  %v15977_v38 = vld [vmem:[%s22285_s9 + $0xf78] sm:$0xff]  }
0x3afa   : > { %18766 = vmatprep.subr.bf16.mxu0 %v15959_v40  ;;  %v15993_v39 = vld [vmem:[%s22285_s9 + $0xff8] sm:$0xff]  }
0x3afb   : > { %v15969_v40 = vld [vmem:[%s22285_s9 + $0xf38] sm:$0xff]  }
0x3afc   : > { %18736 = vmatpush3.bf16.msra.mxu1 %v15935_v41  ;;  %v15985_v41 = vld [vmem:[%s22285_s9 + $0xfb8] sm:$0xff]  }
0x3afd   : > { %18768 = vmatpush3.bf16.msra.mxu0 %v15951_v9  ;;  %18738 = vmatprep.subr.bf16.mxu1 %v15944_v46  ;;  %v11673_v9 = vmax.f32 %v11586_v31, 0.0  ;;  %v11675_v46 = vmax.f32 %v21944_v32, 0.0 }
0x3afe   : > { %18770 = vmatprep.subr.bf16.mxu0 %v15960_v16 }
0x3b00   : > { %18740 = vmatpush3.bf16.msra.mxu1 %v15936_v59 }
0x3b01   : > { %18772 = vmatpush3.bf16.msra.mxu0 %v15952_v61  ;;  %18742 = vmatprep.subr.bf16.mxu1 %v15945_v25 }
0x3b02   : > { %18774 = vmatprep.subr.bf16.mxu0 %v15961_v48 }
0x3b04   : > { %18744 = vmatpush3.bf16.msra.mxu1 %v15937_v50 }
0x3b05   : > { %18776 = vmatpush3.bf16.msra.mxu0 %v15953_v36  ;;  %18778 = vmatprep.subr.bf16.mxu1 %v15970_v56 }
0x3b06   : > { %18810 = vmatprep.subr.bf16.mxu0 %v15986_v35 }
0x3b07   : > { %12026 = vmatmul.mubr.f32.vlgmr.msra.gmra.mrb[106].mxu1 %v11669_v2 }
0x3b08   : > { %12096 = vmatmul.mubr.f32.vlgmr.msra.gmra.mrb[120].mxu0 %v11671_v13  ;;  %18780 = vmatpush3.bf16.msra.mxu1 %v15962_v11 }
0x3b09   : > { %12165 = vmatprep.mubr.f32.mxu1 %v11674_v3  ;;  %18812 = vmatpush3.bf16.msra.mxu0 %v15978_v54 }
0x3b0a   : > { %12235 = vmatprep.mubr.f32.mxu0 %v11676_v26  ;;  %18782 = vmatprep.subr.bf16.mxu1 %v15971_v57 }
0x3b0b   : > { %18814 = vmatprep.subr.bf16.mxu0 %v15987_v22 }
0x3b0c   : > { %18784 = vmatpush3.bf16.msra.mxu1 %v15963_v19 }
0x3b0d   : > { %18816 = vmatpush3.bf16.msra.mxu0 %v15979_v23  ;;  %18786 = vmatprep.subr.bf16.mxu1 %v15972_v27 }
0x3b0e   : > { %18818 = vmatprep.subr.bf16.mxu0 %v15988_v42 }
0x3b10   : > { %18788 = vmatpush3.bf16.msra.mxu1 %v15964_v7 }
0x3b11   : > { %18820 = vmatpush3.bf16.msra.mxu0 %v15980_v52  ;;  %18790 = vmatprep.subr.bf16.mxu1 %v15973_v5 }
0x3b12   : > { %18822 = vmatprep.subr.bf16.mxu0 %v15989_v53 }
0x3b14   : > { %18792 = vmatpush3.bf16.msra.mxu1 %v15965_v51 }
0x3b15   : > { %18824 = vmatpush3.bf16.msra.mxu0 %v15981_v6  ;;  %18794 = vmatprep.subr.bf16.mxu1 %v15974_v17  ;;  %v12272_v17 = vld [vmem:[%s22286_s10] sm:$0xff] }
0x3b16   : > { %18826 = vmatprep.subr.bf16.mxu0 %v15990_v33  ;;  %v12273_v33 = vld [vmem:[%s22286_s10 + $0x8] sm:$0xff] }
0x3b18   : > { %18796 = vmatpush3.bf16.msra.mxu1 %v15966_v8  ;;  %v18842_v8 = vpack.c.bf16 %v12273_v33, %v12272_v17 }
0x3b19   : > { %18828 = vmatpush3.bf16.msra.mxu0 %v15982_v20  ;;  %18798 = vmatprep.subr.bf16.mxu1 %v15975_v12  ;;  %v12275_v20 = vld [vmem:[%s22286_s10 + $0x18] sm:$0xff] }
0x3b1a   : > { %18830 = vmatprep.subr.bf16.mxu0 %v15991_v60 }
0x3b1c   : > { %18800 = vmatpush3.bf16.msra.mxu1 %v15967_v10 }
0x3b1d   : > { %18832 = vmatpush3.bf16.msra.mxu0 %v15983_v18  ;;  %18802 = vmatprep.subr.bf16.mxu1 %v15976_v21  ;;  %v19111_v21 = vld [vmem:[%s22282_s6 + $0x18] sm:$0x3f] }
0x3b1e   : > { %18834 = vmatprep.subr.bf16.mxu0 %v15992_v24  ;;  %v12258_v24 = vrot.slane %v19111_v21, %v19794_v47  ;;  %v12276_v47 = vld [vmem:[%s22349_s27] sm:$0x1] }
0x3b20   : > { %18804 = vmatpush3.bf16.msra.mxu1 %v15968_v29  ;;  %v12263_v29 = vrot.slane %v19111_v21, %v19704_v55 }
0x3b21   : > { %18836 = vmatpush3.bf16.msra.mxu0 %v15984_v30  ;;  %18806 = vmatprep.subr.bf16.mxu1 %v15977_v38 }
0x3b22   : > { %18838 = vmatprep.subr.bf16.mxu0 %v15993_v39 }
0x3b24   : > { %18808 = vmatpush3.bf16.msra.mxu1 %v15969_v40 }
0x3b25   : > { %18840 = vmatpush3.bf16.msra.mxu0 %v15985_v41  ;;  %18841 = vmatprep.subr.bf16.mxu1 %v19178_v4 }
0x3b27   : > { %12166 = vmatmul.mubr.f32.vlgmr.msra.gmra.mrb[108].mxu1 %v11673_v9 }
0x3b28   : > { %12236 = vmatmul.mubr.f32.vlgmr.msra.gmra.mrb[122].mxu0 %v11675_v46  ;;  %17534 = vmatprep.mubr.msk.f32.mxu1 %vm19177_vm1, %v19176_v1 }
0x3b29   : > { %18843 = vmatpush3.bf16.msra.mxu1 %v18842_v8 }
0x3b2a   : > { %18844 = vmatprep.subr.bf16.mxu1 %v19178_v4 }
0x3b9a   : > { %v16984_v15 = vpop.f32.mrb[102].mxu1  ;;  %v17019_v16 = vpop.f32.mrb[116].mxu0 }
0x3b9b   : > { %v16985_v59 = vpop.f32.mrb[103].mxu1  ;;  %v17020_v44 = vpop.f32.mrb[117].mxu0 }
0x3b9c   : > { %v16986_v61 = vadd.f32 %v16985_v59, %v16984_v15  ;;  %v17021_v25 = vadd.f32 %v17020_v44, %v17019_v16 }
0x3b9e   : > { %v11748_v34 = vadd.f32 %v16986_v61, %v11680_v45 }
0x3ba0   : > { %v11818_v48 = vadd.f32 %v17021_v25, %v11748_v34 }
0x3bba   : > { %v17054_v63 = vpop.f32.mrb[104].mxu1  ;;  %v17089_v14 = vpop.f32.mrb[118].mxu0 }
0x3bbb   : > { %v17055_v50 = vpop.f32.mrb[105].mxu1  ;;  %v17090_v32 = vpop.f32.mrb[119].mxu0 }
0x3bbc   : > { %v17056_v0 = vadd.f32 %v17055_v50, %v17054_v63  ;;  %v17091_v36 = vadd.f32 %v17090_v32, %v17089_v14 }
0x3bbe   : > { %v11888_v56 = vadd.f32 %v17056_v0, %v11818_v48 }
0x3bc0   : > { %v11958_v62 = vadd.f32 %v17091_v36, %v11888_v56 }
0x3bda   : > { %v17124_v1 = vpop.f32.mrb[106].mxu1 }
0x3bdb   : > { %v17159_v35 = vpop.f32.mrb[120].mxu0  ;;  %v17125_v37 = vpop.f32.mrb[107].mxu1 }
0x3bdc   : > { %v17126_v2 = vadd.f32 %v17125_v37, %v17124_v1  ;;  %v17160_v11 = vpop.f32.mrb[121].mxu0 }
0x3bdd   : > { %v17161_v43 = vadd.f32 %v17160_v11, %v17159_v35 }
0x3bde   : > { %v12028_v58 = vadd.f32 %v17126_v2, %v11958_v62 }
0x3be0   : > { %v12098_v13 = vadd.f32 %v17161_v43, %v12028_v58 }
0x3bfa   : > { %v17194_v54 = vpop.f32.mrb[108].mxu1 }
0x3bfb   : > { %v17229_v3 = vpop.f32.mrb[122].mxu0  ;;  %v17195_v57 = vpop.f32.mrb[109].mxu1 }
0x3bfc   : > { %v17196_v26 = vadd.f32 %v17195_v57, %v17194_v54  ;;  %v17230_v22 = vpop.f32.mrb[123].mxu0 }
0x3bfd   : > { %v17231_v19 = vadd.f32 %v17230_v22, %v17229_v3 }
0x3bfe   : > { %v12168_v23 = vadd.f32 %v17196_v26, %v12098_v13 }
0x3c00   : > { %v12238_v27 = vadd.f32 %v17231_v19, %v12168_v23 }
0x3c02   : > { %v12241_v42 = vadd.f32 %v12238_v27, %v21676_v49  ;;  %v12274_v49 = vld [vmem:[%s22286_s10 + $0x10] sm:$0xff] }
0x3c03   : > { %v18845_v12 = vpack.c.bf16 %v12275_v20, %v12274_v49 }
0x3c04   : > { %v12242_v7 = vsel %vm1115_vm3, %v12241_v42, 0.0 }
0x3c05   : > { %12243 = vadd.xlane.f32.xlu1 %v12242_v7  ;;  %18846 = vmatpush3.bf16.msra.mxu1 %v18845_v12 }
0x3c92   : > { %v12244_v52 = vpop.xlane.xlu1 %12243 }
0x3c93   : > { %v12245_v5 = vmul.f32 0.03125, %v12244_v52 }
0x3c95   : > { %v12246_v53 = vsub.f32 %v12241_v42, %v12245_v5 }
0x3c97   : > { %v12247_v51 = vmul.f32 %v12246_v53, %v12246_v53 }
0x3c99   : > { %v12248_v6 = vsel %vm1115_vm3, %v12247_v51, 0.0 }
0x3c9a   : > { %12249 = vadd.xlane.f32.xlu1 %v12248_v6 }
0x3d27   : > { %v12250_v60 = vpop.xlane.xlu1 %12249 }
0x3d28   : > { %v12251_v10 = vmul.f32 0.03125, %v12250_v60 }
0x3d2a   : > { %v12252_v18 = vadd.f32 1e-05, %v12251_v10 }
0x3d2c   : > { %19106 = vrsqrt.f32 %v12252_v18 }
0x3d36   : > { %v19107_v28 = vpop.eup %19106 }
0x3d37   : > { %v12254_v30 = vmul.f32 %v19107_v28, %v12246_v53 }
0x3d39   : > { %v12259_v38 = vmul.f32 %v12258_v24, %v12254_v30 }
0x3d3b   : > { %v12264_v39 = vadd.f32 %v12263_v29, %v12259_v38 }
0x3d3d   : > { %v12265_v4 = vsel %vm1115_vm3, %v12264_v39, 0.0 }
0x3d3e   : > { %v12266_v31 = vrot.slane %v12265_v4, 4 }
0x3d40   : > { %v12267_v40 = vadd.f32 %v12266_v31, %v12265_v4 }
0x3d42   : > { %v12268_v41 = vrot.slane %v12267_v40, 2 }
0x3d44   : > { %v12269_v9 = vadd.f32 %v12268_v41, %v12267_v40 }
0x3d46   : > { %v12270_v46 = vrot.slane %v12269_v9, 1 }
0x3d48   : > { %v12271_v15 = vadd.f32 %v12270_v46, %v12269_v9 }
0x3d4a   : > { %17535 = vmatmul.mubr.msk.f32.vlgmr.msra.gmra.mrb[110].mxu1 %vm1115_vm3, %v12271_v15 }
0x3e1d   : > { %v12346_v55 = vpop.f32.mrb[110].mxu1 }
0x3e1e   : > { %v12347_v16 = vadd.f32 %v12346_v55, %v12276_v47  ;;  %v17536_v45 = vpop.f32.mrb[111].mxu1 }
0x3e20   : > { %12351 = vst.msk [vmem:[%s403_s14] sm:$0x1] %vm12350_vm5, %v12347_v16 }
0x3e21   : > { %19125 = shalt.err (!%p19122_p3)
}
0x3e22   : > { %s19126_s29 = scalar_lea.hbm %s22234_s2, 16  ;;  %s19130_s20 = scalar_lea.hbm %s22351_s30, 32 }
0x3e23   : > { %p19127_p4 = scmp.ne.s32.totalorder %s22234_s2, %s19126_s29  ;;  %p19131_p9 = scmp.lt.u32.totalorder %s22234_s2, %s22351_s30 }
0x3e24   : > { %p19132_p10 = scmp.lt.u32.totalorder %s19130_s20, %s19126_s29  ;;  %p19134_p12 = scmp.lt.u32.totalorder %s19126_s29, %s22234_s2 }
0x3e25   : > { %p19128_p7 = pnand %p19127_p4, %p19294_p5 }
0x3e26   : > { %p19133_p11 = por %p19132_p10, %p19131_p9 }
0x3e27   : > { %p19129_p8 = pneg %p19128_p7 }
0x3e28   : > { %p19135_p13 = por %p19134_p12, %p19133_p11 }
0x3e2a   : > { %p19136_p0 = pnand %p19135_p13, %p19129_p8 }
0x3e2c   : > { %19139 = shalt.err (!%p19136_p0)
}
0x3e2d   : > { %18975 = dma.vmem_to_hbm [thread:$0]  (%p19294_p5), %s22236_s12, 16, %s22234_s2, %s12353_s17  }
0x3e2e PF: > { %s22352_s23 = sld [smem:[#allocation7_spill]]  ;;  %s22353_s27 = sld [smem:[#allocation5_spill]] }
0x3e34   : > { %p18981_p1 = scmp.ge.s32.totalorder %s22352_s23, 2  ;;  %s12377_s14 = sand.u32 1, %s22353_s27  }
0x3e35   : > { %s12378_s11 = scalar_lea.sflag [#allocation3], %s12377_s14 }
0x3e36   : > { %p18978_p2 = pnand %p18981_p1, %p19298_p6 }
0x3e38   : > { %19157 = dma.done.wait (!%p18978_p2), %s12378_s11, 16  }
0x3e39   : > { %19159 = vsyncadd (!%p18978_p2), %s12378_s11, 4294967280  ;;  %s22355_s24 = sld [smem:[#allocation8_spill]]  ;;  %s22356_s13 = sld [smem:[#allocation6_spill]] }
0x3e3a   : > { %s22357_s23 = sld [smem:[#allocation9_spill]]  ;;  %s22358_s21 = smov %s19166_s22 }
0x3e3f   : > { %p22_p3 = scmp.ge.s32.totalorder %s22355_s24, 4   ;;  %s22359_s22 = smov %s22356_s13 }
0x3e41   :  { %24 = sbr.rel (!%p22_p3) target bundleno = 9 (0x9), region = 124 }
0x3e48   :  { %12382 = vsyncpa [#allocation3], 1 }
0x3e49   :  { %12384 = vsyncpa [#allocation3 + $0x1], 1 }

</bundles_post_ra>
